<compile_context>
chip_gen: v5e
topology: v5e:2x2
jax: 0.10.0
libtpu: 0.0.40
codegen_flags: <defaults>
</compile_context>

<pallas_src>
import functools

import numpy as np
import jax
import jax.numpy as jnp
from jax.experimental import pallas as pl
from jax.experimental.pallas import tpu as pltpu

EPS = 1e-5                                   # PyTorch BatchNorm2d default
CP = 32                                      # padded class/channel width (21 -> 32)
_VMEM_LIMIT = 48 * 1024 * 1024               # <= v7x 64 MiB physical VMEM


def _cparams(n_axes):
    return pltpu.CompilerParams(
        dimension_semantics=("parallel",) * n_axes,
        vmem_limit_bytes=_VMEM_LIMIT,
    )


def _round_up(x, m):
    return (x + m - 1) // m * m


def _pad_vec(v, cp):
    return jnp.zeros((cp,), jnp.float32).at[: v.shape[0]].set(v)


def _pad_cols(w, cp):
    return jnp.zeros((w.shape[0], cp), jnp.float32).at[:, : w.shape[1]].set(w)


# -----------------------------------------------------------------------------
# Kernel A: 1x1 conv (pixels x channels matmul) + bias + ReLU, emitting pre-BN
# activations plus per-tile (sum, sum_sq) partials for the two-pass BatchNorm.
# -----------------------------------------------------------------------------
def _pconv_kernel(x_ref, w_ref, b_ref, y_ref, st_ref, *, m_batch, tm):
    j = pl.program_id(1)
    x = x_ref[...].reshape(tm, -1)
    y = jnp.dot(x, w_ref[...], preferred_element_type=jnp.float32)
    y = jnp.maximum(y + b_ref[...], 0.0)
    y_ref[...] = y[None]
    # Mask rows past the true per-batch pixel count (partial edge tile) out of
    # the BN statistics.
    rows = jax.lax.broadcasted_iota(jnp.int32, (tm, 1), 0) + j * tm
    yv = jnp.where(rows < m_batch, y, 0.0)
    s1 = jnp.sum(yv, axis=0, keepdims=True)
    s2 = jnp.sum(yv * yv, axis=0, keepdims=True)
    st_ref[...] = jnp.concatenate([s1, s2], axis=0)[None, None]


def pointwise_conv_relu(x_nchw, w_pad, b_pad):
    """Returns (pre-BN (n, h*w, CP) activations, per-channel sum, sum_sq, count)."""
    n, cin, h, wd = x_nchw.shape
    m = h * wd
    cp = w_pad.shape[1]
    xf = jnp.transpose(x_nchw, (0, 2, 3, 1)).reshape(n, m, cin)   # NCHW -> (pixels, Cin)
    tm = min(512, _round_up(m, 8))
    nt = pl.cdiv(m, tm)
    y, st = pl.pallas_call(
        functools.partial(_pconv_kernel, m_batch=m, tm=tm),
        out_shape=(jax.ShapeDtypeStruct((n, m, cp), jnp.float32),
                   jax.ShapeDtypeStruct((n, nt, 2, cp), jnp.float32)),
        grid=(n, nt),
        in_specs=[pl.BlockSpec((1, tm, cin), lambda b, j: (b, j, 0)),
                  pl.BlockSpec((cin, cp), lambda b, j: (0, 0)),
                  pl.BlockSpec((1, cp), lambda b, j: (0, 0))],
        out_specs=(pl.BlockSpec((1, tm, cp), lambda b, j: (b, j, 0)),
                   pl.BlockSpec((1, 1, 2, cp), lambda b, j: (b, j, 0, 0))),
        compiler_params=_cparams(2),
    )(xf, w_pad, b_pad.reshape(1, cp))
    sums = jnp.sum(st, axis=(0, 1))                               # (2, CP)
    return y, sums[0], sums[1], jnp.float32(n * m)


# -----------------------------------------------------------------------------
# Kernel B: phase-decomposed ConvTranspose2d (K = 2*stride, pad = stride/2)
# + bias + ReLU.  One im2col-style matmul per grid step:
#   (tq*w, 9*CP) @ (9*CP, tile_n), with the folded N dim s^2*CP tiled by the
# grid so the accumulator stays register-resident.  Emits phase-major pre-BN
# output + per-tile BN partials.
# -----------------------------------------------------------------------------
def _fold_deconv_weight(w_t, stride, cp):
    # w_t: (Cin, Cout, K, K) PyTorch ConvTranspose2d weight (unpadded channels).
    cin, cout, K, _ = w_t.shape
    s = stride
    p = s // 2
    assert K == 2 * s, "phase folding assumes kernel_size == 2*stride"
    r = np.arange(s)
    a = np.arange(3)
    k_idx = r[None, :] + p - (a[:, None] - 1) * s           # tap for (shift a, phase r)
    valid = (k_idx >= 0) & (k_idx < K)
    k_idx = np.clip(k_idx, 0, K - 1)
    wp = jnp.zeros((cp, cp, K, K), jnp.float32).at[:cin, :cout].set(w_t)
    w = jnp.transpose(wp, (2, 3, 0, 1))                      # (K, K, CP, CP)
    wg = w[k_idx[:, :, None, None], k_idx[None, None, :, :]]   # (3, s, 3, s, CP, CP)
    mask = (valid[:, :, None, None] & valid[None, None, :, :]).astype(np.float32)
    wg = wg * jnp.asarray(mask)[..., None, None]
    wg = jnp.transpose(wg, (0, 2, 4, 1, 3, 5))               # (ay, ax, ci, ry, rx, co)
    return wg.reshape(9 * cp, s * s * cp)                    # rows: (ay*3+ax)*CP + ci


def _deconv_row_tile(h, w, tile_n, max_elems=128 * 256):
    cap = max(1, max_elems // (tile_n * w))                  # keep acc <= ~32 vregs
    best = 1
    for t in range(1, h + 1):
        if h % t == 0 and t <= cap:
            best = t
    return best


def _deconv_kernel(x_ref, w_ref, b_ref, y_ref, st_ref, *, tq, wq, cin):
    q = pl.program_id(1)
    row0 = q * tq
    taps = []
    for ay in range(3):
        for ax in range(3):
            taps.append(x_ref[0, pl.ds(row0 + ay, tq), pl.ds(ax, wq), :])
    xim = jnp.concatenate(taps, axis=-1).reshape(tq * wq, 9 * cin)
    y = jnp.dot(xim, w_ref[...], preferred_element_type=jnp.float32)
    y = jnp.maximum(y + b_ref[...], 0.0)                      # bias + ReLU
    y_ref[...] = y.reshape(1, tq, wq, -1)
    s1 = jnp.sum(y, axis=0, keepdims=True)
    s2 = jnp.sum(y * y, axis=0, keepdims=True)
    st_ref[...] = jnp.concatenate([s1, s2], axis=0)[None, None]


def deconv_stage(x_nhwc, w_fold, b_ps, stride):
    """Returns (phase-major pre-BN output (n,h,w,s^2*CP), per-C sum, sum_sq, count)."""
    n, h, w, cp = x_nhwc.shape
    s = stride
    cps = s * s * cp
    xp = jnp.pad(x_nhwc, ((0, 0), (1, 1), (1, 1), (0, 0)))   # 1-pixel halo, no zero-insert
    tile_n = cps if cps <= 256 else s * cp                   # 128 (s=2) / 256 (s=8)
    nnt = cps // tile_n
    tq = _deconv_row_tile(h, w, tile_n)
    nqt = h // tq
    y_ps, st = pl.pallas_call(
        functools.partial(_deconv_kernel, tq=tq, wq=w, cin=cp),
        out_shape=(jax.ShapeDtypeStruct((n, h, w, cps), jnp.float32),
                   jax.ShapeDtypeStruct((n, nqt, 2, cps), jnp.float32)),
        grid=(n, nqt, nnt),
        in_specs=[pl.BlockSpec((1, h + 2, w + 2, cp), lambda b, q, t: (b, 0, 0, 0)),
                  pl.BlockSpec((9 * cp, tile_n), lambda b, q, t: (0, t)),
                  pl.BlockSpec((1, tile_n), lambda b, q, t: (0, t))],
        out_specs=(pl.BlockSpec((1, tq, w, tile_n), lambda b, q, t: (b, q, 0, t)),
                   pl.BlockSpec((1, 1, 2, tile_n), lambda b, q, t: (b, q, 0, t))),
        compiler_params=_cparams(3),
    )(xp, w_fold, b_ps.reshape(1, cps))
    sums = jnp.sum(st, axis=(0, 1))                           # (2, s^2*CP)
    sum_c = jnp.sum(sums[0].reshape(s * s, cp), axis=0)
    sq_c = jnp.sum(sums[1].reshape(s * s, cp), axis=0)
    return y_ps, sum_c, sq_c, jnp.float32(n * h * w * s * s)


# -----------------------------------------------------------------------------
# Kernel C: fused depth-to-space + BN affine (+ BN-affine skip add).
# Output buffer is (n, h, s, w, s*CP) which is bit-identical memory to NHWC
# (n, h*s, w*s, CP): the in-kernel shuffle is s static lane slices written to
# s static row-phase positions; the final pixel shuffle is a free reshape.
# -----------------------------------------------------------------------------
def _shuffle_affine_kernel(y_ref, sc_ref, sh_ref, o_ref, *, s, cp):
    y = y_ref[...] * sc_ref[...] + sh_ref[...]                # (1, tq, w, s*s*CP)
    for ry in range(s):
        o_ref[0, :, ry, :, :] = y[0, :, :, ry * s * cp:(ry + 1) * s * cp]


def _shuffle_affine_skip_kernel(y_ref, sc_ref, sh_ref, k_ref, ksc_ref, ksh_ref,
                                o_ref, *, s, cp):
    y = y_ref[...] * sc_ref[...] + sh_ref[...]                # (1, tq, w, s*s*CP)
    k = k_ref[...] * ksc_ref[...] + ksh_ref[...]              # (1, tq, s, w, s*CP)
    for ry in range(s):
        o_ref[0, :, ry, :, :] = (y[0, :, :, ry * s * cp:(ry + 1) * s * cp]
                                 + k[0, :, ry, :, :])


def _shuffle_row_tile(h, w, s, cp, budget=4 << 20):
    per_row = w * s * s * cp * 4 * 3
    best = 1
    for t in range(1, h + 1):
        if h % t == 0 and t * per_row <= budget:
            best = t
    return best


def shuffle_affine(y_ps, scale_c, shift_c, stride, skip=None, kscale=None, kshift=None):
    """Fused depth_to_space + BN affine (+ BN-affine skip add). Returns NHWC."""
    n, h, w, cps = y_ps.shape
    s = stride
    cp = cps // (s * s)
    tq = _shuffle_row_tile(h, w, s, cp)
    nqt = h // tq
    sc = jnp.tile(scale_c, s * s).reshape(1, 1, 1, cps)
    sh = jnp.tile(shift_c, s * s).reshape(1, 1, 1, cps)
    y_spec = pl.BlockSpec((1, tq, w, cps), lambda b, q: (b, q, 0, 0))
    v_spec = pl.BlockSpec((1, 1, 1, cps), lambda b, q: (0, 0, 0, 0))
    o_spec = pl.BlockSpec((1, tq, s, w, s * cp), lambda b, q: (b, q, 0, 0, 0))
    if skip is None:
        kern = functools.partial(_shuffle_affine_kernel, s=s, cp=cp)
        args = [y_ps, sc, sh]
        in_specs = [y_spec, v_spec, v_spec]
    else:
        kern = functools.partial(_shuffle_affine_skip_kernel, s=s, cp=cp)
        skip5 = skip.reshape(n, h, s, w, s * cp)              # free view of NHWC skip
        ksc = jnp.tile(kscale, s).reshape(1, 1, 1, 1, s * cp)
        ksh = jnp.tile(kshift, s).reshape(1, 1, 1, 1, s * cp)
        kv_spec = pl.BlockSpec((1, 1, 1, 1, s * cp), lambda b, q: (0, 0, 0, 0, 0))
        args = [y_ps, sc, sh, skip5, ksc, ksh]
        in_specs = [y_spec, v_spec, v_spec, o_spec, kv_spec, kv_spec]
    out5 = pl.pallas_call(
        kern,
        out_shape=jax.ShapeDtypeStruct((n, h, s, w, s * cp), jnp.float32),
        grid=(n, nqt),
        in_specs=in_specs,
        out_specs=o_spec,
        compiler_params=_cparams(2),
    )(*args)
    return out5.reshape(n, h * s, w * s, cp)                  # contiguous -> free


# -----------------------------------------------------------------------------
# Kernel D: tiny lane-dense per-channel affine (used only for bn1 on t5).
# -----------------------------------------------------------------------------
def _affine_kernel(y_ref, sc_ref, sh_ref, o_ref):
    o_ref[...] = y_ref[...] * sc_ref[...] + sh_ref[...]


def affine_nhwc(y, scale_c, shift_c):
    n, h, w, cp = y.shape
    l = w * cp
    out = pl.pallas_call(
        _affine_kernel,
        out_shape=jax.ShapeDtypeStruct((n, h, l), jnp.float32),
        grid=(n,),
        in_specs=[pl.BlockSpec((1, h, l), lambda b: (b, 0, 0)),
                  pl.BlockSpec((1, 1, l), lambda b: (0, 0, 0)),
                  pl.BlockSpec((1, 1, l), lambda b: (0, 0, 0))],
        out_specs=pl.BlockSpec((1, h, l), lambda b: (b, 0, 0)),
        compiler_params=_cparams(1),
    )(y.reshape(n, h, l),
      jnp.tile(scale_c, w).reshape(1, 1, l),
      jnp.tile(shift_c, w).reshape(1, 1, l))
    return out.reshape(n, h, w, cp)


def _bn_affine(sum_c, sumsq_c, count, gamma, beta, eps=EPS):
    # TODO(synk): E[x^2]-E[x]^2 in f32 can cancel for very large pixel counts;
    # switch to Welford-style partials if that ever matters.
    mu = sum_c / count
    var = jnp.maximum(sumsq_c / count - mu * mu, 0.0)
    scale = gamma * jax.lax.rsqrt(var + eps)
    shift = beta - mu * scale
    return scale, shift


# -----------------------------------------------------------------------------
# Deterministic parameter construction (shapes from FCN8.__init__).
# -----------------------------------------------------------------------------
def bilinear_init(in_channels, out_channels, kernel_size):
    factor = (kernel_size + 1) // 2
    if kernel_size % 2 == 1:
        center = factor - 1
    else:
        center = factor - 0.5
    og = np.ogrid[:kernel_size, :kernel_size]
    filt = (1 - abs(og[0] - center) / factor) * (1 - abs(og[1] - center) / factor)
    weight = np.zeros((in_channels, out_channels, kernel_size, kernel_size), dtype='float32')
    weight[range(in_channels), range(out_channels), :, :] = filt
    return jnp.asarray(weight)


def init_params(key, in_channel=512, num_classes=21):
    c = num_classes
    ks = jax.random.split(key, 6)

    def conv1x1_init(k, cin):
        bound = 1.0 / np.sqrt(cin)
        kw_, kb_ = jax.random.split(k)
        w = jax.random.uniform(kw_, (cin, c), jnp.float32, -bound, bound)
        bb = jax.random.uniform(kb_, (c,), jnp.float32, -bound, bound)
        return w, bb

    p = {}
    p['w1'], p['b1'] = conv1x1_init(ks[0], in_channel)            # Conv1x1
    p['w4'], p['b4'] = conv1x1_init(ks[1], in_channel // 2)       # Conv1x1_x4
    p['w3'], p['b3'] = conv1x1_init(ks[2], in_channel // 4)       # Conv1x1_x3
    p['bn1_g'], p['bn1_b'] = jnp.ones((c,), jnp.float32), jnp.zeros((c,), jnp.float32)
    p['dcn2_w'] = bilinear_init(c, c, 4)                          # (Cin, Cout, K, K)
    p['dcn4_w'] = bilinear_init(c, c, 4)
    p['dcn8_w'] = bilinear_init(c, c, 16)
    bnd4 = 1.0 / np.sqrt(c * 4 * 4)
    bnd16 = 1.0 / np.sqrt(c * 16 * 16)
    p['dcn2_b'] = jax.random.uniform(ks[3], (c,), jnp.float32, -bnd4, bnd4)
    p['dcn4_b'] = jax.random.uniform(ks[4], (c,), jnp.float32, -bnd4, bnd4)
    p['dcn8_b'] = jax.random.uniform(ks[5], (c,), jnp.float32, -bnd16, bnd16)
    for name in ('dbn2', 'dbn4', 'dbn8'):
        p[name + '_g'] = jnp.ones((c,), jnp.float32)
        p[name + '_b'] = jnp.zeros((c,), jnp.float32)
    return p


# -----------------------------------------------------------------------------
# FCN8 forward (decoder part; backbone features given as NCHW inputs).
# -----------------------------------------------------------------------------
@jax.jit
def fcn8_forward(x3, x4, x5, p):
    cp = CP
    g1 = _pad_vec(p['bn1_g'], cp)
    bb1 = _pad_vec(p['bn1_b'], cp)
    n, _, h5, w5 = x5.shape
    _, _, h4, w4 = x4.shape
    _, _, h3, w3 = x3.shape

    # x = bn1(relu(Conv1x1(x5)))
    t5_raw, s5, q5, c5 = pointwise_conv_relu(x5, _pad_cols(p['w1'], cp), _pad_vec(p['b1'], cp))
    sc5, sh5 = _bn_affine(s5, q5, c5, g1, bb1)
    t5 = affine_nhwc(t5_raw.reshape(n, h5, w5, cp), sc5, sh5)

    # x4 = bn1(relu(Conv1x1_x4(x4)))  (BN folded into the DCN2 skip-add kernel)
    t4_raw, s4, q4, c4 = pointwise_conv_relu(x4, _pad_cols(p['w4'], cp), _pad_vec(p['b4'], cp))
    sc4, sh4 = _bn_affine(s4, q4, c4, g1, bb1)

    # x = dbn2(relu(DCN2(x))) + x4
    wf2 = _fold_deconv_weight(p['dcn2_w'], 2, cp)
    bp2 = jnp.tile(_pad_vec(p['dcn2_b'], cp), 4)
    y2, s2, q2, c2 = deconv_stage(t5, wf2, bp2, 2)
    sc2, sh2 = _bn_affine(s2, q2, c2, _pad_vec(p['dbn2_g'], cp), _pad_vec(p['dbn2_b'], cp))
    r2 = shuffle_affine(y2, sc2, sh2, 2,
                        skip=t4_raw.reshape(n, h4, w4, cp), kscale=sc4, kshift=sh4)

    # x3 = bn1(relu(Conv1x1_x3(x3)))  (BN folded into the DCN4 skip-add kernel)
    t3_raw, s3, q3, c3 = pointwise_conv_relu(x3, _pad_cols(p['w3'], cp), _pad_vec(p['b3'], cp))
    sc3, sh3 = _bn_affine(s3, q3, c3, g1, bb1)

    # x = dbn4(relu(DCN4(x))) + x3
    wf4 = _fold_deconv_weight(p['dcn4_w'], 2, cp)
    bp4 = jnp.tile(_pad_vec(p['dcn4_b'], cp), 4)
    y4, s4d, q4d, c4d = deconv_stage(r2, wf4, bp4, 2)
    sc4d, sh4d = _bn_affine(s4d, q4d, c4d, _pad_vec(p['dbn4_g'], cp), _pad_vec(p['dbn4_b'], cp))
    r4 = shuffle_affine(y4, sc4d, sh4d, 2,
                        skip=t3_raw.reshape(n, h3, w3, cp), kscale=sc3, kshift=sh3)

    # x = dbn8(relu(DCN8(x)))
    wf8 = _fold_deconv_weight(p['dcn8_w'], 8, cp)
    bp8 = jnp.tile(_pad_vec(p['dcn8_b'], cp), 64)
    y8, s8, q8, c8 = deconv_stage(r4, wf8, bp8, 8)
    sc8, sh8 = _bn_affine(s8, q8, c8, _pad_vec(p['dbn8_g'], cp), _pad_vec(p['dbn8_b'], cp))
    out = shuffle_affine(y8, sc8, sh8, 8)

    nc = p['b1'].shape[0]                                      # strip channel padding
    return jnp.transpose(out[..., :nc], (0, 3, 1, 2))          # NHWC -> NCHW


if __name__ == "__main__":
    key = jax.random.PRNGKey(0)
    kp, k3, k4, k5 = jax.random.split(key, 4)
    params = init_params(kp, in_channel=512, num_classes=21)

    # Small backbone feature maps (strides 32 / 16 / 8 of a hypothetical image):
    x5 = jax.random.normal(k5, (2, 512, 2, 4), jnp.float32)
    x4 = jax.random.normal(k4, (2, 256, 4, 8), jnp.float32)
    x3 = jax.random.normal(k3, (2, 128, 8, 16), jnp.float32)

    out = jax.block_until_ready(fcn8_forward(x3, x4, x5, params))
    assert out.shape == (2, 21, 64, 128), out.shape
    assert bool(jnp.all(jnp.isfinite(out))), "non-finite output"
    print("KERNEL_OK")
</pallas_src>

<mosaic_0001>
module attributes {stable_mosaic.version = 11 : i64} {
  func.func @_pconv_kernel(%arg0: i32, %arg1: i32, %arg2: memref<1x8x512xf32, #tpu.memory_space<vmem>>, %arg3: memref<512x32xf32, #tpu.memory_space<vmem>>, %arg4: memref<1x32xf32, #tpu.memory_space<vmem>>, %arg5: memref<1x8x32xf32, #tpu.memory_space<vmem>>, %arg6: memref<1x1x2x32xf32, #tpu.memory_space<vmem>>) attributes {dimension_semantics = [#tpu.dimension_semantics<parallel>, #tpu.dimension_semantics<parallel>], iteration_bounds = array<i64: 2, 1>, scalar_prefetch = 0 : i64, scratch_operands = 0 : i64, tpu.core_type = #tpu.core_type<tc>, window_params = [{transform_indices = @transform_0, window_bounds = array<i64: 1, 8, 512>}, {pipeline_mode = #tpu.pipeline_mode<synchronous>, transform_indices = @transform_1, window_bounds = array<i64: 512, 32>}, {pipeline_mode = #tpu.pipeline_mode<synchronous>, transform_indices = @transform_2, window_bounds = array<i64: 1, 32>}, {transform_indices = @transform_3, window_bounds = array<i64: 1, 8, 32>}, {transform_indices = @transform_4, window_bounds = array<i64: 1, 1, 2, 32>}]} {
    %c0 = arith.constant 0 : index
    %c0_0 = arith.constant 0 : index
    %c0_1 = arith.constant 0 : index
    %0 = vector.load %arg2[%c0, %c0_0, %c0_1] : memref<1x8x512xf32, #tpu.memory_space<vmem>>, vector<1x8x512xf32>
    %1 = vector.shape_cast %0 : vector<1x8x512xf32> to vector<8x512xf32>
    %c0_2 = arith.constant 0 : index
    %c0_3 = arith.constant 0 : index
    %2 = vector.load %arg3[%c0_2, %c0_3] : memref<512x32xf32, #tpu.memory_space<vmem>>, vector<512x32xf32>
    %cst = arith.constant dense<0.000000e+00> : vector<8x32xf32>
    %3 = tpu.matmul %1, %2, %cst {dimension_numbers = #tpu.dot_dimension_numbers<[1], [0], [0], [1], [0, 0, 1, 1], [], []>} : vector<8x512xf32>, vector<512x32xf32>, vector<8x32xf32> -> vector<8x32xf32>
    %c0_4 = arith.constant 0 : index
    %c0_5 = arith.constant 0 : index
    %4 = vector.load %arg4[%c0_4, %c0_5] : memref<1x32xf32, #tpu.memory_space<vmem>>, vector<1x32xf32>
    %5 = vector.broadcast %4 : vector<1x32xf32> to vector<8x32xf32>
    %6 = arith.addf %3, %5 : vector<8x32xf32>
    %cst_6 = arith.constant 0.000000e+00 : f32
    %7 = vector.broadcast %cst_6 : f32 to vector<8x32xf32>
    %8 = arith.maximumf %6, %7 : vector<8x32xf32>
    %9 = vector.shape_cast %8 : vector<8x32xf32> to vector<1x8x32xf32>
    %c0_7 = arith.constant 0 : index
    %c0_8 = arith.constant 0 : index
    %c0_9 = arith.constant 0 : index
    %10 = vector.load %arg5[%c0_7, %c0_8, %c0_9] : memref<1x8x32xf32, #tpu.memory_space<vmem>>, vector<1x8x32xf32>
    tpu.vector_store %arg5[%c0_7, %c0_8, %c0_9], %9 {strides = array<i32>} : memref<1x8x32xf32, #tpu.memory_space<vmem>>, vector<1x8x32xf32>,
    %11 = tpu.iota {dimensions = array<i32: 0>} : vector<8x1xi32>
    %c8_i32 = arith.constant 8 : i32
    %12 = arith.muli %arg1, %c8_i32 : i32
    %13 = vector.broadcast %12 : i32 to vector<8x1xi32>
    %14 = arith.addi %11, %13 : vector<8x1xi32>
    %c8_i32_10 = arith.constant 8 : i32
    %15 = vector.broadcast %c8_i32_10 : i32 to vector<8x1xi32>
    %16 = arith.cmpi slt, %14, %15 : vector<8x1xi32>
    %cst_11 = arith.constant 0.000000e+00 : f32
    %17 = vector.shape_cast %16 : vector<8x1xi1> to vector<8x1xi1>
    %18 = vector.broadcast %17 : vector<8x1xi1> to vector<8x32xi1>
    %19 = vector.broadcast %cst_11 : f32 to vector<8x32xf32>
    %20 = arith.select %18, %8, %19 : vector<8x32xi1>, vector<8x32xf32>
    %cst_12 = arith.constant dense<0.000000e+00> : vector<32xf32>
    %21 = vector.multi_reduction <add>, %20, %cst_12 [0] : vector<8x32xf32> to vector<32xf32>
    %22 = vector.shape_cast %21 : vector<32xf32> to vector<1x32xf32>
    %23 = arith.mulf %20, %20 : vector<8x32xf32>
    %cst_13 = arith.constant dense<0.000000e+00> : vector<32xf32>
    %24 = vector.multi_reduction <add>, %23, %cst_13 [0] : vector<8x32xf32> to vector<32xf32>
    %25 = vector.shape_cast %24 : vector<32xf32> to vector<1x32xf32>
    %26 = tpu.concatenate %22, %25 in 0 : vector<1x32xf32>, vector<1x32xf32> -> vector<2x32xf32>
    %27 = vector.shape_cast %26 : vector<2x32xf32> to vector<1x1x2x32xf32>
    %c0_14 = arith.constant 0 : index
    %c0_15 = arith.constant 0 : index
    %c0_16 = arith.constant 0 : index
    %c0_17 = arith.constant 0 : index
    %28 = vector.load %arg6[%c0_14, %c0_15, %c0_16, %c0_17] : memref<1x1x2x32xf32, #tpu.memory_space<vmem>>, vector<1x1x2x32xf32>
    tpu.vector_store %arg6[%c0_14, %c0_15, %c0_16, %c0_17], %27 {strides = array<i32>} : memref<1x1x2x32xf32, #tpu.memory_space<vmem>>, vector<1x1x2x32xf32>,
    return
  }
  func.func @transform_0(%arg0: i32, %arg1: i32) -> (i32, i32, i32) {
    %c0_i32 = arith.constant 0 : i32
    %c0_i32_0 = arith.constant 0 : i32
    return %arg0, %arg1, %c0_i32 : i32, i32, i32
  }
  func.func @transform_1(%arg0: i32, %arg1: i32) -> (i32, i32) {
    %c0_i32 = arith.constant 0 : i32
    %c0_i32_0 = arith.constant 0 : i32
    %c0_i32_1 = arith.constant 0 : i32
    return %c0_i32, %c0_i32_0 : i32, i32
  }
  func.func @transform_2(%arg0: i32, %arg1: i32) -> (i32, i32) {
    %c0_i32 = arith.constant 0 : i32
    %c0_i32_0 = arith.constant 0 : i32
    %c0_i32_1 = arith.constant 0 : i32
    return %c0_i32, %c0_i32_0 : i32, i32
  }
  func.func @transform_3(%arg0: i32, %arg1: i32) -> (i32, i32, i32) {
    %c0_i32 = arith.constant 0 : i32
    %c0_i32_0 = arith.constant 0 : i32
    return %arg0, %arg1, %c0_i32 : i32, i32, i32
  }
  func.func @transform_4(%arg0: i32, %arg1: i32) -> (i32, i32, i32, i32) {
    %c0_i32 = arith.constant 0 : i32
    %c0_i32_0 = arith.constant 0 : i32
    %c0_i32_1 = arith.constant 0 : i32
    return %arg0, %arg1, %c0_i32, %c0_i32_0 : i32, i32, i32, i32
  }
}

module attributes {stable_mosaic.version = 11 : i64} {
  func.func @_pconv_kernel(%arg0: i32, %arg1: i32, %arg2: memref<1x32x256xf32, #tpu.memory_space<vmem>>, %arg3: memref<256x32xf32, #tpu.memory_space<vmem>>, %arg4: memref<1x32xf32, #tpu.memory_space<vmem>>, %arg5: memref<1x32x32xf32, #tpu.memory_space<vmem>>, %arg6: memref<1x1x2x32xf32, #tpu.memory_space<vmem>>) attributes {dimension_semantics = [#tpu.dimension_semantics<parallel>, #tpu.dimension_semantics<parallel>], iteration_bounds = array<i64: 2, 1>, scalar_prefetch = 0 : i64, scratch_operands = 0 : i64, tpu.core_type = #tpu.core_type<tc>, window_params = [{transform_indices = @transform_0, window_bounds = array<i64: 1, 32, 256>}, {pipeline_mode = #tpu.pipeline_mode<synchronous>, transform_indices = @transform_1, window_bounds = array<i64: 256, 32>}, {pipeline_mode = #tpu.pipeline_mode<synchronous>, transform_indices = @transform_2, window_bounds = array<i64: 1, 32>}, {transform_indices = @transform_3, window_bounds = array<i64: 1, 32, 32>}, {transform_indices = @transform_4, window_bounds = array<i64: 1, 1, 2, 32>}]} {
    %c0 = arith.constant 0 : index
    %c0_0 = arith.constant 0 : index
    %c0_1 = arith.constant 0 : index
    %0 = vector.load %arg2[%c0, %c0_0, %c0_1] : memref<1x32x256xf32, #tpu.memory_space<vmem>>, vector<1x32x256xf32>
    %1 = vector.shape_cast %0 : vector<1x32x256xf32> to vector<32x256xf32>
    %c0_2 = arith.constant 0 : index
    %c0_3 = arith.constant 0 : index
    %2 = vector.load %arg3[%c0_2, %c0_3] : memref<256x32xf32, #tpu.memory_space<vmem>>, vector<256x32xf32>
    %cst = arith.constant dense<0.000000e+00> : vector<32x32xf32>
    %3 = tpu.matmul %1, %2, %cst {dimension_numbers = #tpu.dot_dimension_numbers<[1], [0], [0], [1], [0, 0, 1, 1], [], []>} : vector<32x256xf32>, vector<256x32xf32>, vector<32x32xf32> -> vector<32x32xf32>
    %c0_4 = arith.constant 0 : index
    %c0_5 = arith.constant 0 : index
    %4 = vector.load %arg4[%c0_4, %c0_5] : memref<1x32xf32, #tpu.memory_space<vmem>>, vector<1x32xf32>
    %5 = vector.broadcast %4 : vector<1x32xf32> to vector<32x32xf32>
    %6 = arith.addf %3, %5 : vector<32x32xf32>
    %cst_6 = arith.constant 0.000000e+00 : f32
    %7 = vector.broadcast %cst_6 : f32 to vector<32x32xf32>
    %8 = arith.maximumf %6, %7 : vector<32x32xf32>
    %9 = vector.shape_cast %8 : vector<32x32xf32> to vector<1x32x32xf32>
    %c0_7 = arith.constant 0 : index
    %c0_8 = arith.constant 0 : index
    %c0_9 = arith.constant 0 : index
    %10 = vector.load %arg5[%c0_7, %c0_8, %c0_9] : memref<1x32x32xf32, #tpu.memory_space<vmem>>, vector<1x32x32xf32>
    tpu.vector_store %arg5[%c0_7, %c0_8, %c0_9], %9 {strides = array<i32>} : memref<1x32x32xf32, #tpu.memory_space<vmem>>, vector<1x32x32xf32>,
    %11 = tpu.iota {dimensions = array<i32: 0>} : vector<32x1xi32>
    %c32_i32 = arith.constant 32 : i32
    %12 = arith.muli %arg1, %c32_i32 : i32
    %13 = vector.broadcast %12 : i32 to vector<32x1xi32>
    %14 = arith.addi %11, %13 : vector<32x1xi32>
    %c32_i32_10 = arith.constant 32 : i32
    %15 = vector.broadcast %c32_i32_10 : i32 to vector<32x1xi32>
    %16 = arith.cmpi slt, %14, %15 : vector<32x1xi32>
    %cst_11 = arith.constant 0.000000e+00 : f32
    %17 = vector.shape_cast %16 : vector<32x1xi1> to vector<32x1xi1>
    %18 = vector.broadcast %17 : vector<32x1xi1> to vector<32x32xi1>
    %19 = vector.broadcast %cst_11 : f32 to vector<32x32xf32>
    %20 = arith.select %18, %8, %19 : vector<32x32xi1>, vector<32x32xf32>
    %cst_12 = arith.constant dense<0.000000e+00> : vector<32xf32>
    %21 = vector.multi_reduction <add>, %20, %cst_12 [0] : vector<32x32xf32> to vector<32xf32>
    %22 = vector.shape_cast %21 : vector<32xf32> to vector<1x32xf32>
    %23 = arith.mulf %20, %20 : vector<32x32xf32>
    %cst_13 = arith.constant dense<0.000000e+00> : vector<32xf32>
    %24 = vector.multi_reduction <add>, %23, %cst_13 [0] : vector<32x32xf32> to vector<32xf32>
    %25 = vector.shape_cast %24 : vector<32xf32> to vector<1x32xf32>
    %26 = tpu.concatenate %22, %25 in 0 : vector<1x32xf32>, vector<1x32xf32> -> vector<2x32xf32>
    %27 = vector.shape_cast %26 : vector<2x32xf32> to vector<1x1x2x32xf32>
    %c0_14 = arith.constant 0 : index
    %c0_15 = arith.constant 0 : index
    %c0_16 = arith.constant 0 : index
    %c0_17 = arith.constant 0 : index
    %28 = vector.load %arg6[%c0_14, %c0_15, %c0_16, %c0_17] : memref<1x1x2x32xf32, #tpu.memory_space<vmem>>, vector<1x1x2x32xf32>
    tpu.vector_store %arg6[%c0_14, %c0_15, %c0_16, %c0_17], %27 {strides = array<i32>} : memref<1x1x2x32xf32, #tpu.memory_space<vmem>>, vector<1x1x2x32xf32>,
    return
  }
  func.func @transform_0(%arg0: i32, %arg1: i32) -> (i32, i32, i32) {
    %c0_i32 = arith.constant 0 : i32
    %c0_i32_0 = arith.constant 0 : i32
    return %arg0, %arg1, %c0_i32 : i32, i32, i32
  }
  func.func @transform_1(%arg0: i32, %arg1: i32) -> (i32, i32) {
    %c0_i32 = arith.constant 0 : i32
    %c0_i32_0 = arith.constant 0 : i32
    %c0_i32_1 = arith.constant 0 : i32
    return %c0_i32, %c0_i32_0 : i32, i32
  }
  func.func @transform_2(%arg0: i32, %arg1: i32) -> (i32, i32) {
    %c0_i32 = arith.constant 0 : i32
    %c0_i32_0 = arith.constant 0 : i32
    %c0_i32_1 = arith.constant 0 : i32
    return %c0_i32, %c0_i32_0 : i32, i32
  }
  func.func @transform_3(%arg0: i32, %arg1: i32) -> (i32, i32, i32) {
    %c0_i32 = arith.constant 0 : i32
    %c0_i32_0 = arith.constant 0 : i32
    return %arg0, %arg1, %c0_i32 : i32, i32, i32
  }
  func.func @transform_4(%arg0: i32, %arg1: i32) -> (i32, i32, i32, i32) {
    %c0_i32 = arith.constant 0 : i32
    %c0_i32_0 = arith.constant 0 : i32
    %c0_i32_1 = arith.constant 0 : i32
    return %arg0, %arg1, %c0_i32, %c0_i32_0 : i32, i32, i32, i32
  }
}

module attributes {stable_mosaic.version = 11 : i64} {
  func.func @_pconv_kernel(%arg0: i32, %arg1: i32, %arg2: memref<1x128x128xf32, #tpu.memory_space<vmem>>, %arg3: memref<128x32xf32, #tpu.memory_space<vmem>>, %arg4: memref<1x32xf32, #tpu.memory_space<vmem>>, %arg5: memref<1x128x32xf32, #tpu.memory_space<vmem>>, %arg6: memref<1x1x2x32xf32, #tpu.memory_space<vmem>>) attributes {dimension_semantics = [#tpu.dimension_semantics<parallel>, #tpu.dimension_semantics<parallel>], iteration_bounds = array<i64: 2, 1>, scalar_prefetch = 0 : i64, scratch_operands = 0 : i64, tpu.core_type = #tpu.core_type<tc>, window_params = [{transform_indices = @transform_0, window_bounds = array<i64: 1, 128, 128>}, {pipeline_mode = #tpu.pipeline_mode<synchronous>, transform_indices = @transform_1, window_bounds = array<i64: 128, 32>}, {pipeline_mode = #tpu.pipeline_mode<synchronous>, transform_indices = @transform_2, window_bounds = array<i64: 1, 32>}, {transform_indices = @transform_3, window_bounds = array<i64: 1, 128, 32>}, {transform_indices = @transform_4, window_bounds = array<i64: 1, 1, 2, 32>}]} {
    %c0 = arith.constant 0 : index
    %c0_0 = arith.constant 0 : index
    %c0_1 = arith.constant 0 : index
    %0 = vector.load %arg2[%c0, %c0_0, %c0_1] : memref<1x128x128xf32, #tpu.memory_space<vmem>>, vector<1x128x128xf32>
    %1 = vector.shape_cast %0 : vector<1x128x128xf32> to vector<128x128xf32>
    %c0_2 = arith.constant 0 : index
    %c0_3 = arith.constant 0 : index
    %2 = vector.load %arg3[%c0_2, %c0_3] : memref<128x32xf32, #tpu.memory_space<vmem>>, vector<128x32xf32>
    %cst = arith.constant dense<0.000000e+00> : vector<128x32xf32>
    %3 = tpu.matmul %1, %2, %cst {dimension_numbers = #tpu.dot_dimension_numbers<[1], [0], [0], [1], [0, 0, 1, 1], [], []>} : vector<128x128xf32>, vector<128x32xf32>, vector<128x32xf32> -> vector<128x32xf32>
    %c0_4 = arith.constant 0 : index
    %c0_5 = arith.constant 0 : index
    %4 = vector.load %arg4[%c0_4, %c0_5] : memref<1x32xf32, #tpu.memory_space<vmem>>, vector<1x32xf32>
    %5 = vector.broadcast %4 : vector<1x32xf32> to vector<128x32xf32>
    %6 = arith.addf %3, %5 : vector<128x32xf32>
    %cst_6 = arith.constant 0.000000e+00 : f32
    %7 = vector.broadcast %cst_6 : f32 to vector<128x32xf32>
    %8 = arith.maximumf %6, %7 : vector<128x32xf32>
    %9 = vector.shape_cast %8 : vector<128x32xf32> to vector<1x128x32xf32>
    %c0_7 = arith.constant 0 : index
    %c0_8 = arith.constant 0 : index
    %c0_9 = arith.constant 0 : index
    %10 = vector.load %arg5[%c0_7, %c0_8, %c0_9] : memref<1x128x32xf32, #tpu.memory_space<vmem>>, vector<1x128x32xf32>
    tpu.vector_store %arg5[%c0_7, %c0_8, %c0_9], %9 {strides = array<i32>} : memref<1x128x32xf32, #tpu.memory_space<vmem>>, vector<1x128x32xf32>,
    %11 = tpu.iota {dimensions = array<i32: 0>} : vector<128x1xi32>
    %c128_i32 = arith.constant 128 : i32
    %12 = arith.muli %arg1, %c128_i32 : i32
    %13 = vector.broadcast %12 : i32 to vector<128x1xi32>
    %14 = arith.addi %11, %13 : vector<128x1xi32>
    %c128_i32_10 = arith.constant 128 : i32
    %15 = vector.broadcast %c128_i32_10 : i32 to vector<128x1xi32>
    %16 = arith.cmpi slt, %14, %15 : vector<128x1xi32>
    %cst_11 = arith.constant 0.000000e+00 : f32
    %17 = vector.shape_cast %16 : vector<128x1xi1> to vector<128x1xi1>
    %18 = vector.broadcast %17 : vector<128x1xi1> to vector<128x32xi1>
    %19 = vector.broadcast %cst_11 : f32 to vector<128x32xf32>
    %20 = arith.select %18, %8, %19 : vector<128x32xi1>, vector<128x32xf32>
    %cst_12 = arith.constant dense<0.000000e+00> : vector<32xf32>
    %21 = vector.multi_reduction <add>, %20, %cst_12 [0] : vector<128x32xf32> to vector<32xf32>
    %22 = vector.shape_cast %21 : vector<32xf32> to vector<1x32xf32>
    %23 = arith.mulf %20, %20 : vector<128x32xf32>
    %cst_13 = arith.constant dense<0.000000e+00> : vector<32xf32>
    %24 = vector.multi_reduction <add>, %23, %cst_13 [0] : vector<128x32xf32> to vector<32xf32>
    %25 = vector.shape_cast %24 : vector<32xf32> to vector<1x32xf32>
    %26 = tpu.concatenate %22, %25 in 0 : vector<1x32xf32>, vector<1x32xf32> -> vector<2x32xf32>
    %27 = vector.shape_cast %26 : vector<2x32xf32> to vector<1x1x2x32xf32>
    %c0_14 = arith.constant 0 : index
    %c0_15 = arith.constant 0 : index
    %c0_16 = arith.constant 0 : index
    %c0_17 = arith.constant 0 : index
    %28 = vector.load %arg6[%c0_14, %c0_15, %c0_16, %c0_17] : memref<1x1x2x32xf32, #tpu.memory_space<vmem>>, vector<1x1x2x32xf32>
    tpu.vector_store %arg6[%c0_14, %c0_15, %c0_16, %c0_17], %27 {strides = array<i32>} : memref<1x1x2x32xf32, #tpu.memory_space<vmem>>, vector<1x1x2x32xf32>,
    return
  }
  func.func @transform_0(%arg0: i32, %arg1: i32) -> (i32, i32, i32) {
    %c0_i32 = arith.constant 0 : i32
    %c0_i32_0 = arith.constant 0 : i32
    return %arg0, %arg1, %c0_i32 : i32, i32, i32
  }
  func.func @transform_1(%arg0: i32, %arg1: i32) -> (i32, i32) {
    %c0_i32 = arith.constant 0 : i32
    %c0_i32_0 = arith.constant 0 : i32
    %c0_i32_1 = arith.constant 0 : i32
    return %c0_i32, %c0_i32_0 : i32, i32
  }
  func.func @transform_2(%arg0: i32, %arg1: i32) -> (i32, i32) {
    %c0_i32 = arith.constant 0 : i32
    %c0_i32_0 = arith.constant 0 : i32
    %c0_i32_1 = arith.constant 0 : i32
    return %c0_i32, %c0_i32_0 : i32, i32
  }
  func.func @transform_3(%arg0: i32, %arg1: i32) -> (i32, i32, i32) {
    %c0_i32 = arith.constant 0 : i32
    %c0_i32_0 = arith.constant 0 : i32
    return %arg0, %arg1, %c0_i32 : i32, i32, i32
  }
  func.func @transform_4(%arg0: i32, %arg1: i32) -> (i32, i32, i32, i32) {
    %c0_i32 = arith.constant 0 : i32
    %c0_i32_0 = arith.constant 0 : i32
    %c0_i32_1 = arith.constant 0 : i32
    return %arg0, %arg1, %c0_i32, %c0_i32_0 : i32, i32, i32, i32
  }
}

module attributes {stable_mosaic.version = 11 : i64} {
  func.func @_affine_kernel(%arg0: i32, %arg1: memref<1x2x128xf32, #tpu.memory_space<vmem>>, %arg2: memref<1x1x128xf32, #tpu.memory_space<vmem>>, %arg3: memref<1x1x128xf32, #tpu.memory_space<vmem>>, %arg4: memref<1x2x128xf32, #tpu.memory_space<vmem>>) attributes {dimension_semantics = [#tpu.dimension_semantics<parallel>], iteration_bounds = array<i64: 2>, scalar_prefetch = 0 : i64, scratch_operands = 0 : i64, tpu.core_type = #tpu.core_type<tc>, window_params = [{transform_indices = @transform_0, window_bounds = array<i64: 1, 2, 128>}, {pipeline_mode = #tpu.pipeline_mode<synchronous>, transform_indices = @transform_1, window_bounds = array<i64: 1, 1, 128>}, {pipeline_mode = #tpu.pipeline_mode<synchronous>, transform_indices = @transform_2, window_bounds = array<i64: 1, 1, 128>}, {transform_indices = @transform_3, window_bounds = array<i64: 1, 2, 128>}]} {
    %c0 = arith.constant 0 : index
    %c0_0 = arith.constant 0 : index
    %c0_1 = arith.constant 0 : index
    %0 = vector.load %arg1[%c0, %c0_0, %c0_1] : memref<1x2x128xf32, #tpu.memory_space<vmem>>, vector<1x2x128xf32>
    %c0_2 = arith.constant 0 : index
    %c0_3 = arith.constant 0 : index
    %c0_4 = arith.constant 0 : index
    %1 = vector.load %arg2[%c0_2, %c0_3, %c0_4] : memref<1x1x128xf32, #tpu.memory_space<vmem>>, vector<1x1x128xf32>
    %2 = vector.broadcast %1 : vector<1x1x128xf32> to vector<1x2x128xf32>
    %3 = arith.mulf %0, %2 : vector<1x2x128xf32>
    %c0_5 = arith.constant 0 : index
    %c0_6 = arith.constant 0 : index
    %c0_7 = arith.constant 0 : index
    %4 = vector.load %arg3[%c0_5, %c0_6, %c0_7] : memref<1x1x128xf32, #tpu.memory_space<vmem>>, vector<1x1x128xf32>
    %5 = vector.broadcast %4 : vector<1x1x128xf32> to vector<1x2x128xf32>
    %6 = arith.addf %3, %5 : vector<1x2x128xf32>
    %c0_8 = arith.constant 0 : index
    %c0_9 = arith.constant 0 : index
    %c0_10 = arith.constant 0 : index
    %7 = vector.load %arg4[%c0_8, %c0_9, %c0_10] : memref<1x2x128xf32, #tpu.memory_space<vmem>>, vector<1x2x128xf32>
    tpu.vector_store %arg4[%c0_8, %c0_9, %c0_10], %6 {strides = array<i32>} : memref<1x2x128xf32, #tpu.memory_space<vmem>>, vector<1x2x128xf32>,
    return
  }
  func.func @transform_0(%arg0: i32) -> (i32, i32, i32) {
    %c0_i32 = arith.constant 0 : i32
    %c0_i32_0 = arith.constant 0 : i32
    %c0_i32_1 = arith.constant 0 : i32
    return %arg0, %c0_i32, %c0_i32_0 : i32, i32, i32
  }
  func.func @transform_1(%arg0: i32) -> (i32, i32, i32) {
    %c0_i32 = arith.constant 0 : i32
    %c0_i32_0 = arith.constant 0 : i32
    %c0_i32_1 = arith.constant 0 : i32
    %c0_i32_2 = arith.constant 0 : i32
    return %c0_i32, %c0_i32_0, %c0_i32_1 : i32, i32, i32
  }
  func.func @transform_2(%arg0: i32) -> (i32, i32, i32) {
    %c0_i32 = arith.constant 0 : i32
    %c0_i32_0 = arith.constant 0 : i32
    %c0_i32_1 = arith.constant 0 : i32
    %c0_i32_2 = arith.constant 0 : i32
    return %c0_i32, %c0_i32_0, %c0_i32_1 : i32, i32, i32
  }
  func.func @transform_3(%arg0: i32) -> (i32, i32, i32) {
    %c0_i32 = arith.constant 0 : i32
    %c0_i32_0 = arith.constant 0 : i32
    %c0_i32_1 = arith.constant 0 : i32
    return %arg0, %c0_i32, %c0_i32_0 : i32, i32, i32
  }
}

module attributes {stable_mosaic.version = 11 : i64} {
  func.func @_deconv_kernel(%arg0: i32, %arg1: i32, %arg2: i32, %arg3: memref<1x4x6x32xf32, #tpu.memory_space<vmem>>, %arg4: memref<288x128xf32, #tpu.memory_space<vmem>>, %arg5: memref<1x128xf32, #tpu.memory_space<vmem>>, %arg6: memref<1x2x4x128xf32, #tpu.memory_space<vmem>>, %arg7: memref<1x1x2x128xf32, #tpu.memory_space<vmem>>) attributes {dimension_semantics = [#tpu.dimension_semantics<parallel>, #tpu.dimension_semantics<parallel>, #tpu.dimension_semantics<parallel>], iteration_bounds = array<i64: 2, 1, 1>, scalar_prefetch = 0 : i64, scratch_operands = 0 : i64, tpu.core_type = #tpu.core_type<tc>, window_params = [{transform_indices = @transform_0, window_bounds = array<i64: 1, 4, 6, 32>}, {transform_indices = @transform_1, window_bounds = array<i64: 288, 128>}, {transform_indices = @transform_2, window_bounds = array<i64: 1, 128>}, {transform_indices = @transform_3, window_bounds = array<i64: 1, 2, 4, 128>}, {transform_indices = @transform_4, window_bounds = array<i64: 1, 1, 2, 128>}]} {
    %c2_i32 = arith.constant 2 : i32
    %0 = arith.muli %arg1, %c2_i32 : i32
    %c0_i32 = arith.constant 0 : i32
    %1 = arith.addi %0, %c0_i32 : i32
    %c0 = arith.constant 0 : index
    %2 = arith.index_cast %1 : i32 to index
    %c0_0 = arith.constant 0 : index
    %c0_1 = arith.constant 0 : index
    %3 = vector.load %arg3[%c0, %2, %c0_0, %c0_1] : memref<1x4x6x32xf32, #tpu.memory_space<vmem>>, vector<1x2x4x32xf32>
    %4 = vector.shape_cast %3 : vector<1x2x4x32xf32> to vector<2x4x32xf32>
    %c0_i32_2 = arith.constant 0 : i32
    %5 = arith.addi %0, %c0_i32_2 : i32
    %c0_3 = arith.constant 0 : index
    %6 = arith.index_cast %5 : i32 to index
    %c1 = arith.constant 1 : index
    %c0_4 = arith.constant 0 : index
    %7 = vector.load %arg3[%c0_3, %6, %c1, %c0_4] : memref<1x4x6x32xf32, #tpu.memory_space<vmem>>, vector<1x2x4x32xf32>
    %8 = vector.shape_cast %7 : vector<1x2x4x32xf32> to vector<2x4x32xf32>
    %c0_i32_5 = arith.constant 0 : i32
    %9 = arith.addi %0, %c0_i32_5 : i32
    %c0_6 = arith.constant 0 : index
    %10 = arith.index_cast %9 : i32 to index
    %c2 = arith.constant 2 : index
    %c0_7 = arith.constant 0 : index
    %11 = vector.load %arg3[%c0_6, %10, %c2, %c0_7] : memref<1x4x6x32xf32, #tpu.memory_space<vmem>>, vector<1x2x4x32xf32>
    %12 = vector.shape_cast %11 : vector<1x2x4x32xf32> to vector<2x4x32xf32>
    %c1_i32 = arith.constant 1 : i32
    %13 = arith.addi %0, %c1_i32 : i32
    %c0_8 = arith.constant 0 : index
    %14 = arith.index_cast %13 : i32 to index
    %c0_9 = arith.constant 0 : index
    %c0_10 = arith.constant 0 : index
    %15 = vector.load %arg3[%c0_8, %14, %c0_9, %c0_10] : memref<1x4x6x32xf32, #tpu.memory_space<vmem>>, vector<1x2x4x32xf32>
    %16 = vector.shape_cast %15 : vector<1x2x4x32xf32> to vector<2x4x32xf32>
    %c1_i32_11 = arith.constant 1 : i32
    %17 = arith.addi %0, %c1_i32_11 : i32
    %c0_12 = arith.constant 0 : index
    %18 = arith.index_cast %17 : i32 to index
    %c1_13 = arith.constant 1 : index
    %c0_14 = arith.constant 0 : index
    %19 = vector.load %arg3[%c0_12, %18, %c1_13, %c0_14] : memref<1x4x6x32xf32, #tpu.memory_space<vmem>>, vector<1x2x4x32xf32>
    %20 = vector.shape_cast %19 : vector<1x2x4x32xf32> to vector<2x4x32xf32>
    %c1_i32_15 = arith.constant 1 : i32
    %21 = arith.addi %0, %c1_i32_15 : i32
    %c0_16 = arith.constant 0 : index
    %22 = arith.index_cast %21 : i32 to index
    %c2_17 = arith.constant 2 : index
    %c0_18 = arith.constant 0 : index
    %23 = vector.load %arg3[%c0_16, %22, %c2_17, %c0_18] : memref<1x4x6x32xf32, #tpu.memory_space<vmem>>, vector<1x2x4x32xf32>
    %24 = vector.shape_cast %23 : vector<1x2x4x32xf32> to vector<2x4x32xf32>
    %c2_i32_19 = arith.constant 2 : i32
    %25 = arith.addi %0, %c2_i32_19 : i32
    %c0_20 = arith.constant 0 : index
    %26 = arith.index_cast %25 : i32 to index
    %c0_21 = arith.constant 0 : index
    %c0_22 = arith.constant 0 : index
    %27 = vector.load %arg3[%c0_20, %26, %c0_21, %c0_22] : memref<1x4x6x32xf32, #tpu.memory_space<vmem>>, vector<1x2x4x32xf32>
    %28 = vector.shape_cast %27 : vector<1x2x4x32xf32> to vector<2x4x32xf32>
    %c2_i32_23 = arith.constant 2 : i32
    %29 = arith.addi %0, %c2_i32_23 : i32
    %c0_24 = arith.constant 0 : index
    %30 = arith.index_cast %29 : i32 to index
    %c1_25 = arith.constant 1 : index
    %c0_26 = arith.constant 0 : index
    %31 = vector.load %arg3[%c0_24, %30, %c1_25, %c0_26] : memref<1x4x6x32xf32, #tpu.memory_space<vmem>>, vector<1x2x4x32xf32>
    %32 = vector.shape_cast %31 : vector<1x2x4x32xf32> to vector<2x4x32xf32>
    %c2_i32_27 = arith.constant 2 : i32
    %33 = arith.addi %0, %c2_i32_27 : i32
    %c0_28 = arith.constant 0 : index
    %34 = arith.index_cast %33 : i32 to index
    %c2_29 = arith.constant 2 : index
    %c0_30 = arith.constant 0 : index
    %35 = vector.load %arg3[%c0_28, %34, %c2_29, %c0_30] : memref<1x4x6x32xf32, #tpu.memory_space<vmem>>, vector<1x2x4x32xf32>
    %36 = vector.shape_cast %35 : vector<1x2x4x32xf32> to vector<2x4x32xf32>
    %37 = tpu.concatenate %4, %8, %12, %16, %20, %24, %28, %32, %36 in 2 : vector<2x4x32xf32>, vector<2x4x32xf32>, vector<2x4x32xf32>, vector<2x4x32xf32>, vector<2x4x32xf32>, vector<2x4x32xf32>, vector<2x4x32xf32>, vector<2x4x32xf32>, vector<2x4x32xf32> -> vector<2x4x288xf32>
    %38 = vector.shape_cast %37 : vector<2x4x288xf32> to vector<8x288xf32>
    %c0_31 = arith.constant 0 : index
    %c0_32 = arith.constant 0 : index
    %39 = vector.load %arg4[%c0_31, %c0_32] : memref<288x128xf32, #tpu.memory_space<vmem>>, vector<288x128xf32>
    %cst = arith.constant dense<0.000000e+00> : vector<8x128xf32>
    %40 = tpu.matmul %38, %39, %cst {dimension_numbers = #tpu.dot_dimension_numbers<[1], [0], [0], [1], [0, 0, 1, 1], [], []>} : vector<8x288xf32>, vector<288x128xf32>, vector<8x128xf32> -> vector<8x128xf32>
    %c0_33 = arith.constant 0 : index
    %c0_34 = arith.constant 0 : index
    %41 = vector.load %arg5[%c0_33, %c0_34] : memref<1x128xf32, #tpu.memory_space<vmem>>, vector<1x128xf32>
    %42 = vector.broadcast %41 : vector<1x128xf32> to vector<8x128xf32>
    %43 = arith.addf %40, %42 : vector<8x128xf32>
    %cst_35 = arith.constant 0.000000e+00 : f32
    %44 = vector.broadcast %cst_35 : f32 to vector<8x128xf32>
    %45 = arith.maximumf %43, %44 : vector<8x128xf32>
    %46 = vector.shape_cast %45 : vector<8x128xf32> to vector<1x2x4x128xf32>
    %c0_36 = arith.constant 0 : index
    %c0_37 = arith.constant 0 : index
    %c0_38 = arith.constant 0 : index
    %c0_39 = arith.constant 0 : index
    %47 = vector.load %arg6[%c0_36, %c0_37, %c0_38, %c0_39] : memref<1x2x4x128xf32, #tpu.memory_space<vmem>>, vector<1x2x4x128xf32>
    tpu.vector_store %arg6[%c0_36, %c0_37, %c0_38, %c0_39], %46 {strides = array<i32>} : memref<1x2x4x128xf32, #tpu.memory_space<vmem>>, vector<1x2x4x128xf32>,
    %cst_40 = arith.constant dense<0.000000e+00> : vector<128xf32>
    %48 = vector.multi_reduction <add>, %45, %cst_40 [0] : vector<8x128xf32> to vector<128xf32>
    %49 = vector.shape_cast %48 : vector<128xf32> to vector<1x128xf32>
    %50 = arith.mulf %45, %45 : vector<8x128xf32>
    %cst_41 = arith.constant dense<0.000000e+00> : vector<128xf32>
    %51 = vector.multi_reduction <add>, %50, %cst_41 [0] : vector<8x128xf32> to vector<128xf32>
    %52 = vector.shape_cast %51 : vector<128xf32> to vector<1x128xf32>
    %53 = tpu.concatenate %49, %52 in 0 : vector<1x128xf32>, vector<1x128xf32> -> vector<2x128xf32>
    %54 = vector.shape_cast %53 : vector<2x128xf32> to vector<1x1x2x128xf32>
    %c0_42 = arith.constant 0 : index
    %c0_43 = arith.constant 0 : index
    %c0_44 = arith.constant 0 : index
    %c0_45 = arith.constant 0 : index
    %55 = vector.load %arg7[%c0_42, %c0_43, %c0_44, %c0_45] : memref<1x1x2x128xf32, #tpu.memory_space<vmem>>, vector<1x1x2x128xf32>
    tpu.vector_store %arg7[%c0_42, %c0_43, %c0_44, %c0_45], %54 {strides = array<i32>} : memref<1x1x2x128xf32, #tpu.memory_space<vmem>>, vector<1x1x2x128xf32>,
    return
  }
  func.func @transform_0(%arg0: i32, %arg1: i32, %arg2: i32) -> (i32, i32, i32, i32) {
    %c0_i32 = arith.constant 0 : i32
    %c0_i32_0 = arith.constant 0 : i32
    %c0_i32_1 = arith.constant 0 : i32
    %c0_i32_2 = arith.constant 0 : i32
    return %arg0, %c0_i32, %c0_i32_0, %c0_i32_1 : i32, i32, i32, i32
  }
  func.func @transform_1(%arg0: i32, %arg1: i32, %arg2: i32) -> (i32, i32) {
    %c0_i32 = arith.constant 0 : i32
    %c0_i32_0 = arith.constant 0 : i32
    return %c0_i32, %arg2 : i32, i32
  }
  func.func @transform_2(%arg0: i32, %arg1: i32, %arg2: i32) -> (i32, i32) {
    %c0_i32 = arith.constant 0 : i32
    %c0_i32_0 = arith.constant 0 : i32
    return %c0_i32, %arg2 : i32, i32
  }
  func.func @transform_3(%arg0: i32, %arg1: i32, %arg2: i32) -> (i32, i32, i32, i32) {
    %c0_i32 = arith.constant 0 : i32
    %c0_i32_0 = arith.constant 0 : i32
    return %arg0, %arg1, %c0_i32, %arg2 : i32, i32, i32, i32
  }
  func.func @transform_4(%arg0: i32, %arg1: i32, %arg2: i32) -> (i32, i32, i32, i32) {
    %c0_i32 = arith.constant 0 : i32
    %c0_i32_0 = arith.constant 0 : i32
    return %arg0, %arg1, %c0_i32, %arg2 : i32, i32, i32, i32
  }
}

module attributes {stable_mosaic.version = 11 : i64} {
  func.func @_shuffle_affine_skip_kernel(%arg0: i32, %arg1: i32, %arg2: memref<1x2x4x128xf32, #tpu.memory_space<vmem>>, %arg3: memref<1x1x1x128xf32, #tpu.memory_space<vmem>>, %arg4: memref<1x1x1x128xf32, #tpu.memory_space<vmem>>, %arg5: memref<1x2x2x4x64xf32, #tpu.memory_space<vmem>>, %arg6: memref<1x1x1x1x64xf32, #tpu.memory_space<vmem>>, %arg7: memref<1x1x1x1x64xf32, #tpu.memory_space<vmem>>, %arg8: memref<1x2x2x4x64xf32, #tpu.memory_space<vmem>>) attributes {dimension_semantics = [#tpu.dimension_semantics<parallel>, #tpu.dimension_semantics<parallel>], iteration_bounds = array<i64: 2, 1>, scalar_prefetch = 0 : i64, scratch_operands = 0 : i64, tpu.core_type = #tpu.core_type<tc>, window_params = [{transform_indices = @transform_0, window_bounds = array<i64: 1, 2, 4, 128>}, {pipeline_mode = #tpu.pipeline_mode<synchronous>, transform_indices = @transform_1, window_bounds = array<i64: 1, 1, 1, 128>}, {pipeline_mode = #tpu.pipeline_mode<synchronous>, transform_indices = @transform_2, window_bounds = array<i64: 1, 1, 1, 128>}, {transform_indices = @transform_3, window_bounds = array<i64: 1, 2, 2, 4, 64>}, {pipeline_mode = #tpu.pipeline_mode<synchronous>, transform_indices = @transform_4, window_bounds = array<i64: 1, 1, 1, 1, 64>}, {pipeline_mode = #tpu.pipeline_mode<synchronous>, transform_indices = @transform_5, window_bounds = array<i64: 1, 1, 1, 1, 64>}, {transform_indices = @transform_6, window_bounds = array<i64: 1, 2, 2, 4, 64>}]} {
    %c0 = arith.constant 0 : index
    %c0_0 = arith.constant 0 : index
    %c0_1 = arith.constant 0 : index
    %c0_2 = arith.constant 0 : index
    %0 = vector.load %arg2[%c0, %c0_0, %c0_1, %c0_2] : memref<1x2x4x128xf32, #tpu.memory_space<vmem>>, vector<1x2x4x128xf32>
    %c0_3 = arith.constant 0 : index
    %c0_4 = arith.constant 0 : index
    %c0_5 = arith.constant 0 : index
    %c0_6 = arith.constant 0 : index
    %1 = vector.load %arg3[%c0_3, %c0_4, %c0_5, %c0_6] : memref<1x1x1x128xf32, #tpu.memory_space<vmem>>, vector<1x1x1x128xf32>
    %2 = vector.broadcast %1 : vector<1x1x1x128xf32> to vector<1x2x4x128xf32>
    %3 = arith.mulf %0, %2 : vector<1x2x4x128xf32>
    %c0_7 = arith.constant 0 : index
    %c0_8 = arith.constant 0 : index
    %c0_9 = arith.constant 0 : index
    %c0_10 = arith.constant 0 : index
    %4 = vector.load %arg4[%c0_7, %c0_8, %c0_9, %c0_10] : memref<1x1x1x128xf32, #tpu.memory_space<vmem>>, vector<1x1x1x128xf32>
    %5 = vector.broadcast %4 : vector<1x1x1x128xf32> to vector<1x2x4x128xf32>
    %6 = arith.addf %3, %5 : vector<1x2x4x128xf32>
    %c0_11 = arith.constant 0 : index
    %c0_12 = arith.constant 0 : index
    %c0_13 = arith.constant 0 : index
    %c0_14 = arith.constant 0 : index
    %c0_15 = arith.constant 0 : index
    %7 = vector.load %arg5[%c0_11, %c0_12, %c0_13, %c0_14, %c0_15] : memref<1x2x2x4x64xf32, #tpu.memory_space<vmem>>, vector<1x2x2x4x64xf32>
    %c0_16 = arith.constant 0 : index
    %c0_17 = arith.constant 0 : index
    %c0_18 = arith.constant 0 : index
    %c0_19 = arith.constant 0 : index
    %c0_20 = arith.constant 0 : index
    %8 = vector.load %arg6[%c0_16, %c0_17, %c0_18, %c0_19, %c0_20] : memref<1x1x1x1x64xf32, #tpu.memory_space<vmem>>, vector<1x1x1x1x64xf32>
    %9 = vector.broadcast %8 : vector<1x1x1x1x64xf32> to vector<1x2x2x4x64xf32>
    %10 = arith.mulf %7, %9 : vector<1x2x2x4x64xf32>
    %c0_21 = arith.constant 0 : index
    %c0_22 = arith.constant 0 : index
    %c0_23 = arith.constant 0 : index
    %c0_24 = arith.constant 0 : index
    %c0_25 = arith.constant 0 : index
    %11 = vector.load %arg7[%c0_21, %c0_22, %c0_23, %c0_24, %c0_25] : memref<1x1x1x1x64xf32, #tpu.memory_space<vmem>>, vector<1x1x1x1x64xf32>
    %12 = vector.broadcast %11 : vector<1x1x1x1x64xf32> to vector<1x2x2x4x64xf32>
    %13 = arith.addf %10, %12 : vector<1x2x2x4x64xf32>
    %14 = vector.extract_strided_slice %6 {offsets = [0, 0, 0, 0], sizes = [1, 2, 4, 64], strides = [1, 1, 1, 1]} : vector<1x2x4x128xf32> to vector<1x2x4x64xf32>
    %15 = vector.shape_cast %14 : vector<1x2x4x64xf32> to vector<2x4x64xf32>
    %16 = vector.extract_strided_slice %13 {offsets = [0, 0, 0, 0, 0], sizes = [1, 2, 1, 4, 64], strides = [1, 1, 1, 1, 1]} : vector<1x2x2x4x64xf32> to vector<1x2x1x4x64xf32>
    %17 = vector.shape_cast %16 : vector<1x2x1x4x64xf32> to vector<2x4x64xf32>
    %18 = arith.addf %15, %17 : vector<2x4x64xf32>
    %c0_26 = arith.constant 0 : index
    %c0_27 = arith.constant 0 : index
    %c0_28 = arith.constant 0 : index
    %c0_29 = arith.constant 0 : index
    %c0_30 = arith.constant 0 : index
    %19 = vector.load %arg8[%c0_26, %c0_27, %c0_28, %c0_29, %c0_30] : memref<1x2x2x4x64xf32, #tpu.memory_space<vmem>>, vector<1x2x1x4x64xf32>
    %20 = vector.shape_cast %19 : vector<1x2x1x4x64xf32> to vector<2x4x64xf32>
    %21 = vector.shape_cast %18 : vector<2x4x64xf32> to vector<1x2x1x4x64xf32>
    tpu.vector_store %arg8[%c0_26, %c0_27, %c0_28, %c0_29, %c0_30], %21 {strides = array<i32>} : memref<1x2x2x4x64xf32, #tpu.memory_space<vmem>>, vector<1x2x1x4x64xf32>,
    %22 = vector.extract_strided_slice %6 {offsets = [0, 0, 0, 64], sizes = [1, 2, 4, 64], strides = [1, 1, 1, 1]} : vector<1x2x4x128xf32> to vector<1x2x4x64xf32>
    %23 = vector.shape_cast %22 : vector<1x2x4x64xf32> to vector<2x4x64xf32>
    %24 = vector.extract_strided_slice %13 {offsets = [0, 0, 1, 0, 0], sizes = [1, 2, 1, 4, 64], strides = [1, 1, 1, 1, 1]} : vector<1x2x2x4x64xf32> to vector<1x2x1x4x64xf32>
    %25 = vector.shape_cast %24 : vector<1x2x1x4x64xf32> to vector<2x4x64xf32>
    %26 = arith.addf %23, %25 : vector<2x4x64xf32>
    %c0_31 = arith.constant 0 : index
    %c0_32 = arith.constant 0 : index
    %c1 = arith.constant 1 : index
    %c0_33 = arith.constant 0 : index
    %c0_34 = arith.constant 0 : index
    %27 = vector.load %arg8[%c0_31, %c0_32, %c1, %c0_33, %c0_34] : memref<1x2x2x4x64xf32, #tpu.memory_space<vmem>>, vector<1x2x1x4x64xf32>
    %28 = vector.shape_cast %27 : vector<1x2x1x4x64xf32> to vector<2x4x64xf32>
    %29 = vector.shape_cast %26 : vector<2x4x64xf32> to vector<1x2x1x4x64xf32>
    tpu.vector_store %arg8[%c0_31, %c0_32, %c1, %c0_33, %c0_34], %29 {strides = array<i32>} : memref<1x2x2x4x64xf32, #tpu.memory_space<vmem>>, vector<1x2x1x4x64xf32>,
    return
  }
  func.func @transform_0(%arg0: i32, %arg1: i32) -> (i32, i32, i32, i32) {
    %c0_i32 = arith.constant 0 : i32
    %c0_i32_0 = arith.constant 0 : i32
    %c0_i32_1 = arith.constant 0 : i32
    return %arg0, %arg1, %c0_i32, %c0_i32_0 : i32, i32, i32, i32
  }
  func.func @transform_1(%arg0: i32, %arg1: i32) -> (i32, i32, i32, i32) {
    %c0_i32 = arith.constant 0 : i32
    %c0_i32_0 = arith.constant 0 : i32
    %c0_i32_1 = arith.constant 0 : i32
    %c0_i32_2 = arith.constant 0 : i32
    %c0_i32_3 = arith.constant 0 : i32
    return %c0_i32, %c0_i32_0, %c0_i32_1, %c0_i32_2 : i32, i32, i32, i32
  }
  func.func @transform_2(%arg0: i32, %arg1: i32) -> (i32, i32, i32, i32) {
    %c0_i32 = arith.constant 0 : i32
    %c0_i32_0 = arith.constant 0 : i32
    %c0_i32_1 = arith.constant 0 : i32
    %c0_i32_2 = arith.constant 0 : i32
    %c0_i32_3 = arith.constant 0 : i32
    return %c0_i32, %c0_i32_0, %c0_i32_1, %c0_i32_2 : i32, i32, i32, i32
  }
  func.func @transform_3(%arg0: i32, %arg1: i32) -> (i32, i32, i32, i32, i32) {
    %c0_i32 = arith.constant 0 : i32
    %c0_i32_0 = arith.constant 0 : i32
    %c0_i32_1 = arith.constant 0 : i32
    %c0_i32_2 = arith.constant 0 : i32
    return %arg0, %arg1, %c0_i32, %c0_i32_0, %c0_i32_1 : i32, i32, i32, i32, i32
  }
  func.func @transform_4(%arg0: i32, %arg1: i32) -> (i32, i32, i32, i32, i32) {
    %c0_i32 = arith.constant 0 : i32
    %c0_i32_0 = arith.constant 0 : i32
    %c0_i32_1 = arith.constant 0 : i32
    %c0_i32_2 = arith.constant 0 : i32
    %c0_i32_3 = arith.constant 0 : i32
    %c0_i32_4 = arith.constant 0 : i32
    return %c0_i32, %c0_i32_0, %c0_i32_1, %c0_i32_2, %c0_i32_3 : i32, i32, i32, i32, i32
  }
  func.func @transform_5(%arg0: i32, %arg1: i32) -> (i32, i32, i32, i32, i32) {
    %c0_i32 = arith.constant 0 : i32
    %c0_i32_0 = arith.constant 0 : i32
    %c0_i32_1 = arith.constant 0 : i32
    %c0_i32_2 = arith.constant 0 : i32
    %c0_i32_3 = arith.constant 0 : i32
    %c0_i32_4 = arith.constant 0 : i32
    return %c0_i32, %c0_i32_0, %c0_i32_1, %c0_i32_2, %c0_i32_3 : i32, i32, i32, i32, i32
  }
  func.func @transform_6(%arg0: i32, %arg1: i32) -> (i32, i32, i32, i32, i32) {
    %c0_i32 = arith.constant 0 : i32
    %c0_i32_0 = arith.constant 0 : i32
    %c0_i32_1 = arith.constant 0 : i32
    %c0_i32_2 = arith.constant 0 : i32
    return %arg0, %arg1, %c0_i32, %c0_i32_0, %c0_i32_1 : i32, i32, i32, i32, i32
  }
}

module attributes {stable_mosaic.version = 11 : i64} {
  func.func @_shuffle_affine_skip_kernel(%arg0: i32, %arg1: i32, %arg2: memref<1x4x8x128xf32, #tpu.memory_space<vmem>>, %arg3: memref<1x1x1x128xf32, #tpu.memory_space<vmem>>, %arg4: memref<1x1x1x128xf32, #tpu.memory_space<vmem>>, %arg5: memref<1x4x2x8x64xf32, #tpu.memory_space<vmem>>, %arg6: memref<1x1x1x1x64xf32, #tpu.memory_space<vmem>>, %arg7: memref<1x1x1x1x64xf32, #tpu.memory_space<vmem>>, %arg8: memref<1x4x2x8x64xf32, #tpu.memory_space<vmem>>) attributes {dimension_semantics = [#tpu.dimension_semantics<parallel>, #tpu.dimension_semantics<parallel>], iteration_bounds = array<i64: 2, 1>, scalar_prefetch = 0 : i64, scratch_operands = 0 : i64, tpu.core_type = #tpu.core_type<tc>, window_params = [{transform_indices = @transform_0, window_bounds = array<i64: 1, 4, 8, 128>}, {pipeline_mode = #tpu.pipeline_mode<synchronous>, transform_indices = @transform_1, window_bounds = array<i64: 1, 1, 1, 128>}, {pipeline_mode = #tpu.pipeline_mode<synchronous>, transform_indices = @transform_2, window_bounds = array<i64: 1, 1, 1, 128>}, {transform_indices = @transform_3, window_bounds = array<i64: 1, 4, 2, 8, 64>}, {pipeline_mode = #tpu.pipeline_mode<synchronous>, transform_indices = @transform_4, window_bounds = array<i64: 1, 1, 1, 1, 64>}, {pipeline_mode = #tpu.pipeline_mode<synchronous>, transform_indices = @transform_5, window_bounds = array<i64: 1, 1, 1, 1, 64>}, {transform_indices = @transform_6, window_bounds = array<i64: 1, 4, 2, 8, 64>}]} {
    %c0 = arith.constant 0 : index
    %c0_0 = arith.constant 0 : index
    %c0_1 = arith.constant 0 : index
    %c0_2 = arith.constant 0 : index
    %0 = vector.load %arg2[%c0, %c0_0, %c0_1, %c0_2] : memref<1x4x8x128xf32, #tpu.memory_space<vmem>>, vector<1x4x8x128xf32>
    %c0_3 = arith.constant 0 : index
    %c0_4 = arith.constant 0 : index
    %c0_5 = arith.constant 0 : index
    %c0_6 = arith.constant 0 : index
    %1 = vector.load %arg3[%c0_3, %c0_4, %c0_5, %c0_6] : memref<1x1x1x128xf32, #tpu.memory_space<vmem>>, vector<1x1x1x128xf32>
    %2 = vector.broadcast %1 : vector<1x1x1x128xf32> to vector<1x4x8x128xf32>
    %3 = arith.mulf %0, %2 : vector<1x4x8x128xf32>
    %c0_7 = arith.constant 0 : index
    %c0_8 = arith.constant 0 : index
    %c0_9 = arith.constant 0 : index
    %c0_10 = arith.constant 0 : index
    %4 = vector.load %arg4[%c0_7, %c0_8, %c0_9, %c0_10] : memref<1x1x1x128xf32, #tpu.memory_space<vmem>>, vector<1x1x1x128xf32>
    %5 = vector.broadcast %4 : vector<1x1x1x128xf32> to vector<1x4x8x128xf32>
    %6 = arith.addf %3, %5 : vector<1x4x8x128xf32>
    %c0_11 = arith.constant 0 : index
    %c0_12 = arith.constant 0 : index
    %c0_13 = arith.constant 0 : index
    %c0_14 = arith.constant 0 : index
    %c0_15 = arith.constant 0 : index
    %7 = vector.load %arg5[%c0_11, %c0_12, %c0_13, %c0_14, %c0_15] : memref<1x4x2x8x64xf32, #tpu.memory_space<vmem>>, vector<1x4x2x8x64xf32>
    %c0_16 = arith.constant 0 : index
    %c0_17 = arith.constant 0 : index
    %c0_18 = arith.constant 0 : index
    %c0_19 = arith.constant 0 : index
    %c0_20 = arith.constant 0 : index
    %8 = vector.load %arg6[%c0_16, %c0_17, %c0_18, %c0_19, %c0_20] : memref<1x1x1x1x64xf32, #tpu.memory_space<vmem>>, vector<1x1x1x1x64xf32>
    %9 = vector.broadcast %8 : vector<1x1x1x1x64xf32> to vector<1x4x2x8x64xf32>
    %10 = arith.mulf %7, %9 : vector<1x4x2x8x64xf32>
    %c0_21 = arith.constant 0 : index
    %c0_22 = arith.constant 0 : index
    %c0_23 = arith.constant 0 : index
    %c0_24 = arith.constant 0 : index
    %c0_25 = arith.constant 0 : index
    %11 = vector.load %arg7[%c0_21, %c0_22, %c0_23, %c0_24, %c0_25] : memref<1x1x1x1x64xf32, #tpu.memory_space<vmem>>, vector<1x1x1x1x64xf32>
    %12 = vector.broadcast %11 : vector<1x1x1x1x64xf32> to vector<1x4x2x8x64xf32>
    %13 = arith.addf %10, %12 : vector<1x4x2x8x64xf32>
    %14 = vector.extract_strided_slice %6 {offsets = [0, 0, 0, 0], sizes = [1, 4, 8, 64], strides = [1, 1, 1, 1]} : vector<1x4x8x128xf32> to vector<1x4x8x64xf32>
    %15 = vector.shape_cast %14 : vector<1x4x8x64xf32> to vector<4x8x64xf32>
    %16 = vector.extract_strided_slice %13 {offsets = [0, 0, 0, 0, 0], sizes = [1, 4, 1, 8, 64], strides = [1, 1, 1, 1, 1]} : vector<1x4x2x8x64xf32> to vector<1x4x1x8x64xf32>
    %17 = vector.shape_cast %16 : vector<1x4x1x8x64xf32> to vector<4x8x64xf32>
    %18 = arith.addf %15, %17 : vector<4x8x64xf32>
    %c0_26 = arith.constant 0 : index
    %c0_27 = arith.constant 0 : index
    %c0_28 = arith.constant 0 : index
    %c0_29 = arith.constant 0 : index
    %c0_30 = arith.constant 0 : index
    %19 = vector.load %arg8[%c0_26, %c0_27, %c0_28, %c0_29, %c0_30] : memref<1x4x2x8x64xf32, #tpu.memory_space<vmem>>, vector<1x4x1x8x64xf32>
    %20 = vector.shape_cast %19 : vector<1x4x1x8x64xf32> to vector<4x8x64xf32>
    %21 = vector.shape_cast %18 : vector<4x8x64xf32> to vector<1x4x1x8x64xf32>
    tpu.vector_store %arg8[%c0_26, %c0_27, %c0_28, %c0_29, %c0_30], %21 {strides = array<i32>} : memref<1x4x2x8x64xf32, #tpu.memory_space<vmem>>, vector<1x4x1x8x64xf32>,
    %22 = vector.extract_strided_slice %6 {offsets = [0, 0, 0, 64], sizes = [1, 4, 8, 64], strides = [1, 1, 1, 1]} : vector<1x4x8x128xf32> to vector<1x4x8x64xf32>
    %23 = vector.shape_cast %22 : vector<1x4x8x64xf32> to vector<4x8x64xf32>
    %24 = vector.extract_strided_slice %13 {offsets = [0, 0, 1, 0, 0], sizes = [1, 4, 1, 8, 64], strides = [1, 1, 1, 1, 1]} : vector<1x4x2x8x64xf32> to vector<1x4x1x8x64xf32>
    %25 = vector.shape_cast %24 : vector<1x4x1x8x64xf32> to vector<4x8x64xf32>
    %26 = arith.addf %23, %25 : vector<4x8x64xf32>
    %c0_31 = arith.constant 0 : index
    %c0_32 = arith.constant 0 : index
    %c1 = arith.constant 1 : index
    %c0_33 = arith.constant 0 : index
    %c0_34 = arith.constant 0 : index
    %27 = vector.load %arg8[%c0_31, %c0_32, %c1, %c0_33, %c0_34] : memref<1x4x2x8x64xf32, #tpu.memory_space<vmem>>, vector<1x4x1x8x64xf32>
    %28 = vector.shape_cast %27 : vector<1x4x1x8x64xf32> to vector<4x8x64xf32>
    %29 = vector.shape_cast %26 : vector<4x8x64xf32> to vector<1x4x1x8x64xf32>
    tpu.vector_store %arg8[%c0_31, %c0_32, %c1, %c0_33, %c0_34], %29 {strides = array<i32>} : memref<1x4x2x8x64xf32, #tpu.memory_space<vmem>>, vector<1x4x1x8x64xf32>,
    return
  }
  func.func @transform_0(%arg0: i32, %arg1: i32) -> (i32, i32, i32, i32) {
    %c0_i32 = arith.constant 0 : i32
    %c0_i32_0 = arith.constant 0 : i32
    %c0_i32_1 = arith.constant 0 : i32
    return %arg0, %arg1, %c0_i32, %c0_i32_0 : i32, i32, i32, i32
  }
  func.func @transform_1(%arg0: i32, %arg1: i32) -> (i32, i32, i32, i32) {
    %c0_i32 = arith.constant 0 : i32
    %c0_i32_0 = arith.constant 0 : i32
    %c0_i32_1 = arith.constant 0 : i32
    %c0_i32_2 = arith.constant 0 : i32
    %c0_i32_3 = arith.constant 0 : i32
    return %c0_i32, %c0_i32_0, %c0_i32_1, %c0_i32_2 : i32, i32, i32, i32
  }
  func.func @transform_2(%arg0: i32, %arg1: i32) -> (i32, i32, i32, i32) {
    %c0_i32 = arith.constant 0 : i32
    %c0_i32_0 = arith.constant 0 : i32
    %c0_i32_1 = arith.constant 0 : i32
    %c0_i32_2 = arith.constant 0 : i32
    %c0_i32_3 = arith.constant 0 : i32
    return %c0_i32, %c0_i32_0, %c0_i32_1, %c0_i32_2 : i32, i32, i32, i32
  }
  func.func @transform_3(%arg0: i32, %arg1: i32) -> (i32, i32, i32, i32, i32) {
    %c0_i32 = arith.constant 0 : i32
    %c0_i32_0 = arith.constant 0 : i32
    %c0_i32_1 = arith.constant 0 : i32
    %c0_i32_2 = arith.constant 0 : i32
    return %arg0, %arg1, %c0_i32, %c0_i32_0, %c0_i32_1 : i32, i32, i32, i32, i32
  }
  func.func @transform_4(%arg0: i32, %arg1: i32) -> (i32, i32, i32, i32, i32) {
    %c0_i32 = arith.constant 0 : i32
    %c0_i32_0 = arith.constant 0 : i32
    %c0_i32_1 = arith.constant 0 : i32
    %c0_i32_2 = arith.constant 0 : i32
    %c0_i32_3 = arith.constant 0 : i32
    %c0_i32_4 = arith.constant 0 : i32
    return %c0_i32, %c0_i32_0, %c0_i32_1, %c0_i32_2, %c0_i32_3 : i32, i32, i32, i32, i32
  }
  func.func @transform_5(%arg0: i32, %arg1: i32) -> (i32, i32, i32, i32, i32) {
    %c0_i32 = arith.constant 0 : i32
    %c0_i32_0 = arith.constant 0 : i32
    %c0_i32_1 = arith.constant 0 : i32
    %c0_i32_2 = arith.constant 0 : i32
    %c0_i32_3 = arith.constant 0 : i32
    %c0_i32_4 = arith.constant 0 : i32
    return %c0_i32, %c0_i32_0, %c0_i32_1, %c0_i32_2, %c0_i32_3 : i32, i32, i32, i32, i32
  }
  func.func @transform_6(%arg0: i32, %arg1: i32) -> (i32, i32, i32, i32, i32) {
    %c0_i32 = arith.constant 0 : i32
    %c0_i32_0 = arith.constant 0 : i32
    %c0_i32_1 = arith.constant 0 : i32
    %c0_i32_2 = arith.constant 0 : i32
    return %arg0, %arg1, %c0_i32, %c0_i32_0, %c0_i32_1 : i32, i32, i32, i32, i32
  }
}

module attributes {stable_mosaic.version = 11 : i64} {
  func.func @_deconv_kernel(%arg0: i32, %arg1: i32, %arg2: i32, %arg3: memref<1x6x10x32xf32, #tpu.memory_space<vmem>>, %arg4: memref<288x128xf32, #tpu.memory_space<vmem>>, %arg5: memref<1x128xf32, #tpu.memory_space<vmem>>, %arg6: memref<1x4x8x128xf32, #tpu.memory_space<vmem>>, %arg7: memref<1x1x2x128xf32, #tpu.memory_space<vmem>>) attributes {dimension_semantics = [#tpu.dimension_semantics<parallel>, #tpu.dimension_semantics<parallel>, #tpu.dimension_semantics<parallel>], iteration_bounds = array<i64: 2, 1, 1>, scalar_prefetch = 0 : i64, scratch_operands = 0 : i64, tpu.core_type = #tpu.core_type<tc>, window_params = [{transform_indices = @transform_0, window_bounds = array<i64: 1, 6, 10, 32>}, {transform_indices = @transform_1, window_bounds = array<i64: 288, 128>}, {transform_indices = @transform_2, window_bounds = array<i64: 1, 128>}, {transform_indices = @transform_3, window_bounds = array<i64: 1, 4, 8, 128>}, {transform_indices = @transform_4, window_bounds = array<i64: 1, 1, 2, 128>}]} {
    %c4_i32 = arith.constant 4 : i32
    %0 = arith.muli %arg1, %c4_i32 : i32
    %c0_i32 = arith.constant 0 : i32
    %1 = arith.addi %0, %c0_i32 : i32
    %c0 = arith.constant 0 : index
    %2 = arith.index_cast %1 : i32 to index
    %c0_0 = arith.constant 0 : index
    %c0_1 = arith.constant 0 : index
    %3 = vector.load %arg3[%c0, %2, %c0_0, %c0_1] : memref<1x6x10x32xf32, #tpu.memory_space<vmem>>, vector<1x4x8x32xf32>
    %4 = vector.shape_cast %3 : vector<1x4x8x32xf32> to vector<4x8x32xf32>
    %c0_i32_2 = arith.constant 0 : i32
    %5 = arith.addi %0, %c0_i32_2 : i32
    %c0_3 = arith.constant 0 : index
    %6 = arith.index_cast %5 : i32 to index
    %c1 = arith.constant 1 : index
    %c0_4 = arith.constant 0 : index
    %7 = vector.load %arg3[%c0_3, %6, %c1, %c0_4] : memref<1x6x10x32xf32, #tpu.memory_space<vmem>>, vector<1x4x8x32xf32>
    %8 = vector.shape_cast %7 : vector<1x4x8x32xf32> to vector<4x8x32xf32>
    %c0_i32_5 = arith.constant 0 : i32
    %9 = arith.addi %0, %c0_i32_5 : i32
    %c0_6 = arith.constant 0 : index
    %10 = arith.index_cast %9 : i32 to index
    %c2 = arith.constant 2 : index
    %c0_7 = arith.constant 0 : index
    %11 = vector.load %arg3[%c0_6, %10, %c2, %c0_7] : memref<1x6x10x32xf32, #tpu.memory_space<vmem>>, vector<1x4x8x32xf32>
    %12 = vector.shape_cast %11 : vector<1x4x8x32xf32> to vector<4x8x32xf32>
    %c1_i32 = arith.constant 1 : i32
    %13 = arith.addi %0, %c1_i32 : i32
    %c0_8 = arith.constant 0 : index
    %14 = arith.index_cast %13 : i32 to index
    %c0_9 = arith.constant 0 : index
    %c0_10 = arith.constant 0 : index
    %15 = vector.load %arg3[%c0_8, %14, %c0_9, %c0_10] : memref<1x6x10x32xf32, #tpu.memory_space<vmem>>, vector<1x4x8x32xf32>
    %16 = vector.shape_cast %15 : vector<1x4x8x32xf32> to vector<4x8x32xf32>
    %c1_i32_11 = arith.constant 1 : i32
    %17 = arith.addi %0, %c1_i32_11 : i32
    %c0_12 = arith.constant 0 : index
    %18 = arith.index_cast %17 : i32 to index
    %c1_13 = arith.constant 1 : index
    %c0_14 = arith.constant 0 : index
    %19 = vector.load %arg3[%c0_12, %18, %c1_13, %c0_14] : memref<1x6x10x32xf32, #tpu.memory_space<vmem>>, vector<1x4x8x32xf32>
    %20 = vector.shape_cast %19 : vector<1x4x8x32xf32> to vector<4x8x32xf32>
    %c1_i32_15 = arith.constant 1 : i32
    %21 = arith.addi %0, %c1_i32_15 : i32
    %c0_16 = arith.constant 0 : index
    %22 = arith.index_cast %21 : i32 to index
    %c2_17 = arith.constant 2 : index
    %c0_18 = arith.constant 0 : index
    %23 = vector.load %arg3[%c0_16, %22, %c2_17, %c0_18] : memref<1x6x10x32xf32, #tpu.memory_space<vmem>>, vector<1x4x8x32xf32>
    %24 = vector.shape_cast %23 : vector<1x4x8x32xf32> to vector<4x8x32xf32>
    %c2_i32 = arith.constant 2 : i32
    %25 = arith.addi %0, %c2_i32 : i32
    %c0_19 = arith.constant 0 : index
    %26 = arith.index_cast %25 : i32 to index
    %c0_20 = arith.constant 0 : index
    %c0_21 = arith.constant 0 : index
    %27 = vector.load %arg3[%c0_19, %26, %c0_20, %c0_21] : memref<1x6x10x32xf32, #tpu.memory_space<vmem>>, vector<1x4x8x32xf32>
    %28 = vector.shape_cast %27 : vector<1x4x8x32xf32> to vector<4x8x32xf32>
    %c2_i32_22 = arith.constant 2 : i32
    %29 = arith.addi %0, %c2_i32_22 : i32
    %c0_23 = arith.constant 0 : index
    %30 = arith.index_cast %29 : i32 to index
    %c1_24 = arith.constant 1 : index
    %c0_25 = arith.constant 0 : index
    %31 = vector.load %arg3[%c0_23, %30, %c1_24, %c0_25] : memref<1x6x10x32xf32, #tpu.memory_space<vmem>>, vector<1x4x8x32xf32>
    %32 = vector.shape_cast %31 : vector<1x4x8x32xf32> to vector<4x8x32xf32>
    %c2_i32_26 = arith.constant 2 : i32
    %33 = arith.addi %0, %c2_i32_26 : i32
    %c0_27 = arith.constant 0 : index
    %34 = arith.index_cast %33 : i32 to index
    %c2_28 = arith.constant 2 : index
    %c0_29 = arith.constant 0 : index
    %35 = vector.load %arg3[%c0_27, %34, %c2_28, %c0_29] : memref<1x6x10x32xf32, #tpu.memory_space<vmem>>, vector<1x4x8x32xf32>
    %36 = vector.shape_cast %35 : vector<1x4x8x32xf32> to vector<4x8x32xf32>
    %37 = tpu.concatenate %4, %8, %12, %16, %20, %24, %28, %32, %36 in 2 : vector<4x8x32xf32>, vector<4x8x32xf32>, vector<4x8x32xf32>, vector<4x8x32xf32>, vector<4x8x32xf32>, vector<4x8x32xf32>, vector<4x8x32xf32>, vector<4x8x32xf32>, vector<4x8x32xf32> -> vector<4x8x288xf32>
    %38 = vector.shape_cast %37 : vector<4x8x288xf32> to vector<32x288xf32>
    %c0_30 = arith.constant 0 : index
    %c0_31 = arith.constant 0 : index
    %39 = vector.load %arg4[%c0_30, %c0_31] : memref<288x128xf32, #tpu.memory_space<vmem>>, vector<288x128xf32>
    %cst = arith.constant dense<0.000000e+00> : vector<32x128xf32>
    %40 = tpu.matmul %38, %39, %cst {dimension_numbers = #tpu.dot_dimension_numbers<[1], [0], [0], [1], [0, 0, 1, 1], [], []>} : vector<32x288xf32>, vector<288x128xf32>, vector<32x128xf32> -> vector<32x128xf32>
    %c0_32 = arith.constant 0 : index
    %c0_33 = arith.constant 0 : index
    %41 = vector.load %arg5[%c0_32, %c0_33] : memref<1x128xf32, #tpu.memory_space<vmem>>, vector<1x128xf32>
    %42 = vector.broadcast %41 : vector<1x128xf32> to vector<32x128xf32>
    %43 = arith.addf %40, %42 : vector<32x128xf32>
    %cst_34 = arith.constant 0.000000e+00 : f32
    %44 = vector.broadcast %cst_34 : f32 to vector<32x128xf32>
    %45 = arith.maximumf %43, %44 : vector<32x128xf32>
    %46 = vector.shape_cast %45 : vector<32x128xf32> to vector<1x4x8x128xf32>
    %c0_35 = arith.constant 0 : index
    %c0_36 = arith.constant 0 : index
    %c0_37 = arith.constant 0 : index
    %c0_38 = arith.constant 0 : index
    %47 = vector.load %arg6[%c0_35, %c0_36, %c0_37, %c0_38] : memref<1x4x8x128xf32, #tpu.memory_space<vmem>>, vector<1x4x8x128xf32>
    tpu.vector_store %arg6[%c0_35, %c0_36, %c0_37, %c0_38], %46 {strides = array<i32>} : memref<1x4x8x128xf32, #tpu.memory_space<vmem>>, vector<1x4x8x128xf32>,
    %cst_39 = arith.constant dense<0.000000e+00> : vector<128xf32>
    %48 = vector.multi_reduction <add>, %45, %cst_39 [0] : vector<32x128xf32> to vector<128xf32>
    %49 = vector.shape_cast %48 : vector<128xf32> to vector<1x128xf32>
    %50 = arith.mulf %45, %45 : vector<32x128xf32>
    %cst_40 = arith.constant dense<0.000000e+00> : vector<128xf32>
    %51 = vector.multi_reduction <add>, %50, %cst_40 [0] : vector<32x128xf32> to vector<128xf32>
    %52 = vector.shape_cast %51 : vector<128xf32> to vector<1x128xf32>
    %53 = tpu.concatenate %49, %52 in 0 : vector<1x128xf32>, vector<1x128xf32> -> vector<2x128xf32>
    %54 = vector.shape_cast %53 : vector<2x128xf32> to vector<1x1x2x128xf32>
    %c0_41 = arith.constant 0 : index
    %c0_42 = arith.constant 0 : index
    %c0_43 = arith.constant 0 : index
    %c0_44 = arith.constant 0 : index
    %55 = vector.load %arg7[%c0_41, %c0_42, %c0_43, %c0_44] : memref<1x1x2x128xf32, #tpu.memory_space<vmem>>, vector<1x1x2x128xf32>
    tpu.vector_store %arg7[%c0_41, %c0_42, %c0_43, %c0_44], %54 {strides = array<i32>} : memref<1x1x2x128xf32, #tpu.memory_space<vmem>>, vector<1x1x2x128xf32>,
    return
  }
  func.func @transform_0(%arg0: i32, %arg1: i32, %arg2: i32) -> (i32, i32, i32, i32) {
    %c0_i32 = arith.constant 0 : i32
    %c0_i32_0 = arith.constant 0 : i32
    %c0_i32_1 = arith.constant 0 : i32
    %c0_i32_2 = arith.constant 0 : i32
    return %arg0, %c0_i32, %c0_i32_0, %c0_i32_1 : i32, i32, i32, i32
  }
  func.func @transform_1(%arg0: i32, %arg1: i32, %arg2: i32) -> (i32, i32) {
    %c0_i32 = arith.constant 0 : i32
    %c0_i32_0 = arith.constant 0 : i32
    return %c0_i32, %arg2 : i32, i32
  }
  func.func @transform_2(%arg0: i32, %arg1: i32, %arg2: i32) -> (i32, i32) {
    %c0_i32 = arith.constant 0 : i32
    %c0_i32_0 = arith.constant 0 : i32
    return %c0_i32, %arg2 : i32, i32
  }
  func.func @transform_3(%arg0: i32, %arg1: i32, %arg2: i32) -> (i32, i32, i32, i32) {
    %c0_i32 = arith.constant 0 : i32
    %c0_i32_0 = arith.constant 0 : i32
    return %arg0, %arg1, %c0_i32, %arg2 : i32, i32, i32, i32
  }
  func.func @transform_4(%arg0: i32, %arg1: i32, %arg2: i32) -> (i32, i32, i32, i32) {
    %c0_i32 = arith.constant 0 : i32
    %c0_i32_0 = arith.constant 0 : i32
    return %arg0, %arg1, %c0_i32, %arg2 : i32, i32, i32, i32
  }
}

module attributes {stable_mosaic.version = 11 : i64} {
  func.func @_deconv_kernel(%arg0: i32, %arg1: i32, %arg2: i32, %arg3: memref<1x10x18x32xf32, #tpu.memory_space<vmem>>, %arg4: memref<288x256xf32, #tpu.memory_space<vmem>>, %arg5: memref<1x256xf32, #tpu.memory_space<vmem>>, %arg6: memref<1x8x16x256xf32, #tpu.memory_space<vmem>>, %arg7: memref<1x1x2x256xf32, #tpu.memory_space<vmem>>) attributes {dimension_semantics = [#tpu.dimension_semantics<parallel>, #tpu.dimension_semantics<parallel>, #tpu.dimension_semantics<parallel>], iteration_bounds = array<i64: 2, 1, 8>, scalar_prefetch = 0 : i64, scratch_operands = 0 : i64, tpu.core_type = #tpu.core_type<tc>, window_params = [{transform_indices = @transform_0, window_bounds = array<i64: 1, 10, 18, 32>}, {transform_indices = @transform_1, window_bounds = array<i64: 288, 256>}, {transform_indices = @transform_2, window_bounds = array<i64: 1, 256>}, {transform_indices = @transform_3, window_bounds = array<i64: 1, 8, 16, 256>}, {transform_indices = @transform_4, window_bounds = array<i64: 1, 1, 2, 256>}]} {
    %c8_i32 = arith.constant 8 : i32
    %0 = arith.muli %arg1, %c8_i32 : i32
    %c0_i32 = arith.constant 0 : i32
    %1 = arith.addi %0, %c0_i32 : i32
    %c0 = arith.constant 0 : index
    %2 = arith.index_cast %1 : i32 to index
    %c0_0 = arith.constant 0 : index
    %c0_1 = arith.constant 0 : index
    %3 = vector.load %arg3[%c0, %2, %c0_0, %c0_1] : memref<1x10x18x32xf32, #tpu.memory_space<vmem>>, vector<1x8x16x32xf32>
    %4 = vector.shape_cast %3 : vector<1x8x16x32xf32> to vector<8x16x32xf32>
    %c0_i32_2 = arith.constant 0 : i32
    %5 = arith.addi %0, %c0_i32_2 : i32
    %c0_3 = arith.constant 0 : index
    %6 = arith.index_cast %5 : i32 to index
    %c1 = arith.constant 1 : index
    %c0_4 = arith.constant 0 : index
    %7 = vector.load %arg3[%c0_3, %6, %c1, %c0_4] : memref<1x10x18x32xf32, #tpu.memory_space<vmem>>, vector<1x8x16x32xf32>
    %8 = vector.shape_cast %7 : vector<1x8x16x32xf32> to vector<8x16x32xf32>
    %c0_i32_5 = arith.constant 0 : i32
    %9 = arith.addi %0, %c0_i32_5 : i32
    %c0_6 = arith.constant 0 : index
    %10 = arith.index_cast %9 : i32 to index
    %c2 = arith.constant 2 : index
    %c0_7 = arith.constant 0 : index
    %11 = vector.load %arg3[%c0_6, %10, %c2, %c0_7] : memref<1x10x18x32xf32, #tpu.memory_space<vmem>>, vector<1x8x16x32xf32>
    %12 = vector.shape_cast %11 : vector<1x8x16x32xf32> to vector<8x16x32xf32>
    %c1_i32 = arith.constant 1 : i32
    %13 = arith.addi %0, %c1_i32 : i32
    %c0_8 = arith.constant 0 : index
    %14 = arith.index_cast %13 : i32 to index
    %c0_9 = arith.constant 0 : index
    %c0_10 = arith.constant 0 : index
    %15 = vector.load %arg3[%c0_8, %14, %c0_9, %c0_10] : memref<1x10x18x32xf32, #tpu.memory_space<vmem>>, vector<1x8x16x32xf32>
    %16 = vector.shape_cast %15 : vector<1x8x16x32xf32> to vector<8x16x32xf32>
    %c1_i32_11 = arith.constant 1 : i32
    %17 = arith.addi %0, %c1_i32_11 : i32
    %c0_12 = arith.constant 0 : index
    %18 = arith.index_cast %17 : i32 to index
    %c1_13 = arith.constant 1 : index
    %c0_14 = arith.constant 0 : index
    %19 = vector.load %arg3[%c0_12, %18, %c1_13, %c0_14] : memref<1x10x18x32xf32, #tpu.memory_space<vmem>>, vector<1x8x16x32xf32>
    %20 = vector.shape_cast %19 : vector<1x8x16x32xf32> to vector<8x16x32xf32>
    %c1_i32_15 = arith.constant 1 : i32
    %21 = arith.addi %0, %c1_i32_15 : i32
    %c0_16 = arith.constant 0 : index
    %22 = arith.index_cast %21 : i32 to index
    %c2_17 = arith.constant 2 : index
    %c0_18 = arith.constant 0 : index
    %23 = vector.load %arg3[%c0_16, %22, %c2_17, %c0_18] : memref<1x10x18x32xf32, #tpu.memory_space<vmem>>, vector<1x8x16x32xf32>
    %24 = vector.shape_cast %23 : vector<1x8x16x32xf32> to vector<8x16x32xf32>
    %c2_i32 = arith.constant 2 : i32
    %25 = arith.addi %0, %c2_i32 : i32
    %c0_19 = arith.constant 0 : index
    %26 = arith.index_cast %25 : i32 to index
    %c0_20 = arith.constant 0 : index
    %c0_21 = arith.constant 0 : index
    %27 = vector.load %arg3[%c0_19, %26, %c0_20, %c0_21] : memref<1x10x18x32xf32, #tpu.memory_space<vmem>>, vector<1x8x16x32xf32>
    %28 = vector.shape_cast %27 : vector<1x8x16x32xf32> to vector<8x16x32xf32>
    %c2_i32_22 = arith.constant 2 : i32
    %29 = arith.addi %0, %c2_i32_22 : i32
    %c0_23 = arith.constant 0 : index
    %30 = arith.index_cast %29 : i32 to index
    %c1_24 = arith.constant 1 : index
    %c0_25 = arith.constant 0 : index
    %31 = vector.load %arg3[%c0_23, %30, %c1_24, %c0_25] : memref<1x10x18x32xf32, #tpu.memory_space<vmem>>, vector<1x8x16x32xf32>
    %32 = vector.shape_cast %31 : vector<1x8x16x32xf32> to vector<8x16x32xf32>
    %c2_i32_26 = arith.constant 2 : i32
    %33 = arith.addi %0, %c2_i32_26 : i32
    %c0_27 = arith.constant 0 : index
    %34 = arith.index_cast %33 : i32 to index
    %c2_28 = arith.constant 2 : index
    %c0_29 = arith.constant 0 : index
    %35 = vector.load %arg3[%c0_27, %34, %c2_28, %c0_29] : memref<1x10x18x32xf32, #tpu.memory_space<vmem>>, vector<1x8x16x32xf32>
    %36 = vector.shape_cast %35 : vector<1x8x16x32xf32> to vector<8x16x32xf32>
    %37 = tpu.concatenate %4, %8, %12, %16, %20, %24, %28, %32, %36 in 2 : vector<8x16x32xf32>, vector<8x16x32xf32>, vector<8x16x32xf32>, vector<8x16x32xf32>, vector<8x16x32xf32>, vector<8x16x32xf32>, vector<8x16x32xf32>, vector<8x16x32xf32>, vector<8x16x32xf32> -> vector<8x16x288xf32>
    %38 = vector.shape_cast %37 : vector<8x16x288xf32> to vector<128x288xf32>
    %c0_30 = arith.constant 0 : index
    %c0_31 = arith.constant 0 : index
    %39 = vector.load %arg4[%c0_30, %c0_31] : memref<288x256xf32, #tpu.memory_space<vmem>>, vector<288x256xf32>
    %cst = arith.constant dense<0.000000e+00> : vector<128x256xf32>
    %40 = tpu.matmul %38, %39, %cst {dimension_numbers = #tpu.dot_dimension_numbers<[1], [0], [0], [1], [0, 0, 1, 1], [], []>} : vector<128x288xf32>, vector<288x256xf32>, vector<128x256xf32> -> vector<128x256xf32>
    %c0_32 = arith.constant 0 : index
    %c0_33 = arith.constant 0 : index
    %41 = vector.load %arg5[%c0_32, %c0_33] : memref<1x256xf32, #tpu.memory_space<vmem>>, vector<1x256xf32>
    %42 = vector.broadcast %41 : vector<1x256xf32> to vector<128x256xf32>
    %43 = arith.addf %40, %42 : vector<128x256xf32>
    %cst_34 = arith.constant 0.000000e+00 : f32
    %44 = vector.broadcast %cst_34 : f32 to vector<128x256xf32>
    %45 = arith.maximumf %43, %44 : vector<128x256xf32>
    %46 = vector.shape_cast %45 : vector<128x256xf32> to vector<1x8x16x256xf32>
    %c0_35 = arith.constant 0 : index
    %c0_36 = arith.constant 0 : index
    %c0_37 = arith.constant 0 : index
    %c0_38 = arith.constant 0 : index
    %47 = vector.load %arg6[%c0_35, %c0_36, %c0_37, %c0_38] : memref<1x8x16x256xf32, #tpu.memory_space<vmem>>, vector<1x8x16x256xf32>
    tpu.vector_store %arg6[%c0_35, %c0_36, %c0_37, %c0_38], %46 {strides = array<i32>} : memref<1x8x16x256xf32, #tpu.memory_space<vmem>>, vector<1x8x16x256xf32>,
    %cst_39 = arith.constant dense<0.000000e+00> : vector<256xf32>
    %48 = vector.multi_reduction <add>, %45, %cst_39 [0] : vector<128x256xf32> to vector<256xf32>
    %49 = vector.shape_cast %48 : vector<256xf32> to vector<1x256xf32>
    %50 = arith.mulf %45, %45 : vector<128x256xf32>
    %cst_40 = arith.constant dense<0.000000e+00> : vector<256xf32>
    %51 = vector.multi_reduction <add>, %50, %cst_40 [0] : vector<128x256xf32> to vector<256xf32>
    %52 = vector.shape_cast %51 : vector<256xf32> to vector<1x256xf32>
    %53 = tpu.concatenate %49, %52 in 0 : vector<1x256xf32>, vector<1x256xf32> -> vector<2x256xf32>
    %54 = vector.shape_cast %53 : vector<2x256xf32> to vector<1x1x2x256xf32>
    %c0_41 = arith.constant 0 : index
    %c0_42 = arith.constant 0 : index
    %c0_43 = arith.constant 0 : index
    %c0_44 = arith.constant 0 : index
    %55 = vector.load %arg7[%c0_41, %c0_42, %c0_43, %c0_44] : memref<1x1x2x256xf32, #tpu.memory_space<vmem>>, vector<1x1x2x256xf32>
    tpu.vector_store %arg7[%c0_41, %c0_42, %c0_43, %c0_44], %54 {strides = array<i32>} : memref<1x1x2x256xf32, #tpu.memory_space<vmem>>, vector<1x1x2x256xf32>,
    return
  }
  func.func @transform_0(%arg0: i32, %arg1: i32, %arg2: i32) -> (i32, i32, i32, i32) {
    %c0_i32 = arith.constant 0 : i32
    %c0_i32_0 = arith.constant 0 : i32
    %c0_i32_1 = arith.constant 0 : i32
    %c0_i32_2 = arith.constant 0 : i32
    return %arg0, %c0_i32, %c0_i32_0, %c0_i32_1 : i32, i32, i32, i32
  }
  func.func @transform_1(%arg0: i32, %arg1: i32, %arg2: i32) -> (i32, i32) {
    %c0_i32 = arith.constant 0 : i32
    %c0_i32_0 = arith.constant 0 : i32
    return %c0_i32, %arg2 : i32, i32
  }
  func.func @transform_2(%arg0: i32, %arg1: i32, %arg2: i32) -> (i32, i32) {
    %c0_i32 = arith.constant 0 : i32
    %c0_i32_0 = arith.constant 0 : i32
    return %c0_i32, %arg2 : i32, i32
  }
  func.func @transform_3(%arg0: i32, %arg1: i32, %arg2: i32) -> (i32, i32, i32, i32) {
    %c0_i32 = arith.constant 0 : i32
    %c0_i32_0 = arith.constant 0 : i32
    return %arg0, %arg1, %c0_i32, %arg2 : i32, i32, i32, i32
  }
  func.func @transform_4(%arg0: i32, %arg1: i32, %arg2: i32) -> (i32, i32, i32, i32) {
    %c0_i32 = arith.constant 0 : i32
    %c0_i32_0 = arith.constant 0 : i32
    return %arg0, %arg1, %c0_i32, %arg2 : i32, i32, i32, i32
  }
}

module attributes {stable_mosaic.version = 11 : i64} {
  func.func @_shuffle_affine_kernel(%arg0: i32, %arg1: i32, %arg2: memref<1x8x16x2048xf32, #tpu.memory_space<vmem>>, %arg3: memref<1x1x1x2048xf32, #tpu.memory_space<vmem>>, %arg4: memref<1x1x1x2048xf32, #tpu.memory_space<vmem>>, %arg5: memref<1x8x8x16x256xf32, #tpu.memory_space<vmem>>) attributes {dimension_semantics = [#tpu.dimension_semantics<parallel>, #tpu.dimension_semantics<parallel>], iteration_bounds = array<i64: 2, 1>, scalar_prefetch = 0 : i64, scratch_operands = 0 : i64, tpu.core_type = #tpu.core_type<tc>, window_params = [{transform_indices = @transform_0, window_bounds = array<i64: 1, 8, 16, 2048>}, {pipeline_mode = #tpu.pipeline_mode<synchronous>, transform_indices = @transform_1, window_bounds = array<i64: 1, 1, 1, 2048>}, {pipeline_mode = #tpu.pipeline_mode<synchronous>, transform_indices = @transform_2, window_bounds = array<i64: 1, 1, 1, 2048>}, {transform_indices = @transform_3, window_bounds = array<i64: 1, 8, 8, 16, 256>}]} {
    %c0 = arith.constant 0 : index
    %c0_0 = arith.constant 0 : index
    %c0_1 = arith.constant 0 : index
    %c0_2 = arith.constant 0 : index
    %0 = vector.load %arg2[%c0, %c0_0, %c0_1, %c0_2] : memref<1x8x16x2048xf32, #tpu.memory_space<vmem>>, vector<1x8x16x2048xf32>
    %c0_3 = arith.constant 0 : index
    %c0_4 = arith.constant 0 : index
    %c0_5 = arith.constant 0 : index
    %c0_6 = arith.constant 0 : index
    %1 = vector.load %arg3[%c0_3, %c0_4, %c0_5, %c0_6] : memref<1x1x1x2048xf32, #tpu.memory_space<vmem>>, vector<1x1x1x2048xf32>
    %2 = vector.broadcast %1 : vector<1x1x1x2048xf32> to vector<1x8x16x2048xf32>
    %3 = arith.mulf %0, %2 : vector<1x8x16x2048xf32>
    %c0_7 = arith.constant 0 : index
    %c0_8 = arith.constant 0 : index
    %c0_9 = arith.constant 0 : index
    %c0_10 = arith.constant 0 : index
    %4 = vector.load %arg4[%c0_7, %c0_8, %c0_9, %c0_10] : memref<1x1x1x2048xf32, #tpu.memory_space<vmem>>, vector<1x1x1x2048xf32>
    %5 = vector.broadcast %4 : vector<1x1x1x2048xf32> to vector<1x8x16x2048xf32>
    %6 = arith.addf %3, %5 : vector<1x8x16x2048xf32>
    %7 = vector.extract_strided_slice %6 {offsets = [0, 0, 0, 0], sizes = [1, 8, 16, 256], strides = [1, 1, 1, 1]} : vector<1x8x16x2048xf32> to vector<1x8x16x256xf32>
    %8 = vector.shape_cast %7 : vector<1x8x16x256xf32> to vector<8x16x256xf32>
    %c0_11 = arith.constant 0 : index
    %c0_12 = arith.constant 0 : index
    %c0_13 = arith.constant 0 : index
    %c0_14 = arith.constant 0 : index
    %c0_15 = arith.constant 0 : index
    %9 = vector.load %arg5[%c0_11, %c0_12, %c0_13, %c0_14, %c0_15] : memref<1x8x8x16x256xf32, #tpu.memory_space<vmem>>, vector<1x8x1x16x256xf32>
    %10 = vector.shape_cast %9 : vector<1x8x1x16x256xf32> to vector<8x16x256xf32>
    %11 = vector.shape_cast %8 : vector<8x16x256xf32> to vector<1x8x1x16x256xf32>
    tpu.vector_store %arg5[%c0_11, %c0_12, %c0_13, %c0_14, %c0_15], %11 {strides = array<i32>} : memref<1x8x8x16x256xf32, #tpu.memory_space<vmem>>, vector<1x8x1x16x256xf32>,
    %12 = vector.extract_strided_slice %6 {offsets = [0, 0, 0, 256], sizes = [1, 8, 16, 256], strides = [1, 1, 1, 1]} : vector<1x8x16x2048xf32> to vector<1x8x16x256xf32>
    %13 = vector.shape_cast %12 : vector<1x8x16x256xf32> to vector<8x16x256xf32>
    %c0_16 = arith.constant 0 : index
    %c0_17 = arith.constant 0 : index
    %c1 = arith.constant 1 : index
    %c0_18 = arith.constant 0 : index
    %c0_19 = arith.constant 0 : index
    %14 = vector.load %arg5[%c0_16, %c0_17, %c1, %c0_18, %c0_19] : memref<1x8x8x16x256xf32, #tpu.memory_space<vmem>>, vector<1x8x1x16x256xf32>
    %15 = vector.shape_cast %14 : vector<1x8x1x16x256xf32> to vector<8x16x256xf32>
    %16 = vector.shape_cast %13 : vector<8x16x256xf32> to vector<1x8x1x16x256xf32>
    tpu.vector_store %arg5[%c0_16, %c0_17, %c1, %c0_18, %c0_19], %16 {strides = array<i32>} : memref<1x8x8x16x256xf32, #tpu.memory_space<vmem>>, vector<1x8x1x16x256xf32>,
    %17 = vector.extract_strided_slice %6 {offsets = [0, 0, 0, 512], sizes = [1, 8, 16, 256], strides = [1, 1, 1, 1]} : vector<1x8x16x2048xf32> to vector<1x8x16x256xf32>
    %18 = vector.shape_cast %17 : vector<1x8x16x256xf32> to vector<8x16x256xf32>
    %c0_20 = arith.constant 0 : index
    %c0_21 = arith.constant 0 : index
    %c2 = arith.constant 2 : index
    %c0_22 = arith.constant 0 : index
    %c0_23 = arith.constant 0 : index
    %19 = vector.load %arg5[%c0_20, %c0_21, %c2, %c0_22, %c0_23] : memref<1x8x8x16x256xf32, #tpu.memory_space<vmem>>, vector<1x8x1x16x256xf32>
    %20 = vector.shape_cast %19 : vector<1x8x1x16x256xf32> to vector<8x16x256xf32>
    %21 = vector.shape_cast %18 : vector<8x16x256xf32> to vector<1x8x1x16x256xf32>
    tpu.vector_store %arg5[%c0_20, %c0_21, %c2, %c0_22, %c0_23], %21 {strides = array<i32>} : memref<1x8x8x16x256xf32, #tpu.memory_space<vmem>>, vector<1x8x1x16x256xf32>,
    %22 = vector.extract_strided_slice %6 {offsets = [0, 0, 0, 768], sizes = [1, 8, 16, 256], strides = [1, 1, 1, 1]} : vector<1x8x16x2048xf32> to vector<1x8x16x256xf32>
    %23 = vector.shape_cast %22 : vector<1x8x16x256xf32> to vector<8x16x256xf32>
    %c0_24 = arith.constant 0 : index
    %c0_25 = arith.constant 0 : index
    %c3 = arith.constant 3 : index
    %c0_26 = arith.constant 0 : index
    %c0_27 = arith.constant 0 : index
    %24 = vector.load %arg5[%c0_24, %c0_25, %c3, %c0_26, %c0_27] : memref<1x8x8x16x256xf32, #tpu.memory_space<vmem>>, vector<1x8x1x16x256xf32>
    %25 = vector.shape_cast %24 : vector<1x8x1x16x256xf32> to vector<8x16x256xf32>
    %26 = vector.shape_cast %23 : vector<8x16x256xf32> to vector<1x8x1x16x256xf32>
    tpu.vector_store %arg5[%c0_24, %c0_25, %c3, %c0_26, %c0_27], %26 {strides = array<i32>} : memref<1x8x8x16x256xf32, #tpu.memory_space<vmem>>, vector<1x8x1x16x256xf32>,
    %27 = vector.extract_strided_slice %6 {offsets = [0, 0, 0, 1024], sizes = [1, 8, 16, 256], strides = [1, 1, 1, 1]} : vector<1x8x16x2048xf32> to vector<1x8x16x256xf32>
    %28 = vector.shape_cast %27 : vector<1x8x16x256xf32> to vector<8x16x256xf32>
    %c0_28 = arith.constant 0 : index
    %c0_29 = arith.constant 0 : index
    %c4 = arith.constant 4 : index
    %c0_30 = arith.constant 0 : index
    %c0_31 = arith.constant 0 : index
    %29 = vector.load %arg5[%c0_28, %c0_29, %c4, %c0_30, %c0_31] : memref<1x8x8x16x256xf32, #tpu.memory_space<vmem>>, vector<1x8x1x16x256xf32>
    %30 = vector.shape_cast %29 : vector<1x8x1x16x256xf32> to vector<8x16x256xf32>
    %31 = vector.shape_cast %28 : vector<8x16x256xf32> to vector<1x8x1x16x256xf32>
    tpu.vector_store %arg5[%c0_28, %c0_29, %c4, %c0_30, %c0_31], %31 {strides = array<i32>} : memref<1x8x8x16x256xf32, #tpu.memory_space<vmem>>, vector<1x8x1x16x256xf32>,
    %32 = vector.extract_strided_slice %6 {offsets = [0, 0, 0, 1280], sizes = [1, 8, 16, 256], strides = [1, 1, 1, 1]} : vector<1x8x16x2048xf32> to vector<1x8x16x256xf32>
    %33 = vector.shape_cast %32 : vector<1x8x16x256xf32> to vector<8x16x256xf32>
    %c0_32 = arith.constant 0 : index
    %c0_33 = arith.constant 0 : index
    %c5 = arith.constant 5 : index
    %c0_34 = arith.constant 0 : index
    %c0_35 = arith.constant 0 : index
    %34 = vector.load %arg5[%c0_32, %c0_33, %c5, %c0_34, %c0_35] : memref<1x8x8x16x256xf32, #tpu.memory_space<vmem>>, vector<1x8x1x16x256xf32>
    %35 = vector.shape_cast %34 : vector<1x8x1x16x256xf32> to vector<8x16x256xf32>
    %36 = vector.shape_cast %33 : vector<8x16x256xf32> to vector<1x8x1x16x256xf32>
    tpu.vector_store %arg5[%c0_32, %c0_33, %c5, %c0_34, %c0_35], %36 {strides = array<i32>} : memref<1x8x8x16x256xf32, #tpu.memory_space<vmem>>, vector<1x8x1x16x256xf32>,
    %37 = vector.extract_strided_slice %6 {offsets = [0, 0, 0, 1536], sizes = [1, 8, 16, 256], strides = [1, 1, 1, 1]} : vector<1x8x16x2048xf32> to vector<1x8x16x256xf32>
    %38 = vector.shape_cast %37 : vector<1x8x16x256xf32> to vector<8x16x256xf32>
    %c0_36 = arith.constant 0 : index
    %c0_37 = arith.constant 0 : index
    %c6 = arith.constant 6 : index
    %c0_38 = arith.constant 0 : index
    %c0_39 = arith.constant 0 : index
    %39 = vector.load %arg5[%c0_36, %c0_37, %c6, %c0_38, %c0_39] : memref<1x8x8x16x256xf32, #tpu.memory_space<vmem>>, vector<1x8x1x16x256xf32>
    %40 = vector.shape_cast %39 : vector<1x8x1x16x256xf32> to vector<8x16x256xf32>
    %41 = vector.shape_cast %38 : vector<8x16x256xf32> to vector<1x8x1x16x256xf32>
    tpu.vector_store %arg5[%c0_36, %c0_37, %c6, %c0_38, %c0_39], %41 {strides = array<i32>} : memref<1x8x8x16x256xf32, #tpu.memory_space<vmem>>, vector<1x8x1x16x256xf32>,
    %42 = vector.extract_strided_slice %6 {offsets = [0, 0, 0, 1792], sizes = [1, 8, 16, 256], strides = [1, 1, 1, 1]} : vector<1x8x16x2048xf32> to vector<1x8x16x256xf32>
    %43 = vector.shape_cast %42 : vector<1x8x16x256xf32> to vector<8x16x256xf32>
    %c0_40 = arith.constant 0 : index
    %c0_41 = arith.constant 0 : index
    %c7 = arith.constant 7 : index
    %c0_42 = arith.constant 0 : index
    %c0_43 = arith.constant 0 : index
    %44 = vector.load %arg5[%c0_40, %c0_41, %c7, %c0_42, %c0_43] : memref<1x8x8x16x256xf32, #tpu.memory_space<vmem>>, vector<1x8x1x16x256xf32>
    %45 = vector.shape_cast %44 : vector<1x8x1x16x256xf32> to vector<8x16x256xf32>
    %46 = vector.shape_cast %43 : vector<8x16x256xf32> to vector<1x8x1x16x256xf32>
    tpu.vector_store %arg5[%c0_40, %c0_41, %c7, %c0_42, %c0_43], %46 {strides = array<i32>} : memref<1x8x8x16x256xf32, #tpu.memory_space<vmem>>, vector<1x8x1x16x256xf32>,
    return
  }
  func.func @transform_0(%arg0: i32, %arg1: i32) -> (i32, i32, i32, i32) {
    %c0_i32 = arith.constant 0 : i32
    %c0_i32_0 = arith.constant 0 : i32
    %c0_i32_1 = arith.constant 0 : i32
    return %arg0, %arg1, %c0_i32, %c0_i32_0 : i32, i32, i32, i32
  }
  func.func @transform_1(%arg0: i32, %arg1: i32) -> (i32, i32, i32, i32) {
    %c0_i32 = arith.constant 0 : i32
    %c0_i32_0 = arith.constant 0 : i32
    %c0_i32_1 = arith.constant 0 : i32
    %c0_i32_2 = arith.constant 0 : i32
    %c0_i32_3 = arith.constant 0 : i32
    return %c0_i32, %c0_i32_0, %c0_i32_1, %c0_i32_2 : i32, i32, i32, i32
  }
  func.func @transform_2(%arg0: i32, %arg1: i32) -> (i32, i32, i32, i32) {
    %c0_i32 = arith.constant 0 : i32
    %c0_i32_0 = arith.constant 0 : i32
    %c0_i32_1 = arith.constant 0 : i32
    %c0_i32_2 = arith.constant 0 : i32
    %c0_i32_3 = arith.constant 0 : i32
    return %c0_i32, %c0_i32_0, %c0_i32_1, %c0_i32_2 : i32, i32, i32, i32
  }
  func.func @transform_3(%arg0: i32, %arg1: i32) -> (i32, i32, i32, i32, i32) {
    %c0_i32 = arith.constant 0 : i32
    %c0_i32_0 = arith.constant 0 : i32
    %c0_i32_1 = arith.constant 0 : i32
    %c0_i32_2 = arith.constant 0 : i32
    return %arg0, %arg1, %c0_i32, %c0_i32_0, %c0_i32_1 : i32, i32, i32, i32, i32
  }
}

</mosaic_0001>

<bundles_post_ra>
// kernel: tile.78
= control target key start
LH: loop header
LB: loop body
LE: loop exit
PB: predicated region body
PF: predicated region fallthrough
CT: control target
= control target key end

     0   :  { %s22_s0 = inlined_call_operand.vmem [shape: f32[32], index: 0, kind: input, shape index: {}]   ;;  %s23_s1 = inlined_call_operand.vmem [shape: f32[4,32], index: 1, kind: output, shape index: {}]  }
   0x1   :  { %v4_v0 = vld [vmem:[%s22_s0] ss:$0 sm:$0xff] }
   0x2   :  { %5 = vst [vmem:[%s23_s1] sm:$0xf] %v4_v0 }

// kernel: tile.79
= control target key start
LH: loop header
LB: loop body
LE: loop exit
PB: predicated region body
PF: predicated region fallthrough
CT: control target
= control target key end

     0   :  { %s37_s8 = smov 32   ;;  %s38_s9 = smov 64   ;;  %vm7_vm0 = vcmask 261120   ;;  %vm13_vm1 = vcmask 1048320   ;;  %vm19_vm2 = vcmask 785920   ;;  %vm25_vm3 = vcmask 523520   ;;  %s55_s0 = inlined_call_operand.vmem [shape: f32[4,32], index: 0, kind: input, shape index: {}]   ;;  %s56_s1 = inlined_call_operand.vmem [shape: f32[1,1,128], index: 1, kind: output, shape index: {}]  }
   0x1   :  { %v4_v0 = vld [vmem:[%s55_s0] sm:$0xf]  ;;  %s36_s0 = smov 96  }
   0x2   :  { %5 = vst [vmem:[#allocation1] sm:$0xf] %v4_v0 }
   0x9   :  { %v10_v1 = vld [vmem:[#allocation1 + $0x3] sm:$0x1]   ;;  %v22_v2 = vld [vmem:[#allocation1 + $0x1] sm:$0x1]   ;;  %v16_v3 = vld [vmem:[#allocation1 + $0x2] sm:$0x1]  }
   0xa   :  { %11 = vrot.lane.b32.xlu0 %v10_v1, %s36_s0  ;;  %23 = vrot.lane.b32.xlu1 %v22_v2, %s37_s8  ;;  %v6_v4 = vld [vmem:[#allocation1] sm:$0x1]  }
   0xb   :  { %8 = vst.msk [vmem:[#allocation0] sm:$0x1] %vm7_vm0, %v6_v4  }
  0x12   :  { %17 = vrot.lane.b32.xlu0 %v16_v3, %s38_s9 }
  0x7c   :  { %v12_v5 = vpop.permute.xlu0 %11   ;;  %v24_v6 = vpop.permute.xlu1 %23  }
  0x7d   :  { %14 = vst.msk [vmem:[#allocation0] sm:$0x1] %vm13_vm1, %v12_v5  }
  0x84   :  { %v18_v7 = vpop.permute.xlu0 %17  }
  0x85   :  { %20 = vst.msk [vmem:[#allocation0] sm:$0x1] %vm19_vm2, %v18_v7  }
  0x86   :  { %26 = vst.msk [vmem:[#allocation0] sm:$0x1] %vm25_vm3, %v24_v6  }
  0x8d   :  { %v29_v8 = vld [vmem:[#allocation0] sm:$0x1] }
  0x8e   :  { %32 = vst [vmem:[%s56_s1] sm:$0x1] %v29_v8 }

// kernel: fcn8_forward.12
= control target key start
LH: loop header
LB: loop body
LE: loop exit
PB: predicated region body
PF: predicated region fallthrough
CT: control target
= control target key end

     0   :  { %10 = vsyncpa [#allocation3], 0  ;;  %s1013_s0 = inlined_call_operand.hbm [shape: f32[2,32,256], index: 0, kind: input, shape index: {}]   ;;  %s1014_s1 = inlined_call_operand.vmem [shape: f32[256,32], index: 1, kind: input, shape index: {}]   ;;  %s1015_s2 = inlined_call_operand.vmem [shape: f32[1,32], index: 2, kind: input, shape index: {}]   ;;  %s1016_s3 = inlined_call_operand.vmem [shape: f32[2,32,32], index: 3, kind: output, shape index: {0}]   ;;  %s1017_s4 = inlined_call_operand.vmem [shape: f32[2,1,2,32], index: 4, kind: output, shape index: {1}]  }
   0x1   :  { %12 = vsyncpa [#allocation3 + $0x1], 0  ;;  %s791_s15 = smov 0   ;;  %s793_s16 = smov 0  }
   0x2   :  { %s795_s17 = smov 0   ;;  %s797_s18 = smov 0  }
   0x3   :  { %s799_s19 = smov 0   ;;  %s801_s20 = smov 0  }
   0x4 LB: > { %s576_s21 = sadd.s32 4294967295, %s762_s20   ;;  %s30_s22 = sadd.s32 1, %s758_s19  ;;  %s762_s20 = sphi %s801_s20, %s18_s20   ;;  %s758_s19 = sphi %s799_s19, %s1024_s19   ;;  %s754_s18 = sphi %s797_s18, %s1023_s18   ;;  %s750_s17 = sphi %s795_s17, %s1022_s17   ;;  %s746_s16 = sphi %s793_s16, %s1021_s16   ;;  %s742_s15 = sphi %s791_s15, %s1020_s15  }
   0x5   : > { %p32_p0 = scmp.ge.s32.totalorder %s30_s22, 2  ;;  %s39_s23 = sadd.s32 1, %s750_s17 }
   0x6   : > { %p46_p1 = scmp.ne.s32.totalorder %s750_s17, %s746_s16  ;;  %p47_p2 = scmp.eq.s32.totalorder %s762_s20, 0 }
   0x7   : > { %s1026_s22 = smov (%p32_p0, %s30_s22), 0  ;;  %p52_p4 = scmp.ne.s32.totalorder %s746_s16, %s742_s15 }
   0x8   : > { %p827_p3 = por %p47_p2, %p46_p1  ;;  %s34_s25 = ssub.s32 %s758_s19, %s1026_s22 }
   0x9   : > { %p53_p5 = scmp.eq.s32.totalorder %s576_s21, 0  ;;  %p37_p6 = scmp.eq.s32.totalorder %s34_s25, 0 }
   0xa   : > { %p630_p8 = scmp.lt.s32.totalorder %s762_s20, 2  ;;  %s180_s28 = sand.u32 1, %s750_s17  }
   0xb   : > { %p834_p7 = por %p53_p5, %p52_p4  ;;  %s590_s29 = sshll.u32 %s758_s19, 6 }
   0xc   : > { %s840_s27 = scalar_select %p37_p6, %s750_s17, %s39_s23  }
   0xd   : > { %s580_s30 = sshll.u32 %s180_s28, 6  ;;  %s192_s7 = scalar_lea.hbm %s1013_s0, %s590_s29 }
   0xe   : > { %s193_s8 = sshll.u32 %s192_s7, 4  ;;  %s184_s9 = scalar_lea.vmem [#allocation2], %s580_s30  ;;  %s194_s8 = int_to_ptr.hbm [resolvable:$true] %s193_s8 }
   0xf   : > { %s195_s10 = sshll.u32 %s184_s9, 4  ;;  %p627_p9 = pnand %p630_p8, %p827_p3  ;;  %s196_s10 = int_to_ptr.vmem [resolvable:$true] %s195_s10 }
  0x10   : > { %p583_p10 = scmp.ge.s32.totalorder %s762_s20, 1  ;;  %p203_p11 = scmp.lt.s32.totalorder %s762_s20, 3 }
  0x11   : > { %s181_s11 = scalar_lea.sflag [#allocation3], %s180_s28  ;;  %s764_s12 = smov 256  }
  0x12   : > { %s765_s13 = smov 16   ;;  %p204_p12 = pnand %p583_p10, %p203_p11 }
  0x13   : > { %629 = dma.hbm_to_vmem [thread:$0]  (!%p627_p9), %s194_s8, 1024, %s196_s10, %s181_s11, %s764_s12, %s764_s12, %s765_s13  }
  0x14   : > { %207 = sbr.rel (%p204_p12) target bundleno = 223 (0xdf), region = 32  ;;  %s209_s14 = sand.u32 (!%p204_p12), 1, %s746_s16  }
  0x15   : > { %s584_s15 = sshll.u32 (!%p204_p12), %s209_s14, 6  ;;  %s210_s21 = scalar_lea.sflag (!%p204_p12), [#allocation3], %s209_s14 }
  0x16   : > { %s852_s23 = scalar_lea.vmem (!%p204_p12), [#allocation2], %s584_s15 }
  0x19   : > { %737 = dma.done.wait (%p834_p7), %s210_s21, 1024  }
  0x1a   : > { %739 = vsyncadd (%p834_p7), %s210_s21, 4294966272  ;;  %v291_v0 = vld [vmem:[%s1014_s1 + $0x78] sm:$0xff]  ;;  %v290_v1 = vld [vmem:[%s1014_s1 + $0x70] sm:$0xff]  ;;  %p252_p13 = scmp.lt.s32.totalorder %s754_s18, 1  ;;  %vm374_vm0 = vcmask 261120   ;;  %vm436_vm1 = vcmask 1040384  }
  0x1b   : > { %v307_v2 = vld [vmem:[%s1014_s1 + $0xf8] sm:$0xff]  ;;  %312 = vmatpush.msra.mxu0 %v291_v0  ;;  %592 = vmatpush.msra.mxu2 %v291_v0  ;;  %v306_v3 = vld [vmem:[%s1014_s1 + $0xf0] sm:$0xff]  ;;  %v289_v4 = vld [vmem:[%s1014_s1 + $0x68] sm:$0xff]  ;;  %vm438_vm2 = vcmask 254976  }
  0x1c   : > { %341 = vmatpush.msra.mxu1 %v307_v2  ;;  %608 = vmatpush.msra.mxu3 %v307_v2  ;;  %v305_v5 = vld [vmem:[%s1014_s1 + $0xe8] sm:$0xff]  ;;  %v288_v6 = vld [vmem:[%s1014_s1 + $0x60] sm:$0xff]  ;;  %v287_v8 = vld [vmem:[%s1014_s1 + $0x58] sm:$0xff]  ;;  %s1028_s18 = smov (!%p252_p13, %s754_s18), 1 }
  0x1d   : > { %313 = vmatpush.msra.mxu0 %v290_v1  ;;  %593 = vmatpush.msra.mxu2 %v290_v1  ;;  %v304_v7 = vld [vmem:[%s1014_s1 + $0xe0] sm:$0xff]  ;;  %v303_v9 = vld [vmem:[%s1014_s1 + $0xd8] sm:$0xff]  ;;  %v286_v10 = vld [vmem:[%s1014_s1 + $0x50] sm:$0xff]  ;;  %s591_s11 = sshll.u32 %s1028_s18, 5  ;;  %s587_s14 = sshll.u32 %s1028_s18, 1 }
  0x1e   : > { %342 = vmatpush.msra.mxu1 %v306_v3  ;;  %609 = vmatpush.msra.mxu3 %v306_v3  ;;  %v302_v11 = vld [vmem:[%s1014_s1 + $0xd0] sm:$0xff]  ;;  %v285_v12 = vld [vmem:[%s1014_s1 + $0x48] sm:$0xff]  ;;  %v284_v14 = vld [vmem:[%s1014_s1 + $0x40] sm:$0xff]  ;;  %s267_s24 = scalar_lea.vmem %s1017_s4, %s587_s14 }
  0x1f   : > { %314 = vmatpush.msra.mxu0 %v289_v4  ;;  %594 = vmatpush.msra.mxu2 %v289_v4  ;;  %v301_v13 = vld [vmem:[%s1014_s1 + $0xc8] sm:$0xff]  ;;  %v300_v15 = vld [vmem:[%s1014_s1 + $0xc0] sm:$0xff]  ;;  %v283_v16 = vld [vmem:[%s1014_s1 + $0x38] sm:$0xff] }
  0x20   : > { %343 = vmatpush.msra.mxu1 %v305_v5  ;;  %610 = vmatpush.msra.mxu3 %v305_v5  ;;  %v299_v17 = vld [vmem:[%s1014_s1 + $0xb8] sm:$0xff]  ;;  %v282_v18 = vld [vmem:[%s1014_s1 + $0x30] sm:$0xff]  ;;  %v281_v20 = vld [vmem:[%s1014_s1 + $0x28] sm:$0xff] }
  0x21   : > { %315 = vmatpush.msra.mxu0 %v288_v6  ;;  %595 = vmatpush.msra.mxu2 %v288_v6  ;;  %v298_v19 = vld [vmem:[%s1014_s1 + $0xb0] sm:$0xff]  ;;  %v297_v21 = vld [vmem:[%s1014_s1 + $0xa8] sm:$0xff]  ;;  %v280_v22 = vld [vmem:[%s1014_s1 + $0x20] sm:$0xff] }
  0x22   : > { %344 = vmatpush.msra.mxu1 %v304_v7  ;;  %611 = vmatpush.msra.mxu3 %v304_v7  ;;  %v296_v23 = vld [vmem:[%s1014_s1 + $0xa0] sm:$0xff]  ;;  %v279_v24 = vld [vmem:[%s1014_s1 + $0x18] sm:$0xff]  ;;  %v278_v26 = vld [vmem:[%s1014_s1 + $0x10] sm:$0xff] }
  0x23   : > { %316 = vmatpush.msra.mxu0 %v287_v8  ;;  %596 = vmatpush.msra.mxu2 %v287_v8  ;;  %v295_v25 = vld [vmem:[%s1014_s1 + $0x98] sm:$0xff]  ;;  %v294_v27 = vld [vmem:[%s1014_s1 + $0x90] sm:$0xff]  ;;  %v277_v28 = vld [vmem:[%s1014_s1 + $0x8] sm:$0xff] }
  0x24   : > { %345 = vmatpush.msra.mxu1 %v303_v9  ;;  %612 = vmatpush.msra.mxu3 %v303_v9  ;;  %v293_v29 = vld [vmem:[%s1014_s1 + $0x88] sm:$0xff]  ;;  %v276_v30 = vld [vmem:[%s1014_s1] sm:$0xff]  ;;  %v270_v36 = vld [vmem:[%s852_s23 + $0x10] sm:$0xff] }
  0x25   : > { %317 = vmatpush.msra.mxu0 %v286_v10  ;;  %597 = vmatpush.msra.mxu2 %v286_v10  ;;  %v268_v31 = vld [vmem:[%s852_s23] sm:$0xff]  ;;  %v269_v34 = vld [vmem:[%s852_s23 + $0x8] sm:$0xff]  ;;  %v274_v37 = vld [vmem:[%s852_s23 + $0x30] sm:$0xff] }
  0x26   : > { %346 = vmatpush.msra.mxu1 %v302_v11  ;;  %613 = vmatpush.msra.mxu3 %v302_v11  ;;  %v272_v32 = vld [vmem:[%s852_s23 + $0x20] sm:$0xff]  ;;  %v273_v35 = vld [vmem:[%s852_s23 + $0x28] sm:$0xff]  ;;  %v271_v38 = vld [vmem:[%s852_s23 + $0x18] sm:$0xff] }
  0x27   : > { %318 = vmatpush.msra.mxu0 %v285_v12  ;;  %598 = vmatpush.msra.mxu2 %v285_v12  ;;  %v292_v33 = vld [vmem:[%s1014_s1 + $0x80] sm:$0xff]  ;;  %v275_v39 = vld [vmem:[%s852_s23 + $0x38] sm:$0xff]  ;;  %s973_s23 = scalar_lea.vmem %s1016_s3, %s591_s11 }
  0x28   : > { %347 = vmatpush.msra.mxu1 %v301_v13  ;;  %614 = vmatpush.msra.mxu3 %v301_v13  ;;  %v681_v40 = vld [vmem:[%s1015_s2] ss:$0 sm:$0xff] }
  0x29   : > { %319 = vmatpush.msra.mxu0 %v284_v14  ;;  %599 = vmatpush.msra.mxu2 %v284_v14 }
  0x2a   : > { %348 = vmatpush.msra.mxu1 %v300_v15  ;;  %615 = vmatpush.msra.mxu3 %v300_v15 }
  0x2b   : > { %320 = vmatpush.msra.mxu0 %v283_v16  ;;  %600 = vmatpush.msra.mxu2 %v283_v16 }
  0x2c   : > { %349 = vmatpush.msra.mxu1 %v299_v17  ;;  %616 = vmatpush.msra.mxu3 %v299_v17 }
  0x2d   : > { %321 = vmatpush.msra.mxu0 %v282_v18  ;;  %601 = vmatpush.msra.mxu2 %v282_v18 }
  0x2e   : > { %350 = vmatpush.msra.mxu1 %v298_v19  ;;  %617 = vmatpush.msra.mxu3 %v298_v19 }
  0x2f   : > { %322 = vmatpush.msra.mxu0 %v281_v20  ;;  %602 = vmatpush.msra.mxu2 %v281_v20 }
  0x30   : > { %351 = vmatpush.msra.mxu1 %v297_v21  ;;  %618 = vmatpush.msra.mxu3 %v297_v21 }
  0x31   : > { %323 = vmatpush.msra.mxu0 %v280_v22  ;;  %603 = vmatpush.msra.mxu2 %v280_v22 }
  0x32   : > { %352 = vmatpush.msra.mxu1 %v296_v23  ;;  %619 = vmatpush.msra.mxu3 %v296_v23 }
  0x33   : > { %324 = vmatpush.msra.mxu0 %v279_v24  ;;  %604 = vmatpush.msra.mxu2 %v279_v24 }
  0x34   : > { %353 = vmatpush.msra.mxu1 %v295_v25  ;;  %620 = vmatpush.msra.mxu3 %v295_v25 }
  0x35   : > { %325 = vmatpush.msra.mxu0 %v278_v26  ;;  %605 = vmatpush.msra.mxu2 %v278_v26 }
  0x36   : > { %354 = vmatpush.msra.mxu1 %v294_v27  ;;  %621 = vmatpush.msra.mxu3 %v294_v27 }
  0x37   : > { %326 = vmatpush.msra.mxu0 %v277_v28  ;;  %606 = vmatpush.msra.mxu2 %v277_v28 }
  0x38   : > { %355 = vmatpush.msra.mxu1 %v293_v29  ;;  %622 = vmatpush.msra.mxu3 %v293_v29 }
  0x39   : > { %327 = vmatpush.msra.mxu0 %v276_v30  ;;  %607 = vmatpush.msra.mxu2 %v276_v30 }
  0x3a   : > { %328 = vmatmul.f32.vlgmr.msra.gmra.mxu0 %v268_v31  ;;  %334 = vmatmul.f32.vlgmr.msra.gmra.mxu2 %v272_v32 }
  0x3b   : > { %356 = vmatpush.msra.mxu1 %v292_v33  ;;  %623 = vmatpush.msra.mxu3 %v292_v33 }
  0x3c   : > { %357 = vmatmul.f32.vlgmr.msra.gmra.mxu1 %v269_v34  ;;  %363 = vmatmul.f32.vlgmr.msra.gmra.mxu3 %v273_v35 }
  0x42   : > { %331 = vmatmul.f32.gmra.mxu0 %v270_v36  ;;  %337 = vmatmul.f32.gmra.mxu2 %v274_v37 }
  0x44   : > { %360 = vmatmul.f32.gmra.mxu1 %v271_v38  ;;  %366 = vmatmul.f32.gmra.mxu3 %v275_v39 }
  0xb7   : > { %v329_v41 = vpop.f32.mrf.mxu0 }
  0xb8   : > { %v330_v42 = vadd.f32 %v681_v40, %v329_v41 }
  0xb9   : > { %v358_v43 = vpop.f32.mrf.mxu1 }
  0xba   : > { %v359_v44 = vadd.f32 %v358_v43, %v330_v42 }
  0xbc   : > { %v370_v45 = vmax.f32 %v359_v44, 0.0 }
  0xbd   : > { %v335_v46 = vpop.f32.mrf.mxu2 }
  0xbe   : > { %375 = vst.msk [vmem:[%s973_s23] sm:$0xff] %vm374_vm0, %v370_v45  ;;  %v336_v47 = vadd.f32 %v681_v40, %v335_v46  ;;  %v419_v55 = vmul.f32 %v370_v45, %v370_v45  ;;  %v406_v58 = vsel %vm374_vm0, %v370_v45, 0.0 }
  0xbf   : > { %v332_v48 = vpop.f32.mrf.mxu0  ;;  %v364_v49 = vpop.f32.mrf.mxu3 }
  0xc0   : > { %v333_v50 = vadd.f32 %v681_v40, %v332_v48  ;;  %v365_v51 = vadd.f32 %v364_v49, %v336_v47  ;;  %v423_v0 = vsel %vm374_vm0, %v419_v55, 0.0 }
  0xc1   : > { %v361_v52 = vpop.f32.mrf.mxu1 }
  0xc2   : > { %v372_v53 = vmax.f32 %v365_v51, 0.0  ;;  %v362_v54 = vadd.f32 %v361_v52, %v333_v50 }
  0xc4   : > { %377 = vst.msk [vmem:[%s973_s23 + $0x10] sm:$0xff] %vm374_vm0, %v372_v53  ;;  %v371_v56 = vmax.f32 %v362_v54, 0.0  ;;  %v421_v1 = vmul.f32 %v372_v53, %v372_v53  ;;  %v409_v5 = vsel %vm374_vm0, %v372_v53, 0.0 }
  0xc5   : > { %v338_v57 = vpop.f32.mrf.mxu2 }
  0xc6   : > { %376 = vst.msk [vmem:[%s973_s23 + $0x8] sm:$0xff] %vm374_vm0, %v371_v56  ;;  %v407_v59 = vsel %vm374_vm0, %v371_v56, 0.0  ;;  %v420_v60 = vmul.f32 %v371_v56, %v371_v56  ;;  %v339_v61 = vadd.f32 %v681_v40, %v338_v57  ;;  %v426_v8 = vsel %vm374_vm0, %v421_v1, 0.0 }
  0xc7   : > { %v408_v62 = vadd.f32 %v407_v59, %v406_v58  ;;  %v367_v63 = vpop.f32.mrf.mxu3 }
  0xc8   : > { %v424_v2 = vsel %vm374_vm0, %v420_v60, 0.0  ;;  %v368_v3 = vadd.f32 %v367_v63, %v339_v61 }
  0xc9   : > { %v425_v4 = vadd.f32 %v424_v2, %v423_v0  ;;  %v410_v7 = vadd.f32 %v409_v5, %v408_v62 }
  0xca   : > { %v373_v6 = vmax.f32 %v368_v3, 0.0 }
  0xcb   : > { %v427_v12 = vadd.f32 %v426_v8, %v425_v4 }
  0xcc   : > { %378 = vst.msk [vmem:[%s973_s23 + $0x18] sm:$0xff] %vm374_vm0, %v373_v6  ;;  %v411_v9 = vsel %vm374_vm0, %v373_v6, 0.0  ;;  %v422_v10 = vmul.f32 %v373_v6, %v373_v6 }
  0xcd   : > { %v412_v11 = vadd.f32 %v411_v9, %v410_v7 }
  0xce   : > { %v428_v13 = vsel %vm374_vm0, %v422_v10, 0.0 }
  0xcf   : > { %v413_v14 = vrot.slane %v412_v11, 4  ;;  %v429_v15 = vadd.f32 %v428_v13, %v427_v12 }
  0xd1   : > { %v414_v16 = vadd.f32 %v413_v14, %v412_v11  ;;  %v430_v17 = vrot.slane %v429_v15, 4 }
  0xd3   : > { %v415_v18 = vrot.slane %v414_v16, 2  ;;  %v431_v19 = vadd.f32 %v430_v17, %v429_v15 }
  0xd5   : > { %v416_v20 = vadd.f32 %v415_v18, %v414_v16  ;;  %v432_v21 = vrot.slane %v431_v19, 2 }
  0xd7   : > { %v417_v22 = vrot.slane %v416_v20, 1  ;;  %v433_v23 = vadd.f32 %v432_v21, %v431_v19 }
  0xd9   : > { %v434_v24 = vrot.slane %v433_v23, 1  ;;  %v418_v25 = vadd.f32 %v417_v22, %v416_v20 }
  0xdb   : > { %v435_v26 = vadd.f32 %v434_v24, %v433_v23 }
  0xdd   : > { %v437_v27 = vsel %vm436_vm1, %v418_v25, %v435_v26 }
  0xde   : > { %439 = vst.msk [vmem:[%s267_s24] sm:$0x3] %vm438_vm2, %v437_v27 }
  0xdf PF: > { %s18_s20 = sadd.s32 1, %s762_s20   ;;  %s1020_s15 = smov %s746_s16 }
  0xe0   : > { %p15_p0 = scmp.ge.s32.totalorder %s18_s20, 4   ;;  %s1021_s16 = smov %s750_s17 }
  0xe1   : > { %s1022_s17 = smov %s840_s27  ;;  %s1023_s18 = smov %s758_s19 }
  0xe2   : > { %s1024_s19 = smov %s1026_s22  ;;  %17 = sbr.rel (!%p15_p0) target bundleno = 4 (0x4), region = 84 }
  0xe7   :  { %490 = vsyncpa [#allocation3], 1 }
  0xe8   :  { %492 = vsyncpa [#allocation3 + $0x1], 1 }

// kernel: fcn8_forward.10
= control target key start
LH: loop header
LB: loop body
LE: loop exit
PB: predicated region body
PF: predicated region fallthrough
CT: control target
= control target key end

     0   :  { %s639_s15 = smov 0   ;;  %s641_s16 = smov 0   ;;  %s881_s0 = inlined_call_operand.vmem [shape: f32[2,8,512], index: 0, kind: input, shape index: {}]   ;;  %s882_s1 = inlined_call_operand.vmem [shape: f32[512,32], index: 1, kind: input, shape index: {}]   ;;  %s883_s2 = inlined_call_operand.vmem [shape: f32[1,32], index: 2, kind: input, shape index: {}]   ;;  %s884_s3 = inlined_call_operand.vmem [shape: f32[2,8,32], index: 3, kind: output, shape index: {0}]   ;;  %s885_s4 = inlined_call_operand.vmem [shape: f32[2,1,2,32], index: 4, kind: output, shape index: {1}]  }
   0x1   :  { %s643_s17 = smov 0  }
   0x2 LB: > { %s27_s18 = sadd.s32 1, %s608_s16  ;;  %p557_p0 = scmp.ge.s32.totalorder %s612_s17, 1  ;;  %s612_s17 = sphi %s643_s17, %s15_s17   ;;  %s608_s16 = sphi %s641_s16, %s887_s16   ;;  %s604_s15 = sphi %s639_s15, %s886_s15  }
   0x3   : > { %p29_p1 = scmp.ge.s32.totalorder %s27_s18, 2  ;;  %p187_p2 = scmp.lt.s32.totalorder %s612_s17, 3 }
   0x5   : > { %s889_s18 = smov (%p29_p1, %s27_s18), 0  ;;  %p188_p3 = pnand %p557_p0, %p187_p2 }
   0x6   : > { %p226_p4 = scmp.lt.s32.totalorder (!%p188_p3), %s604_s15, 1 }
   0x7   : > { %191 = sbr.rel (%p188_p3) target bundleno = 200 (0xc8), region = 32 }
   0xc   : > { %v300_v0 = vld [vmem:[%s882_s1 + $0x178] sm:$0xff]  ;;  %v299_v2 = vld [vmem:[%s882_s1 + $0x170] sm:$0xff]  ;;  %v298_v6 = vld [vmem:[%s882_s1 + $0x168] sm:$0xff]  ;;  %s891_s15 = smov (!%p226_p4, %s604_s15), 1  ;;  %vm402_vm0 = vcmask 261120   ;;  %vm428_vm1 = vcmask 1040384  }
   0xd   : > { %v268_v1 = vld [vmem:[%s882_s1 + $0x78] sm:$0xff]  ;;  %361 = vmatpush.msra.mxu2 %v300_v0  ;;  %v267_v4 = vld [vmem:[%s882_s1 + $0x70] sm:$0xff]  ;;  %v266_v8 = vld [vmem:[%s882_s1 + $0x68] sm:$0xff]  ;;  %s564_s9 = sshll.u32 %s891_s15, 5  ;;  %s560_s21 = sshll.u32 %s891_s15, 3  ;;  %vm430_vm2 = vcmask 254976  }
   0xe   : > { %321 = vmatpush.msra.mxu0 %v268_v1  ;;  %v316_v3 = vld [vmem:[%s882_s1 + $0x1f8] sm:$0xff]  ;;  %v315_v7 = vld [vmem:[%s882_s1 + $0x1f0] sm:$0xff]  ;;  %v314_v10 = vld [vmem:[%s882_s1 + $0x1e8] sm:$0xff]  ;;  %s234_s28 = scalar_lea.vmem %s881_s0, %s564_s9  ;;  %s241_s24 = scalar_lea.vmem %s884_s3, %s560_s21 }
   0xf   : > { %v284_v5 = vld [vmem:[%s882_s1 + $0xf8] sm:$0xff]  ;;  %381 = vmatpush.msra.mxu3 %v316_v3  ;;  %362 = vmatpush.msra.mxu2 %v299_v2  ;;  %v283_v9 = vld [vmem:[%s882_s1 + $0xf0] sm:$0xff]  ;;  %v297_v11 = vld [vmem:[%s882_s1 + $0x160] sm:$0xff]  ;;  %s561_s25 = sshll.u32 %s891_s15, 1 }
  0x10   : > { %341 = vmatpush.msra.mxu1 %v284_v5  ;;  %322 = vmatpush.msra.mxu0 %v267_v4  ;;  %v265_v12 = vld [vmem:[%s882_s1 + $0x60] sm:$0xff]  ;;  %v282_v13 = vld [vmem:[%s882_s1 + $0xe8] sm:$0xff]  ;;  %v296_v16 = vld [vmem:[%s882_s1 + $0x158] sm:$0xff] }
  0x11   : > { %382 = vmatpush.msra.mxu3 %v315_v7  ;;  %363 = vmatpush.msra.mxu2 %v298_v6  ;;  %v313_v14 = vld [vmem:[%s882_s1 + $0x1e0] sm:$0xff]  ;;  %v264_v17 = vld [vmem:[%s882_s1 + $0x58] sm:$0xff]  ;;  %v295_v20 = vld [vmem:[%s882_s1 + $0x150] sm:$0xff] }
  0x12   : > { %342 = vmatpush.msra.mxu1 %v283_v9  ;;  %323 = vmatpush.msra.mxu0 %v266_v8  ;;  %v281_v15 = vld [vmem:[%s882_s1 + $0xe0] sm:$0xff]  ;;  %v312_v18 = vld [vmem:[%s882_s1 + $0x1d8] sm:$0xff]  ;;  %v263_v21 = vld [vmem:[%s882_s1 + $0x50] sm:$0xff] }
  0x13   : > { %383 = vmatpush.msra.mxu3 %v314_v10  ;;  %364 = vmatpush.msra.mxu2 %v297_v11  ;;  %v280_v19 = vld [vmem:[%s882_s1 + $0xd8] sm:$0xff]  ;;  %v311_v22 = vld [vmem:[%s882_s1 + $0x1d0] sm:$0xff]  ;;  %v294_v24 = vld [vmem:[%s882_s1 + $0x148] sm:$0xff] }
  0x14   : > { %343 = vmatpush.msra.mxu1 %v282_v13  ;;  %324 = vmatpush.msra.mxu0 %v265_v12  ;;  %v279_v23 = vld [vmem:[%s882_s1 + $0xd0] sm:$0xff]  ;;  %v262_v25 = vld [vmem:[%s882_s1 + $0x48] sm:$0xff]  ;;  %v293_v28 = vld [vmem:[%s882_s1 + $0x140] sm:$0xff] }
  0x15   : > { %384 = vmatpush.msra.mxu3 %v313_v14  ;;  %365 = vmatpush.msra.mxu2 %v296_v16  ;;  %v310_v26 = vld [vmem:[%s882_s1 + $0x1c8] sm:$0xff]  ;;  %v261_v29 = vld [vmem:[%s882_s1 + $0x40] sm:$0xff]  ;;  %v292_v32 = vld [vmem:[%s882_s1 + $0x138] sm:$0xff] }
  0x16   : > { %344 = vmatpush.msra.mxu1 %v281_v15  ;;  %325 = vmatpush.msra.mxu0 %v264_v17  ;;  %v278_v27 = vld [vmem:[%s882_s1 + $0xc8] sm:$0xff]  ;;  %v309_v30 = vld [vmem:[%s882_s1 + $0x1c0] sm:$0xff]  ;;  %v260_v33 = vld [vmem:[%s882_s1 + $0x38] sm:$0xff] }
  0x17   : > { %385 = vmatpush.msra.mxu3 %v312_v18  ;;  %366 = vmatpush.msra.mxu2 %v295_v20  ;;  %v277_v31 = vld [vmem:[%s882_s1 + $0xc0] sm:$0xff]  ;;  %v308_v34 = vld [vmem:[%s882_s1 + $0x1b8] sm:$0xff]  ;;  %v291_v36 = vld [vmem:[%s882_s1 + $0x130] sm:$0xff] }
  0x18   : > { %345 = vmatpush.msra.mxu1 %v280_v19  ;;  %326 = vmatpush.msra.mxu0 %v263_v21  ;;  %v276_v35 = vld [vmem:[%s882_s1 + $0xb8] sm:$0xff]  ;;  %v259_v37 = vld [vmem:[%s882_s1 + $0x30] sm:$0xff]  ;;  %v290_v40 = vld [vmem:[%s882_s1 + $0x128] sm:$0xff] }
  0x19   : > { %386 = vmatpush.msra.mxu3 %v311_v22  ;;  %367 = vmatpush.msra.mxu2 %v294_v24  ;;  %v307_v38 = vld [vmem:[%s882_s1 + $0x1b0] sm:$0xff]  ;;  %v258_v41 = vld [vmem:[%s882_s1 + $0x28] sm:$0xff]  ;;  %v289_v44 = vld [vmem:[%s882_s1 + $0x120] sm:$0xff] }
  0x1a   : > { %346 = vmatpush.msra.mxu1 %v279_v23  ;;  %327 = vmatpush.msra.mxu0 %v262_v25  ;;  %v275_v39 = vld [vmem:[%s882_s1 + $0xb0] sm:$0xff]  ;;  %v306_v42 = vld [vmem:[%s882_s1 + $0x1a8] sm:$0xff]  ;;  %v257_v45 = vld [vmem:[%s882_s1 + $0x20] sm:$0xff] }
  0x1b   : > { %387 = vmatpush.msra.mxu3 %v310_v26  ;;  %368 = vmatpush.msra.mxu2 %v293_v28  ;;  %v274_v43 = vld [vmem:[%s882_s1 + $0xa8] sm:$0xff]  ;;  %v305_v46 = vld [vmem:[%s882_s1 + $0x1a0] sm:$0xff]  ;;  %v288_v48 = vld [vmem:[%s882_s1 + $0x118] sm:$0xff] }
  0x1c   : > { %347 = vmatpush.msra.mxu1 %v278_v27  ;;  %328 = vmatpush.msra.mxu0 %v261_v29  ;;  %v273_v47 = vld [vmem:[%s882_s1 + $0xa0] sm:$0xff]  ;;  %v256_v49 = vld [vmem:[%s882_s1 + $0x18] sm:$0xff]  ;;  %v287_v52 = vld [vmem:[%s882_s1 + $0x110] sm:$0xff] }
  0x1d   : > { %388 = vmatpush.msra.mxu3 %v309_v30  ;;  %369 = vmatpush.msra.mxu2 %v292_v32  ;;  %v304_v50 = vld [vmem:[%s882_s1 + $0x198] sm:$0xff]  ;;  %v255_v53 = vld [vmem:[%s882_s1 + $0x10] sm:$0xff]  ;;  %v286_v56 = vld [vmem:[%s882_s1 + $0x108] sm:$0xff] }
  0x1e   : > { %348 = vmatpush.msra.mxu1 %v277_v31  ;;  %329 = vmatpush.msra.mxu0 %v260_v33  ;;  %v272_v51 = vld [vmem:[%s882_s1 + $0x98] sm:$0xff]  ;;  %v303_v54 = vld [vmem:[%s882_s1 + $0x190] sm:$0xff]  ;;  %v254_v57 = vld [vmem:[%s882_s1 + $0x8] sm:$0xff] }
  0x1f   : > { %389 = vmatpush.msra.mxu3 %v308_v34  ;;  %370 = vmatpush.msra.mxu2 %v291_v36  ;;  %v271_v55 = vld [vmem:[%s882_s1 + $0x90] sm:$0xff]  ;;  %v302_v58 = vld [vmem:[%s882_s1 + $0x188] sm:$0xff]  ;;  %v285_v60 = vld [vmem:[%s882_s1 + $0x100] sm:$0xff] }
  0x20   : > { %349 = vmatpush.msra.mxu1 %v276_v35  ;;  %330 = vmatpush.msra.mxu0 %v259_v37  ;;  %v270_v59 = vld [vmem:[%s882_s1 + $0x88] sm:$0xff]  ;;  %v253_v61 = vld [vmem:[%s882_s1] sm:$0xff]  ;;  %v251_v62 = vld [vmem:[%s234_s28 + $0x10] sm:$0xff] }
  0x21   : > { %390 = vmatpush.msra.mxu3 %v307_v38  ;;  %371 = vmatpush.msra.mxu2 %v290_v40  ;;  %v301_v63 = vld [vmem:[%s882_s1 + $0x180] sm:$0xff]  ;;  %v252_v1 = vld [vmem:[%s234_s28 + $0x18] sm:$0xff]  ;;  %v250_v3 = vld [vmem:[%s234_s28 + $0x8] sm:$0xff] }
  0x22   : > { %350 = vmatpush.msra.mxu1 %v275_v39  ;;  %331 = vmatpush.msra.mxu0 %v258_v41  ;;  %v249_v0 = vld [vmem:[%s234_s28] sm:$0xff]  ;;  %s248_s28 = scalar_lea.vmem %s885_s4, %s561_s25 }
  0x23   : > { %391 = vmatpush.msra.mxu3 %v306_v42  ;;  %372 = vmatpush.msra.mxu2 %v289_v44  ;;  %v269_v2 = vld [vmem:[%s882_s1 + $0x80] sm:$0xff] }
  0x24   : > { %351 = vmatpush.msra.mxu1 %v274_v43  ;;  %332 = vmatpush.msra.mxu0 %v257_v45  ;;  %v589_v4 = vld [vmem:[%s883_s2] ss:$0 sm:$0xff] }
  0x25   : > { %392 = vmatpush.msra.mxu3 %v305_v46  ;;  %373 = vmatpush.msra.mxu2 %v288_v48 }
  0x26   : > { %352 = vmatpush.msra.mxu1 %v273_v47  ;;  %333 = vmatpush.msra.mxu0 %v256_v49 }
  0x27   : > { %393 = vmatpush.msra.mxu3 %v304_v50  ;;  %374 = vmatpush.msra.mxu2 %v287_v52 }
  0x28   : > { %353 = vmatpush.msra.mxu1 %v272_v51  ;;  %334 = vmatpush.msra.mxu0 %v255_v53 }
  0x29   : > { %394 = vmatpush.msra.mxu3 %v303_v54  ;;  %375 = vmatpush.msra.mxu2 %v286_v56 }
  0x2a   : > { %354 = vmatpush.msra.mxu1 %v271_v55  ;;  %335 = vmatpush.msra.mxu0 %v254_v57 }
  0x2b   : > { %395 = vmatpush.msra.mxu3 %v302_v58  ;;  %376 = vmatpush.msra.mxu2 %v285_v60 }
  0x2c   : > { %355 = vmatpush.msra.mxu1 %v270_v59  ;;  %336 = vmatpush.msra.mxu0 %v253_v61 }
  0x2d   : > { %377 = vmatmul.f32.vlgmr.msra.gmra.mxu2 %v251_v62  ;;  %396 = vmatpush.msra.mxu3 %v301_v63 }
  0x2e   : > { %337 = vmatmul.f32.vlgmr.msra.gmra.mxu0 %v249_v0  ;;  %397 = vmatmul.f32.vlgmr.msra.gmra.mxu3 %v252_v1 }
  0x2f   : > { %356 = vmatpush.msra.mxu1 %v269_v2 }
  0x30   : > { %357 = vmatmul.f32.vlgmr.msra.gmra.mxu1 %v250_v3 }
  0xab   : > { %v338_v5 = vpop.f32.mrf.mxu0 }
  0xac   : > { %v339_v6 = vadd.f32 %v589_v4, %v338_v5 }
  0xad   : > { %v358_v7 = vpop.f32.mrf.mxu1 }
  0xae   : > { %v359_v8 = vadd.f32 %v358_v7, %v339_v6 }
  0xb0   : > { %v378_v9 = vpop.f32.mrf.mxu2 }
  0xb1   : > { %v379_v10 = vadd.f32 %v378_v9, %v359_v8  ;;  %v398_v11 = vpop.f32.mrf.mxu3 }
  0xb3   : > { %v399_v12 = vadd.f32 %v398_v11, %v379_v10 }
  0xb5   : > { %v401_v13 = vmax.f32 %v399_v12, 0.0 }
  0xb7   : > { %403 = vst.msk [vmem:[%s241_s24] sm:$0xff] %vm402_vm0, %v401_v13  ;;  %v413_v14 = vsel %vm402_vm0, %v401_v13, 0.0  ;;  %v420_v15 = vmul.f32 %v401_v13, %v401_v13 }
  0xb8   : > { %v414_v16 = vrot.slane %v413_v14, 4 }
  0xb9   : > { %v421_v17 = vsel %vm402_vm0, %v420_v15, 0.0 }
  0xba   : > { %v415_v18 = vadd.f32 %v414_v16, %v413_v14  ;;  %v422_v19 = vrot.slane %v421_v17, 4 }
  0xbc   : > { %v416_v20 = vrot.slane %v415_v18, 2  ;;  %v423_v21 = vadd.f32 %v422_v19, %v421_v17 }
  0xbe   : > { %v417_v22 = vadd.f32 %v416_v20, %v415_v18  ;;  %v424_v23 = vrot.slane %v423_v21, 2 }
  0xc0   : > { %v418_v24 = vrot.slane %v417_v22, 1  ;;  %v425_v25 = vadd.f32 %v424_v23, %v423_v21 }
  0xc2   : > { %v426_v26 = vrot.slane %v425_v25, 1  ;;  %v419_v27 = vadd.f32 %v418_v24, %v417_v22 }
  0xc4   : > { %v427_v28 = vadd.f32 %v426_v26, %v425_v25 }
  0xc6   : > { %v429_v29 = vsel %vm428_vm1, %v419_v27, %v427_v28 }
  0xc7   : > { %431 = vst.msk [vmem:[%s248_s28] sm:$0x3] %vm430_vm2, %v429_v29 }
  0xc8 PF: > { %s15_s17 = sadd.s32 1, %s612_s17   ;;  %s886_s15 = smov %s608_s16 }
  0xc9   : > { %p12_p5 = scmp.ge.s32.totalorder %s15_s17, 4   ;;  %s887_s16 = smov %s889_s18 }
  0xcb   :  { %14 = sbr.rel (!%p12_p5) target bundleno = 2 (0x2), region = 74 }

// kernel: fcn8_forward.15
= control target key start
LH: loop header
LB: loop body
LE: loop exit
PB: predicated region body
PF: predicated region fallthrough
CT: control target
= control target key end

     0   :  { %10 = vsyncpa [#allocation3], 0  ;;  %s1245_s0 = inlined_call_operand.hbm [shape: f32[2,128,128], index: 0, kind: input, shape index: {}]   ;;  %s1246_s1 = inlined_call_operand.vmem [shape: f32[128,32], index: 1, kind: input, shape index: {}]   ;;  %s1247_s2 = inlined_call_operand.vmem [shape: f32[1,32], index: 2, kind: input, shape index: {}]   ;;  %s1248_s3 = inlined_call_operand.vmem [shape: f32[2,128,32], index: 3, kind: output, shape index: {0}]   ;;  %s1249_s4 = inlined_call_operand.vmem [shape: f32[2,1,2,32], index: 4, kind: output, shape index: {1}]  }
   0x1   :  { %12 = vsyncpa [#allocation3 + $0x1], 0  ;;  %s961_s15 = smov 0   ;;  %s963_s16 = smov 0  }
   0x2   :  { %s965_s17 = smov 0   ;;  %s967_s18 = smov 0  }
   0x3   :  { %s969_s19 = smov 0   ;;  %s971_s20 = smov 0  }
   0x4 LB: > { %s730_s21 = sadd.s32 4294967295, %s932_s20   ;;  %s30_s22 = sadd.s32 1, %s928_s19  ;;  %s932_s20 = sphi %s971_s20, %s18_s20   ;;  %s928_s19 = sphi %s969_s19, %s1256_s19   ;;  %s924_s18 = sphi %s967_s18, %s1255_s18   ;;  %s920_s17 = sphi %s965_s17, %s1254_s17   ;;  %s916_s16 = sphi %s963_s16, %s1253_s16   ;;  %s912_s15 = sphi %s961_s15, %s1252_s15  }
   0x5   : > { %p32_p0 = scmp.ge.s32.totalorder %s30_s22, 2  ;;  %s39_s23 = sadd.s32 1, %s920_s17 }
   0x6   : > { %p46_p1 = scmp.ne.s32.totalorder %s920_s17, %s916_s16  ;;  %p47_p2 = scmp.eq.s32.totalorder %s932_s20, 0 }
   0x7   : > { %s1258_s22 = smov (%p32_p0, %s30_s22), 0  ;;  %p52_p4 = scmp.ne.s32.totalorder %s916_s16, %s912_s15 }
   0x8   : > { %p997_p3 = por %p47_p2, %p46_p1  ;;  %s34_s25 = ssub.s32 %s928_s19, %s1258_s22 }
   0x9   : > { %p53_p5 = scmp.eq.s32.totalorder %s730_s21, 0  ;;  %p37_p6 = scmp.eq.s32.totalorder %s34_s25, 0 }
   0xa   : > { %p800_p8 = scmp.lt.s32.totalorder %s932_s20, 2  ;;  %s180_s28 = sand.u32 1, %s920_s17  }
   0xb   : > { %p1004_p7 = por %p53_p5, %p52_p4  ;;  %s744_s29 = sshll.u32 %s928_s19, 7 }
   0xc   : > { %s1010_s27 = scalar_select %p37_p6, %s920_s17, %s39_s23  }
   0xd   : > { %s734_s30 = sshll.u32 %s180_s28, 7  ;;  %s191_s7 = scalar_lea.hbm %s1245_s0, %s744_s29 }
   0xe   : > { %s192_s8 = sshll.u32 %s191_s7, 4  ;;  %s184_s9 = scalar_lea.vmem [#allocation2], %s734_s30  ;;  %s193_s8 = int_to_ptr.hbm [resolvable:$true] %s192_s8 }
   0xf   : > { %s194_s10 = sshll.u32 %s184_s9, 4  ;;  %p797_p9 = pnand %p800_p8, %p997_p3  ;;  %s195_s10 = int_to_ptr.vmem [resolvable:$true] %s194_s10 }
  0x10   : > { %p737_p10 = scmp.ge.s32.totalorder %s932_s20, 1  ;;  %p202_p11 = scmp.lt.s32.totalorder %s932_s20, 3 }
  0x11   : > { %s181_s11 = scalar_lea.sflag [#allocation3], %s180_s28  ;;  %s934_s12 = smov 128  }
  0x12   : > { %s935_s13 = smov 8   ;;  %p203_p12 = pnand %p737_p10, %p202_p11 }
  0x13   : > { %799 = dma.hbm_to_vmem [thread:$0]  (!%p797_p9), %s193_s8, 2048, %s195_s10, %s181_s11, %s934_s12, %s934_s12, %s935_s13  }
  0x14   : > { %206 = sbr.rel (%p203_p12) target bundleno = 255 (0xff), region = 32  ;;  %s208_s14 = sand.u32 (!%p203_p12), 1, %s916_s16  }
  0x15   : > { %s738_s15 = sshll.u32 (!%p203_p12), %s208_s14, 7  ;;  %s209_s21 = scalar_lea.sflag (!%p203_p12), [#allocation3], %s208_s14 }
  0x16   : > { %s1022_s23 = scalar_lea.vmem (!%p203_p12), [#allocation2], %s738_s15 }
  0x19   : > { %907 = dma.done.wait (%p1004_p7), %s209_s21, 2048  }
  0x1a   : > { %909 = vsyncadd (%p1004_p7), %s209_s21, 4294965248  ;;  %v298_v0 = vld [vmem:[%s1246_s1 + $0x78] sm:$0xff]  ;;  %v297_v1 = vld [vmem:[%s1246_s1 + $0x70] sm:$0xff]  ;;  %p251_p13 = scmp.lt.s32.totalorder %s924_s18, 1  ;;  %vm384_vm0 = vcmask 261120   ;;  %vm590_vm1 = vcmask 1040384  }
  0x1b   : > { %303 = vmatpush.msra.mxu0 %v298_v0  ;;  %746 = vmatpush.msra.mxu1 %v298_v0  ;;  %v296_v2 = vld [vmem:[%s1246_s1 + $0x68] sm:$0xff]  ;;  %v295_v3 = vld [vmem:[%s1246_s1 + $0x60] sm:$0xff]  ;;  %v294_v4 = vld [vmem:[%s1246_s1 + $0x58] sm:$0xff]  ;;  %vm592_vm2 = vcmask 254976  }
  0x1c   : > { %747 = vmatpush.msra.mxu2 %v298_v0  ;;  %748 = vmatpush.msra.mxu3 %v298_v0  ;;  %v293_v5 = vld [vmem:[%s1246_s1 + $0x50] sm:$0xff]  ;;  %v292_v6 = vld [vmem:[%s1246_s1 + $0x48] sm:$0xff]  ;;  %v291_v7 = vld [vmem:[%s1246_s1 + $0x40] sm:$0xff]  ;;  %s1260_s18 = smov (!%p251_p13, %s924_s18), 1 }
  0x1d   : > { %304 = vmatpush.msra.mxu0 %v297_v1  ;;  %749 = vmatpush.msra.mxu1 %v297_v1  ;;  %v290_v8 = vld [vmem:[%s1246_s1 + $0x38] sm:$0xff]  ;;  %v289_v9 = vld [vmem:[%s1246_s1 + $0x30] sm:$0xff]  ;;  %v288_v10 = vld [vmem:[%s1246_s1 + $0x28] sm:$0xff]  ;;  %s745_s15 = sshll.u32 %s1260_s18, 7  ;;  %s741_s25 = sshll.u32 %s1260_s18, 1 }
  0x1e   : > { %750 = vmatpush.msra.mxu2 %v297_v1  ;;  %751 = vmatpush.msra.mxu3 %v297_v1  ;;  %v287_v11 = vld [vmem:[%s1246_s1 + $0x20] sm:$0xff]  ;;  %v286_v12 = vld [vmem:[%s1246_s1 + $0x18] sm:$0xff]  ;;  %v285_v13 = vld [vmem:[%s1246_s1 + $0x10] sm:$0xff]  ;;  %s1107_s24 = scalar_lea.vmem %s1248_s3, %s745_s15  ;;  %s266_s30 = scalar_lea.vmem %s1249_s4, %s741_s25 }
  0x1f   : > { %305 = vmatpush.msra.mxu0 %v296_v2  ;;  %752 = vmatpush.msra.mxu1 %v296_v2  ;;  %v284_v14 = vld [vmem:[%s1246_s1 + $0x8] sm:$0xff]  ;;  %v283_v15 = vld [vmem:[%s1246_s1] sm:$0xff]  ;;  %v269_v24 = vld [vmem:[%s1022_s23 + $0x10] sm:$0xff] }
  0x20   : > { %753 = vmatpush.msra.mxu2 %v296_v2  ;;  %754 = vmatpush.msra.mxu3 %v296_v2  ;;  %v267_v16 = vld [vmem:[%s1022_s23] sm:$0xff]  ;;  %v268_v20 = vld [vmem:[%s1022_s23 + $0x8] sm:$0xff]  ;;  %v273_v25 = vld [vmem:[%s1022_s23 + $0x30] sm:$0xff] }
  0x21   : > { %306 = vmatpush.msra.mxu0 %v295_v3  ;;  %755 = vmatpush.msra.mxu1 %v295_v3  ;;  %v271_v17 = vld [vmem:[%s1022_s23 + $0x20] sm:$0xff]  ;;  %v272_v21 = vld [vmem:[%s1022_s23 + $0x28] sm:$0xff]  ;;  %v277_v26 = vld [vmem:[%s1022_s23 + $0x50] sm:$0xff] }
  0x22   : > { %756 = vmatpush.msra.mxu2 %v295_v3  ;;  %757 = vmatpush.msra.mxu3 %v295_v3  ;;  %v275_v18 = vld [vmem:[%s1022_s23 + $0x40] sm:$0xff]  ;;  %v276_v22 = vld [vmem:[%s1022_s23 + $0x48] sm:$0xff]  ;;  %v281_v27 = vld [vmem:[%s1022_s23 + $0x70] sm:$0xff] }
  0x23   : > { %307 = vmatpush.msra.mxu0 %v294_v4  ;;  %758 = vmatpush.msra.mxu1 %v294_v4  ;;  %v279_v19 = vld [vmem:[%s1022_s23 + $0x60] sm:$0xff]  ;;  %v280_v23 = vld [vmem:[%s1022_s23 + $0x68] sm:$0xff]  ;;  %v270_v28 = vld [vmem:[%s1022_s23 + $0x18] sm:$0xff] }
  0x24   : > { %759 = vmatpush.msra.mxu2 %v294_v4  ;;  %760 = vmatpush.msra.mxu3 %v294_v4  ;;  %v274_v29 = vld [vmem:[%s1022_s23 + $0x38] sm:$0xff]  ;;  %v1099_v32 = vld [vmem:[%s1247_s2] ss:$0 sm:$0xff] }
  0x25   : > { %308 = vmatpush.msra.mxu0 %v293_v5  ;;  %761 = vmatpush.msra.mxu1 %v293_v5  ;;  %v278_v30 = vld [vmem:[%s1022_s23 + $0x58] sm:$0xff] }
  0x26   : > { %762 = vmatpush.msra.mxu2 %v293_v5  ;;  %763 = vmatpush.msra.mxu3 %v293_v5  ;;  %v282_v31 = vld [vmem:[%s1022_s23 + $0x78] sm:$0xff] }
  0x27   : > { %309 = vmatpush.msra.mxu0 %v292_v6  ;;  %764 = vmatpush.msra.mxu1 %v292_v6 }
  0x28   : > { %765 = vmatpush.msra.mxu2 %v292_v6  ;;  %766 = vmatpush.msra.mxu3 %v292_v6 }
  0x29   : > { %310 = vmatpush.msra.mxu0 %v291_v7  ;;  %767 = vmatpush.msra.mxu1 %v291_v7 }
  0x2a   : > { %768 = vmatpush.msra.mxu2 %v291_v7  ;;  %769 = vmatpush.msra.mxu3 %v291_v7 }
  0x2b   : > { %311 = vmatpush.msra.mxu0 %v290_v8  ;;  %770 = vmatpush.msra.mxu1 %v290_v8 }
  0x2c   : > { %771 = vmatpush.msra.mxu2 %v290_v8  ;;  %772 = vmatpush.msra.mxu3 %v290_v8 }
  0x2d   : > { %312 = vmatpush.msra.mxu0 %v289_v9  ;;  %773 = vmatpush.msra.mxu1 %v289_v9 }
  0x2e   : > { %774 = vmatpush.msra.mxu2 %v289_v9  ;;  %775 = vmatpush.msra.mxu3 %v289_v9 }
  0x2f   : > { %313 = vmatpush.msra.mxu0 %v288_v10  ;;  %776 = vmatpush.msra.mxu1 %v288_v10 }
  0x30   : > { %777 = vmatpush.msra.mxu2 %v288_v10  ;;  %778 = vmatpush.msra.mxu3 %v288_v10 }
  0x31   : > { %314 = vmatpush.msra.mxu0 %v287_v11  ;;  %779 = vmatpush.msra.mxu1 %v287_v11 }
  0x32   : > { %780 = vmatpush.msra.mxu2 %v287_v11  ;;  %781 = vmatpush.msra.mxu3 %v287_v11 }
  0x33   : > { %315 = vmatpush.msra.mxu0 %v286_v12  ;;  %782 = vmatpush.msra.mxu1 %v286_v12 }
  0x34   : > { %783 = vmatpush.msra.mxu2 %v286_v12  ;;  %784 = vmatpush.msra.mxu3 %v286_v12 }
  0x35   : > { %316 = vmatpush.msra.mxu0 %v285_v13  ;;  %785 = vmatpush.msra.mxu1 %v285_v13 }
  0x36   : > { %786 = vmatpush.msra.mxu2 %v285_v13  ;;  %787 = vmatpush.msra.mxu3 %v285_v13 }
  0x37   : > { %317 = vmatpush.msra.mxu0 %v284_v14  ;;  %788 = vmatpush.msra.mxu1 %v284_v14 }
  0x38   : > { %789 = vmatpush.msra.mxu2 %v284_v14  ;;  %790 = vmatpush.msra.mxu3 %v284_v14 }
  0x39   : > { %318 = vmatpush.msra.mxu0 %v283_v15  ;;  %791 = vmatpush.msra.mxu1 %v283_v15 }
  0x3a   : > { %319 = vmatmul.f32.vlgmr.msra.gmra.mxu0 %v267_v16  ;;  %331 = vmatmul.f32.vlgmr.msra.gmra.mxu1 %v271_v17 }
  0x3b   : > { %792 = vmatpush.msra.mxu2 %v283_v15  ;;  %793 = vmatpush.msra.mxu3 %v283_v15 }
  0x3c   : > { %343 = vmatmul.f32.vlgmr.msra.gmra.mxu2 %v275_v18  ;;  %355 = vmatmul.f32.vlgmr.msra.gmra.mxu3 %v279_v19 }
  0x42   : > { %322 = vmatmul.f32.gmra.mxu0 %v268_v20  ;;  %334 = vmatmul.f32.gmra.mxu1 %v272_v21 }
  0x44   : > { %346 = vmatmul.f32.gmra.mxu2 %v276_v22  ;;  %358 = vmatmul.f32.gmra.mxu3 %v280_v23 }
  0x4a   : > { %325 = vmatmul.f32.gmra.mxu0 %v269_v24  ;;  %337 = vmatmul.f32.gmra.mxu1 %v273_v25 }
  0x4c   : > { %349 = vmatmul.f32.gmra.mxu2 %v277_v26  ;;  %361 = vmatmul.f32.gmra.mxu3 %v281_v27 }
  0x52   : > { %328 = vmatmul.f32.gmra.mxu0 %v270_v28  ;;  %340 = vmatmul.f32.gmra.mxu1 %v274_v29 }
  0x54   : > { %352 = vmatmul.f32.gmra.mxu2 %v278_v30  ;;  %364 = vmatmul.f32.gmra.mxu3 %v282_v31 }
  0xb7   : > { %v320_v33 = vpop.f32.mrf.mxu0  ;;  %v332_v34 = vpop.f32.mrf.mxu1 }
  0xb8   : > { %v321_v35 = vadd.f32 %v1099_v32, %v320_v33  ;;  %v333_v36 = vadd.f32 %v1099_v32, %v332_v34 }
  0xba   : > { %v368_v37 = vmax.f32 %v321_v35, 0.0  ;;  %v1109_v38 = vmax.f32 %v333_v36, 0.0 }
  0xbc   : > { %385 = vst.msk [vmem:[%s1107_s24] sm:$0xff] %vm384_vm0, %v368_v37  ;;  %v537_v0 = vmul.f32 %v368_v37, %v368_v37  ;;  %v500_v3 = vsel %vm384_vm0, %v368_v37, 0.0  ;;  %v541_v23 = vmul.f32 %v1109_v38, %v1109_v38  ;;  %v507_v28 = vsel %vm384_vm0, %v1109_v38, 0.0 }
  0xbd   : > { %389 = vst.msk [vmem:[%s1107_s24 + $0x20] sm:$0xff] %vm384_vm0, %v1109_v38 }
  0xbe   : > { %v553_v15 = vsel %vm384_vm0, %v537_v0, 0.0  ;;  %v560_v34 = vsel %vm384_vm0, %v541_v23, 0.0 }
  0xbf   : > { %v323_v39 = vpop.f32.mrf.mxu0  ;;  %v335_v40 = vpop.f32.mrf.mxu1 }
  0xc0   : > { %v324_v41 = vadd.f32 %v1099_v32, %v323_v39  ;;  %v336_v42 = vadd.f32 %v1099_v32, %v335_v40  ;;  %v344_v43 = vpop.f32.mrf.mxu2  ;;  %v356_v44 = vpop.f32.mrf.mxu3 }
  0xc1   : > { %v345_v45 = vadd.f32 %v1099_v32, %v344_v43  ;;  %v357_v46 = vadd.f32 %v1099_v32, %v356_v44 }
  0xc2   : > { %v369_v47 = vmax.f32 %v324_v41, 0.0  ;;  %v373_v48 = vmax.f32 %v336_v42, 0.0 }
  0xc3   : > { %v1120_v49 = vmax.f32 %v345_v45, 0.0  ;;  %v1122_v50 = vmax.f32 %v357_v46, 0.0 }
  0xc4   : > { %386 = vst.msk [vmem:[%s1107_s24 + $0x8] sm:$0xff] %vm384_vm0, %v369_v47  ;;  %v538_v63 = vmul.f32 %v369_v47, %v369_v47  ;;  %v501_v1 = vsel %vm384_vm0, %v369_v47, 0.0  ;;  %v542_v29 = vmul.f32 %v373_v48, %v373_v48  ;;  %v509_v35 = vsel %vm384_vm0, %v373_v48, 0.0 }
  0xc5   : > { %390 = vst.msk [vmem:[%s1107_s24 + $0x28] sm:$0xff] %vm384_vm0, %v373_v48  ;;  %v502_v12 = vadd.f32 %v501_v1, %v500_v3 }
  0xc6   : > { %393 = vst.msk [vmem:[%s1107_s24 + $0x40] sm:$0xff] %vm384_vm0, %v1120_v49  ;;  %v554_v6 = vsel %vm384_vm0, %v538_v63, 0.0  ;;  %v562_v44 = vsel %vm384_vm0, %v542_v29, 0.0 }
  0xc7   : > { %v326_v51 = vpop.f32.mrf.mxu0  ;;  %v338_v52 = vpop.f32.mrf.mxu1  ;;  %397 = vst.msk [vmem:[%s1107_s24 + $0x60] sm:$0xff] %vm384_vm0, %v1122_v50  ;;  %v555_v19 = vadd.f32 %v554_v6, %v553_v15 }
  0xc8   : > { %v327_v53 = vadd.f32 %v1099_v32, %v326_v51  ;;  %v339_v54 = vadd.f32 %v1099_v32, %v338_v52  ;;  %v347_v55 = vpop.f32.mrf.mxu2  ;;  %v359_v56 = vpop.f32.mrf.mxu3 }
  0xc9   : > { %v348_v57 = vadd.f32 %v1099_v32, %v347_v55  ;;  %v360_v58 = vadd.f32 %v1099_v32, %v359_v56 }
  0xca   : > { %v370_v59 = vmax.f32 %v327_v53, 0.0  ;;  %v374_v60 = vmax.f32 %v339_v54, 0.0  ;;  %v545_v53 = vmul.f32 %v1120_v49, %v1120_v49 }
  0xcb   : > { %v1138_v61 = vmax.f32 %v348_v57, 0.0  ;;  %v1140_v62 = vmax.f32 %v360_v58, 0.0  ;;  %v515_v57 = vsel %vm384_vm0, %v1120_v49, 0.0 }
  0xcc   : > { %387 = vst.msk [vmem:[%s1107_s24 + $0x10] sm:$0xff] %vm384_vm0, %v370_v59  ;;  %v539_v2 = vmul.f32 %v370_v59, %v370_v59  ;;  %v503_v7 = vsel %vm384_vm0, %v370_v59, 0.0  ;;  %v543_v36 = vmul.f32 %v374_v60, %v374_v60  ;;  %v511_v45 = vsel %vm384_vm0, %v374_v60, 0.0 }
  0xcd   : > { %391 = vst.msk [vmem:[%s1107_s24 + $0x30] sm:$0xff] %vm384_vm0, %v374_v60  ;;  %v504_v20 = vadd.f32 %v503_v7, %v502_v12  ;;  %v546_v58 = vmul.f32 %v1138_v61, %v1138_v61  ;;  %v568_v63 = vsel %vm384_vm0, %v545_v53, 0.0  ;;  %v517_v0 = vsel %vm384_vm0, %v1138_v61, 0.0 }
  0xce   : > { %394 = vst.msk [vmem:[%s1107_s24 + $0x48] sm:$0xff] %vm384_vm0, %v1138_v61  ;;  %v556_v16 = vsel %vm384_vm0, %v539_v2, 0.0  ;;  %v564_v54 = vsel %vm384_vm0, %v543_v36, 0.0 }
  0xcf   : > { %v329_v4 = vpop.f32.mrf.mxu0  ;;  %v341_v5 = vpop.f32.mrf.mxu1  ;;  %398 = vst.msk [vmem:[%s1107_s24 + $0x68] sm:$0xff] %vm384_vm0, %v1140_v62  ;;  %v557_v26 = vadd.f32 %v556_v16, %v555_v19 }
  0xd0   : > { %v330_v8 = vadd.f32 %v1099_v32, %v329_v4  ;;  %v342_v9 = vadd.f32 %v1099_v32, %v341_v5  ;;  %v350_v10 = vpop.f32.mrf.mxu2  ;;  %v362_v11 = vpop.f32.mrf.mxu3  ;;  %v570_v5 = vsel %vm384_vm0, %v546_v58, 0.0 }
  0xd1   : > { %v351_v13 = vadd.f32 %v1099_v32, %v350_v10  ;;  %v363_v14 = vadd.f32 %v1099_v32, %v362_v11 }
  0xd2   : > { %v371_v17 = vmax.f32 %v330_v8, 0.0  ;;  %v375_v18 = vmax.f32 %v342_v9, 0.0  ;;  %v549_v9 = vmul.f32 %v1122_v50, %v1122_v50 }
  0xd3   : > { %v378_v21 = vmax.f32 %v351_v13, 0.0  ;;  %v1162_v22 = vmax.f32 %v363_v14, 0.0  ;;  %v523_v13 = vsel %vm384_vm0, %v1122_v50, 0.0  ;;  %v550_v14 = vmul.f32 %v1140_v62, %v1140_v62 }
  0xd4   : > { %388 = vst.msk [vmem:[%s1107_s24 + $0x18] sm:$0xff] %vm384_vm0, %v371_v17  ;;  %v505_v24 = vsel %vm384_vm0, %v371_v17, 0.0  ;;  %v540_v25 = vmul.f32 %v371_v17, %v371_v17  ;;  %v544_v37 = vmul.f32 %v375_v18, %v375_v18  ;;  %v513_v46 = vsel %vm384_vm0, %v375_v18, 0.0 }
  0xd5   : > { %v506_v27 = vadd.f32 %v505_v24, %v504_v20  ;;  %392 = vst.msk [vmem:[%s1107_s24 + $0x38] sm:$0xff] %vm384_vm0, %v375_v18  ;;  %v547_v1 = vmul.f32 %v378_v21, %v378_v21  ;;  %v519_v49 = vsel %vm384_vm0, %v378_v21, 0.0  ;;  %v576_v17 = vsel %vm384_vm0, %v549_v9, 0.0 }
  0xd6   : > { %v558_v30 = vsel %vm384_vm0, %v540_v25, 0.0  ;;  %395 = vst.msk [vmem:[%s1107_s24 + $0x50] sm:$0xff] %vm384_vm0, %v378_v21  ;;  %v566_v55 = vsel %vm384_vm0, %v544_v37, 0.0  ;;  %v525_v18 = vsel %vm384_vm0, %v1140_v62, 0.0  ;;  %v551_v19 = vmul.f32 %v1162_v22, %v1162_v22 }
  0xd7   : > { %v508_v31 = vadd.f32 %v507_v28, %v506_v27  ;;  %v559_v33 = vadd.f32 %v558_v30, %v557_v26  ;;  %399 = vst.msk [vmem:[%s1107_s24 + $0x70] sm:$0xff] %vm384_vm0, %v1162_v22  ;;  %v572_v10 = vsel %vm384_vm0, %v547_v1, 0.0  ;;  %v578_v24 = vsel %vm384_vm0, %v550_v14, 0.0 }
  0xd8   : > { %v353_v39 = vpop.f32.mrf.mxu2  ;;  %v365_v40 = vpop.f32.mrf.mxu3  ;;  %v527_v50 = vsel %vm384_vm0, %v1162_v22, 0.0  ;;  %v580_v28 = vsel %vm384_vm0, %v551_v19, 0.0 }
  0xd9   : > { %v561_v41 = vadd.f32 %v560_v34, %v559_v33  ;;  %v510_v38 = vadd.f32 %v509_v35, %v508_v31  ;;  %v354_v42 = vadd.f32 %v1099_v32, %v353_v39  ;;  %v366_v43 = vadd.f32 %v1099_v32, %v365_v40 }
  0xdb   : > { %v512_v47 = vadd.f32 %v511_v45, %v510_v38  ;;  %v563_v48 = vadd.f32 %v562_v44, %v561_v41  ;;  %v379_v51 = vmax.f32 %v354_v42, 0.0  ;;  %v383_v52 = vmax.f32 %v366_v43, 0.0 }
  0xdd   : > { %v565_v56 = vadd.f32 %v564_v54, %v563_v48  ;;  %v514_v32 = vadd.f32 %v513_v46, %v512_v47  ;;  %396 = vst.msk [vmem:[%s1107_s24 + $0x58] sm:$0xff] %vm384_vm0, %v379_v51  ;;  %v548_v2 = vmul.f32 %v379_v51, %v379_v51  ;;  %v521_v6 = vsel %vm384_vm0, %v379_v51, 0.0 }
  0xde   : > { %400 = vst.msk [vmem:[%s1107_s24 + $0x78] sm:$0xff] %vm384_vm0, %v383_v52  ;;  %v552_v20 = vmul.f32 %v383_v52, %v383_v52  ;;  %v529_v25 = vsel %vm384_vm0, %v383_v52, 0.0 }
  0xdf   : > { %v516_v59 = vadd.f32 %v515_v57, %v514_v32  ;;  %v567_v60 = vadd.f32 %v566_v55, %v565_v56  ;;  %v574_v11 = vsel %vm384_vm0, %v548_v2, 0.0 }
  0xe0   : > { %v582_v62 = vsel %vm384_vm0, %v552_v20, 0.0 }
  0xe1   : > { %v569_v3 = vadd.f32 %v568_v63, %v567_v60  ;;  %v518_v4 = vadd.f32 %v517_v0, %v516_v59 }
  0xe3   : > { %v520_v7 = vadd.f32 %v519_v49, %v518_v4  ;;  %v571_v8 = vadd.f32 %v570_v5, %v569_v3 }
  0xe5   : > { %v573_v61 = vadd.f32 %v572_v10, %v571_v8  ;;  %v522_v12 = vadd.f32 %v521_v6, %v520_v7 }
  0xe7   : > { %v524_v15 = vadd.f32 %v523_v13, %v522_v12  ;;  %v575_v16 = vadd.f32 %v574_v11, %v573_v61 }
  0xe9   : > { %v577_v21 = vadd.f32 %v576_v17, %v575_v16  ;;  %v526_v23 = vadd.f32 %v525_v18, %v524_v15 }
  0xeb   : > { %v528_v26 = vadd.f32 %v527_v50, %v526_v23  ;;  %v579_v27 = vadd.f32 %v578_v24, %v577_v21 }
  0xed   : > { %v581_v29 = vadd.f32 %v580_v28, %v579_v27  ;;  %v530_v30 = vadd.f32 %v529_v25, %v528_v26 }
  0xef   : > { %v531_v31 = vrot.slane %v530_v30, 4  ;;  %v583_v33 = vadd.f32 %v582_v62, %v581_v29 }
  0xf1   : > { %v532_v34 = vadd.f32 %v531_v31, %v530_v30  ;;  %v584_v35 = vrot.slane %v583_v33, 4 }
  0xf3   : > { %v533_v36 = vrot.slane %v532_v34, 2  ;;  %v585_v37 = vadd.f32 %v584_v35, %v583_v33 }
  0xf5   : > { %v534_v39 = vadd.f32 %v533_v36, %v532_v34  ;;  %v586_v40 = vrot.slane %v585_v37, 2 }
  0xf7   : > { %v535_v22 = vrot.slane %v534_v39, 1  ;;  %v587_v41 = vadd.f32 %v586_v40, %v585_v37 }
  0xf9   : > { %v588_v38 = vrot.slane %v587_v41, 1  ;;  %v536_v42 = vadd.f32 %v535_v22, %v534_v39 }
  0xfb   : > { %v589_v43 = vadd.f32 %v588_v38, %v587_v41 }
  0xfd   : > { %v591_v44 = vsel %vm590_vm1, %v536_v42, %v589_v43 }
  0xfe   : > { %593 = vst.msk [vmem:[%s266_s30] sm:$0x3] %vm592_vm2, %v591_v44 }
  0xff PF: > { %s18_s20 = sadd.s32 1, %s932_s20   ;;  %s1252_s15 = smov %s916_s16 }
 0x100   : > { %p15_p0 = scmp.ge.s32.totalorder %s18_s20, 4   ;;  %s1253_s16 = smov %s920_s17 }
 0x101   : > { %s1254_s17 = smov %s1010_s27  ;;  %s1255_s18 = smov %s928_s19 }
 0x102   : > { %s1256_s19 = smov %s1258_s22  ;;  %17 = sbr.rel (!%p15_p0) target bundleno = 4 (0x4), region = 84 }
 0x107   :  { %644 = vsyncpa [#allocation3], 1 }
 0x108   :  { %646 = vsyncpa [#allocation3 + $0x1], 1 }

// kernel: fcn8_forward.11
= control target key start
LH: loop header
LB: loop body
LE: loop exit
PB: predicated region body
PF: predicated region fallthrough
CT: control target
= control target key end

     0   :  { %s254_s12 = smov 0   ;;  %s290_s0 = inlined_call_operand.vmem [shape: f32[2,2,128], index: 0, kind: input, shape index: {}]   ;;  %s291_s1 = inlined_call_operand.vmem [shape: f32[1,1,128], index: 1, kind: input, shape index: {}]   ;;  %s292_s2 = inlined_call_operand.vmem [shape: f32[1,1,128], index: 2, kind: input, shape index: {}]   ;;  %s293_s3 = inlined_call_operand.vmem [shape: f32[2,2,128], index: 3, kind: output, shape index: {}]  }
   0x1 LB: > { %s231_s13 = sadd.s32 4294967295, %s256_s12   ;;  %p235_p0 = scmp.ge.s32.totalorder %s256_s12, 1  ;;  %s256_s12 = sphi %s254_s12, %s13_s12  }
   0x2   : > { %p136_p1 = scmp.lt.s32.totalorder %s256_s12, 3 }
   0x4   : > { %p137_p2 = pnand %p235_p0, %p136_p1 }
   0x5   : > { %p158_p3 = scmp.lt.s32.totalorder (!%p137_p2), %s231_s13, 1 }
   0x6   : > { %140 = sbr.rel (%p137_p2) target bundleno = 20 (0x14), region = 32 }
   0xb   : > { %s295_s13 = smov (!%p158_p3, %s231_s13), 1  ;;  %v248_v0 = vld [vmem:[%s291_s1] ss:$0 sm:$0xff] }
   0xc   : > { %s236_s16 = sshll.u32 %s295_s13, 1  ;;  %v249_v1 = vld [vmem:[%s292_s2] ss:$0 sm:$0xff] }
   0xd   : > { %s161_s19 = scalar_lea.vmem %s290_s0, %s236_s16  ;;  %s165_s24 = scalar_lea.vmem %s293_s3, %s236_s16 }
   0xe   : > { %v166_v2 = vld [vmem:[%s161_s19] sm:$0x3] }
   0xf   : > { %v171_v3 = vmul.f32 %v248_v0, %v166_v2 }
  0x11   : > { %v176_v4 = vadd.f32 %v249_v1, %v171_v3 }
  0x13   : > { %177 = vst [vmem:[%s165_s24] sm:$0x3] %v176_v4 }
  0x14 PF: > { %s13_s12 = sadd.s32 1, %s256_s12  }
  0x15   : > { %p10_p4 = scmp.ge.s32.totalorder %s13_s12, 4  }
  0x17   :  { %12 = sbr.rel (!%p10_p4) target bundleno = 1 (0x1), region = 62 }

// kernel: tile.89
= control target key start
LH: loop header
LB: loop body
LE: loop exit
PB: predicated region body
PF: predicated region fallthrough
CT: control target
= control target key end

     0   :  { %s37_s8 = smov 32   ;;  %s38_s9 = smov 64   ;;  %vm7_vm0 = vcmask 261120   ;;  %vm13_vm1 = vcmask 1048320   ;;  %vm19_vm2 = vcmask 785920   ;;  %vm25_vm3 = vcmask 523520   ;;  %s55_s0 = inlined_call_operand.vmem [shape: f32[4,32], index: 0, kind: input, shape index: {}]   ;;  %s56_s1 = inlined_call_operand.vmem [shape: f32[1,128], index: 1, kind: output, shape index: {}]  }
   0x1   :  { %v4_v0 = vld [vmem:[%s55_s0] sm:$0xf]  ;;  %s36_s0 = smov 96  }
   0x2   :  { %5 = vst [vmem:[#allocation1] sm:$0xf] %v4_v0 }
   0x9   :  { %v10_v1 = vld [vmem:[#allocation1 + $0x3] sm:$0x1]   ;;  %v22_v2 = vld [vmem:[#allocation1 + $0x1] sm:$0x1]   ;;  %v16_v3 = vld [vmem:[#allocation1 + $0x2] sm:$0x1]  }
   0xa   :  { %11 = vrot.lane.b32.xlu0 %v10_v1, %s36_s0  ;;  %23 = vrot.lane.b32.xlu1 %v22_v2, %s37_s8  ;;  %v6_v4 = vld [vmem:[#allocation1] sm:$0x1]  }
   0xb   :  { %8 = vst.msk [vmem:[#allocation0] sm:$0x1] %vm7_vm0, %v6_v4  }
  0x12   :  { %17 = vrot.lane.b32.xlu0 %v16_v3, %s38_s9 }
  0x7c   :  { %v12_v5 = vpop.permute.xlu0 %11   ;;  %v24_v6 = vpop.permute.xlu1 %23  }
  0x7d   :  { %14 = vst.msk [vmem:[#allocation0] sm:$0x1] %vm13_vm1, %v12_v5  }
  0x84   :  { %v18_v7 = vpop.permute.xlu0 %17  }
  0x85   :  { %20 = vst.msk [vmem:[#allocation0] sm:$0x1] %vm19_vm2, %v18_v7  }
  0x86   :  { %26 = vst.msk [vmem:[#allocation0] sm:$0x1] %vm25_vm3, %v24_v6  }
  0x8d   :  { %v29_v8 = vld [vmem:[#allocation0] sm:$0x1] }
  0x8e   :  { %32 = vst [vmem:[%s56_s1] sm:$0x1] %v29_v8 }

// kernel: squeeze.16
= control target key start
LH: loop header
LB: loop body
LE: loop exit
PB: predicated region body
PF: predicated region fallthrough
CT: control target
= control target key end

     0   :  { %s37_s8 = smov 32   ;;  %s38_s9 = smov 64   ;;  %vm7_vm0 = vcmask 261120   ;;  %s55_s0 = inlined_call_operand.vmem [shape: f32[128], index: 0, kind: input, shape index: {}]   ;;  %s56_s1 = inlined_call_operand.vmem [shape: f32[4,32], index: 1, kind: output, shape index: {}]  }
   0x1   :  { %v4_v0 = vld [vmem:[%s55_s0] sm:$0x1]  ;;  %s36_s0 = smov 96  }
   0x2   :  { %5 = vst [vmem:[#allocation1] sm:$0x1] %v4_v0 }
   0x9   :  { %v9_v1 = vld [vmem:[#allocation1] sm:$0x1]  }
   0xa   :  { %v21_v2 = vld [vmem:[#allocation1] sm:$0x1]   ;;  %10 = vrot.lane.b32.xlu0 %v9_v1, %s36_s0 }
   0xb   :  { %22 = vrot.lane.b32.xlu1 %v21_v2, %s37_s8  ;;  %v15_v3 = vld [vmem:[#allocation1] sm:$0x1]  }
   0xc   :  { %v6_v4 = vld [vmem:[#allocation1] sm:$0x1]  }
   0xd   :  { %8 = vst.msk [vmem:[#allocation0] sm:$0x1] %vm7_vm0, %v6_v4  }
  0x12   :  { %16 = vrot.lane.b32.xlu0 %v15_v3, %s38_s9 }
  0x7c   :  { %v11_v5 = vpop.permute.xlu0 %10  }
  0x7d   :  { %v23_v6 = vpop.permute.xlu1 %22   ;;  %14 = vst.msk [vmem:[#allocation0 + $0x1] sm:$0x1] %vm7_vm0, %v11_v5  }
  0x7e   :  { %26 = vst.msk [vmem:[#allocation0 + $0x3] sm:$0x1] %vm7_vm0, %v23_v6  }
  0x84   :  { %v17_v7 = vpop.permute.xlu0 %16  }
  0x85   :  { %20 = vst.msk [vmem:[#allocation0 + $0x2] sm:$0x1] %vm7_vm0, %v17_v7  }
  0x8c   :  { %v29_v8 = vld [vmem:[#allocation0] sm:$0xf] }
  0x8d   :  { %32 = vst [vmem:[%s56_s1] sm:$0xf] %v29_v8 }

// kernel: tile.94
= control target key start
LH: loop header
LB: loop body
LE: loop exit
PB: predicated region body
PF: predicated region fallthrough
CT: control target
= control target key end

     0   :  { %s37_s8 = smov 32   ;;  %s38_s9 = smov 64   ;;  %vm7_vm0 = vcmask 261120   ;;  %vm13_vm1 = vcmask 1048320   ;;  %vm19_vm2 = vcmask 785920   ;;  %vm25_vm3 = vcmask 523520   ;;  %s55_s0 = inlined_call_operand.vmem [shape: f32[4,32], index: 0, kind: input, shape index: {}]   ;;  %s56_s1 = inlined_call_operand.vmem [shape: f32[1,1,1,128], index: 1, kind: output, shape index: {}]  }
   0x1   :  { %v4_v0 = vld [vmem:[%s55_s0] sm:$0xf]  ;;  %s36_s0 = smov 96  }
   0x2   :  { %5 = vst [vmem:[#allocation1] sm:$0xf] %v4_v0 }
   0x9   :  { %v10_v1 = vld [vmem:[#allocation1 + $0x3] sm:$0x1]   ;;  %v22_v2 = vld [vmem:[#allocation1 + $0x1] sm:$0x1]   ;;  %v16_v3 = vld [vmem:[#allocation1 + $0x2] sm:$0x1]  }
   0xa   :  { %11 = vrot.lane.b32.xlu0 %v10_v1, %s36_s0  ;;  %23 = vrot.lane.b32.xlu1 %v22_v2, %s37_s8  ;;  %v6_v4 = vld [vmem:[#allocation1] sm:$0x1]  }
   0xb   :  { %8 = vst.msk [vmem:[#allocation0] sm:$0x1] %vm7_vm0, %v6_v4  }
  0x12   :  { %17 = vrot.lane.b32.xlu0 %v16_v3, %s38_s9 }
  0x7c   :  { %v12_v5 = vpop.permute.xlu0 %11   ;;  %v24_v6 = vpop.permute.xlu1 %23  }
  0x7d   :  { %14 = vst.msk [vmem:[#allocation0] sm:$0x1] %vm13_vm1, %v12_v5  }
  0x84   :  { %v18_v7 = vpop.permute.xlu0 %17  }
  0x85   :  { %20 = vst.msk [vmem:[#allocation0] sm:$0x1] %vm19_vm2, %v18_v7  }
  0x86   :  { %26 = vst.msk [vmem:[#allocation0] sm:$0x1] %vm25_vm3, %v24_v6  }
  0x8d   :  { %v29_v8 = vld [vmem:[#allocation0] sm:$0x1] }
  0x8e   :  { %32 = vst [vmem:[%s56_s1] sm:$0x1] %v29_v8 }

// kernel: tile.103
= control target key start
LH: loop header
LB: loop body
LE: loop exit
PB: predicated region body
PF: predicated region fallthrough
CT: control target
= control target key end

     0   :  { %s22_s0 = inlined_call_operand.vmem [shape: f32[32], index: 0, kind: input, shape index: {}]   ;;  %s23_s1 = inlined_call_operand.vmem [shape: f32[2,32], index: 1, kind: output, shape index: {}]  }
   0x1   :  { %v4_v0 = vld [vmem:[%s22_s0] ss:$0 sm:$0xff] }
   0x2   :  { %5 = vst [vmem:[%s23_s1] sm:$0x3] %v4_v0 }

// kernel: tile.104
= control target key start
LH: loop header
LB: loop body
LE: loop exit
PB: predicated region body
PF: predicated region fallthrough
CT: control target
= control target key end

     0   :  { %vm7_vm0 = vcmask 261120   ;;  %vm13_vm1 = vcmask 523520   ;;  %s39_s0 = inlined_call_operand.vmem [shape: f32[2,32], index: 0, kind: input, shape index: {}]   ;;  %s40_s1 = inlined_call_operand.vmem [shape: f32[1,1,1,1,64], index: 1, kind: output, shape index: {}]  }
   0x1   :  { %v4_v0 = vld [vmem:[%s39_s0] sm:$0x3]  ;;  %s22_s0 = smov 32  }
   0x2   :  { %5 = vst [vmem:[#allocation1] sm:$0x3] %v4_v0 }
   0x9   :  { %v10_v1 = vld [vmem:[#allocation1 + $0x1] sm:$0x1]   ;;  %v6_v2 = vld [vmem:[#allocation1] sm:$0x1]  }
   0xa   :  { %11 = vrot.lane.b32.xlu0 %v10_v1, %s22_s0  ;;  %8 = vst.msk [vmem:[#allocation0] sm:$0x1] %vm7_vm0, %v6_v2  }
  0x7c   :  { %v12_v3 = vpop.permute.xlu0 %11  }
  0x7d   :  { %14 = vst.msk [vmem:[#allocation0] sm:$0x1] %vm13_vm1, %v12_v3  }
  0x84   :  { %v17_v4 = vld [vmem:[#allocation0] sm:$0x1] }
  0x85   :  { %20 = vst [vmem:[%s40_s1] sm:$0x1] %v17_v4 }

// kernel: fcn8_forward.13
= control target key start
LH: loop header
LB: loop body
LE: loop exit
PB: predicated region body
PF: predicated region fallthrough
CT: control target
= control target key end

     0   :  { %s822_s15 = smov 0   ;;  %s824_s16 = smov 0   ;;  %s1007_s0 = inlined_call_operand.vmem [shape: f32[2,4,6,32], index: 0, kind: input, shape index: {}]   ;;  %s1008_s1 = inlined_call_operand.vmem [shape: f32[288,128], index: 1, kind: input, shape index: {}]   ;;  %s1009_s2 = inlined_call_operand.vmem [shape: f32[1,128], index: 2, kind: input, shape index: {}]   ;;  %s1010_s3 = inlined_call_operand.vmem [shape: f32[2,2,4,128], index: 3, kind: output, shape index: {0}]   ;;  %s1011_s4 = inlined_call_operand.vmem [shape: f32[2,1,2,128], index: 4, kind: output, shape index: {1}]  }
   0x1   :  { %s826_s17 = smov 0  }
   0x2 LB: > { %s34_s18 = sadd.s32 1, %s788_s16  ;;  %p719_p0 = scmp.ge.s32.totalorder %s792_s17, 1  ;;  %s792_s17 = sphi %s826_s17, %s15_s17   ;;  %s788_s16 = sphi %s824_s16, %s1013_s16   ;;  %s784_s15 = sphi %s822_s15, %s1012_s15  }
   0x3   : > { %p36_p1 = scmp.ge.s32.totalorder %s34_s18, 2  ;;  %p209_p2 = scmp.lt.s32.totalorder %s792_s17, 3 }
   0x5   : > { %s1015_s18 = smov (%p36_p1, %s34_s18), 0  ;;  %p210_p3 = pnand %p719_p0, %p209_p2 }
   0x6   : > { %p259_p4 = scmp.lt.s32.totalorder (!%p210_p3), %s784_s15, 1  ;;  %s794_s23 = smov (!%p210_p3), 64  }
   0x7   : > { %213 = sbr.rel (%p210_p3) target bundleno = 316 (0x13c), region = 32  ;;  %s795_s24 = smov (!%p210_p3), 32  }
   0x8   : > { %s796_s25 = smov (!%p210_p3), 96  }
   0xc   : > { %s1017_s15 = smov (!%p259_p4, %s784_s15), 1  ;;  %v410_v12 = vld [vmem:[%s1008_s1 + $0x78] sm:$0xff]  ;;  %v409_v14 = vld [vmem:[%s1008_s1 + $0x70] sm:$0xff]  ;;  %v408_v16 = vld [vmem:[%s1008_s1 + $0x68] sm:$0xff]  ;;  %vm369_vm0 = vcmask 261120   ;;  %vm372_vm1 = vcmask 523264  }
   0xd   : > { %s740_s19 = sshll.u32 %s1017_s15, 5  ;;  %v426_v13 = vld [vmem:[%s1008_s1 + $0xf8] sm:$0xff]  ;;  %449 = vmatpush.msra.mxu0 %v410_v12  ;;  %v425_v15 = vld [vmem:[%s1008_s1 + $0xf0] sm:$0xff]  ;;  %v424_v17 = vld [vmem:[%s1008_s1 + $0xe8] sm:$0xff]  ;;  %vm375_vm2 = vcmask 785408   ;;  %vm392_vm3 = vcmask 1043456  }
   0xe   : > { %s846_s22 = scalar_lea.vmem %s1007_s0, %s740_s19  ;;  %469 = vmatpush.msra.mxu1 %v426_v13  ;;  %v407_v18 = vld [vmem:[%s1008_s1 + $0x60] sm:$0xff]  ;;  %v406_v20 = vld [vmem:[%s1008_s1 + $0x58] sm:$0xff]  ;;  %v405_v22 = vld [vmem:[%s1008_s1 + $0x50] sm:$0xff]  ;;  %s741_s10 = sshll.u32 %s1017_s15, 3  ;;  %vm528_vm4 = vcmask 1040384  }
   0xf   : > { %v731_v0 = vld [vmem:[%s846_s22 + $0x10] sm:$0xf]  ;;  %v729_v1 = vld [vmem:[%s846_s22 + $0xa] sm:$0xf]  ;;  %v299_v2 = vld [vmem:[%s846_s22 + $0x1] sm:$0xf]  ;;  %450 = vmatpush.msra.mxu0 %v409_v14  ;;  %s282_s13 = scalar_lea.vmem %s1010_s3, %s741_s10 }
  0x10   : > { %355 = vrot.lane.b32.xlu1 %v731_v0, %s794_s23  ;;  %347 = vrot.lane.b32.xlu0 %v729_v1, %s795_s24  ;;  %v732_v3 = vld [vmem:[%s846_s22 + $0x18] sm:$0xf]  ;;  %v730_v4 = vld [vmem:[%s846_s22 + $0x12] sm:$0xf]  ;;  %s724_s14 = sshll.u32 %s1017_s15, 1 }
  0x11   : > { %323 = vrot.lane.b32.xlu2 %v299_v2, %s795_s24  ;;  %v300_v5 = vld [vmem:[%s846_s22 + $0x9] sm:$0xf]  ;;  %v734_v6 = vld [vmem:[%s846_s22 + $0x19] sm:$0xf]  ;;  %v733_v7 = vld [vmem:[%s846_s22 + $0x11] sm:$0xf]  ;;  %470 = vmatpush.msra.mxu1 %v425_v15  ;;  %s293_s21 = scalar_lea.vmem %s1011_s4, %s724_s14 }
  0x12   : > { %v301_v8 = vld [vmem:[%s846_s22 + $0x2] sm:$0xf]  ;;  %v725_v9 = vld [vmem:[%s846_s22 + $0x8] sm:$0xf]  ;;  %v726_v11 = vld [vmem:[%s846_s22 + $0x10] sm:$0xf]  ;;  %451 = vmatpush.msra.mxu0 %v408_v16 }
  0x13   : > { %v302_v10 = vld [vmem:[%s846_s22 + $0xa] sm:$0xf]  ;;  %471 = vmatpush.msra.mxu1 %v424_v17  ;;  %v423_v19 = vld [vmem:[%s1008_s1 + $0xe0] sm:$0xff]  ;;  %v422_v21 = vld [vmem:[%s1008_s1 + $0xd8] sm:$0xff] }
  0x14   : > { %452 = vmatpush.msra.mxu0 %v407_v18  ;;  %v421_v23 = vld [vmem:[%s1008_s1 + $0xd0] sm:$0xff]  ;;  %v404_v24 = vld [vmem:[%s1008_s1 + $0x48] sm:$0xff]  ;;  %v403_v26 = vld [vmem:[%s1008_s1 + $0x40] sm:$0xff] }
  0x15   : > { %472 = vmatpush.msra.mxu1 %v423_v19  ;;  %v420_v25 = vld [vmem:[%s1008_s1 + $0xc8] sm:$0xff]  ;;  %v419_v27 = vld [vmem:[%s1008_s1 + $0xc0] sm:$0xff]  ;;  %v402_v28 = vld [vmem:[%s1008_s1 + $0x38] sm:$0xff] }
  0x16   : > { %453 = vmatpush.msra.mxu0 %v406_v20  ;;  %v418_v29 = vld [vmem:[%s1008_s1 + $0xb8] sm:$0xff]  ;;  %v401_v30 = vld [vmem:[%s1008_s1 + $0x30] sm:$0xff]  ;;  %v400_v32 = vld [vmem:[%s1008_s1 + $0x28] sm:$0xff] }
  0x17   : > { %473 = vmatpush.msra.mxu1 %v422_v21  ;;  %v417_v31 = vld [vmem:[%s1008_s1 + $0xb0] sm:$0xff]  ;;  %v416_v33 = vld [vmem:[%s1008_s1 + $0xa8] sm:$0xff]  ;;  %v736_v35 = vld [vmem:[%s846_s22 + $0x1a] sm:$0xf] }
  0x18   : > { %357 = vrot.lane.b32.xlu1 %v732_v3, %s794_s23  ;;  %349 = vrot.lane.b32.xlu0 %v730_v4, %s795_s24  ;;  %v735_v34 = vld [vmem:[%s846_s22 + $0x12] sm:$0xf]  ;;  %v399_v36 = vld [vmem:[%s1008_s1 + $0x20] sm:$0xff]  ;;  %441 = vst [vmem:[#allocation1 + $0x11] ss:$2 sm:$0xff] %v736_v35 }
  0x19   : > { %325 = vrot.lane.b32.xlu2 %v300_v5, %s795_s24  ;;  %454 = vmatpush.msra.mxu0 %v405_v22  ;;  %v415_v37 = vld [vmem:[%s1008_s1 + $0xa0] sm:$0xff]  ;;  %v430_v38 = vld [vmem:[%s1008_s1 + $0x118] sm:$0xff]  ;;  %439 = vst [vmem:[#allocation1 + $0x10] ss:$2 sm:$0xff] %v735_v34  ;;  %v429_v42 = vld [vmem:[%s1008_s1 + $0x110] sm:$0xff] }
  0x1a   : > { %474 = vmatpush.msra.mxu1 %v421_v23  ;;  %501 = vmatpush.msra.mxu2 %v430_v38  ;;  %v398_v40 = vld [vmem:[%s1008_s1 + $0x18] sm:$0xff]  ;;  %v397_v43 = vld [vmem:[%s1008_s1 + $0x10] sm:$0xff]  ;;  %v428_v45 = vld [vmem:[%s1008_s1 + $0x108] sm:$0xff] }
  0x1b   : > { %455 = vmatpush.msra.mxu0 %v404_v24  ;;  %v414_v41 = vld [vmem:[%s1008_s1 + $0x98] sm:$0xff]  ;;  %v413_v44 = vld [vmem:[%s1008_s1 + $0x90] sm:$0xff]  ;;  %v396_v46 = vld [vmem:[%s1008_s1 + $0x8] sm:$0xff] }
  0x1c   : > { %475 = vmatpush.msra.mxu1 %v420_v25  ;;  %502 = vmatpush.msra.mxu2 %v429_v42  ;;  %v412_v47 = vld [vmem:[%s1008_s1 + $0x88] sm:$0xff]  ;;  %v427_v48 = vld [vmem:[%s1008_s1 + $0x100] sm:$0xff]  ;;  %v728_v59 = vld [vmem:[%s846_s22 + $0x11] sm:$0xf] }
  0x1d   : > { %456 = vmatpush.msra.mxu0 %v403_v26  ;;  %v395_v51 = vld [vmem:[%s1008_s1] sm:$0xff]  ;;  %v727_v57 = vld [vmem:[%s846_s22 + $0x9] sm:$0xf] }
  0x1e   : > { %476 = vmatpush.msra.mxu1 %v419_v27  ;;  %503 = vmatpush.msra.mxu2 %v428_v45  ;;  %v411_v52 = vld [vmem:[%s1008_s1 + $0x80] sm:$0xff]  ;;  %v298_v3 = vld [vmem:[%s846_s22 + $0x8] sm:$0xf] }
  0x1f   : > { %457 = vmatpush.msra.mxu0 %v402_v28  ;;  %v297_v63 = vld [vmem:[%s846_s22] sm:$0xf] }
  0x20   : > { %365 = vrot.lane.b32.xlu1 %v734_v6, %s796_s25  ;;  %363 = vrot.lane.b32.xlu0 %v733_v7, %s796_s25  ;;  %v444_v53 = vld.sshfl [vmem:[#allocation1 + $0x10] sm:$0xff pattern:$0x75316420]  ;;  %v769_v21 = vld [vmem:[%s1009_s2] ss:$0 sm:$0xff] }
  0x21   : > { %331 = vrot.lane.b32.xlu2 %v301_v8, %s794_s23  ;;  %477 = vmatpush.msra.mxu1 %v418_v29 }
  0x22   : > { %458 = vmatpush.msra.mxu0 %v401_v30  ;;  %504 = vmatpush.msra.mxu2 %v427_v48 }
  0x23   : > { %478 = vmatpush.msra.mxu1 %v417_v31  ;;  %737 = vmatmul.msk.f32.vlgmr.msra.gmra.mxu2 %vm369_vm0, %v444_v53 }
  0x24   : > { %459 = vmatpush.msra.mxu0 %v400_v32 }
  0x25   : > { %479 = vmatpush.msra.mxu1 %v416_v33 }
  0x26   : > { %460 = vmatpush.msra.mxu0 %v399_v36 }
  0x27   : > { %480 = vmatpush.msra.mxu1 %v415_v37 }
  0x28   : > { %339 = vrot.lane.b32.xlu1 %v725_v9, %s796_s25  ;;  %333 = vrot.lane.b32.xlu0 %v302_v10, %s794_s23 }
  0x29   : > { %341 = vrot.lane.b32.xlu2 %v726_v11, %s796_s25  ;;  %461 = vmatpush.msra.mxu0 %v398_v40 }
  0x2a   : > { %481 = vmatpush.msra.mxu1 %v414_v41 }
  0x2b   : > { %462 = vmatpush.msra.mxu0 %v397_v43 }
  0x2c   : > { %482 = vmatpush.msra.mxu1 %v413_v44 }
  0x2d   : > { %463 = vmatpush.msra.mxu0 %v396_v46 }
  0x2e   : > { %483 = vmatpush.msra.mxu1 %v412_v47 }
  0x2f   : > { %464 = vmatpush.msra.mxu0 %v395_v51 }
  0x30   : > { %484 = vmatpush.msra.mxu1 %v411_v52 }
  0x6b   : > { %v324_v39 = vpop.permute.xlu2 %323 }
  0x6c   : > { %v370_v2 = vsel %vm369_vm0, %v297_v63, %v324_v39 }
  0x73   : > { %v326_v54 = vpop.permute.xlu2 %325 }
  0x74   : > { %v371_v8 = vsel %vm369_vm0, %v298_v3, %v326_v54 }
  0x7b   : > { %v332_v58 = vpop.permute.xlu2 %331 }
  0x7c   : > { %v373_v9 = vsel %vm372_vm1, %v370_v2, %v332_v58 }
  0x82   : > { %v356_v49 = vpop.permute.xlu1 %355  ;;  %v348_v50 = vpop.permute.xlu0 %347 }
  0x83   : > { %v378_v62 = vsel %vm369_vm0, %v727_v57, %v348_v50  ;;  %v342_v7 = vpop.permute.xlu2 %341 }
  0x84   : > { %v380_v1 = vsel %vm372_vm1, %v378_v62, %v356_v49 }
  0x8a   : > { %v358_v55 = vpop.permute.xlu1 %357  ;;  %v350_v56 = vpop.permute.xlu0 %349 }
  0x8b   : > { %v379_v0 = vsel %vm369_vm0, %v728_v59, %v350_v56 }
  0x8c   : > { %v381_v4 = vsel %vm372_vm1, %v379_v0, %v358_v55 }
  0x92   : > { %v366_v60 = vpop.permute.xlu1 %365  ;;  %v364_v61 = vpop.permute.xlu0 %363 }
  0x93   : > { %v382_v5 = vsel %vm375_vm2, %v380_v1, %v364_v61  ;;  %v383_v6 = vsel %vm375_vm2, %v381_v4, %v366_v60 }
  0x94   : > { %v390_v10 = vrot.slane %v382_v5, 4  ;;  %v391_v13 = vrot.slane %v383_v6, 4 }
  0x9a   : > { %v340_v11 = vpop.permute.xlu1 %339  ;;  %v334_v12 = vpop.permute.xlu0 %333 }
  0x9b   : > { %v376_v14 = vsel %vm375_vm2, %v373_v9, %v340_v11  ;;  %v374_v15 = vsel %vm372_vm1, %v371_v8, %v334_v12 }
  0x9c   : > { %v393_v16 = vsel %vm392_vm3, %v376_v14, %v390_v10  ;;  %v377_v17 = vsel %vm375_vm2, %v374_v15, %v342_v7 }
  0x9d   : > { %435 = vst [vmem:[#allocation1] ss:$2 sm:$0xff] %v393_v16  ;;  %v394_v18 = vsel %vm392_vm3, %v377_v17, %v391_v13 }
  0x9e   : > { %437 = vst [vmem:[#allocation1 + $0x1] ss:$2 sm:$0xff] %v394_v18 }
  0xa5   : > { %v442_v19 = vld.sshfl [vmem:[#allocation1] sm:$0xff pattern:$0x75316420]  ;;  %v443_v20 = vld.sshfl [vmem:[#allocation1 + $0x8] sm:$0xff pattern:$0x75316420] }
  0xa6   : > { %465 = vmatmul.f32.vlgmr.msra.gmra.mxu0 %v442_v19  ;;  %485 = vmatmul.f32.vlgmr.msra.gmra.mxu1 %v443_v20  ;;  %v506_v25 = vpop.f32.mrf.mxu2 }
 0x123   : > { %v466_v22 = vpop.f32.mrf.mxu0  ;;  %v486_v24 = vpop.f32.mrf.mxu1 }
 0x124   : > { %v467_v23 = vadd.f32 %v769_v21, %v466_v22 }
 0x126   : > { %v487_v26 = vadd.f32 %v486_v24, %v467_v23 }
 0x128   : > { %v507_v27 = vadd.f32 %v506_v25, %v487_v26 }
 0x12a   : > { %v509_v28 = vmax.f32 %v507_v27, 0.0 }
 0x12c   : > { %v511_v29 = vrot.slane %v509_v28, 4  ;;  %513 = vst [vmem:[%s282_s13] sm:$0xf] %v509_v28  ;;  %v521_v30 = vmul.f32 %v509_v28, %v509_v28 }
 0x12e   : > { %514 = vst [vmem:[%s282_s13 + $0x4] sm:$0xf] %v511_v29  ;;  %v516_v31 = vadd.f32 %v511_v29, %v509_v28  ;;  %v522_v32 = vrot.slane %v521_v30, 4 }
 0x130   : > { %v517_v33 = vrot.slane %v516_v31, 2  ;;  %v523_v34 = vadd.f32 %v522_v32, %v521_v30 }
 0x132   : > { %v518_v35 = vadd.f32 %v517_v33, %v516_v31  ;;  %v524_v36 = vrot.slane %v523_v34, 2 }
 0x134   : > { %v519_v37 = vrot.slane %v518_v35, 1  ;;  %v525_v38 = vadd.f32 %v524_v36, %v523_v34 }
 0x136   : > { %v526_v39 = vrot.slane %v525_v38, 1  ;;  %v520_v40 = vadd.f32 %v519_v37, %v518_v35 }
 0x138   : > { %v527_v41 = vadd.f32 %v526_v39, %v525_v38 }
 0x13a   : > { %v529_v42 = vsel %vm528_vm4, %v520_v40, %v527_v41 }
 0x13b   : > { %530 = vst [vmem:[%s293_s21] sm:$0x3] %v529_v42 }
 0x13c PF: > { %s15_s17 = sadd.s32 1, %s792_s17   ;;  %s1012_s15 = smov %s788_s16 }
 0x13d   : > { %p12_p5 = scmp.ge.s32.totalorder %s15_s17, 4   ;;  %s1013_s16 = smov %s1015_s18 }
 0x13f   :  { %14 = sbr.rel (!%p12_p5) target bundleno = 2 (0x2), region = 86 }

// kernel: fcn8_forward.14
= control target key start
LH: loop header
LB: loop body
LE: loop exit
PB: predicated region body
PF: predicated region fallthrough
CT: control target
= control target key end

     0   :  { %s613_s21 = smov 0   ;;  %s615_s22 = smov 0   ;;  %s673_s0 = inlined_call_operand.vmem [shape: f32[2,2,4,128], index: 0, kind: input, shape index: {}]   ;;  %s674_s1 = inlined_call_operand.vmem [shape: f32[1,1,1,128], index: 1, kind: input, shape index: {}]   ;;  %s675_s2 = inlined_call_operand.vmem [shape: f32[1,1,1,128], index: 2, kind: input, shape index: {}]   ;;  %s676_s3 = inlined_call_operand.vmem [shape: f32[2,2,2,4,64], index: 3, kind: input, shape index: {}]   ;;  %s677_s4 = inlined_call_operand.vmem [shape: f32[1,1,1,1,64], index: 4, kind: input, shape index: {}]   ;;  %s678_s5 = inlined_call_operand.vmem [shape: f32[1,1,1,1,64], index: 5, kind: input, shape index: {}]   ;;  %s679_s6 = inlined_call_operand.vmem [shape: f32[2,2,2,4,64], index: 6, kind: output, shape index: {}]  }
   0x1   :  { %s617_s23 = smov 0  }
   0x2 LB: > { %s28_s24 = sadd.s32 1, %s571_s22  ;;  %p510_p0 = scmp.ge.s32.totalorder %s575_s23, 1  ;;  %s575_s23 = sphi %s617_s23, %s16_s23   ;;  %s571_s22 = sphi %s615_s22, %s681_s22   ;;  %s567_s21 = sphi %s613_s21, %s680_s21  }
   0x3   : > { %p30_p1 = scmp.ge.s32.totalorder %s28_s24, 2  ;;  %p251_p2 = scmp.lt.s32.totalorder %s575_s23, 3 }
   0x5   : > { %s683_s24 = smov (%p30_p1, %s28_s24), 0  ;;  %p252_p3 = pnand %p510_p0, %p251_p2 }
   0x6   : > { %p301_p4 = scmp.lt.s32.totalorder (!%p252_p3), %s567_s21, 1  ;;  %s577_s9 = smov (!%p252_p3), 64  }
   0x7   : > { %255 = sbr.rel (%p252_p3) target bundleno = 261 (0x105), region = 44 }
   0xc   : > { %s685_s21 = smov (!%p301_p4, %s567_s21), 1  ;;  %v549_v0 = vld [vmem:[%s677_s4] ss:$0 sm:$0xff]  ;;  %vm368_vm0 = vcmask 519168  }
   0xd   : > { %s522_s27 = sshll.u32 %s685_s21, 4  ;;  %v550_v1 = vld [vmem:[%s678_s5] ss:$0 sm:$0xff]  ;;  %s521_s10 = sshll.u32 %s685_s21, 3 }
   0xe   : > { %s319_s30 = scalar_lea.vmem %s676_s3, %s522_s27  ;;  %s308_s13 = scalar_lea.vmem %s673_s0, %s521_s10  ;;  %v551_v8 = vld [vmem:[%s674_s1] ss:$0 sm:$0xff] }
   0xf   : > { %v347_v2 = vld [vmem:[%s319_s30 + $0x4] sm:$0xf]  ;;  %v349_v4 = vld [vmem:[%s319_s30 + $0xc] sm:$0xf]  ;;  %v332_v9 = vld [vmem:[%s308_s13] sm:$0xf]  ;;  %s330_s20 = scalar_lea.vmem %s679_s6, %s522_s27 }
  0x10   : > { %v355_v3 = vmul.f32 %v549_v0, %v347_v2  ;;  %v357_v6 = vmul.f32 %v549_v0, %v349_v4  ;;  %v346_v10 = vld [vmem:[%s319_s30] sm:$0xf]  ;;  %v338_v13 = vmul.f32 %v551_v8, %v332_v9  ;;  %v348_v14 = vld [vmem:[%s319_s30 + $0x8] sm:$0xf]  ;;  %v333_v16 = vld [vmem:[%s308_s13 + $0x4] sm:$0xf] }
  0x11   : > { %v354_v11 = vmul.f32 %v549_v0, %v346_v10  ;;  %v552_v12 = vld [vmem:[%s675_s2] ss:$0 sm:$0xff]  ;;  %v356_v15 = vmul.f32 %v549_v0, %v348_v14  ;;  %v339_v18 = vmul.f32 %v551_v8, %v333_v16 }
  0x12   : > { %v363_v5 = vadd.f32 %v550_v1, %v355_v3  ;;  %v365_v7 = vadd.f32 %v550_v1, %v357_v6  ;;  %v344_v20 = vadd.f32 %v552_v12, %v338_v13 }
  0x13   : > { %v362_v17 = vadd.f32 %v550_v1, %v354_v11  ;;  %v364_v19 = vadd.f32 %v550_v1, %v356_v15  ;;  %v345_v21 = vadd.f32 %v552_v12, %v339_v18 }
  0x14   : > { %373 = vrot.lane.b32.xlu0 %v363_v5, %s577_s9 }
  0x15   : > { %v366_v22 = vadd.f32 %v362_v17, %v344_v20  ;;  %v367_v23 = vadd.f32 %v364_v19, %v345_v21 }
  0x17   : > { %370 = vst.msk [vmem:[%s330_s20 + $0x8] sm:$0xf] %vm368_vm0, %v367_v23 }
  0x18   : > { %369 = vst.msk [vmem:[%s330_s20] sm:$0xf] %vm368_vm0, %v366_v22 }
  0x1c   : > { %375 = vrot.lane.b32.xlu0 %v365_v7, %s577_s9 }
  0x86   : > { %v374_v24 = vpop.permute.xlu0 %373 }
  0x87   : > { %v379_v25 = vadd.f32 %v374_v24, %v344_v20 }
  0x89   : > { %383 = vrot.lane.b32.xlu1 %v379_v25, %s577_s9 }
  0x8e   : > { %v376_v26 = vpop.permute.xlu0 %375 }
  0x8f   : > { %v380_v27 = vadd.f32 %v376_v26, %v345_v21 }
  0x91   : > { %385 = vrot.lane.b32.xlu1 %v380_v27, %s577_s9 }
  0xfb   : > { %v384_v28 = vpop.permute.xlu1 %383 }
  0xfc   : > { %517 = vst.msk [vmem:[%s330_s20 + $0x4] sm:$0xf] %vm368_vm0, %v384_v28 }
 0x103   : > { %v386_v29 = vpop.permute.xlu1 %385 }
 0x104   : > { %518 = vst.msk [vmem:[%s330_s20 + $0xc] sm:$0xf] %vm368_vm0, %v386_v29 }
 0x105 PF: > { %s16_s23 = sadd.s32 1, %s575_s23   ;;  %s680_s21 = smov %s571_s22 }
 0x106   : > { %p13_p5 = scmp.ge.s32.totalorder %s16_s23, 4   ;;  %s681_s22 = smov %s683_s24 }
 0x108   :  { %15 = sbr.rel (!%p13_p5) target bundleno = 2 (0x2), region = 78 }

// kernel: fcn8_forward.17
= control target key start
LH: loop header
LB: loop body
LE: loop exit
PB: predicated region body
PF: predicated region fallthrough
CT: control target
= control target key end

     0   :  { %s657_s21 = smov 0   ;;  %s659_s22 = smov 0   ;;  %s749_s0 = inlined_call_operand.vmem [shape: f32[2,4,8,128], index: 0, kind: input, shape index: {}]   ;;  %s750_s1 = inlined_call_operand.vmem [shape: f32[1,1,1,128], index: 1, kind: input, shape index: {}]   ;;  %s751_s2 = inlined_call_operand.vmem [shape: f32[1,1,1,128], index: 2, kind: input, shape index: {}]   ;;  %s752_s3 = inlined_call_operand.vmem [shape: f32[2,4,2,8,64], index: 3, kind: input, shape index: {}]   ;;  %s753_s4 = inlined_call_operand.vmem [shape: f32[1,1,1,1,64], index: 4, kind: input, shape index: {}]   ;;  %s754_s5 = inlined_call_operand.vmem [shape: f32[1,1,1,1,64], index: 5, kind: input, shape index: {}]   ;;  %s755_s6 = inlined_call_operand.vmem [shape: f32[2,4,2,8,64], index: 6, kind: output, shape index: {}]  }
   0x1   :  { %s661_s23 = smov 0  }
   0x2 LB: > { %s28_s24 = sadd.s32 1, %s615_s22  ;;  %p552_p0 = scmp.ge.s32.totalorder %s619_s23, 1  ;;  %s619_s23 = sphi %s661_s23, %s16_s23   ;;  %s615_s22 = sphi %s659_s22, %s757_s22   ;;  %s611_s21 = sphi %s657_s21, %s756_s21  }
   0x3   : > { %p30_p1 = scmp.ge.s32.totalorder %s28_s24, 2  ;;  %p251_p2 = scmp.lt.s32.totalorder %s619_s23, 3 }
   0x5   : > { %s759_s24 = smov (%p30_p1, %s28_s24), 0  ;;  %p252_p3 = pnand %p552_p0, %p251_p2 }
   0x6   : > { %p301_p4 = scmp.lt.s32.totalorder (!%p252_p3), %s611_s21, 1  ;;  %s621_s9 = smov (!%p252_p3), 64  }
   0x7   : > { %255 = sbr.rel (%p252_p3) target bundleno = 261 (0x105), region = 44 }
   0xc   : > { %s761_s21 = smov (!%p301_p4, %s611_s21), 1  ;;  %v593_v0 = vld [vmem:[%s753_s4] ss:$0 sm:$0xff]  ;;  %vm388_vm0 = vcmask 523264  }
   0xd   : > { %s566_s27 = sshll.u32 %s761_s21, 6  ;;  %v594_v1 = vld [vmem:[%s754_s5] ss:$0 sm:$0xff]  ;;  %s565_s10 = sshll.u32 %s761_s21, 5 }
   0xe   : > { %s686_s30 = scalar_lea.vmem %s752_s3, %s566_s27  ;;  %s308_s13 = scalar_lea.vmem %s749_s0, %s565_s10  ;;  %v595_v14 = vld [vmem:[%s750_s1] ss:$0 sm:$0xff] }
   0xf   : > { %v357_v2 = vld [vmem:[%s686_s30 + $0x28] sm:$0xff]  ;;  %v359_v6 = vld [vmem:[%s686_s30 + $0x38] sm:$0xff]  ;;  %v334_v15 = vld [vmem:[%s308_s13 + $0x10] sm:$0xff]  ;;  %s716_s20 = scalar_lea.vmem %s755_s6, %s566_s27 }
  0x10   : > { %v353_v3 = vld [vmem:[%s686_s30 + $0x8] sm:$0xff]  ;;  %v369_v4 = vmul.f32 %v593_v0, %v357_v2  ;;  %v355_v7 = vld [vmem:[%s686_s30 + $0x18] sm:$0xff]  ;;  %v371_v10 = vmul.f32 %v593_v0, %v359_v6  ;;  %v596_v16 = vld [vmem:[%s751_s2] ss:$0 sm:$0xff]  ;;  %v342_v17 = vmul.f32 %v595_v14, %v334_v15 }
  0x11   : > { %v365_v5 = vmul.f32 %v593_v0, %v353_v3  ;;  %v367_v11 = vmul.f32 %v593_v0, %v355_v7  ;;  %v356_v18 = vld [vmem:[%s686_s30 + $0x20] sm:$0xff]  ;;  %v358_v22 = vld [vmem:[%s686_s30 + $0x30] sm:$0xff]  ;;  %v335_v24 = vld [vmem:[%s308_s13 + $0x18] sm:$0xff] }
  0x12   : > { %v381_v8 = vadd.f32 %v594_v1, %v369_v4  ;;  %v383_v12 = vadd.f32 %v594_v1, %v371_v10  ;;  %v368_v19 = vmul.f32 %v593_v0, %v356_v18  ;;  %v350_v20 = vadd.f32 %v596_v16, %v342_v17  ;;  %v332_v30 = vld [vmem:[%s308_s13] sm:$0xff]  ;;  %v354_v32 = vld [vmem:[%s686_s30 + $0x10] sm:$0xff]  ;;  %v333_v36 = vld [vmem:[%s308_s13 + $0x8] sm:$0xff] }
  0x13   : > { %v377_v9 = vadd.f32 %v594_v1, %v365_v5  ;;  %v379_v13 = vadd.f32 %v594_v1, %v367_v11  ;;  %v370_v23 = vmul.f32 %v593_v0, %v358_v22  ;;  %v343_v26 = vmul.f32 %v595_v14, %v335_v24  ;;  %v352_v31 = vld [vmem:[%s686_s30] sm:$0xff] }
  0x14   : > { %401 = vrot.lane.b32.xlu1 %v381_v8, %s621_s9  ;;  %v380_v21 = vadd.f32 %v594_v1, %v368_v19  ;;  %v340_v33 = vmul.f32 %v595_v14, %v332_v30  ;;  %v364_v34 = vmul.f32 %v593_v0, %v352_v31  ;;  %v366_v35 = vmul.f32 %v593_v0, %v354_v32 }
  0x15   : > { %397 = vrot.lane.b32.xlu0 %v377_v9, %s621_s9  ;;  %v382_v27 = vadd.f32 %v594_v1, %v370_v23  ;;  %v351_v28 = vadd.f32 %v596_v16, %v343_v26  ;;  %v341_v37 = vmul.f32 %v595_v14, %v333_v36 }
  0x16   : > { %v386_v25 = vadd.f32 %v380_v21, %v350_v20  ;;  %v348_v38 = vadd.f32 %v596_v16, %v340_v33  ;;  %v376_v39 = vadd.f32 %v594_v1, %v364_v34  ;;  %v378_v40 = vadd.f32 %v594_v1, %v366_v35 }
  0x17   : > { %v387_v29 = vadd.f32 %v382_v27, %v351_v28  ;;  %v349_v41 = vadd.f32 %v596_v16, %v341_v37 }
  0x18   : > { %391 = vst.msk [vmem:[%s716_s20 + $0x20] sm:$0xff] %vm388_vm0, %v386_v25  ;;  %v384_v42 = vadd.f32 %v376_v39, %v348_v38 }
  0x19   : > { %392 = vst.msk [vmem:[%s716_s20 + $0x30] sm:$0xff] %vm388_vm0, %v387_v29  ;;  %v385_v43 = vadd.f32 %v378_v40, %v349_v41 }
  0x1a   : > { %389 = vst.msk [vmem:[%s716_s20] sm:$0xff] %vm388_vm0, %v384_v42 }
  0x1b   : > { %390 = vst.msk [vmem:[%s716_s20 + $0x10] sm:$0xff] %vm388_vm0, %v385_v43 }
  0x1c   : > { %403 = vrot.lane.b32.xlu1 %v383_v12, %s621_s9 }
  0x1d   : > { %399 = vrot.lane.b32.xlu0 %v379_v13, %s621_s9 }
  0x86   : > { %v402_v44 = vpop.permute.xlu1 %401 }
  0x87   : > { %v398_v45 = vpop.permute.xlu0 %397  ;;  %v411_v46 = vadd.f32 %v402_v44, %v350_v20 }
  0x88   : > { %v409_v47 = vadd.f32 %v398_v45, %v348_v38 }
  0x89   : > { %421 = vrot.lane.b32.xlu0 %v411_v46, %s621_s9 }
  0x8a   : > { %417 = vrot.lane.b32.xlu2 %v409_v47, %s621_s9 }
  0x8e   : > { %v404_v48 = vpop.permute.xlu1 %403 }
  0x8f   : > { %v400_v49 = vpop.permute.xlu0 %399  ;;  %v412_v50 = vadd.f32 %v404_v48, %v351_v28 }
  0x90   : > { %v410_v51 = vadd.f32 %v400_v49, %v349_v41 }
  0x91   : > { %423 = vrot.lane.b32.xlu1 %v412_v50, %s621_s9 }
  0x92   : > { %419 = vrot.lane.b32.xlu2 %v410_v51, %s621_s9 }
  0xe4   : > { %v418_v52 = vpop.permute.xlu2 %417 }
  0xe5   : > { %559 = vst.msk [vmem:[%s716_s20 + $0x8] sm:$0xff] %vm388_vm0, %v418_v52 }
  0xec   : > { %v420_v53 = vpop.permute.xlu2 %419 }
  0xed   : > { %560 = vst.msk [vmem:[%s716_s20 + $0x18] sm:$0xff] %vm388_vm0, %v420_v53 }
  0xfb   : > { %v422_v54 = vpop.permute.xlu0 %421 }
  0xfc   : > { %561 = vst.msk [vmem:[%s716_s20 + $0x28] sm:$0xff] %vm388_vm0, %v422_v54 }
 0x103   : > { %v424_v55 = vpop.permute.xlu1 %423 }
 0x104   : > { %562 = vst.msk [vmem:[%s716_s20 + $0x38] sm:$0xff] %vm388_vm0, %v424_v55 }
 0x105 PF: > { %s16_s23 = sadd.s32 1, %s619_s23   ;;  %s756_s21 = smov %s615_s22 }
 0x106   : > { %p13_p5 = scmp.ge.s32.totalorder %s16_s23, 4   ;;  %s757_s22 = smov %s759_s24 }
 0x108   :  { %15 = sbr.rel (!%p13_p5) target bundleno = 2 (0x2), region = 78 }

// kernel: fcn8_forward.16
= control target key start
LH: loop header
LB: loop body
LE: loop exit
PB: predicated region body
PF: predicated region fallthrough
CT: control target
= control target key end

     0   :  { %s1005_s15 = smov 0   ;;  %s1007_s16 = smov 0   ;;  %s1271_s0 = inlined_call_operand.vmem [shape: f32[2,6,10,32], index: 0, kind: input, shape index: {}]   ;;  %s1272_s1 = inlined_call_operand.vmem [shape: f32[288,128], index: 1, kind: input, shape index: {}]   ;;  %s1273_s2 = inlined_call_operand.vmem [shape: f32[1,128], index: 2, kind: input, shape index: {}]   ;;  %s1274_s3 = inlined_call_operand.vmem [shape: f32[2,4,8,128], index: 3, kind: output, shape index: {0}]   ;;  %s1275_s4 = inlined_call_operand.vmem [shape: f32[2,1,2,128], index: 4, kind: output, shape index: {1}]  }
   0x1   :  { %s1009_s17 = smov 0  }
   0x2 LB: > { %s34_s18 = sadd.s32 1, %s971_s16  ;;  %p822_p0 = scmp.ge.s32.totalorder %s975_s17, 1  ;;  %s975_s17 = sphi %s1009_s17, %s15_s17   ;;  %s971_s16 = sphi %s1007_s16, %s1277_s16   ;;  %s967_s15 = sphi %s1005_s15, %s1276_s15  }
   0x3   : > { %p36_p1 = scmp.ge.s32.totalorder %s34_s18, 2  ;;  %p209_p2 = scmp.lt.s32.totalorder %s975_s17, 3 }
   0x5   : > { %s1279_s18 = smov (%p36_p1, %s34_s18), 0  ;;  %p210_p3 = pnand %p822_p0, %p209_p2 }
   0x6   : > { %p259_p4 = scmp.lt.s32.totalorder (!%p210_p3), %s967_s15, 1  ;;  %s977_s23 = smov (!%p210_p3), 96  }
   0x7   : > { %213 = sbr.rel (%p210_p3) target bundleno = 321 (0x141), region = 32  ;;  %s978_s24 = smov (!%p210_p3), 32  }
   0x8   : > { %s979_s29 = smov (!%p210_p3), 64  }
   0xc   : > { %s1281_s15 = smov (!%p259_p4, %s967_s15), 1  ;;  %v477_v9 = vld [vmem:[%s1272_s1 + $0x78] sm:$0xff]  ;;  %v476_v11 = vld [vmem:[%s1272_s1 + $0x70] sm:$0xff]  ;;  %v475_v14 = vld [vmem:[%s1272_s1 + $0x68] sm:$0xff]  ;;  %vm435_vm0 = vcmask 261120   ;;  %vm440_vm1 = vcmask 523264  }
   0xd   : > { %s874_s19 = smul.u32 96, %s1281_s15  ;;  %v493_v10 = vld [vmem:[%s1272_s1 + $0xf8] sm:$0xff]  ;;  %858 = vmatpush.msra.mxu3 %v477_v9  ;;  %v492_v12 = vld [vmem:[%s1272_s1 + $0xf0] sm:$0xff]  ;;  %514 = vmatpush.msra.mxu0 %v477_v9  ;;  %v491_v16 = vld [vmem:[%s1272_s1 + $0xe8] sm:$0xff]  ;;  %vm445_vm2 = vcmask 785408   ;;  %s857_s13 = sshll.u32 %s1281_s15, 5 }
   0xe   : > { %543 = vmatpush.msra.mxu1 %v493_v10  ;;  %v474_v18 = vld [vmem:[%s1272_s1 + $0x60] sm:$0xff]  ;;  %v473_v21 = vld [vmem:[%s1272_s1 + $0x58] sm:$0xff]  ;;  %v472_v25 = vld [vmem:[%s1272_s1 + $0x50] sm:$0xff]  ;;  %s1252_s20 = scalar_lea.vmem %s1274_s3, %s857_s13  ;;  %s826_s21 = sshll.u32 %s1281_s15, 1  ;;  %vm631_vm3 = vcmask 1040384  }
   0xf   : > { %s1029_s22 = scalar_lea.vmem %s1271_s0, %s874_s19  ;;  %859 = vmatpush.msra.mxu3 %v476_v11  ;;  %515 = vmatpush.msra.mxu0 %v476_v11  ;;  %v490_v20 = vld [vmem:[%s1272_s1 + $0xe0] sm:$0xff]  ;;  %v489_v24 = vld [vmem:[%s1272_s1 + $0xd8] sm:$0xff]  ;;  %v488_v26 = vld [vmem:[%s1272_s1 + $0xd0] sm:$0xff]  ;;  %s293_s27 = scalar_lea.vmem %s1275_s4, %s826_s21 }
  0x10   : > { %v1032_v0 = vld [vmem:[%s1029_s22 + $0x20] sm:$0xff]  ;;  %v1038_v2 = vld [vmem:[%s1029_s22 + $0x11] sm:$0xff]  ;;  %544 = vmatpush.msra.mxu1 %v492_v12  ;;  %v471_v30 = vld [vmem:[%s1272_s1 + $0x48] sm:$0xff] }
  0x11   : > { %v1035_v1 = vld [vmem:[%s1029_s22 + $0x21] sm:$0xff]  ;;  %v835_v4 = vld [vmem:[%s1029_s22 + $0x12] sm:$0xff]  ;;  %860 = vmatpush.msra.mxu3 %v475_v14  ;;  %516 = vmatpush.msra.mxu0 %v475_v14 }
  0x12   : > { %v912_v3 = vpack.i.bf16 %v1035_v1, %v1032_v0  ;;  %v902_v5 = vpack.i.bf16 %v835_v4, %v1038_v2  ;;  %v1046_v6 = vld [vmem:[%s1029_s22 + $0x22] sm:$0xff]  ;;  %v1049_v7 = vld [vmem:[%s1029_s22 + $0x30] sm:$0xff]  ;;  %v907_v15 = vpack.i.bf16 %v1032_v0, %v835_v4  ;;  %545 = vmatpush.msra.mxu1 %v491_v16  ;;  %v469_v36 = vld [vmem:[%s1272_s1 + $0x38] sm:$0xff] }
  0x13   : > { %v922_v8 = vpack.i.bf16 %v1049_v7, %v1046_v6  ;;  %v917_v13 = vpack.i.bf16 %v1046_v6, %v1035_v1  ;;  %v1077_v17 = vld [vmem:[%s1029_s22 + $0x31] sm:$0xff]  ;;  %v841_v23 = vld [vmem:[%s1029_s22 + $0x40] sm:$0xff]  ;;  %861 = vmatpush.msra.mxu3 %v474_v18  ;;  %517 = vmatpush.msra.mxu0 %v474_v18  ;;  %v487_v32 = vld [vmem:[%s1272_s1 + $0xc8] sm:$0xff] }
  0x14   : > { %913 = vrot.lane.b32.xlu1 %v912_v3, %s977_s23  ;;  %903 = vrot.lane.b32.xlu0 %v902_v5, %s978_s24  ;;  %v927_v19 = vpack.i.bf16 %v1077_v17, %v1049_v7  ;;  %v1093_v22 = vld [vmem:[%s1029_s22 + $0x32] sm:$0xff]  ;;  %v301_v28 = vld [vmem:[%s1029_s22 + $0x1] sm:$0xff] }
  0x15   : > { %923 = vrot.lane.b32.xlu2 %v922_v8, %s979_s29  ;;  %546 = vmatpush.msra.mxu1 %v490_v20  ;;  %v937_v27 = vpack.i.bf16 %v841_v23, %v1093_v22  ;;  %v1109_v29 = vld [vmem:[%s1029_s22 + $0x42] sm:$0xff]  ;;  %v932_v31 = vpack.i.bf16 %v1093_v22, %v1077_v17  ;;  %v485_v37 = vld [vmem:[%s1272_s1 + $0xb8] sm:$0xff]  ;;  %v468_v39 = vld [vmem:[%s1272_s1 + $0x30] sm:$0xff] }
  0x16   : > { %862 = vmatpush.msra.mxu3 %v473_v21  ;;  %v470_v33 = vld [vmem:[%s1272_s1 + $0x40] sm:$0xff]  ;;  %518 = vmatpush.msra.mxu0 %v473_v21  ;;  %v942_v34 = vpack.i.bf16 %v1109_v29, %v301_v28  ;;  %v484_v40 = vld [vmem:[%s1272_s1 + $0xb0] sm:$0xff]  ;;  %v467_v46 = vld [vmem:[%s1272_s1 + $0x28] sm:$0xff] }
  0x17   : > { %547 = vmatpush.msra.mxu1 %v489_v24  ;;  %v486_v35 = vld [vmem:[%s1272_s1 + $0xc0] sm:$0xff]  ;;  %v1148_v43 = vld [vmem:[%s1029_s22 + $0x10] sm:$0xff]  ;;  %v483_v47 = vld [vmem:[%s1272_s1 + $0xa8] sm:$0xff] }
  0x18   : > { %863 = vmatpush.msra.mxu3 %v472_v25  ;;  %v1135_v38 = vld [vmem:[%s1029_s22 + $0x41] sm:$0xff]  ;;  %519 = vmatpush.msra.mxu0 %v472_v25  ;;  %v846_v44 = vld [vmem:[%s1029_s22 + $0x51] sm:$0xff] }
  0x19   : > { %548 = vmatpush.msra.mxu1 %v488_v26  ;;  %v305_v41 = vld [vmem:[%s1029_s22 + $0x2] sm:$0xff]  ;;  %v947_v42 = vpack.i.bf16 %v1135_v38, %v841_v23  ;;  %v842_v45 = vld [vmem:[%s1029_s22 + $0x50] sm:$0xff]  ;;  %v497_v48 = vld [vmem:[%s1272_s1 + $0x118] sm:$0xff] }
  0x1a   : > { %864 = vmatpush.msra.mxu3 %v471_v30  ;;  %520 = vmatpush.msra.mxu0 %v471_v30  ;;  %v466_v49 = vld [vmem:[%s1272_s1 + $0x20] sm:$0xff]  ;;  %v496_v51 = vld [vmem:[%s1272_s1 + $0x110] sm:$0xff]  ;;  %v465_v52 = vld [vmem:[%s1272_s1 + $0x18] sm:$0xff] }
  0x1b   : > { %549 = vmatpush.msra.mxu1 %v487_v32  ;;  %v482_v50 = vld [vmem:[%s1272_s1 + $0xa0] sm:$0xff]  ;;  %584 = vmatpush.msra.mxu2 %v497_v48  ;;  %v481_v53 = vld [vmem:[%s1272_s1 + $0x98] sm:$0xff]  ;;  %v495_v54 = vld [vmem:[%s1272_s1 + $0x108] sm:$0xff] }
  0x1c   : > { %918 = vrot.lane.b32.xlu1 %v917_v13, %s978_s24  ;;  %908 = vrot.lane.b32.xlu0 %v907_v15, %s979_s29  ;;  %v464_v55 = vld [vmem:[%s1272_s1 + $0x10] sm:$0xff]  ;;  %v494_v57 = vld [vmem:[%s1272_s1 + $0x100] sm:$0xff] }
  0x1d   : > { %928 = vrot.lane.b32.xlu2 %v927_v19, %s977_s23  ;;  %865 = vmatpush.msra.mxu3 %v470_v33  ;;  %v480_v56 = vld [vmem:[%s1272_s1 + $0x90] sm:$0xff]  ;;  %v463_v58 = vld [vmem:[%s1272_s1 + $0x8] sm:$0xff]  ;;  %v462_v60 = vld [vmem:[%s1272_s1] sm:$0xff] }
  0x1e   : > { %550 = vmatpush.msra.mxu1 %v486_v35  ;;  %521 = vmatpush.msra.mxu0 %v470_v33  ;;  %v479_v59 = vld [vmem:[%s1272_s1 + $0x88] sm:$0xff]  ;;  %v478_v61 = vld [vmem:[%s1272_s1 + $0x80] sm:$0xff]  ;;  %v850_v4 = vld [vmem:[%s1029_s22 + $0x52] sm:$0xff] }
  0x1f   : > { %866 = vmatpush.msra.mxu3 %v469_v36  ;;  %585 = vmatpush.msra.mxu2 %v496_v51  ;;  %v297_v35 = vld [vmem:[%s1029_s22] sm:$0xff] }
  0x20   : > { %551 = vmatpush.msra.mxu1 %v485_v37  ;;  %522 = vmatpush.msra.mxu0 %v469_v36 }
  0x21   : > { %867 = vmatpush.msra.mxu3 %v468_v39  ;;  %586 = vmatpush.msra.mxu2 %v495_v54 }
  0x22   : > { %552 = vmatpush.msra.mxu1 %v484_v40  ;;  %523 = vmatpush.msra.mxu0 %v468_v39 }
  0x23   : > { %868 = vmatpush.msra.mxu3 %v467_v46  ;;  %587 = vmatpush.msra.mxu2 %v494_v57 }
  0x24   : > { %938 = vrot.lane.b32.xlu1 %v937_v27, %s979_s29  ;;  %933 = vrot.lane.b32.xlu0 %v932_v31, %s978_s24 }
  0x25   : > { %943 = vrot.lane.b32.xlu2 %v942_v34, %s978_s24  ;;  %553 = vmatpush.msra.mxu1 %v483_v47 }
  0x26   : > { %524 = vmatpush.msra.mxu0 %v467_v46  ;;  %869 = vmatpush.msra.mxu3 %v466_v49 }
  0x27   : > { %554 = vmatpush.msra.mxu1 %v482_v50  ;;  %851 = vmatmul.msk.f32.vlgmr.msra.gmra.mxu2 %vm435_vm0, %v1046_v6 }
  0x28   : > { %525 = vmatpush.msra.mxu0 %v466_v49  ;;  %870 = vmatpush.msra.mxu3 %v465_v52 }
  0x29   : > { %555 = vmatpush.msra.mxu1 %v481_v53 }
  0x2a   : > { %526 = vmatpush.msra.mxu0 %v465_v52  ;;  %871 = vmatpush.msra.mxu3 %v464_v55 }
  0x2b   : > { %556 = vmatpush.msra.mxu1 %v480_v56 }
  0x2c   : > { %359 = vrot.lane.b32.xlu1 %v305_v41, %s979_s29  ;;  %948 = vrot.lane.b32.xlu0 %v947_v42, %s977_s23 }
  0x2d   : > { %375 = vrot.lane.b32.xlu2 %v1148_v43, %s977_s23  ;;  %527 = vmatpush.msra.mxu0 %v464_v55 }
  0x2e   : > { %872 = vmatpush.msra.mxu3 %v463_v58  ;;  %557 = vmatpush.msra.mxu1 %v479_v59 }
  0x2f   : > { %528 = vmatpush.msra.mxu0 %v463_v58  ;;  %852 = vmatmul.msk.f32.gmra.mxu2 %vm435_vm0, %v1093_v22 }
  0x30   : > { %873 = vmatpush.msra.mxu3 %v462_v60  ;;  %558 = vmatpush.msra.mxu1 %v478_v61  ;;  %v952_v61 = vld [vmem:[%s1273_s2] ss:$0 sm:$0xff] }
  0x31   : > { %529 = vmatpush.msra.mxu0 %v462_v60 }
  0x34   : > { %429 = vrot.lane.b32.xlu1 %v846_v44, %s977_s23  ;;  %413 = vrot.lane.b32.xlu0 %v842_v45, %s979_s29 }
  0x37   : > { %853 = vmatmul.msk.f32.gmra.mxu2 %vm435_vm0, %v1109_v29 }
  0x3f   : > { %854 = vmatmul.msk.f32.gmra.mxu2 %vm435_vm0, %v850_v4 }
  0x6f   : > { %v924_v62 = vpop.permute.xlu2 %923 }
  0x70   : > { %v926_v27 = vunpack.i.h.bf16 %v924_v62 }
  0x77   : > { %v929_v5 = vpop.permute.xlu2 %928 }
  0x78   : > { %v931_v29 = vunpack.i.h.bf16 %v929_v5  ;;  %v930_v30 = vunpack.i.l.bf16 %v929_v5 }
  0x7f   : > { %v944_v24 = vpop.permute.xlu2 %943 }
  0x80   : > { %v945_v32 = vunpack.i.l.bf16 %v944_v24 }
  0x86   : > { %v914_v63 = vpop.permute.xlu1 %913  ;;  %v904_v3 = vpop.permute.xlu0 %903 }
  0x87   : > { %v906_v6 = vunpack.i.h.bf16 %v904_v3  ;;  %v905_v8 = vunpack.i.l.bf16 %v904_v3  ;;  %v916_v11 = vunpack.i.h.bf16 %v914_v63  ;;  %v915_v12 = vunpack.i.l.bf16 %v914_v63  ;;  %v376_v42 = vpop.permute.xlu2 %375 }
  0x89   : > { %v437_v18 = vsel %vm435_vm0, %v1148_v43, %v905_v8  ;;  %v450_v19 = vsel %vm435_vm0, %v1038_v2, %v906_v6  ;;  %v925_v2 = vunpack.i.l.bf16 %v924_v62 }
  0x8e   : > { %v919_v9 = vpop.permute.xlu1 %918  ;;  %v909_v10 = vpop.permute.xlu0 %908 }
  0x8f   : > { %v911_v13 = vunpack.i.h.bf16 %v909_v10  ;;  %v910_v14 = vunpack.i.l.bf16 %v909_v10  ;;  %v921_v15 = vunpack.i.h.bf16 %v919_v9  ;;  %v920_v16 = vunpack.i.l.bf16 %v919_v9 }
  0x91   : > { %v442_v20 = vsel %vm440_vm1, %v437_v18, %v910_v14  ;;  %v454_v21 = vsel %vm440_vm1, %v450_v19, %v911_v13  ;;  %v438_v25 = vsel %vm435_vm0, %v1032_v0, %v920_v16  ;;  %v451_v26 = vsel %vm435_vm0, %v1035_v1, %v921_v15 }
  0x92   : > { %v447_v22 = vsel %vm445_vm2, %v442_v20, %v915_v12  ;;  %v458_v23 = vsel %vm445_vm2, %v454_v21, %v916_v11  ;;  %v443_v33 = vsel %vm440_vm1, %v438_v25, %v925_v2  ;;  %v455_v34 = vsel %vm440_vm1, %v451_v26, %v926_v27 }
  0x93   : > { %533 = vmatmul.f32.vlgmr.msra.gmra.mxu3 %v447_v22  ;;  %559 = vmatmul.f32.vlgmr.msra.gmra.mxu1 %v458_v23  ;;  %v448_v39 = vsel %vm445_vm2, %v443_v33, %v930_v30  ;;  %v459_v0 = vsel %vm445_vm2, %v455_v34, %v931_v29  ;;  %v436_v1 = vsel %vm435_vm0, %v297_v35, %v945_v32 }
  0x96   : > { %v939_v28 = vpop.permute.xlu1 %938  ;;  %v934_v31 = vpop.permute.xlu0 %933 }
  0x97   : > { %v936_v36 = vunpack.i.h.bf16 %v934_v31  ;;  %v935_v37 = vunpack.i.l.bf16 %v934_v31  ;;  %v941_v40 = vunpack.i.h.bf16 %v939_v28  ;;  %v940_v41 = vunpack.i.l.bf16 %v939_v28 }
  0x99   : > { %v439_v44 = vsel %vm435_vm0, %v1049_v7, %v935_v37  ;;  %v452_v45 = vsel %vm435_vm0, %v1077_v17, %v936_v36  ;;  %v946_v7 = vunpack.i.h.bf16 %v944_v24 }
  0x9a   : > { %v444_v51 = vsel %vm440_vm1, %v439_v44, %v940_v41  ;;  %v456_v52 = vsel %vm440_vm1, %v452_v45, %v941_v40 }
  0x9b   : > { %536 = vmatmul.f32.gmra.mxu3 %v448_v39  ;;  %562 = vmatmul.f32.gmra.mxu1 %v459_v0  ;;  %v453_v55 = vsel %vm435_vm0, %v1135_v38, %v946_v7 }
  0x9e   : > { %v360_v43 = vpop.permute.xlu1 %359  ;;  %v949_v47 = vpop.permute.xlu0 %948 }
  0x9f   : > { %v441_v46 = vsel %vm440_vm1, %v436_v1, %v360_v43  ;;  %v951_v48 = vunpack.i.h.bf16 %v949_v47  ;;  %v950_v49 = vunpack.i.l.bf16 %v949_v47 }
  0xa0   : > { %v446_v50 = vsel %vm445_vm2, %v441_v46, %v376_v42 }
  0xa1   : > { %530 = vmatmul.f32.vlgmr.msra.gmra.mxu0 %v446_v50  ;;  %v449_v53 = vsel %vm445_vm2, %v444_v51, %v950_v49  ;;  %v460_v54 = vsel %vm445_vm2, %v456_v52, %v951_v48 }
  0xa3   : > { %539 = vmatmul.f32.gmra.mxu3 %v449_v53  ;;  %565 = vmatmul.f32.gmra.mxu1 %v460_v54 }
  0xa6   : > { %v414_v17 = vpop.permute.xlu0 %413  ;;  %v430_v57 = vpop.permute.xlu1 %429 }
  0xa7   : > { %v457_v56 = vsel %vm440_vm1, %v453_v55, %v414_v17 }
  0xa8   : > { %v461_v58 = vsel %vm445_vm2, %v457_v56, %v430_v57 }
  0xaa   : > { %v589_v59 = vpop.f32.mrf.mxu2 }
  0xab   : > { %568 = vmatmul.f32.gmra.mxu1 %v461_v58 }
  0xb2   : > { %v592_v62 = vpop.f32.mrf.mxu2 }
  0xba   : > { %v595_v11 = vpop.f32.mrf.mxu2 }
  0xc2   : > { %v598_v25 = vpop.f32.mrf.mxu2 }
 0x110   : > { %v560_v60 = vpop.f32.mrf.mxu1 }
 0x116   : > { %v534_v63 = vpop.f32.mrf.mxu3 }
 0x117   : > { %v535_v3 = vadd.f32 %v952_v61, %v534_v63 }
 0x118   : > { %v563_v4 = vpop.f32.mrf.mxu1 }
 0x119   : > { %v564_v5 = vadd.f32 %v563_v4, %v535_v3 }
 0x11b   : > { %v593_v6 = vadd.f32 %v592_v62, %v564_v5 }
 0x11d   : > { %v602_v38 = vmax.f32 %v593_v6, 0.0 }
 0x11e   : > { %v531_v8 = vpop.f32.mrf.mxu0  ;;  %v537_v10 = vpop.f32.mrf.mxu3 }
 0x11f   : > { %v532_v9 = vadd.f32 %v952_v61, %v531_v8  ;;  %606 = vst [vmem:[%s1252_s20 + $0x8] sm:$0xff] %v602_v38  ;;  %v538_v12 = vadd.f32 %v952_v61, %v537_v10  ;;  %v619_v26 = vmul.f32 %v602_v38, %v602_v38 }
 0x120   : > { %v566_v14 = vpop.f32.mrf.mxu1 }
 0x121   : > { %v561_v13 = vadd.f32 %v560_v60, %v532_v9  ;;  %v567_v15 = vadd.f32 %v566_v14, %v538_v12 }
 0x123   : > { %v590_v16 = vadd.f32 %v589_v59, %v561_v13  ;;  %v596_v18 = vadd.f32 %v595_v11, %v567_v15 }
 0x125   : > { %v601_v19 = vmax.f32 %v590_v16, 0.0  ;;  %v603_v20 = vmax.f32 %v596_v18, 0.0 }
 0x126   : > { %v540_v21 = vpop.f32.mrf.mxu3 }
 0x127   : > { %605 = vst [vmem:[%s1252_s20] sm:$0xff] %v601_v19  ;;  %v618_v22 = vmul.f32 %v601_v19, %v601_v19  ;;  %v541_v23 = vadd.f32 %v952_v61, %v540_v21  ;;  %v609_v27 = vadd.f32 %v602_v38, %v601_v19  ;;  %v620_v31 = vmul.f32 %v603_v20, %v603_v20 }
 0x128   : > { %607 = vst [vmem:[%s1252_s20 + $0x10] sm:$0xff] %v603_v20  ;;  %v569_v24 = vpop.f32.mrf.mxu1 }
 0x129   : > { %v570_v2 = vadd.f32 %v569_v24, %v541_v23  ;;  %v622_v28 = vadd.f32 %v619_v26, %v618_v22  ;;  %v610_v30 = vadd.f32 %v609_v27, %v603_v20 }
 0x12b   : > { %v599_v29 = vadd.f32 %v598_v25, %v570_v2  ;;  %v623_v33 = vadd.f32 %v622_v28, %v620_v31 }
 0x12d   : > { %v604_v32 = vmax.f32 %v599_v29, 0.0 }
 0x12f   : > { %608 = vst [vmem:[%s1252_s20 + $0x18] sm:$0xff] %v604_v32  ;;  %v611_v34 = vadd.f32 %v610_v30, %v604_v32  ;;  %v621_v35 = vmul.f32 %v604_v32, %v604_v32 }
 0x131   : > { %v612_v36 = vrot.slane %v611_v34, 4  ;;  %v624_v37 = vadd.f32 %v623_v33, %v621_v35 }
 0x133   : > { %v613_v39 = vadd.f32 %v612_v36, %v611_v34  ;;  %v625_v0 = vrot.slane %v624_v37, 4 }
 0x135   : > { %v614_v1 = vrot.slane %v613_v39, 2  ;;  %v626_v40 = vadd.f32 %v625_v0, %v624_v37 }
 0x137   : > { %v615_v41 = vadd.f32 %v614_v1, %v613_v39  ;;  %v627_v42 = vrot.slane %v626_v40, 2 }
 0x139   : > { %v616_v43 = vrot.slane %v615_v41, 1  ;;  %v628_v44 = vadd.f32 %v627_v42, %v626_v40 }
 0x13b   : > { %v629_v45 = vrot.slane %v628_v44, 1  ;;  %v617_v46 = vadd.f32 %v616_v43, %v615_v41 }
 0x13d   : > { %v630_v47 = vadd.f32 %v629_v45, %v628_v44 }
 0x13f   : > { %v632_v48 = vsel %vm631_vm3, %v617_v46, %v630_v47 }
 0x140   : > { %633 = vst [vmem:[%s293_s27] sm:$0x3] %v632_v48 }
 0x141 PF: > { %s15_s17 = sadd.s32 1, %s975_s17   ;;  %s1276_s15 = smov %s971_s16 }
 0x142   : > { %p12_p5 = scmp.ge.s32.totalorder %s15_s17, 4   ;;  %s1277_s16 = smov %s1279_s18 }
 0x144   :  { %14 = sbr.rel (!%p12_p5) target bundleno = 2 (0x2), region = 83 }

// kernel: tile.138
= control target key start
LH: loop header
LB: loop body
LE: loop exit
PB: predicated region body
PF: predicated region fallthrough
CT: control target
= control target key end

     0   :  { %s64_s0 = inlined_call_operand.vmem [shape: f32[32], index: 0, kind: input, shape index: {}]   ;;  %s65_s1 = inlined_call_operand.vmem [shape: f32[64,32], index: 1, kind: output, shape index: {}]  }
   0x1   :  { %v4_v0 = vld [vmem:[%s64_s0] ss:$0 sm:$0xff] }
   0x2   :  { %5 = vst [vmem:[%s65_s1] sm:$0xff] %v4_v0 }
   0x3   :  { %20 = vst [vmem:[%s65_s1 + $0x8] sm:$0xff] %v4_v0 }
   0x4   :  { %21 = vst [vmem:[%s65_s1 + $0x10] sm:$0xff] %v4_v0 }
   0x5   :  { %22 = vst [vmem:[%s65_s1 + $0x18] sm:$0xff] %v4_v0 }
   0x6   :  { %23 = vst [vmem:[%s65_s1 + $0x20] sm:$0xff] %v4_v0 }
   0x7   :  { %24 = vst [vmem:[%s65_s1 + $0x28] sm:$0xff] %v4_v0 }
   0x8   :  { %25 = vst [vmem:[%s65_s1 + $0x30] sm:$0xff] %v4_v0 }
   0x9   :  { %26 = vst [vmem:[%s65_s1 + $0x38] sm:$0xff] %v4_v0 }

// kernel: tile.139
= control target key start
LH: loop header
LB: loop body
LE: loop exit
PB: predicated region body
PF: predicated region fallthrough
CT: control target
= control target key end

     0   :  { %s182_s10 = smov 96   ;;  %s183_s11 = smov 64   ;;  %vm3_vm0 = vcmask 261120   ;;  %vm17_vm1 = vcmask 1048320   ;;  %vm33_vm2 = vcmask 785920   ;;  %vm49_vm3 = vcmask 523520   ;;  %s275_s0 = inlined_call_operand.vmem [shape: f32[64,32], index: 0, kind: input, shape index: {}]   ;;  %s276_s1 = inlined_call_operand.vmem [shape: f32[1,2048], index: 1, kind: output, shape index: {}]  }
   0x1   :  { %v158_v0 = vld [vmem:[%s275_s0 + $0x3] ss:$4 sm:$0xff]   ;;  %v160_v1 = vld [vmem:[%s275_s0 + $0x2] ss:$4 sm:$0xff]   ;;  %v162_v2 = vld [vmem:[%s275_s0 + $0x1] ss:$4 sm:$0xff]  }
   0x2   :  { %15 = vrot.lane.b32.xlu0 %v158_v0, %s182_s10  ;;  %31 = vrot.lane.b32.xlu1 %v160_v1, %s183_s11  ;;  %s184_s14 = smov 32   ;;  %v159_v3 = vld [vmem:[%s275_s0 + $0x23] ss:$4 sm:$0xff]   ;;  %v161_v4 = vld [vmem:[%s275_s0 + $0x22] ss:$4 sm:$0xff]  }
   0x3   :  { %47 = vrot.lane.b32.xlu2 %v162_v2, %s184_s14  ;;  %v163_v5 = vld [vmem:[%s275_s0 + $0x21] ss:$4 sm:$0xff]   ;;  %v2_v6 = vld [vmem:[%s275_s0] ss:$4 sm:$0xff]  }
   0x4   :  { %4 = vst.msk [vmem:[#allocation0] ss:$8 sm:$0xf] %vm3_vm0, %v2_v6   ;;  %v157_v8 = vld [vmem:[%s275_s0 + $0x20] ss:$4 sm:$0xff]  }
   0x5   :  { %5 = vst.msk [vmem:[#allocation0] ss:$8 sm:$0xf0] %vm3_vm0, %v2_v6  }
   0x6   :  { %10 = vst.msk [vmem:[#allocation0 + $0x40] ss:$8 sm:$0xf] %vm3_vm0, %v157_v8  }
   0x7   :  { %12 = vst.msk [vmem:[#allocation0 + $0x40] ss:$8 sm:$0xf0] %vm3_vm0, %v157_v8  }
   0xa   :  { %22 = vrot.lane.b32.xlu0 %v159_v3, %s182_s10  ;;  %38 = vrot.lane.b32.xlu1 %v161_v4, %s183_s11 }
   0xb   :  { %54 = vrot.lane.b32.xlu2 %v163_v5, %s184_s14 }
  0x5d   :  { %v48_v7 = vpop.permute.xlu2 %47  }
  0x65   :  { %v55_v9 = vpop.permute.xlu2 %54  }
  0x74   :  { %v16_v10 = vpop.permute.xlu0 %15   ;;  %v32_v11 = vpop.permute.xlu1 %31  }
  0x75   :  { %18 = vst.msk [vmem:[#allocation0] ss:$8 sm:$0xf] %vm17_vm1, %v16_v10  }
  0x76   :  { %19 = vst.msk [vmem:[#allocation0] ss:$8 sm:$0xf0] %vm17_vm1, %v16_v10  }
  0x77   :  { %34 = vst.msk [vmem:[#allocation0] ss:$8 sm:$0xf] %vm33_vm2, %v32_v11  }
  0x78   :  { %35 = vst.msk [vmem:[#allocation0] ss:$8 sm:$0xf0] %vm33_vm2, %v32_v11  }
  0x79   :  { %50 = vst.msk [vmem:[#allocation0] ss:$8 sm:$0xf] %vm49_vm3, %v48_v7  }
  0x7a   :  { %51 = vst.msk [vmem:[#allocation0] ss:$8 sm:$0xf0] %vm49_vm3, %v48_v7  }
  0x7c   :  { %v23_v12 = vpop.permute.xlu0 %22   ;;  %v39_v13 = vpop.permute.xlu1 %38  }
  0x7d   :  { %26 = vst.msk [vmem:[#allocation0 + $0x40] ss:$8 sm:$0xf] %vm17_vm1, %v23_v12  }
  0x7e   :  { %28 = vst.msk [vmem:[#allocation0 + $0x40] ss:$8 sm:$0xf0] %vm17_vm1, %v23_v12  }
  0x7f   :  { %42 = vst.msk [vmem:[#allocation0 + $0x40] ss:$8 sm:$0xf] %vm33_vm2, %v39_v13  }
  0x80   :  { %v63_v14 = vld [vmem:[#allocation0] sm:$0x1]  ;;  %v68_v15 = vld [vmem:[#allocation0 + $0x8] sm:$0x1]  ;;  %v74_v16 = vld [vmem:[#allocation0 + $0x10] sm:$0x1] }
  0x81   :  { %66 = vst [vmem:[%s276_s1] sm:$0x1] %v63_v14  ;;  %v80_v17 = vld [vmem:[#allocation0 + $0x18] sm:$0x1]  ;;  %v86_v18 = vld [vmem:[#allocation0 + $0x20] sm:$0x1] }
  0x82   :  { %164 = vst [vmem:[%s276_s1 + $0x1] sm:$0x1] %v68_v15  ;;  %v92_v19 = vld [vmem:[#allocation0 + $0x28] sm:$0x1]  ;;  %v98_v20 = vld [vmem:[#allocation0 + $0x30] sm:$0x1] }
  0x83   :  { %165 = vst [vmem:[%s276_s1 + $0x2] sm:$0x1] %v74_v16  ;;  %v104_v21 = vld [vmem:[#allocation0 + $0x38] sm:$0x1] }
  0x84   :  { %166 = vst [vmem:[%s276_s1 + $0x3] sm:$0x1] %v80_v17 }
  0x85   :  { %167 = vst [vmem:[%s276_s1 + $0x4] sm:$0x1] %v86_v18 }
  0x86   :  { %168 = vst [vmem:[%s276_s1 + $0x5] sm:$0x1] %v92_v19 }
  0x87   :  { %169 = vst [vmem:[%s276_s1 + $0x6] sm:$0x1] %v98_v20 }
  0x88   :  { %170 = vst [vmem:[%s276_s1 + $0x7] sm:$0x1] %v104_v21 }
  0x89   :  { %44 = vst.msk [vmem:[#allocation0 + $0x40] ss:$8 sm:$0xf0] %vm33_vm2, %v39_v13  }
  0x8a   :  { %58 = vst.msk [vmem:[#allocation0 + $0x40] ss:$8 sm:$0xf] %vm49_vm3, %v55_v9  }
  0x8b   :  { %60 = vst.msk [vmem:[#allocation0 + $0x40] ss:$8 sm:$0xf0] %vm49_vm3, %v55_v9  }
  0x91   :  { %v110_v22 = vld [vmem:[#allocation0 + $0x40] sm:$0x1]  ;;  %v116_v23 = vld [vmem:[#allocation0 + $0x48] sm:$0x1]  ;;  %v122_v24 = vld [vmem:[#allocation0 + $0x50] sm:$0x1] }
  0x92   :  { %171 = vst [vmem:[%s276_s1 + $0x8] sm:$0x1] %v110_v22  ;;  %v128_v25 = vld [vmem:[#allocation0 + $0x58] sm:$0x1]  ;;  %v134_v26 = vld [vmem:[#allocation0 + $0x60] sm:$0x1] }
  0x93   :  { %172 = vst [vmem:[%s276_s1 + $0x9] sm:$0x1] %v116_v23  ;;  %v140_v27 = vld [vmem:[#allocation0 + $0x68] sm:$0x1]  ;;  %v146_v28 = vld [vmem:[#allocation0 + $0x70] sm:$0x1] }
  0x94   :  { %173 = vst [vmem:[%s276_s1 + $0xa] sm:$0x1] %v122_v24  ;;  %v152_v29 = vld [vmem:[#allocation0 + $0x78] sm:$0x1] }
  0x95   :  { %174 = vst [vmem:[%s276_s1 + $0xb] sm:$0x1] %v128_v25 }
  0x96   :  { %175 = vst [vmem:[%s276_s1 + $0xc] sm:$0x1] %v134_v26 }
  0x97   :  { %176 = vst [vmem:[%s276_s1 + $0xd] sm:$0x1] %v140_v27 }
  0x98   :  { %177 = vst [vmem:[%s276_s1 + $0xe] sm:$0x1] %v146_v28 }
  0x99   :  { %178 = vst [vmem:[%s276_s1 + $0xf] sm:$0x1] %v152_v29 }

// kernel: fcn8_forward.18
= control target key start
LH: loop header
LB: loop body
LE: loop exit
PB: predicated region body
PF: predicated region fallthrough
CT: control target
= control target key end

     0   :  { %s2633_s15 = smov 0   ;;  %s2635_s16 = smov 0   ;;  %s3835_s0 = inlined_call_operand.vmem [shape: f32[2,10,18,32], index: 0, kind: input, shape index: {}]   ;;  %s3836_s1 = inlined_call_operand.vmem [shape: f32[288,2048], index: 1, kind: input, shape index: {}]   ;;  %s3837_s2 = inlined_call_operand.vmem [shape: f32[1,2048], index: 2, kind: input, shape index: {}]   ;;  %s3838_s3 = inlined_call_operand.vmem [shape: f32[2,8,16,2048], index: 3, kind: output, shape index: {0}]   ;;  %s3839_s4 = inlined_call_operand.vmem [shape: f32[2,1,2,2048], index: 4, kind: output, shape index: {1}]  }
   0x1   :  { %s2637_s17 = smov 0   ;;  %s2639_s18 = smov 0  }
   0x2   :  { %s2641_s19 = smov 0   ;;  %s2643_s20 = smov 0  }
   0x3   :  { %s2645_s21 = smov 0   ;;  %s2647_s22 = smov 0  }
   0x4   :  { %s2649_s23 = smov 0  }
   0x5 LB: > { %s2062_s24 = sadd.s32 4294967295, %s2603_s23   ;;  %s27_s25 = sadd.s32 1, %s2595_s21  ;;  %s2603_s23 = sphi %s2649_s23, %s15_s23   ;;  %s2599_s22 = sphi %s2647_s22, %s3848_s22   ;;  %s2595_s21 = sphi %s2645_s21, %s3847_s21   ;;  %s2591_s20 = sphi %s2643_s20, %s3846_s20   ;;  %s2587_s19 = sphi %s2641_s19, %s3845_s19   ;;  %s2583_s18 = sphi %s2639_s18, %s3844_s18   ;;  %s2579_s17 = sphi %s2637_s17, %s3843_s17   ;;  %s2575_s16 = sphi %s2635_s16, %s3842_s16   ;;  %s2571_s15 = sphi %s2633_s15, %s3841_s15  }
   0x6   : > { %p28_p0 = scmp.ge.s32.totalorder %s27_s25, 8  ;;  %s34_s26 = sadd.s32 1, %s2599_s22 }
   0x7   : > { %s67_s27 = sadd.s32 1, %s2583_s18  ;;  %p74_p1 = scmp.ne.s32.totalorder %s2583_s18, %s2579_s17 }
   0x8   : > { %s3850_s25 = smov (%p28_p0, %s27_s25), 0  ;;  %s3852_s26 = smov (!%p28_p0, %s34_s26), %s2599_s22 }
   0x9   : > { %s64_s28 = ssub.s32 %s2595_s21, %s3850_s25  ;;  %p75_p2 = scmp.eq.s32.totalorder %s2603_s23, 0 }
   0xa   : > { %p36_p3 = scmp.ge.s32.totalorder %s3852_s26, 2  ;;  %p65_p4 = scmp.eq.s32.totalorder %s64_s28, 0 }
   0xb   : > { %p76_p5 = por %p75_p2, %p74_p1  ;;  %s123_s29 = sadd.s32 1, %s2575_s16 }
   0xc   : > { %s3854_s26 = smov (%p36_p3, %s3852_s26), 0  ;;  %p133_p6 = scmp.ne.s32.totalorder %s2575_s16, %s2571_s15 }
   0xd   : > { %s2694_s30 = scalar_select %p65_p4, %s2583_s18, %s67_s27  }
   0xe   : > { %s116_s5 = ssub.s32 %s2599_s22, %s3854_s26  ;;  %p134_p7 = scmp.eq.s32.totalorder %s2062_s24, 15 }
   0xf   : > { %s120_s6 = sor.u32 %s116_s5, %s64_s28  ;;  %p2065_p10 = scmp.ge.s32.totalorder %s2603_s23, 16 }
  0x10   : > { %p121_p8 = scmp.eq.s32.totalorder %s120_s6, 0  ;;  %p2700_p9 = por %p134_p7, %p133_p6 }
  0x11   : > { %186 = sbr.rel (%p2065_p10) target bundleno = 98 (0x62), region = 16 }
  0x12   : > { %s2705_s8 = scalar_select %p121_p8, %s2575_s16, %s123_s29  }
  0x16   : > { %197 = sbr.rel (!%p76_p5) target bundleno = 98 (0x62), region = 24  ;;  %s199_s9 = sand.u32 (%p76_p5), 1, %s2583_s18  }
  0x17   : > { %s2209_s10 = sshll.u32 (%p76_p5), %s2595_s21, 4  ;;  %s2234_s11 = smul.u32 (%p76_p5), 576, %s199_s9 }
  0x18   : > { %s2713_s14 = scalar_lea.vmem (%p76_p5), %s3836_s1, %s2209_s10 }
  0x19   : > { %v217_v0 = vld [vmem:[%s2713_s14] sm:$0xff] (%p76_p5)  ;;  %v219_v1 = vld [vmem:[%s2713_s14 + $0x8] sm:$0xff] (%p76_p5)  ;;  %s2718_s24 = scalar_lea.vmem (%p76_p5), [#allocation2], %s2234_s11 }
  0x1a   : > { %v221_v2 = vld [vmem:[%s2713_s14 + $0x80] sm:$0xff] (%p76_p5)  ;;  %218 = vst [vmem:[%s2718_s24] sm:$0xff] (%p76_p5), %v217_v0  ;;  %v223_v3 = vld [vmem:[%s2713_s14 + $0x88] sm:$0xff] (%p76_p5) }
  0x1b   : > { %220 = vst [vmem:[%s2718_s24 + $0x8] sm:$0xff] %v219_v1  ;;  %v225_v4 = vld [vmem:[%s2713_s14 + $0x100] sm:$0xff]  ;;  %v227_v5 = vld [vmem:[%s2713_s14 + $0x108] sm:$0xff] }
  0x1c   : > { %222 = vst [vmem:[%s2718_s24 + $0x10] sm:$0xff] %v221_v2  ;;  %v229_v6 = vld [vmem:[%s2713_s14 + $0x180] sm:$0xff]  ;;  %v231_v7 = vld [vmem:[%s2713_s14 + $0x188] sm:$0xff] }
  0x1d   : > { %224 = vst [vmem:[%s2718_s24 + $0x18] sm:$0xff] %v223_v3  ;;  %v233_v8 = vld [vmem:[%s2713_s14 + $0x200] sm:$0xff]  ;;  %v235_v9 = vld [vmem:[%s2713_s14 + $0x208] sm:$0xff] }
  0x1e   : > { %226 = vst [vmem:[%s2718_s24 + $0x20] sm:$0xff] %v225_v4  ;;  %v237_v10 = vld [vmem:[%s2713_s14 + $0x280] sm:$0xff]  ;;  %v239_v11 = vld [vmem:[%s2713_s14 + $0x288] sm:$0xff] }
  0x1f   : > { %228 = vst [vmem:[%s2718_s24 + $0x28] sm:$0xff] %v227_v5  ;;  %v241_v12 = vld [vmem:[%s2713_s14 + $0x300] sm:$0xff]  ;;  %v243_v13 = vld [vmem:[%s2713_s14 + $0x308] sm:$0xff] }
  0x20   : > { %230 = vst [vmem:[%s2718_s24 + $0x30] sm:$0xff] %v229_v6  ;;  %v245_v14 = vld [vmem:[%s2713_s14 + $0x380] sm:$0xff]  ;;  %v247_v15 = vld [vmem:[%s2713_s14 + $0x388] sm:$0xff] }
  0x21   : > { %232 = vst [vmem:[%s2718_s24 + $0x38] sm:$0xff] %v231_v7  ;;  %v249_v16 = vld [vmem:[%s2713_s14 + $0x400] sm:$0xff]  ;;  %v251_v17 = vld [vmem:[%s2713_s14 + $0x408] sm:$0xff] }
  0x22   : > { %234 = vst [vmem:[%s2718_s24 + $0x40] sm:$0xff] %v233_v8  ;;  %v253_v18 = vld [vmem:[%s2713_s14 + $0x480] sm:$0xff]  ;;  %v255_v19 = vld [vmem:[%s2713_s14 + $0x488] sm:$0xff] }
  0x23   : > { %236 = vst [vmem:[%s2718_s24 + $0x48] sm:$0xff] %v235_v9  ;;  %v257_v20 = vld [vmem:[%s2713_s14 + $0x500] sm:$0xff]  ;;  %v259_v21 = vld [vmem:[%s2713_s14 + $0x508] sm:$0xff] }
  0x24   : > { %238 = vst [vmem:[%s2718_s24 + $0x50] sm:$0xff] %v237_v10  ;;  %v261_v22 = vld [vmem:[%s2713_s14 + $0x580] sm:$0xff]  ;;  %v263_v23 = vld [vmem:[%s2713_s14 + $0x588] sm:$0xff] }
  0x25   : > { %240 = vst [vmem:[%s2718_s24 + $0x58] sm:$0xff] %v239_v11  ;;  %v265_v24 = vld [vmem:[%s2713_s14 + $0x600] sm:$0xff]  ;;  %v267_v25 = vld [vmem:[%s2713_s14 + $0x608] sm:$0xff] }
  0x26   : > { %242 = vst [vmem:[%s2718_s24 + $0x60] sm:$0xff] %v241_v12  ;;  %v269_v26 = vld [vmem:[%s2713_s14 + $0x680] sm:$0xff]  ;;  %v271_v27 = vld [vmem:[%s2713_s14 + $0x688] sm:$0xff] }
  0x27   : > { %244 = vst [vmem:[%s2718_s24 + $0x68] sm:$0xff] %v243_v13  ;;  %v273_v28 = vld [vmem:[%s2713_s14 + $0x700] sm:$0xff]  ;;  %v275_v29 = vld [vmem:[%s2713_s14 + $0x708] sm:$0xff] }
  0x28   : > { %246 = vst [vmem:[%s2718_s24 + $0x70] sm:$0xff] %v245_v14  ;;  %v277_v30 = vld [vmem:[%s2713_s14 + $0x780] sm:$0xff]  ;;  %v279_v31 = vld [vmem:[%s2713_s14 + $0x788] sm:$0xff] }
  0x29   : > { %248 = vst [vmem:[%s2718_s24 + $0x78] sm:$0xff] %v247_v15  ;;  %v281_v32 = vld [vmem:[%s2713_s14 + $0x800] sm:$0xff]  ;;  %v283_v33 = vld [vmem:[%s2713_s14 + $0x808] sm:$0xff] }
  0x2a   : > { %250 = vst [vmem:[%s2718_s24 + $0x80] sm:$0xff] %v249_v16  ;;  %v285_v34 = vld [vmem:[%s2713_s14 + $0x880] sm:$0xff]  ;;  %v287_v35 = vld [vmem:[%s2713_s14 + $0x888] sm:$0xff] }
  0x2b   : > { %252 = vst [vmem:[%s2718_s24 + $0x88] sm:$0xff] %v251_v17  ;;  %v289_v36 = vld [vmem:[%s2713_s14 + $0x900] sm:$0xff]  ;;  %v291_v37 = vld [vmem:[%s2713_s14 + $0x908] sm:$0xff] }
  0x2c   : > { %254 = vst [vmem:[%s2718_s24 + $0x90] sm:$0xff] %v253_v18  ;;  %v293_v38 = vld [vmem:[%s2713_s14 + $0x980] sm:$0xff]  ;;  %v295_v39 = vld [vmem:[%s2713_s14 + $0x988] sm:$0xff] }
  0x2d   : > { %256 = vst [vmem:[%s2718_s24 + $0x98] sm:$0xff] %v255_v19  ;;  %v297_v40 = vld [vmem:[%s2713_s14 + $0xa00] sm:$0xff]  ;;  %v299_v41 = vld [vmem:[%s2713_s14 + $0xa08] sm:$0xff] }
  0x2e   : > { %258 = vst [vmem:[%s2718_s24 + $0xa0] sm:$0xff] %v257_v20  ;;  %v301_v42 = vld [vmem:[%s2713_s14 + $0xa80] sm:$0xff]  ;;  %v303_v43 = vld [vmem:[%s2713_s14 + $0xa88] sm:$0xff] }
  0x2f   : > { %260 = vst [vmem:[%s2718_s24 + $0xa8] sm:$0xff] %v259_v21  ;;  %v305_v44 = vld [vmem:[%s2713_s14 + $0xb00] sm:$0xff]  ;;  %v307_v45 = vld [vmem:[%s2713_s14 + $0xb08] sm:$0xff] }
  0x30   : > { %262 = vst [vmem:[%s2718_s24 + $0xb0] sm:$0xff] %v261_v22  ;;  %v309_v46 = vld [vmem:[%s2713_s14 + $0xb80] sm:$0xff]  ;;  %v311_v47 = vld [vmem:[%s2713_s14 + $0xb88] sm:$0xff] }
  0x31   : > { %264 = vst [vmem:[%s2718_s24 + $0xb8] sm:$0xff] %v263_v23  ;;  %v313_v48 = vld [vmem:[%s2713_s14 + $0xc00] sm:$0xff]  ;;  %v315_v49 = vld [vmem:[%s2713_s14 + $0xc08] sm:$0xff] }
  0x32   : > { %266 = vst [vmem:[%s2718_s24 + $0xc0] sm:$0xff] %v265_v24  ;;  %v317_v50 = vld [vmem:[%s2713_s14 + $0xc80] sm:$0xff]  ;;  %v319_v51 = vld [vmem:[%s2713_s14 + $0xc88] sm:$0xff] }
  0x33   : > { %268 = vst [vmem:[%s2718_s24 + $0xc8] sm:$0xff] %v267_v25  ;;  %v321_v52 = vld [vmem:[%s2713_s14 + $0xd00] sm:$0xff]  ;;  %v323_v53 = vld [vmem:[%s2713_s14 + $0xd08] sm:$0xff] }
  0x34   : > { %270 = vst [vmem:[%s2718_s24 + $0xd0] sm:$0xff] %v269_v26  ;;  %v325_v54 = vld [vmem:[%s2713_s14 + $0xd80] sm:$0xff]  ;;  %v327_v55 = vld [vmem:[%s2713_s14 + $0xd88] sm:$0xff] }
  0x35   : > { %272 = vst [vmem:[%s2718_s24 + $0xd8] sm:$0xff] %v271_v27  ;;  %v329_v56 = vld [vmem:[%s2713_s14 + $0xe00] sm:$0xff]  ;;  %v331_v57 = vld [vmem:[%s2713_s14 + $0xe08] sm:$0xff] }
  0x36   : > { %274 = vst [vmem:[%s2718_s24 + $0xe0] sm:$0xff] %v273_v28  ;;  %v333_v58 = vld [vmem:[%s2713_s14 + $0xe80] sm:$0xff]  ;;  %v335_v59 = vld [vmem:[%s2713_s14 + $0xe88] sm:$0xff] }
  0x37   : > { %276 = vst [vmem:[%s2718_s24 + $0xe8] sm:$0xff] %v275_v29  ;;  %v337_v60 = vld [vmem:[%s2713_s14 + $0xf00] sm:$0xff]  ;;  %v339_v61 = vld [vmem:[%s2713_s14 + $0xf08] sm:$0xff] }
  0x38   : > { %278 = vst [vmem:[%s2718_s24 + $0xf0] sm:$0xff] %v277_v30  ;;  %v341_v62 = vld [vmem:[%s2713_s14 + $0xf80] sm:$0xff]  ;;  %v343_v63 = vld [vmem:[%s2713_s14 + $0xf88] sm:$0xff] }
  0x39   : > { %280 = vst [vmem:[%s2718_s24 + $0xf8] sm:$0xff] %v279_v31  ;;  %v345_v0 = vld [vmem:[%s2713_s14 + $0x1000] sm:$0xff]  ;;  %v347_v1 = vld [vmem:[%s2713_s14 + $0x1008] sm:$0xff] }
  0x3a   : > { %282 = vst [vmem:[%s2718_s24 + $0x100] sm:$0xff] %v281_v32  ;;  %v349_v2 = vld [vmem:[%s2713_s14 + $0x1080] sm:$0xff]  ;;  %v351_v3 = vld [vmem:[%s2713_s14 + $0x1088] sm:$0xff] }
  0x3b   : > { %284 = vst [vmem:[%s2718_s24 + $0x108] sm:$0xff] %v283_v33  ;;  %v353_v4 = vld [vmem:[%s2713_s14 + $0x1100] sm:$0xff]  ;;  %v355_v5 = vld [vmem:[%s2713_s14 + $0x1108] sm:$0xff] }
  0x3c   : > { %286 = vst [vmem:[%s2718_s24 + $0x110] sm:$0xff] %v285_v34  ;;  %v357_v6 = vld [vmem:[%s2713_s14 + $0x1180] sm:$0xff]  ;;  %v359_v7 = vld [vmem:[%s2713_s14 + $0x1188] sm:$0xff] }
  0x3d   : > { %288 = vst [vmem:[%s2718_s24 + $0x118] sm:$0xff] %v287_v35 }
  0x3e   : > { %290 = vst [vmem:[%s2718_s24 + $0x120] sm:$0xff] %v289_v36 }
  0x3f   : > { %292 = vst [vmem:[%s2718_s24 + $0x128] sm:$0xff] %v291_v37 }
  0x40   : > { %294 = vst [vmem:[%s2718_s24 + $0x130] sm:$0xff] %v293_v38 }
  0x41   : > { %296 = vst [vmem:[%s2718_s24 + $0x138] sm:$0xff] %v295_v39 }
  0x42   : > { %298 = vst [vmem:[%s2718_s24 + $0x140] sm:$0xff] %v297_v40 }
  0x43   : > { %300 = vst [vmem:[%s2718_s24 + $0x148] sm:$0xff] %v299_v41 }
  0x44   : > { %302 = vst [vmem:[%s2718_s24 + $0x150] sm:$0xff] %v301_v42 }
  0x45   : > { %304 = vst [vmem:[%s2718_s24 + $0x158] sm:$0xff] %v303_v43 }
  0x46   : > { %306 = vst [vmem:[%s2718_s24 + $0x160] sm:$0xff] %v305_v44 }
  0x47   : > { %308 = vst [vmem:[%s2718_s24 + $0x168] sm:$0xff] %v307_v45 }
  0x48   : > { %310 = vst [vmem:[%s2718_s24 + $0x170] sm:$0xff] %v309_v46 }
  0x49   : > { %312 = vst [vmem:[%s2718_s24 + $0x178] sm:$0xff] %v311_v47 }
  0x4a   : > { %314 = vst [vmem:[%s2718_s24 + $0x180] sm:$0xff] %v313_v48 }
  0x4b   : > { %316 = vst [vmem:[%s2718_s24 + $0x188] sm:$0xff] %v315_v49 }
  0x4c   : > { %318 = vst [vmem:[%s2718_s24 + $0x190] sm:$0xff] %v317_v50 }
  0x4d   : > { %320 = vst [vmem:[%s2718_s24 + $0x198] sm:$0xff] %v319_v51 }
  0x4e   : > { %322 = vst [vmem:[%s2718_s24 + $0x1a0] sm:$0xff] %v321_v52 }
  0x4f   : > { %324 = vst [vmem:[%s2718_s24 + $0x1a8] sm:$0xff] %v323_v53 }
  0x50   : > { %326 = vst [vmem:[%s2718_s24 + $0x1b0] sm:$0xff] %v325_v54 }
  0x51   : > { %328 = vst [vmem:[%s2718_s24 + $0x1b8] sm:$0xff] %v327_v55 }
  0x52   : > { %330 = vst [vmem:[%s2718_s24 + $0x1c0] sm:$0xff] %v329_v56 }
  0x53   : > { %332 = vst [vmem:[%s2718_s24 + $0x1c8] sm:$0xff] %v331_v57 }
  0x54   : > { %334 = vst [vmem:[%s2718_s24 + $0x1d0] sm:$0xff] %v333_v58 }
  0x55   : > { %336 = vst [vmem:[%s2718_s24 + $0x1d8] sm:$0xff] %v335_v59 }
  0x56   : > { %338 = vst [vmem:[%s2718_s24 + $0x1e0] sm:$0xff] %v337_v60 }
  0x57   : > { %340 = vst [vmem:[%s2718_s24 + $0x1e8] sm:$0xff] %v339_v61 }
  0x58   : > { %342 = vst [vmem:[%s2718_s24 + $0x1f0] sm:$0xff] %v341_v62 }
  0x59   : > { %344 = vst [vmem:[%s2718_s24 + $0x1f8] sm:$0xff] %v343_v63 }
  0x5a   : > { %346 = vst [vmem:[%s2718_s24 + $0x200] sm:$0xff] %v345_v0 }
  0x5b   : > { %348 = vst [vmem:[%s2718_s24 + $0x208] sm:$0xff] %v347_v1 }
  0x5c   : > { %350 = vst [vmem:[%s2718_s24 + $0x210] sm:$0xff] %v349_v2 }
  0x5d   : > { %352 = vst [vmem:[%s2718_s24 + $0x218] sm:$0xff] %v351_v3 }
  0x5e   : > { %354 = vst [vmem:[%s2718_s24 + $0x220] sm:$0xff] %v353_v4 }
  0x5f   : > { %356 = vst [vmem:[%s2718_s24 + $0x228] sm:$0xff] %v355_v5 }
  0x60   : > { %358 = vst [vmem:[%s2718_s24 + $0x230] sm:$0xff] %v357_v6 }
  0x61   : > { %360 = vst [vmem:[%s2718_s24 + $0x238] sm:$0xff] %v359_v7 }
  0x62 PF: > { %p2068_p11 = scmp.ge.s32.totalorder %s2603_s23, 1  ;;  %p373_p12 = scmp.lt.s32.totalorder %s2603_s23, 17 }
  0x64   : > { %p374_p13 = pnand %p2068_p11, %p373_p12 }
  0x65   : > { %p426_p0 = scmp.lt.s32.totalorder (!%p374_p13), %s2591_s20, 1  ;;  %s2605_s9 = smov (!%p374_p13), 96  }
  0x66   : > { %377 = sbr.rel (%p374_p13) target bundleno = 580 (0x244), region = 51  ;;  %s2606_s10 = smov (!%p374_p13), 32  }
  0x67   : > { %s2607_s11 = smov (!%p374_p13), 64   ;;  %s380_s12 = sand.u32 (!%p374_p13), 1, %s2579_s17  }
  0x68   : > { %s2235_s13 = smul.u32 (!%p374_p13), 576, %s380_s12  ;;  %s3447_s14 = sshll.u32 (!%p374_p13), %s2587_s19, 1 }
  0x69   : > { %p433_p1 = scmp.lt.s32.totalorder (!%p374_p13), %s3447_s14, 15  ;;  %s408_s5 = sand.u32 (!%p374_p13), 1, %s2571_s15  }
  0x6a   : > { %s3017_s17 = scalar_lea.vmem (!%p374_p13), [#allocation2], %s2235_s13 }
  0x6b   : > { %s2865_s27 = scalar_select %p426_p0, %s2591_s20, 1  ;;  %v1159_v61 = vld [vmem:[%s3017_s17 + $0x230] sm:$0xff]  ;;  %v1157_v1 = vld [vmem:[%s3017_s17 + $0x220] sm:$0xff]  ;;  %vm990_vm0 = vcmask 261120   ;;  %vm1007_vm1 = vcmask 523264   ;;  %vm1024_vm2 = vcmask 785408  }
  0x6c   : > { %2226 = vmatpush.msra.mxu3 %v1159_v61  ;;  %v1155_v4 = vld [vmem:[%s3017_s17 + $0x210] sm:$0xff]  ;;  %1357 = vmatpush.msra.mxu2 %v1159_v61  ;;  %v1153_v6 = vld [vmem:[%s3017_s17 + $0x200] sm:$0xff]  ;;  %v1110_v61 = vld [vmem:[%s3017_s17 + $0xa8] sm:$0xff]  ;;  %s3458_s19 = scalar_select %p433_p1, %s3447_s14, 15  ;;  %vm1785_vm3 = vcmask 1040384   ;;  %vm1791_vm4 = vcmask 1041408  }
  0x6d   : > { %s2236_s28 = smul.u32 240, %s2865_s27 }
  0x6e   : > { %2227 = vmatpush.msra.mxu3 %v1157_v1  ;;  %1358 = vmatpush.msra.mxu2 %v1157_v1  ;;  %v1150_v1 = vld [vmem:[%s3017_s17 + $0x1e8] sm:$0xff]  ;;  %s435_s29 = scalar_lea.vmem %s3837_s2, %s3458_s19 }
  0x6f   : > { %s2871_s6 = scalar_lea.vmem %s3835_s0, %s2236_s28 }
  0x70   : > { %v2874_v8 = vld [vmem:[%s2871_s6 + $0x18] sm:$0xff]  ;;  %v472_v10 = vld [vmem:[%s2871_s6 + $0x1] sm:$0xff]  ;;  %v473_v14 = vld [vmem:[%s2871_s6 + $0x9] sm:$0xff]  ;;  %2228 = vmatpush.msra.mxu3 %v1155_v4  ;;  %1359 = vmatpush.msra.mxu2 %v1155_v4 }
  0x71   : > { %v2877_v9 = vld [vmem:[%s2871_s6 + $0x78] sm:$0xff]  ;;  %v2883_v12 = vld [vmem:[%s2871_s6 + $0x61] sm:$0xff]  ;;  %v2890_v15 = vld [vmem:[%s2871_s6 + $0x69] sm:$0xff] }
  0x72   : > { %v2322_v11 = vpack.i.bf16 %v2874_v8, %v2877_v9  ;;  %v2312_v13 = vpack.i.bf16 %v472_v10, %v2883_v12  ;;  %v488_v16 = vld [vmem:[%s2871_s6 + $0x2] sm:$0xff]  ;;  %v489_v18 = vld [vmem:[%s2871_s6 + $0xa] sm:$0xff]  ;;  %v2327_v21 = vpack.i.bf16 %v473_v14, %v2890_v15  ;;  %v2913_v25 = vld [vmem:[%s2871_s6 + $0x1a] sm:$0xff]  ;;  %2229 = vmatpush.msra.mxu3 %v1153_v6  ;;  %1360 = vmatpush.msra.mxu2 %v1153_v6 }
  0x73   : > { %v2894_v17 = vld [vmem:[%s2871_s6 + $0x62] sm:$0xff]  ;;  %v2898_v19 = vld [vmem:[%s2871_s6 + $0x6a] sm:$0xff]  ;;  %v2916_v26 = vld [vmem:[%s2871_s6 + $0x7a] sm:$0xff] }
  0x74   : > { %2323 = vrot.lane.b32.xlu1 %v2322_v11, %s2605_s9  ;;  %2313 = vrot.lane.b32.xlu0 %v2312_v13, %s2606_s10  ;;  %v2332_v20 = vpack.i.bf16 %v489_v18, %v2898_v19  ;;  %v2317_v22 = vpack.i.bf16 %v488_v16, %v2894_v17  ;;  %v2905_v23 = vld [vmem:[%s2871_s6 + $0x20] sm:$0xff]  ;;  %v2347_v30 = vpack.i.bf16 %v2913_v25, %v2916_v26  ;;  %v2932_v32 = vld [vmem:[%s2871_s6 + $0x30] sm:$0xff] }
  0x75   : > { %v2908_v24 = vld [vmem:[%s2871_s6 + $0x80] sm:$0xff]  ;;  %v2935_v33 = vld [vmem:[%s2871_s6 + $0x90] sm:$0xff]  ;;  %v2956_v41 = vld [vmem:[%s2871_s6 + $0x38] sm:$0xff] }
  0x76   : > { %2333 = vrot.lane.b32.xlu2 %v2332_v20, %s2607_s11  ;;  %v2337_v27 = vpack.i.bf16 %v2905_v23, %v2908_v24  ;;  %v2921_v28 = vld [vmem:[%s2871_s6 + $0x19] sm:$0xff]  ;;  %v2940_v34 = vld [vmem:[%s2871_s6 + $0x22] sm:$0xff]  ;;  %v2352_v36 = vpack.i.bf16 %v2932_v32, %v2935_v33  ;;  %v2972_v46 = vld [vmem:[%s2871_s6 + $0x31] sm:$0xff] }
  0x77   : > { %v2924_v29 = vld [vmem:[%s2871_s6 + $0x79] sm:$0xff]  ;;  %v2943_v35 = vld [vmem:[%s2871_s6 + $0x82] sm:$0xff]  ;;  %v2975_v47 = vld [vmem:[%s2871_s6 + $0x91] sm:$0xff] }
  0x78   : > { %v2342_v31 = vpack.i.bf16 %v2921_v28, %v2924_v29  ;;  %v475_v37 = vld [vmem:[%s2871_s6 + $0x21] sm:$0xff]  ;;  %v2362_v39 = vpack.i.bf16 %v2940_v34, %v2943_v35  ;;  %v2959_v42 = vld [vmem:[%s2871_s6 + $0x98] sm:$0xff]  ;;  %v2372_v49 = vpack.i.bf16 %v2972_v46, %v2975_v47  ;;  %v3011_v59 = vld [vmem:[%s2871_s6 + $0x50] sm:$0xff] }
  0x79   : > { %v2949_v38 = vld [vmem:[%s2871_s6 + $0x81] sm:$0xff]  ;;  %v2964_v43 = vld [vmem:[%s2871_s6 + $0x32] sm:$0xff]  ;;  %v2367_v45 = vpack.i.bf16 %v2956_v41, %v2959_v42  ;;  %v3022_v62 = vld [vmem:[%s2871_s6 + $0x4a] sm:$0xff] }
  0x7a   : > { %v2357_v40 = vpack.i.bf16 %v475_v37, %v2949_v38  ;;  %v2967_v44 = vld [vmem:[%s2871_s6 + $0x92] sm:$0xff]  ;;  %v2983_v50 = vld [vmem:[%s2871_s6 + $0x48] sm:$0xff]  ;;  %v2992_v52 = vld [vmem:[%s2871_s6 + $0x3a] sm:$0xff]  ;;  %2171 = vmatmul.msk.f32.vlgmr.msra.gmra.mxu2 %vm990_vm0, %v2964_v43 }
  0x7b   : > { %v2377_v48 = vpack.i.bf16 %v2964_v43, %v2967_v44  ;;  %v2986_v51 = vld [vmem:[%s2871_s6 + $0xa8] sm:$0xff]  ;;  %v2995_v53 = vld [vmem:[%s2871_s6 + $0x9a] sm:$0xff]  ;;  %v3014_v60 = vld [vmem:[%s2871_s6 + $0xb0] sm:$0xff] }
  0x7c   : > { %2328 = vrot.lane.b32.xlu1 %v2327_v21, %s2606_s10  ;;  %2318 = vrot.lane.b32.xlu0 %v2317_v22, %s2607_s11  ;;  %v2382_v54 = vpack.i.bf16 %v2983_v50, %v2986_v51  ;;  %v3000_v55 = vld [vmem:[%s2871_s6 + $0x39] sm:$0xff]  ;;  %v2392_v57 = vpack.i.bf16 %v2992_v52, %v2995_v53  ;;  %v3025_v63 = vld [vmem:[%s2871_s6 + $0xaa] sm:$0xff]  ;;  %v2397_v0 = vpack.i.bf16 %v3011_v59, %v3014_v60 }
  0x7d   : > { %v3003_v56 = vld [vmem:[%s2871_s6 + $0x99] sm:$0xff]  ;;  %v3031_v2 = vld [vmem:[%s2871_s6 + $0x49] sm:$0xff]  ;;  %v2407_v5 = vpack.i.bf16 %v3022_v62, %v3025_v63  ;;  %2181 = vmatmul.msk.f32.vlgmr.msra.gmra.mxu3 %vm990_vm0, %v3025_v63  ;;  %v3054_v13 = vld [vmem:[%s2871_s6 + $0xb1] sm:$0xff] }
  0x7e   : > { %2338 = vrot.lane.b32.xlu2 %v2337_v27, %s2605_s9  ;;  %v2387_v58 = vpack.i.bf16 %v3000_v55, %v3003_v56  ;;  %v3034_v3 = vld [vmem:[%s2871_s6 + $0xa9] sm:$0xff]  ;;  %v3044_v10 = vld [vmem:[%s2871_s6 + $0x60] sm:$0xff]  ;;  %v3057_v14 = vld [vmem:[%s2871_s6 + $0xb2] sm:$0xff]  ;;  %v2417_v37 = vpack.i.bf16 %v2913_v25, %v3054_v13 }
  0x7f   : > { %v2402_v7 = vpack.i.bf16 %v3031_v2, %v3034_v3  ;;  %v3047_v11 = vld [vmem:[%s2871_s6 + $0xc0] sm:$0xff]  ;;  %v1119_v18 = vld [vmem:[%s3017_s17 + $0xf0] sm:$0xff]  ;;  %v1120_v20 = vld [vmem:[%s3017_s17 + $0xf8] sm:$0xff] }
  0x80   : > { %v2412_v16 = vpack.i.bf16 %v3044_v10, %v3047_v11  ;;  %1215 = vmatpush.msra.mxu0 %v1119_v18  ;;  %2210 = vmatpush.msra.mxu1 %v1119_v18  ;;  %v1117_v21 = vld [vmem:[%s3017_s17 + $0xe0] sm:$0xff]  ;;  %v1118_v22 = vld [vmem:[%s3017_s17 + $0xe8] sm:$0xff]  ;;  %v1115_v27 = vld [vmem:[%s3017_s17 + $0xd0] sm:$0xff] }
  0x81   : > { %1410 = vmatpush.msrb.mxu3 %v1120_v20  ;;  %v3085_v25 = vld [vmem:[%s2871_s6 + $0x52] sm:$0xff]  ;;  %v3106_v6 = vld [vmem:[%s2871_s6 + $0x68] sm:$0xff] }
  0x82   : > { %1216 = vmatpush.msra.mxu0 %v1117_v21  ;;  %2211 = vmatpush.msra.mxu1 %v1117_v21  ;;  %v1106_v18 = vld [vmem:[%s3017_s17 + $0x88] sm:$0xff]  ;;  %v1103_v20 = vld [vmem:[%s3017_s17 + $0x70] sm:$0xff]  ;;  %v1104_v21 = vld [vmem:[%s3017_s17 + $0x78] sm:$0xff] }
  0x83   : > { %1411 = vmatpush.msrb.mxu3 %v1118_v22  ;;  %2172 = vmatmul.msk.f32.gmra.mxu2 %vm990_vm0, %v2992_v52  ;;  %v1148_v22 = vld [vmem:[%s3017_s17 + $0x1d8] sm:$0xff] }
  0x84   : > { %2348 = vrot.lane.b32.xlu1 %v2347_v30, %s2607_s11  ;;  %2343 = vrot.lane.b32.xlu0 %v2342_v31, %s2606_s10  ;;  %v2422_v30 = vpack.i.bf16 %v2932_v32, %v3057_v14  ;;  %v1116_v31 = vld [vmem:[%s3017_s17 + $0xd8] sm:$0xff] }
  0x85   : > { %1217 = vmatpush.msra.mxu0 %v1115_v27  ;;  %2212 = vmatpush.msra.mxu1 %v1115_v27  ;;  %v2452_v27 = vpack.i.bf16 %v3011_v59, %v2983_v50 }
  0x86   : > { %2353 = vrot.lane.b32.xlu2 %v2352_v36, %s2605_s9  ;;  %v1152_v36 = vld [vmem:[%s3017_s17 + $0x1f8] sm:$0xff]  ;;  %1412 = vmatpush.msrb.mxu3 %v1116_v31 }
  0x87   : > { %1475 = vmatpush.msrb.mxu2 %v1152_v36  ;;  %2182 = vmatmul.msk.f32.gmra.mxu3 %vm990_vm0, %v3057_v14  ;;  %v2467_v36 = vpack.i.bf16 %v3106_v6, %v3044_v10 }
  0x89   : > { %1476 = vmatpush.msrb.mxu2 %v1150_v1  ;;  %v1093_v1 = vld [vmem:[%s3017_s17 + $0x20] sm:$0xff] }
  0x8b   : > { %2173 = vmatmul.msk.f32.gmra.mxu2 %vm990_vm0, %v3022_v62 }
  0x8c   : > { %2363 = vrot.lane.b32.xlu1 %v2362_v39, %s2607_s11  ;;  %2358 = vrot.lane.b32.xlu0 %v2357_v40, %s2606_s10  ;;  %v3076_v39 = vld [vmem:[%s2871_s6 + $0xc8] sm:$0xff]  ;;  %v1113_v40 = vld [vmem:[%s3017_s17 + $0xc0] sm:$0xff] }
  0x8d   : > { %1218 = vmatpush.msra.mxu0 %v1113_v40  ;;  %2213 = vmatpush.msra.mxu1 %v1113_v40  ;;  %v2169_v40 = vld [vmem:[%s2871_s6 + $0xda] sm:$0xff] }
  0x8e   : > { %2368 = vrot.lane.b32.xlu2 %v2367_v45, %s2605_s9  ;;  %v1114_v45 = vld [vmem:[%s3017_s17 + $0xc8] sm:$0xff]  ;;  %1477 = vmatpush.msrb.mxu2 %v1148_v22 }
  0x8f   : > { %1413 = vmatpush.msrb.mxu3 %v1114_v45  ;;  %v1101_v45 = vld [vmem:[%s3017_s17 + $0x60] sm:$0xff] }
  0x93   : > { %2174 = vmatmul.msk.f32.gmra.mxu2 %vm990_vm0, %v3085_v25 }
  0x94   : > { %2378 = vrot.lane.b32.xlu1 %v2377_v48, %s2607_s11  ;;  %2373 = vrot.lane.b32.xlu0 %v2372_v49, %s2606_s10  ;;  %v2427_v48 = vpack.i.bf16 %v2972_v46, %v3076_v39  ;;  %v1111_v49 = vld [vmem:[%s3017_s17 + $0xb0] sm:$0xff] }
  0x95   : > { %1219 = vmatpush.msra.mxu0 %v1111_v49  ;;  %2214 = vmatpush.msra.mxu1 %v1111_v49  ;;  %v1107_v46 = vld [vmem:[%s3017_s17 + $0x90] sm:$0xff]  ;;  %v2482_v49 = vpack.i.bf16 %v2908_v24, %v2877_v9 }
  0x96   : > { %2383 = vrot.lane.b32.xlu2 %v2382_v54, %s2605_s9  ;;  %v1112_v54 = vld [vmem:[%s3017_s17 + $0xb8] sm:$0xff] }
  0x97   : > { %1414 = vmatpush.msrb.mxu3 %v1112_v54  ;;  %v1099_v54 = vld [vmem:[%s3017_s17 + $0x50] sm:$0xff] }
  0x99   : > { %1415 = vmatpush.msrb.mxu3 %v1110_v61  ;;  %v1098_v61 = vld [vmem:[%s3017_s17 + $0x48] sm:$0xff] }
  0x9b   : > { %2175 = vmatmul.msk.f32.gmra.mxu2 %vm990_vm0, %v2894_v17 }
  0x9c   : > { %2393 = vrot.lane.b32.xlu1 %v2392_v57, %s2607_s11  ;;  %2388 = vrot.lane.b32.xlu0 %v2387_v58, %s2606_s10  ;;  %v479_v57 = vld [vmem:[%s2871_s6 + $0x51] sm:$0xff]  ;;  %v1109_v58 = vld [vmem:[%s3017_s17 + $0xa0] sm:$0xff] }
  0x9d   : > { %v2432_v4 = vpack.i.bf16 %v2940_v34, %v479_v57  ;;  %1220 = vmatpush.msra.mxu0 %v1109_v58  ;;  %2215 = vmatpush.msra.mxu1 %v1109_v58  ;;  %v2442_v34 = vpack.i.bf16 %v3000_v55, %v3106_v6  ;;  %v2447_v55 = vpack.i.bf16 %v2992_v52, %v2964_v43  ;;  %v1097_v58 = vld [vmem:[%s3017_s17 + $0x40] sm:$0xff] }
  0x9e   : > { %2398 = vrot.lane.b32.xlu2 %v2397_v0, %s2605_s9  ;;  %v2437_v0 = vpack.i.bf16 %v2956_v41, %v3085_v25  ;;  %v2457_v31 = vpack.i.bf16 %v479_v57, %v3031_v2  ;;  %v2472_v2 = vpack.i.bf16 %v2890_v15, %v2883_v12  ;;  %v1100_v57 = vld [vmem:[%s3017_s17 + $0x58] sm:$0xff]  ;;  %v2477_v12 = vpack.i.bf16 %v2898_v19, %v2894_v17  ;;  %v1146_v15 = vld [vmem:[%s3017_s17 + $0x1c8] sm:$0xff] }
  0x9f   : > { %1221 = vmatpush.msra.mxu0 %v1107_v46  ;;  %2216 = vmatpush.msra.mxu1 %v1107_v46  ;;  %v1095_v46 = vld [vmem:[%s3017_s17 + $0x30] sm:$0xff]  ;;  %v1096_v17 = vld [vmem:[%s3017_s17 + $0x38] sm:$0xff] }
  0xa0   : > { %1478 = vmatpush.msrb.mxu2 %v1146_v15 }
  0xa3   : > { %2176 = vmatmul.msk.f32.gmra.mxu2 %vm990_vm0, %v2898_v19  ;;  %v1151_v19 = vld [vmem:[%s3017_s17 + $0x1f0] sm:$0xff] }
  0xa4   : > { %2408 = vrot.lane.b32.xlu1 %v2407_v5, %s2607_s11  ;;  %2403 = vrot.lane.b32.xlu0 %v2402_v7, %s2606_s10  ;;  %v3103_v5 = vld [vmem:[%s2871_s6 + $0xc2] sm:$0xff]  ;;  %v1108_v7 = vld [vmem:[%s3017_s17 + $0x98] sm:$0xff] }
  0xa5   : > { %2183 = vmatmul.msk.f32.gmra.mxu3 %vm990_vm0, %v3103_v5 }
  0xa6   : > { %2413 = vrot.lane.b32.xlu2 %v2412_v16, %s2605_s9  ;;  %v1105_v16 = vld [vmem:[%s3017_s17 + $0x80] sm:$0xff]  ;;  %1416 = vmatpush.msrb.mxu3 %v1108_v7  ;;  %v2497_v7 = vpack.i.bf16 %v2959_v42, %v2935_v33 }
  0xa7   : > { %1222 = vmatpush.msra.mxu0 %v1105_v16  ;;  %2217 = vmatpush.msra.mxu1 %v1105_v16  ;;  %v1144_v16 = vld [vmem:[%s3017_s17 + $0x1b8] sm:$0xff] }
  0xa8   : > { %1417 = vmatpush.msrb.mxu3 %v1106_v18  ;;  %v1092_v18 = vld [vmem:[%s3017_s17 + $0x18] sm:$0xff]  ;;  %1479 = vmatpush.msrb.mxu2 %v1144_v16 }
  0xa9   : > { %1223 = vmatpush.msra.mxu0 %v1103_v20  ;;  %2218 = vmatpush.msra.mxu1 %v1103_v20  ;;  %v2492_v20 = vpack.i.bf16 %v2943_v35, %v2916_v26 }
  0xaa   : > { %1418 = vmatpush.msrb.mxu3 %v1104_v21  ;;  %v1089_v21 = vld [vmem:[%s3017_s17] sm:$0xff] }
  0xab   : > { %1224 = vmatpush.msra.mxu0 %v1101_v45  ;;  %2219 = vmatpush.msra.mxu1 %v1101_v45  ;;  %v2512_v45 = vpack.i.bf16 %v3014_v60, %v2986_v51 }
  0xac   : > { %2423 = vrot.lane.b32.xlu1 %v2422_v30, %s2607_s11  ;;  %2418 = vrot.lane.b32.xlu0 %v2417_v37, %s2606_s10  ;;  %v3128_v30 = vld [vmem:[%s2871_s6 + $0xca] sm:$0xff]  ;;  %v2462_v37 = vpack.i.bf16 %v3085_v25, %v3022_v62 }
  0xad   : > { %2184 = vmatmul.msk.f32.gmra.mxu3 %vm990_vm0, %v3128_v30  ;;  %1225 = vmatpush.msra.mxu0 %v1099_v54 }
  0xae   : > { %2428 = vrot.lane.b32.xlu2 %v2427_v48, %s2605_s9  ;;  %v1102_v48 = vld [vmem:[%s3017_s17 + $0x68] sm:$0xff]  ;;  %2220 = vmatpush.msra.mxu1 %v1099_v54  ;;  %v1136_v54 = vld [vmem:[%s3017_s17 + $0x178] sm:$0xff] }
  0xaf   : > { %1419 = vmatpush.msrb.mxu3 %v1102_v48  ;;  %1226 = vmatpush.msra.mxu0 %v1097_v58  ;;  %v1145_v48 = vld [vmem:[%s3017_s17 + $0x1c0] sm:$0xff] }
  0xb0   : > { %2221 = vmatpush.msra.mxu1 %v1097_v58  ;;  %2177 = vmatmul.msk.f32.gmra.mxu2 %vm990_vm0, %v2916_v26  ;;  %v1138_v26 = vld [vmem:[%s3017_s17 + $0x188] sm:$0xff] }
  0xb1   : > { %1420 = vmatpush.msrb.mxu3 %v1100_v57  ;;  %1227 = vmatpush.msra.mxu0 %v1095_v46  ;;  %v2502_v57 = vpack.i.bf16 %v3003_v56, %v2975_v47  ;;  %v1139_v47 = vld [vmem:[%s3017_s17 + $0x190] sm:$0xff]  ;;  %v2517_v56 = vpack.i.bf16 %v3057_v14, %v3025_v63 }
  0xb2   : > { %2222 = vmatpush.msra.mxu1 %v1095_v46  ;;  %v1158_v46 = vld [vmem:[%s3017_s17 + $0x228] sm:$0xff] }
  0xb3   : > { %1421 = vmatpush.msrb.mxu3 %v1098_v61  ;;  %1228 = vmatpush.msra.mxu0 %v1093_v1  ;;  %v1134_v61 = vld [vmem:[%s3017_s17 + $0x168] sm:$0xff] }
  0xb4   : > { %2438 = vrot.lane.b32.xlu1 %v2437_v0, %s2607_s11  ;;  %2433 = vrot.lane.b32.xlu0 %v2432_v4, %s2606_s10  ;;  %v3163_v0 = vld [vmem:[%s2871_s6 + $0xe2] sm:$0xff] }
  0xb5   : > { %2185 = vmatmul.msk.f32.gmra.mxu3 %vm990_vm0, %v2169_v40  ;;  %v1094_v4 = vld [vmem:[%s3017_s17 + $0x28] sm:$0xff]  ;;  %2223 = vmatpush.msra.mxu1 %v1093_v1  ;;  %v1160_v40 = vld [vmem:[%s3017_s17 + $0x238] sm:$0xff] }
  0xb6   : > { %2443 = vrot.lane.b32.xlu2 %v2442_v34, %s2605_s9  ;;  %1422 = vmatpush.msrb.mxu3 %v1096_v17  ;;  %v1091_v34 = vld [vmem:[%s3017_s17 + $0x10] sm:$0xff]  ;;  %v1132_v1 = vld [vmem:[%s3017_s17 + $0x158] sm:$0xff] }
  0xb7   : > { %1229 = vmatpush.msra.mxu0 %v1091_v34  ;;  %2224 = vmatpush.msra.mxu1 %v1091_v34 }
  0xb8   : > { %1423 = vmatpush.msrb.mxu3 %v1094_v4  ;;  %2178 = vmatmul.msk.f32.gmra.mxu2 %vm990_vm0, %v2943_v35  ;;  %v1141_v35 = vld [vmem:[%s3017_s17 + $0x1a0] sm:$0xff] }
  0xb9   : > { %1230 = vmatpush.msra.mxu0 %v1089_v21  ;;  %2225 = vmatpush.msra.mxu1 %v1089_v21  ;;  %v1130_v21 = vld [vmem:[%s3017_s17 + $0x148] sm:$0xff] }
  0xba   : > { %1424 = vmatpush.msrb.mxu3 %v1092_v18  ;;  %v1137_v18 = vld [vmem:[%s3017_s17 + $0x180] sm:$0xff] }
  0xbb   : > { %1280 = vmatpush.msrb.mxu1 %v1151_v19  ;;  %1552 = vmatpush.msrb.mxu0 %v1160_v40 }
  0xbc   : > { %2453 = vrot.lane.b32.xlu1 %v2452_v27, %s2607_s11  ;;  %2448 = vrot.lane.b32.xlu0 %v2447_v55, %s2606_s10  ;;  %v1090_v27 = vld [vmem:[%s3017_s17 + $0x8] sm:$0xff] }
  0xbd   : > { %2186 = vmatmul.msk.f32.gmra.mxu3 %vm990_vm0, %v3163_v0  ;;  %v1142_v55 = vld [vmem:[%s3017_s17 + $0x1a8] sm:$0xff]  ;;  %1553 = vmatpush.msrb.mxu0 %v1158_v46 }
  0xbe   : > { %2458 = vrot.lane.b32.xlu2 %v2457_v31, %s2605_s9  ;;  %v2487_v31 = vpack.i.bf16 %v2949_v38, %v2924_v29  ;;  %1425 = vmatpush.msrb.mxu3 %v1090_v27  ;;  %v1147_v29 = vld [vmem:[%s3017_s17 + $0x1d0] sm:$0xff]  ;;  %v2507_v38 = vpack.i.bf16 %v2995_v53, %v2967_v44 }
  0xbf   : > { %1480 = vmatpush.msrb.mxu2 %v1142_v55 }
  0xc0   : > { %2230 = vmatpush.msra.mxu3 %v1160_v40  ;;  %2179 = vmatmul.msk.f32.gmra.mxu2 %vm990_vm0, %v2967_v44  ;;  %v457_v40 = vld [vmem:[%s2871_s6 + $0x8] sm:$0xff] }
  0xc2   : > { %2231 = vmatpush.msra.mxu3 %v1158_v46 }
  0xc4   : > { %2468 = vrot.lane.b32.xlu1 %v2467_v36, %s2607_s11  ;;  %2463 = vrot.lane.b32.xlu0 %v2462_v37, %s2606_s10  ;;  %v1149_v36 = vld [vmem:[%s3017_s17 + $0x1e0] sm:$0xff]  ;;  %v1140_v37 = vld [vmem:[%s3017_s17 + $0x198] sm:$0xff] }
  0xc5   : > { %1281 = vmatpush.msrb.mxu1 %v1149_v36  ;;  %1481 = vmatpush.msrb.mxu2 %v1140_v37 }
  0xc6   : > { %2473 = vrot.lane.b32.xlu2 %v2472_v2, %s2605_s9 }
  0xc7   : > { %1282 = vmatpush.msrb.mxu1 %v1147_v29  ;;  %1482 = vmatpush.msrb.mxu2 %v1138_v26 }
  0xc8   : > { %2180 = vmatmul.msk.f32.gmra.mxu2 %vm990_vm0, %v2995_v53 }
  0xc9   : > { %1283 = vmatpush.msrb.mxu1 %v1145_v48  ;;  %1483 = vmatpush.msrb.mxu2 %v1136_v54 }
  0xcb   : > { %1484 = vmatpush.msrb.mxu2 %v1134_v61  ;;  %v1128_v61 = vld [vmem:[%s3017_s17 + $0x138] sm:$0xff] }
  0xcc   : > { %2483 = vrot.lane.b32.xlu1 %v2482_v49, %s2607_s11  ;;  %2478 = vrot.lane.b32.xlu0 %v2477_v12, %s2606_s10  ;;  %v1143_v49 = vld [vmem:[%s3017_s17 + $0x1b0] sm:$0xff] }
  0xcd   : > { %1284 = vmatpush.msrb.mxu1 %v1143_v49  ;;  %1485 = vmatpush.msrb.mxu2 %v1132_v1 }
  0xce   : > { %2488 = vrot.lane.b32.xlu2 %v2487_v31, %s2605_s9 }
  0xcf   : > { %1285 = vmatpush.msrb.mxu1 %v1141_v35  ;;  %1486 = vmatpush.msrb.mxu2 %v1130_v21  ;;  %v1133_v35 = vld [vmem:[%s3017_s17 + $0x160] sm:$0xff]  ;;  %v1124_v21 = vld [vmem:[%s3017_s17 + $0x118] sm:$0xff] }
  0xd0   : > { %v3183_v22 = vpop.permute.xlu2 %2333 }
  0xd1   : > { %1286 = vmatpush.msrb.mxu1 %v1139_v47  ;;  %v2336_v26 = vunpack.i.h.bf16 %v3183_v22  ;;  %v2335_v48 = vunpack.i.l.bf16 %v3183_v22  ;;  %v1156_v22 = vld [vmem:[%s3017_s17 + $0x218] sm:$0xff]  ;;  %1487 = vmatpush.msrb.mxu2 %v1128_v61  ;;  %v1123_v61 = vld [vmem:[%s3017_s17 + $0x110] sm:$0xff] }
  0xd2   : > { %1554 = vmatpush.msrb.mxu0 %v1156_v22  ;;  %2232 = vmatpush.msra.mxu3 %v1156_v22 }
  0xd3   : > { %1287 = vmatpush.msrb.mxu1 %v1137_v18  ;;  %v2137_v18 = vld [vmem:[%s2871_s6 + $0xd8] sm:$0xff] }
  0xd4   : > { %2498 = vrot.lane.b32.xlu1 %v2497_v7, %s2607_s11  ;;  %2493 = vrot.lane.b32.xlu0 %v2492_v20, %s2606_s10  ;;  %v456_v7 = vld [vmem:[%s2871_s6] sm:$0xff] }
  0xd5   : > { %v3235_v20 = vld [vmem:[%s2871_s6 + $0xc1] sm:$0xff] }
  0xd6   : > { %2503 = vrot.lane.b32.xlu2 %v2502_v57, %s2605_s9 }
  0xd8   : > { %v3201_v2 = vpop.permute.xlu2 %2338 }
  0xd9   : > { %v2341_v54 = vunpack.i.h.bf16 %v3201_v2  ;;  %v2340_v57 = vunpack.i.l.bf16 %v3201_v2 }
  0xdc   : > { %2508 = vrot.lane.b32.xlu0 %v2507_v38, %s2606_s10  ;;  %2513 = vrot.lane.b32.xlu1 %v2512_v45, %s2607_s11 }
  0xde   : > { %962 = vrot.lane.b32.xlu2 %v3034_v3, %s2605_s9 }
  0xe0   : > { %v3217_v15 = vpop.permute.xlu2 %2353 }
  0xe4   : > { %964 = vrot.lane.b32.xlu0 %v3054_v13, %s2605_s9  ;;  %2518 = vrot.lane.b32.xlu1 %v2517_v56, %s2606_s10 }
  0xe6   : > { %v2324_v58 = vpop.permute.xlu1 %2323  ;;  %v2314_v12 = vpop.permute.xlu0 %2313  ;;  %902 = vrot.lane.b32.xlu2 %v3047_v11, %s2607_s11 }
  0xe7   : > { %v2316_v13 = vunpack.i.h.bf16 %v2314_v12  ;;  %v2315_v17 = vunpack.i.l.bf16 %v2314_v12  ;;  %v2326_v16 = vunpack.i.h.bf16 %v2324_v58  ;;  %v2325_v63 = vunpack.i.l.bf16 %v2324_v58 }
  0xe8   : > { %v3243_v31 = vpop.permute.xlu2 %2368 }
  0xe9   : > { %v991_v55 = vsel %vm990_vm0, %v456_v7, %v2316_v13  ;;  %v999_v3 = vsel %vm990_vm0, %v3044_v10, %v2315_v17  ;;  %v1135_v10 = vld [vmem:[%s3017_s17 + $0x170] sm:$0xff] }
  0xea   : > { %1288 = vmatpush.msrb.mxu1 %v1135_v10  ;;  %v1131_v17 = vld [vmem:[%s3017_s17 + $0x150] sm:$0xff] }
  0xec   : > { %966 = vrot.lane.b32.xlu0 %v3235_v20, %s2605_s9  ;;  %904 = vrot.lane.b32.xlu1 %v3076_v39, %s2607_s11 }
  0xed   : > { %1289 = vmatpush.msrb.mxu1 %v1133_v35 }
  0xee   : > { %v2329_v4 = vpop.permute.xlu1 %2328  ;;  %v2319_v44 = vpop.permute.xlu0 %2318 }
  0xef   : > { %v2321_v14 = vunpack.i.h.bf16 %v2319_v44  ;;  %v2320_v34 = vunpack.i.l.bf16 %v2319_v44  ;;  %v2331_v27 = vunpack.i.h.bf16 %v2329_v4  ;;  %v2330_v19 = vunpack.i.l.bf16 %v2329_v4  ;;  %1290 = vmatpush.msrb.mxu1 %v1131_v17  ;;  %v1126_v4 = vld [vmem:[%s3017_s17 + $0x128] sm:$0xff] }
  0xf0   : > { %v3278_v2 = vpop.permute.xlu2 %2383  ;;  %1488 = vmatpush.msrb.mxu2 %v1126_v4  ;;  %v2356_v44 = vunpack.i.h.bf16 %v3217_v15  ;;  %v3333_v4 = vld [vmem:[%s2871_s6 + $0xc9] sm:$0xff] }
  0xf1   : > { %v1008_v36 = vsel %vm1007_vm1, %v991_v55, %v2321_v14  ;;  %v1016_v37 = vsel %vm1007_vm1, %v999_v3, %v2320_v34  ;;  %v992_v38 = vsel %vm990_vm0, %v457_v40, %v2331_v27  ;;  %v1000_v45 = vsel %vm990_vm0, %v3106_v6, %v2330_v19  ;;  %968 = vrot.lane.b32.xlu2 %v3333_v4, %s2605_s9 }
  0xf2   : > { %v1025_v53 = vsel %vm1024_vm2, %v1008_v36, %v2326_v16  ;;  %v3252_v29 = vsel %vm1024_vm2, %v1016_v37, %v2325_v63  ;;  %v1009_v12 = vsel %vm1007_vm1, %v992_v38, %v2336_v26  ;;  %v1017_v6 = vsel %vm1007_vm1, %v1000_v45, %v2335_v48  ;;  %1489 = vmatpush.msrb.mxu2 %v1124_v21  ;;  %v1127_v36 = vld [vmem:[%s3017_s17 + $0x130] sm:$0xff]  ;;  %v1122_v37 = vld [vmem:[%s3017_s17 + $0x108] sm:$0xff] }
  0xf3   : > { %1231 = vmatmul.f32.vlgmr.msra.gmra.mxu0 %v1025_v53  ;;  %1255 = vmatmul.f32.vlgmr.msra.gmra.mxu1 %v3252_v29  ;;  %v1026_v39 = vsel %vm1024_vm2, %v1009_v12, %v2341_v54  ;;  %v3276_v11 = vsel %vm1024_vm2, %v1017_v6, %v2340_v57  ;;  %v2355_v16 = vunpack.i.l.bf16 %v3217_v15  ;;  %v2371_v38 = vunpack.i.h.bf16 %v3243_v31  ;;  %v2138_v54 = vld [vmem:[%s2871_s6 + $0xe0] sm:$0xff]  ;;  %v1154_v57 = vld [vmem:[%s3017_s17 + $0x208] sm:$0xff] }
  0xf4   : > { %1426 = vmatmul.f32.vlgmr.msrb.gmra.mxu3 %v1025_v53  ;;  %842 = vrot.lane.b32.xlu0 %v3103_v5, %s2606_s10  ;;  %v2370_v45 = vunpack.i.l.bf16 %v3243_v31 }
  0xf5   : > { %906 = vrot.lane.b32.xlu1 %v2137_v18, %s2607_s11  ;;  %1490 = vmatpush.msrb.mxu2 %v1122_v37 }
  0xf6   : > { %v2349_v49 = vpop.permute.xlu1 %2348  ;;  %v2344_v58 = vpop.permute.xlu0 %2343  ;;  %1555 = vmatpush.msrb.mxu0 %v1154_v57  ;;  %2233 = vmatpush.msra.mxu3 %v1154_v57 }
  0xf7   : > { %v2346_v46 = vunpack.i.h.bf16 %v2344_v58  ;;  %v2345_v47 = vunpack.i.l.bf16 %v2344_v58  ;;  %v2351_v56 = vunpack.i.h.bf16 %v2349_v49  ;;  %v2350_v13 = vunpack.i.l.bf16 %v2349_v49 }
  0xf8   : > { %v3308_v53 = vpop.permute.xlu2 %2398 }
  0xf9   : > { %v993_v5 = vsel %vm990_vm0, %v2874_v8, %v2346_v46  ;;  %v1001_v1 = vsel %vm990_vm0, %v2877_v9, %v2345_v47  ;;  %v1129_v8 = vld [vmem:[%s3017_s17 + $0x140] sm:$0xff]  ;;  %v2401_v21 = vunpack.i.h.bf16 %v3308_v53 }
  0xfa   : > { %v1010_v14 = vsel %vm1007_vm1, %v993_v5, %v2351_v56  ;;  %v1018_v34 = vsel %vm1007_vm1, %v1001_v1, %v2350_v13  ;;  %1291 = vmatpush.msrb.mxu1 %v1129_v8  ;;  %v2385_v56 = vunpack.i.l.bf16 %v3278_v2  ;;  %v2153_v8 = vld [vmem:[%s2871_s6 + $0xd9] sm:$0xff] }
  0xfb   : > { %1234 = vmatmul.f32.gmra.mxu0 %v1026_v39  ;;  %1258 = vmatmul.f32.gmra.mxu1 %v3276_v11  ;;  %v1027_v15 = vsel %vm1024_vm2, %v1010_v14, %v2356_v44  ;;  %v3299_v19 = vsel %vm1024_vm2, %v1018_v34, %v2355_v16 }
  0xfc   : > { %1429 = vmatmul.f32.gmra.mxu3 %v1026_v39  ;;  %844 = vrot.lane.b32.xlu0 %v3128_v30, %s2606_s10  ;;  %v2386_v39 = vunpack.i.h.bf16 %v3278_v2 }
  0xfd   : > { %1292 = vmatpush.msrb.mxu1 %v1127_v36  ;;  %908 = vrot.lane.b32.xlu1 %v2138_v54, %s2607_s11 }
  0xfe   : > { %v2364_v7 = vpop.permute.xlu1 %2363  ;;  %v2359_v63 = vpop.permute.xlu0 %2358  ;;  %970 = vrot.lane.b32.xlu2 %v2153_v8, %s2605_s9 }
  0xff   : > { %v2361_v27 = vunpack.i.h.bf16 %v2359_v63  ;;  %v2360_v9 = vunpack.i.l.bf16 %v2359_v63  ;;  %v2366_v55 = vunpack.i.h.bf16 %v2364_v7  ;;  %v2365_v3 = vunpack.i.l.bf16 %v2364_v7  ;;  %v1121_v7 = vld [vmem:[%s3017_s17 + $0x100] sm:$0xff] }
 0x100   : > { %v2414_v17 = vpop.permute.xlu2 %2413 }
 0x101   : > { %v994_v40 = vsel %vm990_vm0, %v2905_v23, %v2361_v27  ;;  %v1002_v30 = vsel %vm990_vm0, %v2908_v24, %v2360_v9  ;;  %v1125_v23 = vld [vmem:[%s3017_s17 + $0x120] sm:$0xff]  ;;  %v2400_v27 = vunpack.i.l.bf16 %v3308_v53  ;;  %s2205_s17 = sshll.u32 (%p2700_p9), %s2591_s20, 8 }
 0x102   : > { %v1011_v48 = vsel %vm1007_vm1, %v994_v40, %v2366_v55  ;;  %v1019_v49 = vsel %vm1007_vm1, %v1002_v30, %v2365_v3  ;;  %1293 = vmatpush.msrb.mxu1 %v1125_v23 }
 0x103   : > { %1237 = vmatmul.f32.gmra.mxu0 %v1027_v15  ;;  %1261 = vmatmul.f32.gmra.mxu1 %v3299_v19  ;;  %v1028_v12 = vsel %vm1024_vm2, %v1011_v48, %v2371_v38  ;;  %v3320_v31 = vsel %vm1024_vm2, %v1019_v49, %v2370_v45  ;;  %v2154_v45 = vld [vmem:[%s2871_s6 + $0xe1] sm:$0xff]  ;;  %v2415_v48 = vunpack.i.l.bf16 %v2414_v17 }
 0x104   : > { %1432 = vmatmul.f32.gmra.mxu3 %v1027_v15  ;;  %1294 = vmatpush.msrb.mxu1 %v1123_v61 }
 0x106   : > { %v2379_v10 = vpop.permute.xlu1 %2378  ;;  %v2374_v26 = vpop.permute.xlu0 %2373  ;;  %1295 = vmatpush.msrb.mxu1 %v1121_v7  ;;  %972 = vrot.lane.b32.xlu2 %v2154_v45, %s2605_s9  ;;  %s2073_s9 = sshll.u32 %s2865_s27, 4 }
 0x107   : > { %v2376_v58 = vunpack.i.h.bf16 %v2374_v26  ;;  %v2375_v24 = vunpack.i.l.bf16 %v2374_v26  ;;  %v2381_v6 = vunpack.i.h.bf16 %v2379_v10  ;;  %v2380_v35 = vunpack.i.l.bf16 %v2379_v10  ;;  %s449_s10 = sadd.s32 %s2073_s9, %s3458_s19  ;;  %s1820_s19 = sadd.s32 (%p2700_p9), %s2205_s17, %s3447_s14 }
 0x108   : > { %v2429_v37 = vpop.permute.xlu2 %2428  ;;  %v2416_v26 = vunpack.i.h.bf16 %v2414_v17  ;;  %s2074_s11 = sshll.u32 %s449_s10, 1  ;;  %s2206_s24 = sshll.u32 (%p2700_p9), %s1820_s19, 3 }
 0x109   : > { %v995_v22 = vsel %vm990_vm0, %v2932_v32, %v2376_v58  ;;  %v1003_v46 = vsel %vm990_vm0, %v2935_v33, %v2375_v24  ;;  %v2431_v57 = vunpack.i.h.bf16 %v2429_v37  ;;  %s451_s27 = scalar_lea.vmem %s3839_s4, %s2074_s11  ;;  %s3744_s7 = scalar_lea.vmem (%p2700_p9), %s3838_s3, %s2206_s24 }
 0x10a   : > { %v1012_v5 = vsel %vm1007_vm1, %v995_v22, %v2381_v6  ;;  %v1020_v1 = vsel %vm1007_vm1, %v1003_v46, %v2380_v35 }
 0x10b   : > { %1240 = vmatmul.f32.gmra.mxu0 %v1028_v12  ;;  %1264 = vmatmul.f32.gmra.mxu1 %v3320_v31  ;;  %v1029_v33 = vsel %vm1024_vm2, %v1012_v5, %v2386_v39  ;;  %v3340_v2 = vsel %vm1024_vm2, %v1020_v1, %v2385_v56  ;;  %v2430_v39 = vunpack.i.l.bf16 %v2429_v37  ;;  %v2092_v1 = vld [vmem:[%s2871_s6 + $0x21] sm:$0xff] }
 0x10c   : > { %1435 = vmatmul.f32.gmra.mxu3 %v1028_v12 }
 0x10e   : > { %v2394_v47 = vpop.permute.xlu1 %2393  ;;  %v2389_v13 = vpop.permute.xlu0 %2388 }
 0x10f   : > { %v2391_v32 = vunpack.i.h.bf16 %v2389_v13  ;;  %v2390_v44 = vunpack.i.l.bf16 %v2389_v13  ;;  %v2396_v16 = vunpack.i.h.bf16 %v2394_v47  ;;  %v2395_v63 = vunpack.i.l.bf16 %v2394_v47 }
 0x110   : > { %v2444_v61 = vpop.permute.xlu2 %2443 }
 0x111   : > { %v996_v14 = vsel %vm990_vm0, %v2956_v41, %v2391_v32  ;;  %v1004_v34 = vsel %vm990_vm0, %v2959_v42, %v2390_v44  ;;  %v2446_v5 = vunpack.i.h.bf16 %v2444_v61  ;;  %v2445_v44 = vunpack.i.l.bf16 %v2444_v61  ;;  %v3409_v61 = vpop.f32.mrf.mxu2 }
 0x112   : > { %v1013_v15 = vsel %vm1007_vm1, %v996_v14, %v2396_v16  ;;  %v1021_v55 = vsel %vm1007_vm1, %v1004_v34, %v2395_v63 }
 0x113   : > { %1243 = vmatmul.f32.gmra.mxu0 %v1029_v33  ;;  %1267 = vmatmul.f32.gmra.mxu1 %v3340_v2  ;;  %v1030_v41 = vsel %vm1024_vm2, %v1013_v15, %v2401_v21  ;;  %v3355_v42 = vsel %vm1024_vm2, %v1021_v55, %v2400_v27  ;;  %v2093_v15 = vld [vmem:[%s2871_s6 + $0x31] sm:$0xff] }
 0x114   : > { %1438 = vmatmul.f32.gmra.mxu3 %v1029_v33 }
 0x116   : > { %v2409_v18 = vpop.permute.xlu1 %2408  ;;  %v2404_v9 = vpop.permute.xlu0 %2403 }
 0x117   : > { %v2406_v3 = vunpack.i.h.bf16 %v2404_v9  ;;  %v2405_v36 = vunpack.i.l.bf16 %v2404_v9  ;;  %v2411_v40 = vunpack.i.h.bf16 %v2409_v18  ;;  %v2410_v30 = vunpack.i.l.bf16 %v2409_v18 }
 0x118   : > { %v2459_v21 = vpop.permute.xlu2 %2458 }
 0x119   : > { %v997_v53 = vsel %vm990_vm0, %v2983_v50, %v2406_v3  ;;  %v1005_v10 = vsel %vm990_vm0, %v2986_v51, %v2405_v36  ;;  %v2460_v3 = vunpack.i.l.bf16 %v2459_v21 }
 0x11a   : > { %v1014_v58 = vsel %vm1007_vm1, %v997_v53, %v2411_v40  ;;  %v1022_v24 = vsel %vm1007_vm1, %v1005_v10, %v2410_v30 }
 0x11b   : > { %1246 = vmatmul.f32.gmra.mxu0 %v1030_v41  ;;  %1270 = vmatmul.f32.gmra.mxu1 %v3355_v42  ;;  %v1031_v51 = vsel %vm1024_vm2, %v1014_v58, %v2416_v26  ;;  %v3370_v6 = vsel %vm1024_vm2, %v1022_v24, %v2415_v48 }
 0x11c   : > { %1441 = vmatmul.f32.gmra.mxu3 %v1030_v41  ;;  %v2094_v41 = vld [vmem:[%s2871_s6 + $0x39] sm:$0xff] }
 0x11e   : > { %v2424_v38 = vpop.permute.xlu1 %2423  ;;  %v2419_v49 = vpop.permute.xlu0 %2418 }
 0x11f   : > { %v2426_v54 = vunpack.i.h.bf16 %v2424_v38  ;;  %v2421_v23 = vunpack.i.h.bf16 %v2419_v49  ;;  %v2420_v12 = vunpack.i.l.bf16 %v2419_v49  ;;  %v2425_v22 = vunpack.i.l.bf16 %v2424_v38 }
 0x120   : > { %v2461_v38 = vunpack.i.h.bf16 %v2459_v21  ;;  %v2474_v58 = vpop.permute.xlu2 %2473 }
 0x121   : > { %v1041_v50 = vsel %vm990_vm0, %v2921_v28, %v2421_v23  ;;  %v1006_v28 = vsel %vm990_vm0, %v3014_v60, %v2420_v12 }
 0x122   : > { %v1057_v35 = vsel %vm1007_vm1, %v1041_v50, %v2426_v54  ;;  %v1023_v33 = vsel %vm1007_vm1, %v1006_v28, %v2425_v22  ;;  %v2095_v54 = vld [vmem:[%s2871_s6 + $0x49] sm:$0xff]  ;;  %v2096_v50 = vld [vmem:[%s2871_s6 + $0x51] sm:$0xff] }
 0x123   : > { %1249 = vmatmul.f32.gmra.mxu0 %v1031_v51  ;;  %1273 = vmatmul.f32.gmra.mxu1 %v3370_v6  ;;  %v1073_v46 = vsel %vm1024_vm2, %v1057_v35, %v2431_v57  ;;  %v3383_v60 = vsel %vm1024_vm2, %v1023_v33, %v2430_v39  ;;  %v2098_v33 = vld [vmem:[%s2871_s6 + $0x69] sm:$0xff] }
 0x124   : > { %1444 = vmatmul.f32.gmra.mxu3 %v1031_v51  ;;  %1491 = vmatmul.f32.vlgmr.msrb.gmra.mxu2 %v1073_v46 }
 0x126   : > { %v2439_v47 = vpop.permute.xlu1 %2438  ;;  %v2434_v56 = vpop.permute.xlu0 %2433 }
 0x127   : > { %v2441_v13 = vunpack.i.h.bf16 %v2439_v47  ;;  %v2440_v17 = vunpack.i.l.bf16 %v2439_v47  ;;  %v2436_v7 = vunpack.i.h.bf16 %v2434_v56  ;;  %v2435_v32 = vunpack.i.l.bf16 %v2434_v56  ;;  %v2097_v56 = vld [vmem:[%s2871_s6 + $0x61] sm:$0xff] }
 0x129   : > { %v998_v16 = vsel %vm990_vm0, %v3011_v59, %v2435_v32  ;;  %v1042_v63 = vsel %vm990_vm0, %v2092_v1, %v2436_v7 }
 0x12a   : > { %v1015_v14 = vsel %vm1007_vm1, %v998_v16, %v2440_v17  ;;  %v1058_v34 = vsel %vm1007_vm1, %v1042_v63, %v2441_v13  ;;  %v2489_v17 = vpop.permute.xlu2 %2488 }
 0x12b   : > { %1276 = vmatmul.f32.gmra.mxu1 %v3383_v60  ;;  %v1032_v18 = vsel %vm1024_vm2, %v1015_v14, %v2445_v44  ;;  %v1074_v8 = vsel %vm1024_vm2, %v1058_v34, %v2446_v5  ;;  %v3424_v5 = vpop.f32.mrf.mxu2  ;;  %v2490_v1 = vunpack.i.l.bf16 %v2489_v17  ;;  %v2491_v34 = vunpack.i.h.bf16 %v2489_v17 }
 0x12c   : > { %1252 = vmatmul.f32.gmra.mxu0 %v1032_v18  ;;  %1447 = vmatmul.f32.gmra.mxu3 %v1032_v18 }
 0x12d   : > { %1494 = vmatmul.f32.gmra.mxu2 %v1074_v8 }
 0x12e   : > { %v2454_v59 = vpop.permute.xlu1 %2453  ;;  %v2449_v27 = vpop.permute.xlu0 %2448 }
 0x12f   : > { %v2455_v9 = vunpack.i.l.bf16 %v2454_v59  ;;  %v2450_v55 = vunpack.i.l.bf16 %v2449_v27  ;;  %v2451_v36 = vunpack.i.h.bf16 %v2449_v27  ;;  %v2456_v30 = vunpack.i.h.bf16 %v2454_v59 }
 0x131   : > { %v1043_v37 = vsel %vm990_vm0, %v2093_v15, %v2450_v55  ;;  %v1044_v10 = vsel %vm990_vm0, %v2094_v41, %v2451_v36 }
 0x132   : > { %v1059_v40 = vsel %vm1007_vm1, %v1043_v37, %v2455_v9  ;;  %v1060_v26 = vsel %vm1007_vm1, %v1044_v10, %v2456_v30  ;;  %v2504_v55 = vpop.permute.xlu2 %2503  ;;  %v2100_v30 = vld [vmem:[%s2871_s6 + $0x81] sm:$0xff] }
 0x133   : > { %1296 = vmatmul.f32.vlgmr.msrb.gmra.mxu1 %v1073_v46  ;;  %v1075_v53 = vsel %vm1024_vm2, %v1059_v40, %v2460_v3  ;;  %v1076_v23 = vsel %vm1024_vm2, %v1060_v26, %v2461_v38  ;;  %v2476_v46 = vunpack.i.h.bf16 %v2474_v58  ;;  %v2523_v3 = vld [vmem:[%s2871_s6 + $0x6a] sm:$0xff]  ;;  %v2505_v37 = vunpack.i.l.bf16 %v2504_v55 }
 0x134   : > { %1450 = vmatmul.f32.gmra.mxu3 %v3252_v29  ;;  %2187 = vmatmul.msk.f32.vlgmr.msrb.gmra.mxu0 %vm990_vm0, %v2964_v43  ;;  %v2475_v29 = vunpack.i.l.bf16 %v2474_v58  ;;  %v2101_v58 = vld [vmem:[%s2871_s6 + $0x91] sm:$0xff] }
 0x135   : > { %1497 = vmatmul.f32.gmra.mxu2 %v1075_v53 }
 0x136   : > { %v2464_v45 = vpop.permute.xlu0 %2463  ;;  %v2469_v49 = vpop.permute.xlu1 %2468 }
 0x137   : > { %v2465_v48 = vunpack.i.l.bf16 %v2464_v45  ;;  %v2470_v57 = vunpack.i.l.bf16 %v2469_v49  ;;  %v2466_v12 = vunpack.i.h.bf16 %v2464_v45  ;;  %v2471_v35 = vunpack.i.h.bf16 %v2469_v49  ;;  %v2524_v45 = vld [vmem:[%s2871_s6 + $0x7a] sm:$0xff] }
 0x138   : > { %v2506_v49 = vunpack.i.h.bf16 %v2504_v55 }
 0x139   : > { %v1045_v43 = vsel %vm990_vm0, %v2095_v54, %v2465_v48 }
 0x13a   : > { %v1061_v24 = vsel %vm1007_vm1, %v1045_v43, %v2470_v57  ;;  %v3471_v43 = vld [vmem:[%s435_s29] sm:$0x3] }
 0x13b   : > { %1299 = vmatmul.f32.gmra.mxu1 %v1074_v8  ;;  %v1077_v51 = vsel %vm1024_vm2, %v1061_v24, %v2475_v29  ;;  %v3436_v8 = vpop.f32.mrf.mxu2 }
 0x13c   : > { %1453 = vmatmul.f32.gmra.mxu3 %v3276_v11  ;;  %2188 = vmatmul.msk.f32.gmra.mxu0 %vm990_vm0, %v2992_v52  ;;  %v1046_v52 = vsel %vm990_vm0, %v2096_v50, %v2466_v12  ;;  %v3415_v11 = vpop.f32.mrf.mxu3  ;;  %v2525_v12 = vld [vmem:[%s2871_s6 + $0x82] sm:$0xff] }
 0x13d   : > { %1500 = vmatmul.f32.gmra.mxu2 %v1076_v23  ;;  %v1062_v28 = vsel %vm1007_vm1, %v1046_v52, %v2471_v35  ;;  %v3482_v35 = vperm.slane %v3471_v43, 0  ;;  %v963_v52 = vpop.permute.xlu2 %962 }
 0x13e   : > { %v2479_v22 = vpop.permute.xlu0 %2478  ;;  %v2484_v39 = vpop.permute.xlu1 %2483  ;;  %v1078_v13 = vsel %vm1024_vm2, %v1062_v28, %v2476_v46 }
 0x13f   : > { %v2480_v47 = vunpack.i.l.bf16 %v2479_v22  ;;  %v2481_v44 = vunpack.i.h.bf16 %v2479_v22  ;;  %v2486_v63 = vunpack.i.h.bf16 %v2484_v39 }
 0x143   : > { %1302 = vmatmul.f32.gmra.mxu1 %v1075_v53  ;;  %v3452_v53 = vpop.f32.mrf.mxu2 }
 0x144   : > { %1456 = vmatmul.f32.gmra.mxu3 %v3299_v19  ;;  %2189 = vmatmul.msk.f32.gmra.mxu0 %vm990_vm0, %v3022_v62  ;;  %v2485_v19 = vunpack.i.l.bf16 %v2484_v39  ;;  %v1047_v62 = vsel %vm990_vm0, %v2097_v56, %v2480_v47  ;;  %v3426_v7 = vpop.f32.mrf.mxu3  ;;  %v2102_v39 = vld [vmem:[%s2871_s6 + $0x99] sm:$0xff] }
 0x145   : > { %1503 = vmatmul.f32.gmra.mxu2 %v1077_v51 }
 0x146   : > { %v1063_v32 = vsel %vm1007_vm1, %v1047_v62, %v2485_v19  ;;  %v2494_v14 = vpop.permute.xlu0 %2493  ;;  %v2499_v59 = vpop.permute.xlu1 %2498  ;;  %v2526_v19 = vld [vmem:[%s2871_s6 + $0x92] sm:$0xff] }
 0x147   : > { %v1079_v16 = vsel %vm1024_vm2, %v1063_v32, %v2490_v1  ;;  %v2495_v21 = vunpack.i.l.bf16 %v2494_v14  ;;  %v2500_v15 = vunpack.i.l.bf16 %v2499_v59  ;;  %v2496_v40 = vunpack.i.h.bf16 %v2494_v14  ;;  %v2103_v14 = vld [vmem:[%s2871_s6 + $0xa9] sm:$0xff] }
 0x148   : > { %v2501_v38 = vunpack.i.h.bf16 %v2499_v59 }
 0x149   : > { %v1050_v26 = vsel %vm990_vm0, %v2100_v30, %v2496_v40  ;;  %v2104_v40 = vld [vmem:[%s2871_s6 + $0xb1] sm:$0xff] }
 0x14a   : > { %v1066_v54 = vsel %vm1007_vm1, %v1050_v26, %v2501_v38  ;;  %v2528_v38 = vld [vmem:[%s2871_s6 + $0xaa] sm:$0xff] }
 0x14b   : > { %1305 = vmatmul.f32.gmra.mxu1 %v1076_v23  ;;  %v3473_v24 = vpop.f32.mrf.mxu2 }
 0x14c   : > { %1459 = vmatmul.f32.gmra.mxu3 %v3320_v31  ;;  %2190 = vmatmul.msk.f32.gmra.mxu0 %vm990_vm0, %v3085_v25  ;;  %v2522_v25 = vld [vmem:[%s2871_s6 + $0x62] sm:$0xff]  ;;  %v1048_v31 = vsel %vm990_vm0, %v2098_v33, %v2481_v44  ;;  %v3438_v27 = vpop.f32.mrf.mxu3 }
 0x14d   : > { %1506 = vmatmul.f32.gmra.mxu2 %v1078_v13  ;;  %v1064_v18 = vsel %vm1007_vm1, %v1048_v31, %v2486_v63 }
 0x14e   : > { %v1080_v9 = vsel %vm1024_vm2, %v1064_v18, %v2491_v34  ;;  %v2509_v48 = vpop.permute.xlu0 %2508  ;;  %v2514_v57 = vpop.permute.xlu1 %2513  ;;  %v2527_v18 = vld [vmem:[%s2871_s6 + $0x9a] sm:$0xff] }
 0x14f   : > { %v2510_v23 = vunpack.i.l.bf16 %v2509_v48  ;;  %v2515_v29 = vunpack.i.l.bf16 %v2514_v57  ;;  %v2511_v46 = vunpack.i.h.bf16 %v2509_v48  ;;  %v903_v34 = vpop.permute.xlu2 %902 }
 0x151   : > { %v1051_v50 = vsel %vm990_vm0, %v2101_v58, %v2510_v23  ;;  %v1052_v62 = vsel %vm990_vm0, %v2102_v39, %v2511_v46 }
 0x152   : > { %v1067_v22 = vsel %vm1007_vm1, %v1051_v50, %v2515_v29 }
 0x153   : > { %1308 = vmatmul.f32.gmra.mxu1 %v1077_v51  ;;  %v1083_v56 = vsel %vm1024_vm2, %v1067_v22, %v963_v52  ;;  %v3497_v32 = vpop.f32.mrf.mxu2 }
 0x154   : > { %1462 = vmatmul.f32.gmra.mxu3 %v3340_v2  ;;  %2191 = vmatmul.msk.f32.gmra.mxu0 %vm990_vm0, %v2522_v25  ;;  %v2099_v2 = vld [vmem:[%s2871_s6 + $0x79] sm:$0xff]  ;;  %v3455_v10 = vpop.f32.mrf.mxu3 }
 0x155   : > { %1509 = vmatmul.f32.gmra.mxu2 %v1079_v16  ;;  %v1049_v36 = vsel %vm990_vm0, %v2099_v2, %v2495_v21 }
 0x156   : > { %v1065_v41 = vsel %vm1007_vm1, %v1049_v36, %v2500_v15  ;;  %v965_v17 = vpop.permute.xlu0 %964  ;;  %v2519_v1 = vpop.permute.xlu1 %2518 }
 0x157   : > { %v2520_v25 = vunpack.i.l.bf16 %v2519_v1  ;;  %v2521_v55 = vunpack.i.h.bf16 %v2519_v1 }
 0x159   : > { %v1053_v21 = vsel %vm990_vm0, %v2103_v14, %v2520_v25 }
 0x15a   : > { %v1069_v2 = vsel %vm1007_vm1, %v1053_v21, %v903_v34 }
 0x15b   : > { %1311 = vmatmul.f32.gmra.mxu1 %v1078_v13  ;;  %v2516_v13 = vunpack.i.h.bf16 %v2514_v57 }
 0x15c   : > { %1465 = vmatmul.f32.gmra.mxu3 %v3355_v42  ;;  %2192 = vmatmul.msk.f32.gmra.mxu0 %vm990_vm0, %v2523_v3  ;;  %v1081_v42 = vsel %vm1024_vm2, %v1065_v41, %v2505_v37  ;;  %v3479_v51 = vpop.f32.mrf.mxu3 }
 0x15d   : > { %1512 = vmatmul.f32.gmra.mxu2 %v1080_v9  ;;  %v1068_v33 = vsel %vm1007_vm1, %v1052_v62, %v2516_v13 }
 0x15e   : > { %v967_v59 = vpop.permute.xlu0 %966  ;;  %v905_v15 = vpop.permute.xlu1 %904 }
 0x15f   : > { %v1085_v30 = vsel %vm1024_vm2, %v1069_v2, %v967_v59 }
 0x163   : > { %1314 = vmatmul.f32.gmra.mxu1 %v1079_v16 }
 0x164   : > { %1468 = vmatmul.f32.gmra.mxu3 %v3370_v6  ;;  %2193 = vmatmul.msk.f32.gmra.mxu0 %vm990_vm0, %v2524_v45  ;;  %v1082_v6 = vsel %vm1024_vm2, %v1066_v54, %v2506_v49  ;;  %v3499_v44 = vpop.f32.mrf.mxu3  ;;  %v1054_v45 = vsel %vm990_vm0, %v2104_v40, %v2521_v55  ;;  %v2532_v55 = vld [vmem:[%s2871_s6 + $0xda] sm:$0xff] }
 0x165   : > { %1515 = vmatmul.f32.gmra.mxu2 %v1081_v42  ;;  %v1070_v26 = vsel %vm1007_vm1, %v1054_v45, %v905_v15  ;;  %v3581_v45 = vperm.slane %v3471_v43, 1 }
 0x166   : > { %v843_v48 = vpop.permute.xlu0 %842 }
 0x167   : > { %v1055_v50 = vsel %vm990_vm0, %v3235_v20, %v843_v48 }
 0x16b   : > { %1317 = vmatmul.f32.gmra.mxu1 %v1080_v9  ;;  %v3513_v9 = vpop.f32.mrf.mxu2 }
 0x16c   : > { %1471 = vmatmul.f32.gmra.mxu3 %v3383_v60  ;;  %2194 = vmatmul.msk.f32.gmra.mxu0 %vm990_vm0, %v2525_v12  ;;  %v2529_v12 = vld [vmem:[%s2871_s6 + $0xb2] sm:$0xff] }
 0x16d   : > { %1518 = vmatmul.f32.gmra.mxu2 %v1082_v6 }
 0x170   : > { %v3485_v28 = vpop.f32.mrf.mxu0  ;;  %v1256_v47 = vpop.f32.mrf.mxu1 }
 0x171   : > { %v3488_v60 = vadd.f32 %v1256_v47, %v3482_v35  ;;  %v1233_v48 = vadd.f32 %v3485_v28, %v3482_v35 }
 0x173   : > { %1320 = vmatmul.f32.gmra.mxu1 %v1081_v42  ;;  %v969_v42 = vpop.permute.xlu2 %968  ;;  %v3533_v57 = vpop.f32.mrf.mxu2 }
 0x174   : > { %2195 = vmatmul.msk.f32.gmra.mxu0 %vm990_vm0, %v2526_v19  ;;  %2202 = vmatmul.msk.f32.vlgmr.msra.gmra.mxu3 %vm990_vm0, %v3163_v0  ;;  %v1084_v0 = vsel %vm1024_vm2, %v1068_v33, %v965_v17  ;;  %v1086_v58 = vsel %vm1024_vm2, %v1070_v26, %v969_v42  ;;  %v2530_v17 = vld [vmem:[%s2871_s6 + $0xc2] sm:$0xff] }
 0x175   : > { %1521 = vmatmul.f32.gmra.mxu2 %v1083_v56 }
 0x177   : > { %v3517_v37 = vpop.f32.mrf.mxu3 }
 0x178   : > { %v3502_v16 = vpop.f32.mrf.mxu0  ;;  %v1259_v63 = vpop.f32.mrf.mxu1  ;;  %v1428_v26 = vadd.f32 %v3517_v37, %v3581_v45 }
 0x179   : > { %v3505_v31 = vadd.f32 %v1259_v63, %v3482_v35  ;;  %v1236_v28 = vadd.f32 %v3502_v16, %v3482_v35 }
 0x17b   : > { %1323 = vmatmul.f32.gmra.mxu1 %v1082_v6  ;;  %v907_v6 = vpop.permute.xlu1 %906  ;;  %v971_v52 = vpop.permute.xlu2 %970 }
 0x17c   : > { %2196 = vmatmul.msk.f32.gmra.mxu0 %vm990_vm0, %v2527_v18  ;;  %v1071_v22 = vsel %vm1007_vm1, %v1055_v50, %v907_v6  ;;  %v3547_v19 = vpop.f32.mrf.mxu2  ;;  %v2531_v18 = vld [vmem:[%s2871_s6 + $0xca] sm:$0xff]  ;;  %s2069_s6 = sshll.u32 %s408_s5, 8 }
 0x17d   : > { %1524 = vmatmul.f32.gmra.mxu2 %v1084_v0  ;;  %v1087_v13 = vsel %vm1024_vm2, %v1071_v22, %v971_v52  ;;  %s3592_s15 = scalar_lea.vmem [#allocation3], %s2069_s6 }
 0x17f   : > { %v1430_v29 = vpop.f32.mrf.mxu3 }
 0x180   : > { %v3515_v3 = vpop.f32.mrf.mxu0  ;;  %v1262_v36 = vpop.f32.mrf.mxu1 }
 0x181   : > { %v3520_v41 = vadd.f32 %v1262_v36, %v3482_v35 }
 0x183   : > { %1326 = vmatmul.f32.gmra.mxu1 %v1083_v56  ;;  %v845_v56 = vpop.permute.xlu0 %844  ;;  %v909_v62 = vpop.permute.xlu1 %908 }
 0x184   : > { %2197 = vmatmul.msk.f32.gmra.mxu0 %vm990_vm0, %v2528_v38  ;;  %v1056_v20 = vsel %vm990_vm0, %v3333_v4, %v845_v56  ;;  %v973_v63 = vpop.permute.xlu2 %972  ;;  %v3562_v4 = vpop.f32.mrf.mxu2 }
 0x185   : > { %1527 = vmatmul.f32.gmra.mxu2 %v1085_v30  ;;  %v1072_v33 = vsel %vm1007_vm1, %v1056_v20, %v909_v62 }
 0x187   : > { %v1433_v1 = vpop.f32.mrf.mxu3 }
 0x188   : > { %v3528_v49 = vpop.f32.mrf.mxu0  ;;  %v1265_v54 = vpop.f32.mrf.mxu1 }
 0x189   : > { %v3531_v23 = vadd.f32 %v1265_v54, %v3482_v35 }
 0x18b   : > { %1329 = vmatmul.f32.gmra.mxu1 %v1084_v0  ;;  %v1088_v0 = vsel %vm1024_vm2, %v1072_v33, %v973_v63 }
 0x18c   : > { %2198 = vmatmul.msk.f32.gmra.mxu0 %vm990_vm0, %v2529_v12 }
 0x18d   : > { %1530 = vmatmul.f32.gmra.mxu2 %v1086_v58 }
 0x18f   : > { %v3564_v21 = vpop.f32.mrf.mxu3 }
 0x190   : > { %v3541_v46 = vpop.f32.mrf.mxu0  ;;  %v1268_v47 = vpop.f32.mrf.mxu1 }
 0x191   : > { %v3544_v39 = vadd.f32 %v1268_v47, %v3482_v35 }
 0x193   : > { %1332 = vmatmul.f32.gmra.mxu1 %v1085_v30 }
 0x194   : > { %2199 = vmatmul.msk.f32.gmra.mxu0 %vm990_vm0, %v2530_v17 }
 0x195   : > { %1533 = vmatmul.f32.gmra.mxu2 %v1087_v13 }
 0x197   : > { %v3573_v30 = vpop.f32.mrf.mxu3 }
 0x198   : > { %v3554_v25 = vpop.f32.mrf.mxu0  ;;  %v1271_v14 = vpop.f32.mrf.mxu1 }
 0x199   : > { %v3557_v34 = vadd.f32 %v1271_v14, %v3482_v35 }
 0x19b   : > { %1335 = vmatmul.f32.gmra.mxu1 %v1086_v58 }
 0x19c   : > { %2200 = vmatmul.msk.f32.gmra.mxu0 %vm990_vm0, %v2531_v18  ;;  %v1434_v18 = vadd.f32 %v1433_v1, %v3581_v45 }
 0x19d   : > { %1536 = vmatmul.f32.gmra.mxu2 %v1088_v0 }
 0x19f   : > { %v3588_v22 = vpop.f32.mrf.mxu3 }
 0x1a0   : > { %v3566_v59 = vpop.f32.mrf.mxu0  ;;  %v1274_v2 = vpop.f32.mrf.mxu1 }
 0x1a1   : > { %v3569_v15 = vadd.f32 %v1274_v2, %v3482_v35 }
 0x1a3   : > { %1338 = vmatmul.f32.gmra.mxu1 %v1087_v13  ;;  %v1431_v13 = vadd.f32 %v1430_v29, %v3581_v45 }
 0x1a4   : > { %2201 = vmatmul.msk.f32.gmra.mxu0 %vm990_vm0, %v2532_v55 }
 0x1a7   : > { %v1492_v36 = vpop.f32.mrf.mxu2  ;;  %v3599_v14 = vpop.f32.mrf.mxu3 }
 0x1a8   : > { %v1277_v40 = vpop.f32.mrf.mxu1  ;;  %v1493_v54 = vadd.f32 %v1492_v36, %v1428_v26  ;;  %v1239_v36 = vadd.f32 %v3515_v3, %v3482_v35  ;;  %v1437_v3 = vadd.f32 %v3564_v21, %v3581_v45 }
 0x1a9   : > { %v3576_v42 = vadd.f32 %v1277_v40, %v3482_v35  ;;  %v3578_v38 = vpop.f32.mrf.mxu0 }
 0x1ab   : > { %1341 = vmatmul.f32.gmra.mxu1 %v1088_v0 }
 0x1b0   : > { %v1495_v58 = vpop.f32.mrf.mxu2  ;;  %v1297_v6 = vpop.f32.mrf.mxu1 }
 0x1b1   : > { %v1298_v12 = vadd.f32 %v1297_v6, %v1233_v48  ;;  %v1557_v50 = vpop.f32.mrf.mxu0  ;;  %v1496_v37 = vadd.f32 %v1495_v58, %v1431_v13 }
 0x1b2   : > { %v1558_v52 = vadd.f32 %v1557_v50, %v1493_v54 }
 0x1b3   : > { %v1363_v43 = vadd.f32 %v3409_v61, %v1298_v12 }
 0x1b4   : > { %v1606_v47 = vmax.f32 %v1558_v52, 0.0 }
 0x1b5   : > { %v1605_v56 = vmax.f32 %v1363_v43, 0.0 }
 0x1b6   : > { %1638 = vst [vmem:[%s3592_s15 + $0x8] sm:$0xff] %v1606_v47  ;;  %v1712_v2 = vmul.f32 %v1606_v47, %v1606_v47 }
 0x1b7   : > { %1637 = vst [vmem:[%s3592_s15] sm:$0xff] %v1605_v56  ;;  %v1711_v40 = vmul.f32 %v1605_v56, %v1605_v56 }
 0x1b8   : > { %v1498_v17 = vpop.f32.mrf.mxu2  ;;  %v1300_v20 = vpop.f32.mrf.mxu1 }
 0x1b9   : > { %v1301_v62 = vadd.f32 %v1300_v20, %v1236_v28  ;;  %v1560_v61 = vpop.f32.mrf.mxu0  ;;  %v1499_v54 = vadd.f32 %v1498_v17, %v1434_v18  ;;  %v3612_v17 = vpop.f32.mrf.mxu3 }
 0x1ba   : > { %v1561_v33 = vadd.f32 %v1560_v61, %v1496_v37  ;;  %v1242_v37 = vadd.f32 %v3528_v49, %v3482_v35  ;;  %v1440_v49 = vadd.f32 %v3573_v30, %v3581_v45 }
 0x1bb   : > { %v1366_v63 = vadd.f32 %v3424_v5, %v1301_v62 }
 0x1bc   : > { %v1608_v29 = vmax.f32 %v1561_v33, 0.0 }
 0x1bd   : > { %v1607_v0 = vmax.f32 %v1366_v63, 0.0 }
 0x1be   : > { %1640 = vst [vmem:[%s3592_s15 + $0x18] sm:$0xff] %v1608_v29  ;;  %v1690_v55 = vadd.f32 %v1608_v29, %v1606_v47  ;;  %v1714_v16 = vmul.f32 %v1608_v29, %v1608_v29 }
 0x1bf   : > { %1639 = vst [vmem:[%s3592_s15 + $0x10] sm:$0xff] %v1607_v0  ;;  %v1669_v26 = vadd.f32 %v1607_v0, %v1605_v56  ;;  %v1713_v48 = vmul.f32 %v1607_v0, %v1607_v0 }
 0x1c0   : > { %v1764_v5 = vadd.f32 %v1714_v16, %v1712_v2  ;;  %v1501_v58 = vpop.f32.mrf.mxu2  ;;  %v1303_v6 = vpop.f32.mrf.mxu1 }
 0x1c1   : > { %v1743_v12 = vadd.f32 %v1713_v48, %v1711_v40  ;;  %v1304_v50 = vadd.f32 %v1303_v6, %v1239_v36  ;;  %v1563_v1 = vpop.f32.mrf.mxu0  ;;  %v1502_v61 = vadd.f32 %v1501_v58, %v1437_v3 }
 0x1c2   : > { %v1564_v52 = vadd.f32 %v1563_v1, %v1499_v54 }
 0x1c3   : > { %v1369_v43 = vadd.f32 %v3436_v8, %v1304_v50 }
 0x1c4   : > { %v1610_v47 = vmax.f32 %v1564_v52, 0.0 }
 0x1c5   : > { %v1609_v13 = vmax.f32 %v1369_v43, 0.0 }
 0x1c6   : > { %1642 = vst [vmem:[%s3592_s15 + $0x28] sm:$0xff] %v1610_v47  ;;  %v1691_v28 = vadd.f32 %v1690_v55, %v1610_v47  ;;  %v1716_v56 = vmul.f32 %v1610_v47, %v1610_v47 }
 0x1c7   : > { %1641 = vst [vmem:[%s3592_s15 + $0x20] sm:$0xff] %v1609_v13  ;;  %v1670_v20 = vadd.f32 %v1669_v26, %v1609_v13  ;;  %v1715_v62 = vmul.f32 %v1609_v13, %v1609_v13  ;;  %v1245_v26 = vadd.f32 %v3541_v46, %v3482_v35  ;;  %v1443_v46 = vadd.f32 %v3588_v22, %v3581_v45 }
 0x1c8   : > { %v1765_v8 = vadd.f32 %v1764_v5, %v1716_v56  ;;  %v1504_v33 = vpop.f32.mrf.mxu2  ;;  %v1306_v63 = vpop.f32.mrf.mxu1  ;;  %v1248_v56 = vadd.f32 %v3554_v25, %v3482_v35 }
 0x1c9   : > { %v1744_v29 = vadd.f32 %v1743_v12, %v1715_v62  ;;  %v1307_v0 = vadd.f32 %v1306_v63, %v1242_v37  ;;  %v1566_v21 = vpop.f32.mrf.mxu0  ;;  %v1505_v5 = vadd.f32 %v1504_v33, %v1440_v49  ;;  %v1451_v12 = vpop.f32.mrf.mxu3 }
 0x1ca   : > { %v1567_v18 = vadd.f32 %v1566_v21, %v1502_v61 }
 0x1cb   : > { %v1372_v2 = vadd.f32 %v3452_v53, %v1307_v0 }
 0x1cc   : > { %v1612_v55 = vmax.f32 %v1567_v18, 0.0 }
 0x1cd   : > { %v1611_v16 = vmax.f32 %v1372_v2, 0.0  ;;  %v1446_v2 = vadd.f32 %v3599_v14, %v3581_v45 }
 0x1ce   : > { %1644 = vst [vmem:[%s3592_s15 + $0x38] sm:$0xff] %v1612_v55  ;;  %v1692_v36 = vadd.f32 %v1691_v28, %v1612_v55  ;;  %v1718_v40 = vmul.f32 %v1612_v55, %v1612_v55  ;;  %v1251_v55 = vadd.f32 %v3566_v59, %v3482_v35  ;;  %v1254_v59 = vadd.f32 %v3578_v38, %v3482_v35 }
 0x1cf   : > { %1643 = vst [vmem:[%s3592_s15 + $0x30] sm:$0xff] %v1611_v16  ;;  %v1671_v48 = vadd.f32 %v1670_v20, %v1611_v16  ;;  %v1717_v54 = vmul.f32 %v1611_v16, %v1611_v16 }
 0x1d0   : > { %v1766_v58 = vadd.f32 %v1765_v8, %v1718_v40  ;;  %v1507_v6 = vpop.f32.mrf.mxu2  ;;  %v1309_v53 = vpop.f32.mrf.mxu1 }
 0x1d1   : > { %v1745_v50 = vadd.f32 %v1744_v29, %v1717_v54  ;;  %v1310_v1 = vadd.f32 %v1309_v53, %v1245_v26  ;;  %v1569_v52 = vpop.f32.mrf.mxu0  ;;  %v1508_v62 = vadd.f32 %v1507_v6, %v1443_v46  ;;  %v1454_v0 = vpop.f32.mrf.mxu3 }
 0x1d2   : > { %v1570_v30 = vadd.f32 %v1569_v52, %v1505_v5 }
 0x1d3   : > { %v1375_v43 = vadd.f32 %v3473_v24, %v1310_v1 }
 0x1d4   : > { %v1614_v47 = vmax.f32 %v1570_v30, 0.0 }
 0x1d5   : > { %v1613_v13 = vmax.f32 %v1375_v43, 0.0 }
 0x1d6   : > { %1646 = vst [vmem:[%s3592_s15 + $0x48] sm:$0xff] %v1614_v47  ;;  %v3626_v3 = vadd.f32 %v1692_v36, %v1614_v47  ;;  %v1720_v28 = vmul.f32 %v1614_v47, %v1614_v47 }
 0x1d7   : > { %1645 = vst [vmem:[%s3592_s15 + $0x40] sm:$0xff] %v1613_v13  ;;  %v1672_v37 = vadd.f32 %v1671_v48, %v1613_v13  ;;  %v1719_v20 = vmul.f32 %v1613_v13, %v1613_v13 }
 0x1d8   : > { %v3631_v61 = vadd.f32 %v1766_v58, %v1720_v28  ;;  %v1510_v24 = vpop.f32.mrf.mxu2  ;;  %v1312_v8 = vpop.f32.mrf.mxu1  ;;  %v1449_v58 = vadd.f32 %v3612_v17, %v3581_v45  ;;  %v1452_v17 = vadd.f32 %v1451_v12, %v3581_v45 }
 0x1d9   : > { %v1746_v33 = vadd.f32 %v1745_v50, %v1719_v20  ;;  %v1313_v63 = vadd.f32 %v1312_v8, %v1248_v56  ;;  %v1572_v22 = vpop.f32.mrf.mxu0  ;;  %v1511_v16 = vadd.f32 %v1510_v24, %v1446_v2  ;;  %v1457_v5 = vpop.f32.mrf.mxu3 }
 0x1da   : > { %v1573_v29 = vadd.f32 %v1572_v22, %v1508_v62 }
 0x1db   : > { %v1378_v21 = vadd.f32 %v3497_v32, %v1313_v63 }
 0x1dc   : > { %v3634_v18 = vmax.f32 %v1573_v29, 0.0 }
 0x1dd   : > { %v1615_v25 = vmax.f32 %v1378_v21, 0.0 }
 0x1de   : > { %1648 = vst [vmem:[%s3592_s15 + $0x58] sm:$0xff] %v3634_v18 }
 0x1df   : > { %1647 = vst [vmem:[%s3592_s15 + $0x50] sm:$0xff] %v1615_v25  ;;  %v1721_v46 = vmul.f32 %v1615_v25, %v1615_v25  ;;  %v1673_v56 = vadd.f32 %v1672_v37, %v1615_v25 }
 0x1e0   : > { %v1513_v49 = vpop.f32.mrf.mxu2  ;;  %v1315_v36 = vpop.f32.mrf.mxu1 }
 0x1e1   : > { %v1316_v40 = vadd.f32 %v1315_v36, %v1251_v55  ;;  %v1575_v26 = vpop.f32.mrf.mxu0  ;;  %v1514_v6 = vadd.f32 %v1513_v49, %v1449_v58  ;;  %v1460_v13 = vpop.f32.mrf.mxu3  ;;  %v1747_v8 = vadd.f32 %v1746_v33, %v1721_v46 }
 0x1e2   : > { %v1576_v32 = vadd.f32 %v1575_v26, %v1511_v16  ;;  %v1455_v16 = vadd.f32 %v1454_v0, %v3581_v45 }
 0x1e3   : > { %v1381_v48 = vadd.f32 %v3513_v9, %v1316_v40 }
 0x1e4   : > { %v3644_v54 = vmax.f32 %v1576_v32, 0.0 }
 0x1e5   : > { %v1617_v14 = vmax.f32 %v1381_v48, 0.0 }
 0x1e6   : > { %1650 = vst [vmem:[%s3592_s15 + $0x68] sm:$0xff] %v3644_v54 }
 0x1e7   : > { %1649 = vst [vmem:[%s3592_s15 + $0x60] sm:$0xff] %v1617_v14  ;;  %v1723_v20 = vmul.f32 %v1617_v14, %v1617_v14  ;;  %v1674_v63 = vadd.f32 %v1673_v56, %v1617_v14 }
 0x1e8   : > { %v1516_v53 = vpop.f32.mrf.mxu2  ;;  %v1318_v50 = vpop.f32.mrf.mxu1 }
 0x1e9   : > { %v1319_v1 = vadd.f32 %v1318_v50, %v1254_v59  ;;  %v1578_v9 = vpop.f32.mrf.mxu0  ;;  %v1517_v35 = vadd.f32 %v1516_v53, %v1452_v17  ;;  %v1748_v21 = vadd.f32 %v1747_v8, %v1723_v20  ;;  %v1463_v40 = vpop.f32.mrf.mxu3  ;;  %v1458_v59 = vadd.f32 %v1457_v5, %v3581_v45 }
 0x1ea   : > { %v1579_v52 = vadd.f32 %v1578_v9, %v1514_v6 }
 0x1eb   : > { %v1384_v30 = vadd.f32 %v3533_v57, %v1319_v1 }
 0x1ec   : > { %v3654_v43 = vmax.f32 %v1579_v52, 0.0 }
 0x1ed   : > { %v1619_v47 = vmax.f32 %v1384_v30, 0.0 }
 0x1ee   : > { %1652 = vst [vmem:[%s3592_s15 + $0x78] sm:$0xff] %v3654_v43 }
 0x1ef   : > { %1651 = vst [vmem:[%s3592_s15 + $0x70] sm:$0xff] %v1619_v47  ;;  %v1725_v22 = vmul.f32 %v1619_v47, %v1619_v47  ;;  %v1675_v2 = vadd.f32 %v1674_v63, %v1619_v47 }
 0x1f0   : > { %v1519_v38 = vpop.f32.mrf.mxu2  ;;  %v1321_v28 = vpop.f32.mrf.mxu1 }
 0x1f1   : > { %v1322_v62 = vadd.f32 %v1321_v28, %v3488_v60  ;;  %v1581_v57 = vpop.f32.mrf.mxu0  ;;  %v1749_v37 = vadd.f32 %v1748_v21, %v1725_v22  ;;  %v1520_v33 = vadd.f32 %v1519_v38, %v1455_v16  ;;  %v1466_v47 = vpop.f32.mrf.mxu3 }
 0x1f2   : > { %v1582_v24 = vadd.f32 %v1581_v57, %v1517_v35  ;;  %v1461_v35 = vadd.f32 %v1460_v13, %v3581_v45 }
 0x1f3   : > { %v1387_v12 = vadd.f32 %v3547_v19, %v1322_v62 }
 0x1f4   : > { %v3662_v29 = vmax.f32 %v1582_v24, 0.0 }
 0x1f5   : > { %v1621_v55 = vmax.f32 %v1387_v12, 0.0  ;;  %v1464_v12 = vadd.f32 %v1463_v40, %v3581_v45  ;;  %v1724_v40 = vmul.f32 %v3644_v54, %v3644_v54 }
 0x1f6   : > { %1654 = vst [vmem:[%s3592_s15 + $0x88] sm:$0xff] %v3662_v29 }
 0x1f7   : > { %1653 = vst [vmem:[%s3592_s15 + $0x80] sm:$0xff] %v1621_v55  ;;  %v1676_v60 = vadd.f32 %v1675_v2, %v1621_v55  ;;  %v1727_v25 = vmul.f32 %v1621_v55, %v1621_v55 }
 0x1f8   : > { %v1522_v49 = vpop.f32.mrf.mxu2  ;;  %v1324_v36 = vpop.f32.mrf.mxu1 }
 0x1f9   : > { %v1750_v19 = vadd.f32 %v1749_v37, %v1727_v25  ;;  %v1325_v26 = vadd.f32 %v1324_v36, %v3505_v31  ;;  %v1584_v32 = vpop.f32.mrf.mxu0  ;;  %v1523_v50 = vadd.f32 %v1522_v49, %v1458_v59  ;;  %v1469_v22 = vpop.f32.mrf.mxu3  ;;  %v1694_v36 = vadd.f32 %v3626_v3, %v3634_v18 }
 0x1fa   : > { %v1585_v48 = vadd.f32 %v1584_v32, %v1520_v33 }
 0x1fb   : > { %v1390_v14 = vadd.f32 %v3562_v4, %v1325_v26 }
 0x1fc   : > { %v3670_v0 = vmax.f32 %v1585_v48, 0.0  ;;  %v1467_v48 = vadd.f32 %v1466_v47, %v3581_v45 }
 0x1fd   : > { %v1623_v58 = vmax.f32 %v1390_v14, 0.0  ;;  %v1726_v14 = vmul.f32 %v3654_v43, %v3654_v43 }
 0x1fe   : > { %1656 = vst [vmem:[%s3592_s15 + $0x98] sm:$0xff] %v3670_v0 }
 0x1ff   : > { %1655 = vst [vmem:[%s3592_s15 + $0x90] sm:$0xff] %v1623_v58  ;;  %v1677_v6 = vadd.f32 %v1676_v60, %v1623_v58  ;;  %v1729_v53 = vmul.f32 %v1623_v58, %v1623_v58 }
 0x200   : > { %v1525_v1 = vpop.f32.mrf.mxu2  ;;  %v1327_v9 = vpop.f32.mrf.mxu1 }
 0x201   : > { %v1751_v31 = vadd.f32 %v1750_v19, %v1729_v53  ;;  %v1328_v52 = vadd.f32 %v1327_v9, %v3520_v41  ;;  %v1587_v30 = vpop.f32.mrf.mxu0  ;;  %v1526_v56 = vadd.f32 %v1525_v1, %v1461_v35  ;;  %v1472_v58 = vpop.f32.mrf.mxu3 }
 0x202   : > { %v1588_v4 = vadd.f32 %v1587_v30, %v1523_v50  ;;  %v1730_v30 = vmul.f32 %v3670_v0, %v3670_v0 }
 0x203   : > { %v1393_v17 = vadd.f32 %v3415_v11, %v1328_v52 }
 0x204   : > { %v3678_v46 = vmax.f32 %v1588_v4, 0.0 }
 0x205   : > { %v1625_v5 = vmax.f32 %v1393_v17, 0.0 }
 0x206   : > { %1658 = vst [vmem:[%s3592_s15 + $0xa8] sm:$0xff] %v3678_v46 }
 0x207   : > { %1657 = vst [vmem:[%s3592_s15 + $0xa0] sm:$0xff] %v1625_v5  ;;  %v1678_v38 = vadd.f32 %v1677_v6, %v1625_v5  ;;  %v1731_v28 = vmul.f32 %v1625_v5, %v1625_v5  ;;  %v1728_v6 = vmul.f32 %v3662_v29, %v3662_v29  ;;  %v1732_v5 = vmul.f32 %v3678_v46, %v3678_v46 }
 0x208   : > { %v1528_v20 = vpop.f32.mrf.mxu2  ;;  %v1330_v41 = vpop.f32.mrf.mxu1 }
 0x209   : > { %v1752_v62 = vadd.f32 %v1751_v31, %v1731_v28  ;;  %v1331_v57 = vadd.f32 %v1330_v41, %v3531_v23  ;;  %v1590_v24 = vpop.f32.mrf.mxu0  ;;  %v1529_v55 = vadd.f32 %v1528_v20, %v1464_v12  ;;  %v1473_v20 = vadd.f32 %v1472_v58, %v3581_v45 }
 0x20a   : > { %v1591_v11 = vadd.f32 %v1590_v24, %v1526_v56 }
 0x20b   : > { %v1396_v8 = vadd.f32 %v3426_v7, %v1331_v57  ;;  %v1722_v7 = vmul.f32 %v3634_v18, %v3634_v18 }
 0x20c   : > { %v1628_v63 = vmax.f32 %v1591_v11, 0.0 }
 0x20d   : > { %v1627_v13 = vmax.f32 %v1396_v8, 0.0  ;;  %v1768_v32 = vadd.f32 %v3631_v61, %v1722_v7 }
 0x20e   : > { %1660 = vst [vmem:[%s3592_s15 + $0xb8] sm:$0xff] %v1628_v63 }
 0x20f   : > { %1659 = vst [vmem:[%s3592_s15 + $0xb0] sm:$0xff] %v1627_v13  ;;  %v1679_v21 = vadd.f32 %v1678_v38, %v1627_v13  ;;  %v1733_v2 = vmul.f32 %v1627_v13, %v1627_v13  ;;  %v1769_v3 = vadd.f32 %v1768_v32, %v1724_v40  ;;  %v1470_v38 = vadd.f32 %v1469_v22, %v3581_v45 }
 0x210   : > { %v1531_v16 = vpop.f32.mrf.mxu2  ;;  %v1333_v37 = vpop.f32.mrf.mxu1 }
 0x211   : > { %v1753_v60 = vadd.f32 %v1752_v62, %v1733_v2  ;;  %v1334_v23 = vadd.f32 %v1333_v37, %v3544_v39  ;;  %v1593_v25 = vpop.f32.mrf.mxu0  ;;  %v1695_v39 = vadd.f32 %v1694_v36, %v3644_v54  ;;  %v1532_v53 = vadd.f32 %v1531_v16, %v1467_v48  ;;  %v1602_v62 = vpop.f32.mrf.mxu3 }
 0x212   : > { %v1594_v33 = vadd.f32 %v1593_v25, %v1529_v55  ;;  %v1770_v31 = vadd.f32 %v1769_v3, %v1726_v14 }
 0x213   : > { %v1399_v49 = vadd.f32 %v3438_v27, %v1334_v23  ;;  %v1696_v18 = vadd.f32 %v1695_v39, %v3654_v43 }
 0x214   : > { %v1630_v19 = vmax.f32 %v1594_v33, 0.0  ;;  %v1771_v47 = vadd.f32 %v1770_v31, %v1728_v6 }
 0x215   : > { %v1629_v26 = vmax.f32 %v1399_v49, 0.0  ;;  %v1697_v52 = vadd.f32 %v1696_v18, %v3662_v29  ;;  %v1734_v29 = vmul.f32 %v1628_v63, %v1628_v63 }
 0x216   : > { %1662 = vst [vmem:[%s3592_s15 + $0xc8] sm:$0xff] %v1630_v19  ;;  %v1772_v28 = vadd.f32 %v1771_v47, %v1730_v30  ;;  %v1736_v24 = vmul.f32 %v1630_v19, %v1630_v19 }
 0x217   : > { %1661 = vst [vmem:[%s3592_s15 + $0xc0] sm:$0xff] %v1629_v26  ;;  %v1680_v27 = vadd.f32 %v1679_v21, %v1629_v26  ;;  %v1735_v59 = vmul.f32 %v1629_v26, %v1629_v26  ;;  %v1698_v17 = vadd.f32 %v1697_v52, %v3670_v0 }
 0x218   : > { %v1534_v61 = vpop.f32.mrf.mxu2  ;;  %v1336_v50 = vpop.f32.mrf.mxu1  ;;  %v1773_v57 = vadd.f32 %v1772_v28, %v1732_v5 }
 0x219   : > { %v1754_v1 = vadd.f32 %v1753_v60, %v1735_v59  ;;  %v1337_v54 = vadd.f32 %v1336_v50, %v3557_v34  ;;  %v1596_v9 = vpop.f32.mrf.mxu0  ;;  %v1699_v56 = vadd.f32 %v1698_v17, %v3678_v46  ;;  %v1535_v11 = vadd.f32 %v1534_v61, %v1470_v38 }
 0x21a   : > { %v1597_v4 = vadd.f32 %v1596_v9, %v1532_v53  ;;  %v1774_v2 = vadd.f32 %v1773_v57, %v1734_v29 }
 0x21b   : > { %v1402_v43 = vadd.f32 %v3455_v10, %v1337_v54  ;;  %v1700_v0 = vadd.f32 %v1699_v56, %v1628_v63 }
 0x21c   : > { %v1632_v35 = vmax.f32 %v1597_v4, 0.0  ;;  %v1775_v63 = vadd.f32 %v1774_v2, %v1736_v24  ;;  %v1835_v24 = vld [vmem:[%s3592_s15] sm:$0xff] (%p2700_p9) }
 0x21d   : > { %v1631_v34 = vmax.f32 %v1402_v43, 0.0  ;;  %v1701_v55 = vadd.f32 %v1700_v0, %v1630_v19  ;;  %1836 = vst [vmem:[%s3744_s7] sm:$0xff] (%p2700_p9), %v1835_v24  ;;  %v1851_v2 = vld [vmem:[%s3592_s15 + $0x40] sm:$0xff] (%p2700_p9) }
 0x21e   : > { %1664 = vst [vmem:[%s3592_s15 + $0xd8] sm:$0xff] %v1632_v35  ;;  %v1738_v45 = vmul.f32 %v1632_v35, %v1632_v35 }
 0x21f   : > { %1663 = vst [vmem:[%s3592_s15 + $0xd0] sm:$0xff] %v1631_v34  ;;  %v1681_v41 = vadd.f32 %v1680_v27, %v1631_v34  ;;  %v1737_v10 = vmul.f32 %v1631_v34, %v1631_v34  ;;  %v1702_v23 = vadd.f32 %v1701_v55, %v1632_v35  ;;  %v1853_v55 = vld [vmem:[%s3592_s15 + $0x48] sm:$0xff] (%p2700_p9) }
 0x220   : > { %v1537_v8 = vpop.f32.mrf.mxu2  ;;  %v1339_v13 = vpop.f32.mrf.mxu1  ;;  %v1776_v49 = vadd.f32 %v1775_v63, %v1738_v45  ;;  %v1855_v45 = vld [vmem:[%s3592_s15 + $0x50] sm:$0xff] (%p2700_p9)  ;;  %1852 = vst [vmem:[%s3744_s7 + $0x200] sm:$0xff] (%p2700_p9), %v1851_v2 }
 0x221   : > { %v1755_v12 = vadd.f32 %v1754_v1, %v1737_v10  ;;  %v1538_v22 = vadd.f32 %v1537_v8, %v1473_v20  ;;  %v1340_v21 = vadd.f32 %v1339_v13, %v3569_v15  ;;  %v1599_v46 = vpop.f32.mrf.mxu0  ;;  %v1839_v8 = vld [vmem:[%s3592_s15 + $0x10] sm:$0xff] (%p2700_p9)  ;;  %v1841_v13 = vld [vmem:[%s3592_s15 + $0x18] sm:$0xff] (%p2700_p9)  ;;  %1854 = vst [vmem:[%s3744_s7 + $0x208] sm:$0xff] (%p2700_p9), %v1853_v55 }
 0x222   : > { %v1600_v16 = vadd.f32 %v1599_v46, %v1535_v11  ;;  %v1837_v11 = vld [vmem:[%s3592_s15 + $0x8] sm:$0xff] (%p2700_p9)  ;;  %1840 = vst [vmem:[%s3744_s7 + $0x80] sm:$0xff] (%p2700_p9), %v1839_v8  ;;  %v1849_v46 = vld [vmem:[%s3592_s15 + $0x38] sm:$0xff] (%p2700_p9)  ;;  %v1863_v63 = vld [vmem:[%s3592_s15 + $0x70] sm:$0xff] (%p2700_p9) }
 0x223   : > { %v1405_v37 = vadd.f32 %v3479_v51, %v1340_v21  ;;  %v1603_v60 = vadd.f32 %v1602_v62, %v1538_v22  ;;  %1838 = vst [vmem:[%s3744_s7 + $0x8] sm:$0xff] (%p2700_p9), %v1837_v11  ;;  %v1845_v22 = vld [vmem:[%s3592_s15 + $0x28] sm:$0xff] (%p2700_p9)  ;;  %v1847_v21 = vld [vmem:[%s3592_s15 + $0x30] sm:$0xff] (%p2700_p9) }
 0x224   : > { %v1634_v25 = vmax.f32 %v1600_v16, 0.0  ;;  %1842 = vst [vmem:[%s3744_s7 + $0x88] sm:$0xff] (%p2700_p9), %v1841_v13  ;;  %v1857_v16 = vld [vmem:[%s3592_s15 + $0x58] sm:$0xff] (%p2700_p9) }
 0x225   : > { %v1633_v7 = vmax.f32 %v1405_v37, 0.0  ;;  %v1636_v33 = vmax.f32 %v1603_v60, 0.0  ;;  %1846 = vst [vmem:[%s3744_s7 + $0x108] sm:$0xff] (%p2700_p9), %v1845_v22  ;;  %v1859_v37 = vld [vmem:[%s3592_s15 + $0x60] sm:$0xff] (%p2700_p9)  ;;  %v1861_v60 = vld [vmem:[%s3592_s15 + $0x68] sm:$0xff] (%p2700_p9) }
 0x226   : > { %1666 = vst [vmem:[%s3592_s15 + $0xe8] sm:$0xff] %v1634_v25  ;;  %v1703_v36 = vadd.f32 %v1702_v23, %v1634_v25  ;;  %v1740_v40 = vmul.f32 %v1634_v25, %v1634_v25  ;;  %v1865_v23 = vld [vmem:[%s3592_s15 + $0x78] sm:$0xff] (%p2700_p9)  ;;  %v1867_v25 = vld [vmem:[%s3592_s15 + $0x80] sm:$0xff] (%p2700_p9) }
 0x227   : > { %1665 = vst [vmem:[%s3592_s15 + $0xe0] sm:$0xff] %v1633_v7  ;;  %v1682_v15 = vadd.f32 %v1681_v41, %v1633_v7  ;;  %v1739_v26 = vmul.f32 %v1633_v7, %v1633_v7  ;;  %v1742_v48 = vmul.f32 %v1636_v33, %v1636_v33  ;;  %v1869_v7 = vld [vmem:[%s3592_s15 + $0x88] sm:$0xff] (%p2700_p9) }
 0x228   : > { %v1777_v19 = vadd.f32 %v1776_v49, %v1740_v40  ;;  %1668 = vst [vmem:[%s3592_s15 + $0xf8] sm:$0xff] %v1636_v33  ;;  %v1704_v32 = vadd.f32 %v1703_v36, %v1636_v33  ;;  %v1342_v39 = vpop.f32.mrf.mxu1  ;;  %v1871_v33 = vld [vmem:[%s3592_s15 + $0x90] sm:$0xff] (%p2700_p9)  ;;  %v1873_v49 = vld [vmem:[%s3592_s15 + $0x98] sm:$0xff] (%p2700_p9)  ;;  %v1875_v36 = vld [vmem:[%s3592_s15 + $0xa0] sm:$0xff] (%p2700_p9) }
 0x229   : > { %v1756_v51 = vadd.f32 %v1755_v12, %v1739_v26  ;;  %v1343_v14 = vadd.f32 %v1342_v39, %v3576_v42  ;;  %v1843_v12 = vld [vmem:[%s3592_s15 + $0x20] sm:$0xff] (%p2700_p9)  ;;  %1848 = vst [vmem:[%s3744_s7 + $0x180] sm:$0xff] (%p2700_p9), %v1847_v21  ;;  %v1877_v40 = vld [vmem:[%s3592_s15 + $0xa8] sm:$0xff] (%p2700_p9)  ;;  %v1881_v26 = vld [vmem:[%s3592_s15 + $0xb8] sm:$0xff] (%p2700_p9) }
 0x22a   : > { %v1705_v58 = vrot.slane %v1704_v32, 4  ;;  %v1778_v27 = vadd.f32 %v1777_v19, %v1742_v48  ;;  %1844 = vst [vmem:[%s3744_s7 + $0x100] sm:$0xff] (%p2700_p9), %v1843_v12  ;;  %v1883_v19 = vld [vmem:[%s3592_s15 + $0xc0] sm:$0xff] (%p2700_p9)  ;;  %v1887_v48 = vld [vmem:[%s3592_s15 + $0xd0] sm:$0xff] (%p2700_p9)  ;;  %v1889_v39 = vld [vmem:[%s3592_s15 + $0xd8] sm:$0xff] (%p2700_p9) }
 0x22b   : > { %v1408_v59 = vadd.f32 %v3499_v44, %v1343_v14  ;;  %1850 = vst [vmem:[%s3744_s7 + $0x188] sm:$0xff] (%p2700_p9), %v1849_v46 }
 0x22c   : > { %v1706_v3 = vadd.f32 %v1705_v58, %v1704_v32  ;;  %v1779_v18 = vrot.slane %v1778_v27, 4  ;;  %1856 = vst [vmem:[%s3744_s7 + $0x280] sm:$0xff] (%p2700_p9), %v1855_v45  ;;  %v1885_v32 = vld [vmem:[%s3592_s15 + $0xc8] sm:$0xff] (%p2700_p9) }
 0x22d   : > { %v1635_v6 = vmax.f32 %v1408_v59, 0.0  ;;  %1858 = vst [vmem:[%s3744_s7 + $0x288] sm:$0xff] (%p2700_p9), %v1857_v16  ;;  %v1893_v14 = vld [vmem:[%s3592_s15 + $0xe8] sm:$0xff] (%p2700_p9) }
 0x22e   : > { %v1707_v53 = vrot.slane %v1706_v3, 2  ;;  %v1780_v61 = vadd.f32 %v1779_v18, %v1778_v27  ;;  %1860 = vst [vmem:[%s3744_s7 + $0x300] sm:$0xff] (%p2700_p9), %v1859_v37 }
 0x22f   : > { %1667 = vst [vmem:[%s3592_s15 + $0xf0] sm:$0xff] %v1635_v6  ;;  %v1683_v50 = vadd.f32 %v1682_v15, %v1635_v6  ;;  %v1741_v1 = vmul.f32 %v1635_v6, %v1635_v6  ;;  %v1879_v15 = vld [vmem:[%s3592_s15 + $0xb0] sm:$0xff] (%p2700_p9)  ;;  %v1897_v27 = vld [vmem:[%s3592_s15 + $0xf8] sm:$0xff] (%p2700_p9) }
 0x230   : > { %v1708_v54 = vadd.f32 %v1707_v53, %v1706_v3  ;;  %v1781_v9 = vrot.slane %v1780_v61, 2  ;;  %1862 = vst [vmem:[%s3744_s7 + $0x308] sm:$0xff] (%p2700_p9), %v1861_v60 }
 0x231   : > { %v1684_v31 = vrot.slane %v1683_v50, 4  ;;  %v1757_v52 = vadd.f32 %v1756_v51, %v1741_v1  ;;  %1864 = vst [vmem:[%s3744_s7 + $0x380] sm:$0xff] (%p2700_p9), %v1863_v63  ;;  %v1891_v51 = vld [vmem:[%s3592_s15 + $0xe0] sm:$0xff] (%p2700_p9) }
 0x232   : > { %v1709_v30 = vrot.slane %v1708_v54, 1  ;;  %v1782_v42 = vadd.f32 %v1781_v9, %v1780_v61  ;;  %1866 = vst [vmem:[%s3744_s7 + $0x388] sm:$0xff] (%p2700_p9), %v1865_v23 }
 0x233   : > { %v1685_v4 = vadd.f32 %v1684_v31, %v1683_v50  ;;  %v1758_v43 = vrot.slane %v1757_v52, 4  ;;  %1868 = vst [vmem:[%s3744_s7 + $0x400] sm:$0xff] (%p2700_p9), %v1867_v25 }
 0x234   : > { %v1783_v47 = vrot.slane %v1782_v42, 1  ;;  %v1710_v5 = vadd.f32 %v1709_v30, %v1708_v54  ;;  %1870 = vst [vmem:[%s3744_s7 + $0x408] sm:$0xff] (%p2700_p9), %v1869_v7 }
 0x235   : > { %v1686_v44 = vrot.slane %v1685_v4, 2  ;;  %v1759_v17 = vadd.f32 %v1758_v43, %v1757_v52  ;;  %1872 = vst [vmem:[%s3744_s7 + $0x480] sm:$0xff] (%p2700_p9), %v1871_v33 }
 0x236   : > { %v1784_v35 = vadd.f32 %v1783_v47, %v1782_v42  ;;  %1874 = vst [vmem:[%s3744_s7 + $0x488] sm:$0xff] (%p2700_p9), %v1873_v49  ;;  %v1895_v58 = vld [vmem:[%s3592_s15 + $0xf0] sm:$0xff] (%p2700_p9) }
 0x237   : > { %v1687_v34 = vadd.f32 %v1686_v44, %v1685_v4  ;;  %v1760_v38 = vrot.slane %v1759_v17, 2  ;;  %1876 = vst [vmem:[%s3744_s7 + $0x500] sm:$0xff] (%p2700_p9), %v1875_v36 }
 0x238   : > { %v1787_v28 = vsel %vm1785_vm3, %v1710_v5, %v1784_v35  ;;  %1878 = vst [vmem:[%s3744_s7 + $0x508] sm:$0xff] (%p2700_p9), %v1877_v40 }
 0x239   : > { %v1688_v56 = vrot.slane %v1687_v34, 1  ;;  %v1761_v29 = vadd.f32 %v1760_v38, %v1759_v17  ;;  %v1790_v62 = vrot.slane %v1787_v28, 6  ;;  %1880 = vst [vmem:[%s3744_s7 + $0x580] sm:$0xff] (%p2700_p9), %v1879_v15 }
 0x23a   : > { %1882 = vst [vmem:[%s3744_s7 + $0x588] sm:$0xff] (%p2700_p9), %v1881_v26 }
 0x23b   : > { %v1762_v20 = vrot.slane %v1761_v29, 1  ;;  %v1689_v41 = vadd.f32 %v1688_v56, %v1687_v34  ;;  %1884 = vst [vmem:[%s3744_s7 + $0x600] sm:$0xff] (%p2700_p9), %v1883_v19 }
 0x23c   : > { %1886 = vst [vmem:[%s3744_s7 + $0x608] sm:$0xff] (%p2700_p9), %v1885_v32 }
 0x23d   : > { %v1763_v10 = vadd.f32 %v1762_v20, %v1761_v29  ;;  %1814 = sbr.rel (!%p2700_p9) target bundleno = 580 (0x244), region = 59  ;;  %1888 = vst [vmem:[%s3744_s7 + $0x680] sm:$0xff] (%p2700_p9), %v1887_v48 }
 0x23e   : > { %1890 = vst [vmem:[%s3744_s7 + $0x688] sm:$0xff] (%p2700_p9), %v1889_v39 }
 0x23f   : > { %v1786_v57 = vsel %vm1785_vm3, %v1689_v41, %v1763_v10  ;;  %1892 = vst [vmem:[%s3744_s7 + $0x700] sm:$0xff] (%p2700_p9), %v1891_v51 }
 0x240   : > { %v1792_v0 = vsel %vm1791_vm4, %v1786_v57, %v1790_v62  ;;  %1894 = vst [vmem:[%s3744_s7 + $0x708] sm:$0xff] (%p2700_p9), %v1893_v14 }
 0x241   : > { %1794 = vst [vmem:[%s451_s27] sm:$0xf] %v1792_v0 }
 0x242   : > { %1896 = vst [vmem:[%s3744_s7 + $0x780] sm:$0xff] %v1895_v58 }
 0x243   : > { %1898 = vst [vmem:[%s3744_s7 + $0x788] sm:$0xff] %v1897_v27 }
 0x244 PF: > { %s15_s23 = sadd.s32 1, %s2603_s23   ;;  %s3841_s15 = smov %s2575_s16 }
 0x245   : > { %p12_p2 = scmp.ge.s32.totalorder %s15_s23, 18   ;;  %s3842_s16 = smov %s2705_s8 }
 0x246   : > { %s3843_s17 = smov %s2583_s18  ;;  %s3844_s18 = smov %s2694_s30 }
 0x247   : > { %s3845_s19 = smov %s2595_s21  ;;  %s3846_s20 = smov %s2599_s22 }
 0x248   : > { %s3847_s21 = smov %s3850_s25  ;;  %s3848_s22 = smov %s3854_s26 }
 0x249   :  { %14 = sbr.rel (!%p12_p2) target bundleno = 5 (0x5), region = 134 }

// kernel: squeeze.22
= control target key start
LH: loop header
LB: loop body
LE: loop exit
PB: predicated region body
PF: predicated region fallthrough
CT: control target
= control target key end

     0   :  { %vm3_vm0 = vcmask 261120   ;;  %s63_s8 = smov 64   ;;  %s64_s9 = smov 96   ;;  %s114_s0 = inlined_call_operand.vmem [shape: f32[2048], index: 0, kind: input, shape index: {}]   ;;  %s115_s1 = inlined_call_operand.vmem [shape: f32[64,32], index: 1, kind: output, shape index: {}]  }
   0x1   :  { %v23_v0 = vld [vmem:[%s114_s0] sm:$0xff]   ;;  %v55_v1 = vld [vmem:[%s114_s0 + $0x8] sm:$0xff]   ;;  %s65_s13 = smov 32  }
   0x2   :  { %24 = vrot.lane.b32.xlu1 %v23_v0, %s63_s8  ;;  %11 = vrot.lane.b32.xlu0 %v23_v0, %s64_s9  ;;  %4 = vst.msk [vmem:[%s115_s1] ss:$4 sm:$0xff] %vm3_vm0, %v23_v0  }
   0x3   :  { %37 = vrot.lane.b32.xlu2 %v23_v0, %s65_s13  ;;  %50 = vst.msk [vmem:[%s115_s1 + $0x20] ss:$4 sm:$0xff] %vm3_vm0, %v55_v1  }
   0xa   :  { %31 = vrot.lane.b32.xlu1 %v55_v1, %s63_s8  ;;  %18 = vrot.lane.b32.xlu0 %v55_v1, %s64_s9 }
   0xb   :  { %44 = vrot.lane.b32.xlu2 %v55_v1, %s65_s13 }
  0x5d   :  { %v38_v2 = vpop.permute.xlu2 %37  }
  0x5e   :  { %57 = vst.msk [vmem:[%s115_s1 + $0x3] ss:$4 sm:$0xff] %vm3_vm0, %v38_v2  }
  0x65   :  { %v45_v3 = vpop.permute.xlu2 %44  }
  0x66   :  { %59 = vst.msk [vmem:[%s115_s1 + $0x23] ss:$4 sm:$0xff] %vm3_vm0, %v45_v3  }
  0x74   :  { %v25_v4 = vpop.permute.xlu1 %24   ;;  %v12_v5 = vpop.permute.xlu0 %11  }
  0x75   :  { %54 = vst.msk [vmem:[%s115_s1 + $0x2] ss:$4 sm:$0xff] %vm3_vm0, %v25_v4  }
  0x76   :  { %51 = vst.msk [vmem:[%s115_s1 + $0x1] ss:$4 sm:$0xff] %vm3_vm0, %v12_v5  }
  0x7c   :  { %v32_v6 = vpop.permute.xlu1 %31   ;;  %v19_v7 = vpop.permute.xlu0 %18  }
  0x7d   :  { %56 = vst.msk [vmem:[%s115_s1 + $0x22] ss:$4 sm:$0xff] %vm3_vm0, %v32_v6  }
  0x7e   :  { %53 = vst.msk [vmem:[%s115_s1 + $0x21] ss:$4 sm:$0xff] %vm3_vm0, %v19_v7  }

// kernel: tile.144
= control target key start
LH: loop header
LB: loop body
LE: loop exit
PB: predicated region body
PF: predicated region fallthrough
CT: control target
= control target key end

     0   :  { %s182_s10 = smov 96   ;;  %s183_s11 = smov 64   ;;  %vm3_vm0 = vcmask 261120   ;;  %vm17_vm1 = vcmask 1048320   ;;  %vm33_vm2 = vcmask 785920   ;;  %vm49_vm3 = vcmask 523520   ;;  %s275_s0 = inlined_call_operand.vmem [shape: f32[64,32], index: 0, kind: input, shape index: {}]   ;;  %s276_s1 = inlined_call_operand.vmem [shape: f32[1,1,1,2048], index: 1, kind: output, shape index: {}]  }
   0x1   :  { %v158_v0 = vld [vmem:[%s275_s0 + $0x3] ss:$4 sm:$0xff]   ;;  %v160_v1 = vld [vmem:[%s275_s0 + $0x2] ss:$4 sm:$0xff]   ;;  %v162_v2 = vld [vmem:[%s275_s0 + $0x1] ss:$4 sm:$0xff]  }
   0x2   :  { %15 = vrot.lane.b32.xlu0 %v158_v0, %s182_s10  ;;  %31 = vrot.lane.b32.xlu1 %v160_v1, %s183_s11  ;;  %s184_s14 = smov 32   ;;  %v159_v3 = vld [vmem:[%s275_s0 + $0x23] ss:$4 sm:$0xff]   ;;  %v161_v4 = vld [vmem:[%s275_s0 + $0x22] ss:$4 sm:$0xff]  }
   0x3   :  { %47 = vrot.lane.b32.xlu2 %v162_v2, %s184_s14  ;;  %v163_v5 = vld [vmem:[%s275_s0 + $0x21] ss:$4 sm:$0xff]   ;;  %v2_v6 = vld [vmem:[%s275_s0] ss:$4 sm:$0xff]  }
   0x4   :  { %4 = vst.msk [vmem:[#allocation0] ss:$8 sm:$0xf] %vm3_vm0, %v2_v6   ;;  %v157_v8 = vld [vmem:[%s275_s0 + $0x20] ss:$4 sm:$0xff]  }
   0x5   :  { %5 = vst.msk [vmem:[#allocation0] ss:$8 sm:$0xf0] %vm3_vm0, %v2_v6  }
   0x6   :  { %10 = vst.msk [vmem:[#allocation0 + $0x40] ss:$8 sm:$0xf] %vm3_vm0, %v157_v8  }
   0x7   :  { %12 = vst.msk [vmem:[#allocation0 + $0x40] ss:$8 sm:$0xf0] %vm3_vm0, %v157_v8  }
   0xa   :  { %22 = vrot.lane.b32.xlu0 %v159_v3, %s182_s10  ;;  %38 = vrot.lane.b32.xlu1 %v161_v4, %s183_s11 }
   0xb   :  { %54 = vrot.lane.b32.xlu2 %v163_v5, %s184_s14 }
  0x5d   :  { %v48_v7 = vpop.permute.xlu2 %47  }
  0x65   :  { %v55_v9 = vpop.permute.xlu2 %54  }
  0x74   :  { %v16_v10 = vpop.permute.xlu0 %15   ;;  %v32_v11 = vpop.permute.xlu1 %31  }
  0x75   :  { %18 = vst.msk [vmem:[#allocation0] ss:$8 sm:$0xf] %vm17_vm1, %v16_v10  }
  0x76   :  { %19 = vst.msk [vmem:[#allocation0] ss:$8 sm:$0xf0] %vm17_vm1, %v16_v10  }
  0x77   :  { %34 = vst.msk [vmem:[#allocation0] ss:$8 sm:$0xf] %vm33_vm2, %v32_v11  }
  0x78   :  { %35 = vst.msk [vmem:[#allocation0] ss:$8 sm:$0xf0] %vm33_vm2, %v32_v11  }
  0x79   :  { %50 = vst.msk [vmem:[#allocation0] ss:$8 sm:$0xf] %vm49_vm3, %v48_v7  }
  0x7a   :  { %51 = vst.msk [vmem:[#allocation0] ss:$8 sm:$0xf0] %vm49_vm3, %v48_v7  }
  0x7c   :  { %v23_v12 = vpop.permute.xlu0 %22   ;;  %v39_v13 = vpop.permute.xlu1 %38  }
  0x7d   :  { %26 = vst.msk [vmem:[#allocation0 + $0x40] ss:$8 sm:$0xf] %vm17_vm1, %v23_v12  }
  0x7e   :  { %28 = vst.msk [vmem:[#allocation0 + $0x40] ss:$8 sm:$0xf0] %vm17_vm1, %v23_v12  }
  0x7f   :  { %42 = vst.msk [vmem:[#allocation0 + $0x40] ss:$8 sm:$0xf] %vm33_vm2, %v39_v13  }
  0x80   :  { %v63_v14 = vld [vmem:[#allocation0] sm:$0x1]  ;;  %v68_v15 = vld [vmem:[#allocation0 + $0x8] sm:$0x1]  ;;  %v74_v16 = vld [vmem:[#allocation0 + $0x10] sm:$0x1] }
  0x81   :  { %66 = vst [vmem:[%s276_s1] sm:$0x1] %v63_v14  ;;  %v80_v17 = vld [vmem:[#allocation0 + $0x18] sm:$0x1]  ;;  %v86_v18 = vld [vmem:[#allocation0 + $0x20] sm:$0x1] }
  0x82   :  { %164 = vst [vmem:[%s276_s1 + $0x1] sm:$0x1] %v68_v15  ;;  %v92_v19 = vld [vmem:[#allocation0 + $0x28] sm:$0x1]  ;;  %v98_v20 = vld [vmem:[#allocation0 + $0x30] sm:$0x1] }
  0x83   :  { %165 = vst [vmem:[%s276_s1 + $0x2] sm:$0x1] %v74_v16  ;;  %v104_v21 = vld [vmem:[#allocation0 + $0x38] sm:$0x1] }
  0x84   :  { %166 = vst [vmem:[%s276_s1 + $0x3] sm:$0x1] %v80_v17 }
  0x85   :  { %167 = vst [vmem:[%s276_s1 + $0x4] sm:$0x1] %v86_v18 }
  0x86   :  { %168 = vst [vmem:[%s276_s1 + $0x5] sm:$0x1] %v92_v19 }
  0x87   :  { %169 = vst [vmem:[%s276_s1 + $0x6] sm:$0x1] %v98_v20 }
  0x88   :  { %170 = vst [vmem:[%s276_s1 + $0x7] sm:$0x1] %v104_v21 }
  0x89   :  { %44 = vst.msk [vmem:[#allocation0 + $0x40] ss:$8 sm:$0xf0] %vm33_vm2, %v39_v13  }
  0x8a   :  { %58 = vst.msk [vmem:[#allocation0 + $0x40] ss:$8 sm:$0xf] %vm49_vm3, %v55_v9  }
  0x8b   :  { %60 = vst.msk [vmem:[#allocation0 + $0x40] ss:$8 sm:$0xf0] %vm49_vm3, %v55_v9  }
  0x91   :  { %v110_v22 = vld [vmem:[#allocation0 + $0x40] sm:$0x1]  ;;  %v116_v23 = vld [vmem:[#allocation0 + $0x48] sm:$0x1]  ;;  %v122_v24 = vld [vmem:[#allocation0 + $0x50] sm:$0x1] }
  0x92   :  { %171 = vst [vmem:[%s276_s1 + $0x8] sm:$0x1] %v110_v22  ;;  %v128_v25 = vld [vmem:[#allocation0 + $0x58] sm:$0x1]  ;;  %v134_v26 = vld [vmem:[#allocation0 + $0x60] sm:$0x1] }
  0x93   :  { %172 = vst [vmem:[%s276_s1 + $0x9] sm:$0x1] %v116_v23  ;;  %v140_v27 = vld [vmem:[#allocation0 + $0x68] sm:$0x1]  ;;  %v146_v28 = vld [vmem:[#allocation0 + $0x70] sm:$0x1] }
  0x94   :  { %173 = vst [vmem:[%s276_s1 + $0xa] sm:$0x1] %v122_v24  ;;  %v152_v29 = vld [vmem:[#allocation0 + $0x78] sm:$0x1] }
  0x95   :  { %174 = vst [vmem:[%s276_s1 + $0xb] sm:$0x1] %v128_v25 }
  0x96   :  { %175 = vst [vmem:[%s276_s1 + $0xc] sm:$0x1] %v134_v26 }
  0x97   :  { %176 = vst [vmem:[%s276_s1 + $0xd] sm:$0x1] %v140_v27 }
  0x98   :  { %177 = vst [vmem:[%s276_s1 + $0xe] sm:$0x1] %v146_v28 }
  0x99   :  { %178 = vst [vmem:[%s276_s1 + $0xf] sm:$0x1] %v152_v29 }

// kernel: fcn8_forward.19
= control target key start
LH: loop header
LB: loop body
LE: loop exit
PB: predicated region body
PF: predicated region fallthrough
CT: control target
= control target key end

     0   :  { %s1719_s12 = smov 0   ;;  %s1721_s13 = smov 0   ;;  %s2896_s0 = inlined_call_operand.vmem [shape: f32[2,8,16,2048], index: 0, kind: input, shape index: {}]   ;;  %s2897_s1 = inlined_call_operand.vmem [shape: f32[1,1,1,2048], index: 1, kind: input, shape index: {}]   ;;  %s2898_s2 = inlined_call_operand.vmem [shape: f32[1,1,1,2048], index: 2, kind: input, shape index: {}]   ;;  %s2899_s3 = inlined_call_operand.vmem [shape: f32[2,8,8,16,256], index: 3, kind: output, shape index: {}]  }
   0x1   :  { %s1723_s14 = smov 0  }
   0x2 LB: > { %s25_s15 = sadd.s32 1, %s1693_s13  ;;  %p1418_p0 = scmp.ge.s32.totalorder %s1697_s14, 1  ;;  %s1697_s14 = sphi %s1723_s14, %s13_s14   ;;  %s1693_s13 = sphi %s1721_s13, %s2901_s13   ;;  %s1689_s12 = sphi %s1719_s12, %s2900_s12  }
   0x3   : > { %p27_p1 = scmp.ge.s32.totalorder %s25_s15, 2  ;;  %p159_p2 = scmp.lt.s32.totalorder %s1697_s14, 3 }
   0x5   : > { %s2903_s15 = smov (%p27_p1, %s25_s15), 0  ;;  %p160_p3 = pnand %p1418_p0, %p159_p2 }
   0x6   : > { %p194_p4 = scmp.lt.s32.totalorder (!%p160_p3), %s1689_s12, 1 }
   0x7   : > { %163 = sbr.rel (%p160_p3) target bundleno = 276 (0x114), region = 32 }
   0xc   : > { %v1740_v0 = vld [vmem:[%s2897_s1] sm:$0xff]  ;;  %s2905_s12 = smov (!%p194_p4, %s1689_s12), 1 }
   0xd   : > { %v1745_v1 = vld [vmem:[%s2898_s2] sm:$0xff]  ;;  %v1748_v2 = vperm.slane %v1740_v0, 0  ;;  %v1751_v3 = vperm.slane %v1740_v0, 1  ;;  %s1649_s20 = sshll.u32 %s2905_s12, 11 }
   0xe   : > { %s1756_s23 = scalar_lea.vmem %s2896_s0, %s1649_s20  ;;  %v1759_v4 = vperm.slane %v1745_v1, 0  ;;  %v1762_v5 = vperm.slane %v1745_v1, 1  ;;  %s1776_s26 = scalar_lea.vmem %s2899_s3, %s1649_s20 }
   0xf   : > { %v215_v6 = vld [vmem:[%s1756_s23] sm:$0xff]  ;;  %v216_v7 = vld [vmem:[%s1756_s23 + $0x8] sm:$0xff] }
  0x10   : > { %v231_v8 = vld [vmem:[%s1756_s23 + $0x80] sm:$0xff]  ;;  %v507_v9 = vmul.f32 %v1748_v2, %v215_v6  ;;  %v508_v10 = vmul.f32 %v1751_v3, %v216_v7  ;;  %v232_v12 = vld [vmem:[%s1756_s23 + $0x88] sm:$0xff] }
  0x11   : > { %v523_v11 = vmul.f32 %v1748_v2, %v231_v8  ;;  %v247_v13 = vld [vmem:[%s1756_s23 + $0x100] sm:$0xff]  ;;  %v248_v14 = vld [vmem:[%s1756_s23 + $0x108] sm:$0xff]  ;;  %v524_v15 = vmul.f32 %v1751_v3, %v232_v12 }
  0x12   : > { %v539_v16 = vmul.f32 %v1748_v2, %v247_v13  ;;  %v540_v17 = vmul.f32 %v1751_v3, %v248_v14  ;;  %v263_v18 = vld [vmem:[%s1756_s23 + $0x180] sm:$0xff]  ;;  %v264_v19 = vld [vmem:[%s1756_s23 + $0x188] sm:$0xff]  ;;  %v799_v21 = vadd.f32 %v1759_v4, %v507_v9  ;;  %v800_v22 = vadd.f32 %v1762_v5, %v508_v10 }
  0x13   : > { %v279_v20 = vld [vmem:[%s1756_s23 + $0x200] sm:$0xff]  ;;  %v815_v23 = vadd.f32 %v1759_v4, %v523_v11  ;;  %v555_v24 = vmul.f32 %v1748_v2, %v263_v18  ;;  %v280_v25 = vld [vmem:[%s1756_s23 + $0x208] sm:$0xff]  ;;  %v816_v26 = vadd.f32 %v1762_v5, %v524_v15  ;;  %v556_v27 = vmul.f32 %v1751_v3, %v264_v19 }
  0x14   : > { %v295_v28 = vld [vmem:[%s1756_s23 + $0x280] sm:$0xff]  ;;  %1055 = vst [vmem:[%s1776_s26] sm:$0xff] %v799_v21  ;;  %v831_v29 = vadd.f32 %v1759_v4, %v539_v16  ;;  %v571_v30 = vmul.f32 %v1748_v2, %v279_v20  ;;  %v296_v31 = vld [vmem:[%s1756_s23 + $0x288] sm:$0xff]  ;;  %v832_v32 = vadd.f32 %v1762_v5, %v540_v17  ;;  %v572_v33 = vmul.f32 %v1751_v3, %v280_v25 }
  0x15   : > { %1056 = vst [vmem:[%s1776_s26 + $0x8] sm:$0xff] %v800_v22  ;;  %v311_v34 = vld [vmem:[%s1756_s23 + $0x300] sm:$0xff]  ;;  %v847_v35 = vadd.f32 %v1759_v4, %v555_v24  ;;  %v587_v36 = vmul.f32 %v1748_v2, %v295_v28  ;;  %v312_v37 = vld [vmem:[%s1756_s23 + $0x308] sm:$0xff]  ;;  %v848_v38 = vadd.f32 %v1762_v5, %v556_v27  ;;  %v588_v39 = vmul.f32 %v1751_v3, %v296_v31 }
  0x16   : > { %1057 = vst [vmem:[%s1776_s26 + $0x10] sm:$0xff] %v815_v23  ;;  %v327_v40 = vld [vmem:[%s1756_s23 + $0x380] sm:$0xff]  ;;  %v863_v41 = vadd.f32 %v1759_v4, %v571_v30  ;;  %v603_v42 = vmul.f32 %v1748_v2, %v311_v34  ;;  %v328_v43 = vld [vmem:[%s1756_s23 + $0x388] sm:$0xff]  ;;  %v864_v44 = vadd.f32 %v1762_v5, %v572_v33  ;;  %v604_v45 = vmul.f32 %v1751_v3, %v312_v37  ;;  %v217_v37 = vld [vmem:[%s1756_s23 + $0x10] sm:$0xff] }
  0x17   : > { %1058 = vst [vmem:[%s1776_s26 + $0x18] sm:$0xff] %v816_v26  ;;  %v343_v46 = vld [vmem:[%s1756_s23 + $0x400] sm:$0xff]  ;;  %v879_v47 = vadd.f32 %v1759_v4, %v587_v36  ;;  %v619_v48 = vmul.f32 %v1748_v2, %v327_v40  ;;  %v344_v49 = vld [vmem:[%s1756_s23 + $0x408] sm:$0xff]  ;;  %v880_v50 = vadd.f32 %v1762_v5, %v588_v39  ;;  %v620_v51 = vmul.f32 %v1751_v3, %v328_v43 }
  0x18   : > { %1059 = vst [vmem:[%s1776_s26 + $0x100] sm:$0xff] %v831_v29  ;;  %v359_v52 = vld [vmem:[%s1756_s23 + $0x480] sm:$0xff]  ;;  %v895_v53 = vadd.f32 %v1759_v4, %v603_v42  ;;  %v635_v54 = vmul.f32 %v1748_v2, %v343_v46  ;;  %v360_v55 = vld [vmem:[%s1756_s23 + $0x488] sm:$0xff]  ;;  %v896_v56 = vadd.f32 %v1762_v5, %v604_v45  ;;  %v636_v57 = vmul.f32 %v1751_v3, %v344_v49 }
  0x19   : > { %1060 = vst [vmem:[%s1776_s26 + $0x108] sm:$0xff] %v832_v32  ;;  %v375_v58 = vld [vmem:[%s1756_s23 + $0x500] sm:$0xff]  ;;  %v911_v59 = vadd.f32 %v1759_v4, %v619_v48  ;;  %v651_v60 = vmul.f32 %v1748_v2, %v359_v52  ;;  %v376_v61 = vld [vmem:[%s1756_s23 + $0x508] sm:$0xff]  ;;  %v912_v62 = vadd.f32 %v1762_v5, %v620_v51  ;;  %v652_v63 = vmul.f32 %v1751_v3, %v360_v55 }
  0x1a   : > { %1061 = vst [vmem:[%s1776_s26 + $0x110] sm:$0xff] %v847_v35  ;;  %v391_v6 = vld [vmem:[%s1756_s23 + $0x580] sm:$0xff]  ;;  %v927_v7 = vadd.f32 %v1759_v4, %v635_v54  ;;  %v667_v8 = vmul.f32 %v1748_v2, %v375_v58  ;;  %v392_v9 = vld [vmem:[%s1756_s23 + $0x588] sm:$0xff]  ;;  %v928_v10 = vadd.f32 %v1762_v5, %v636_v57  ;;  %v668_v11 = vmul.f32 %v1751_v3, %v376_v61  ;;  %v281_v61 = vld [vmem:[%s1756_s23 + $0x210] sm:$0xff] }
  0x1b   : > { %1062 = vst [vmem:[%s1776_s26 + $0x118] sm:$0xff] %v848_v38  ;;  %v407_v12 = vld [vmem:[%s1756_s23 + $0x600] sm:$0xff]  ;;  %v943_v13 = vadd.f32 %v1759_v4, %v651_v60  ;;  %v683_v14 = vmul.f32 %v1748_v2, %v391_v6  ;;  %v408_v15 = vld [vmem:[%s1756_s23 + $0x608] sm:$0xff]  ;;  %v944_v16 = vadd.f32 %v1762_v5, %v652_v63  ;;  %v684_v17 = vmul.f32 %v1751_v3, %v392_v9  ;;  %v282_v63 = vld [vmem:[%s1756_s23 + $0x218] sm:$0xff] }
  0x1c   : > { %1063 = vst [vmem:[%s1776_s26 + $0x200] sm:$0xff] %v863_v41  ;;  %v423_v18 = vld [vmem:[%s1756_s23 + $0x680] sm:$0xff]  ;;  %v959_v19 = vadd.f32 %v1759_v4, %v667_v8  ;;  %v699_v20 = vmul.f32 %v1748_v2, %v407_v12  ;;  %v424_v21 = vld [vmem:[%s1756_s23 + $0x688] sm:$0xff]  ;;  %v960_v22 = vadd.f32 %v1762_v5, %v668_v11  ;;  %v700_v23 = vmul.f32 %v1751_v3, %v408_v15  ;;  %v218_v41 = vld [vmem:[%s1756_s23 + $0x18] sm:$0xff] }
  0x1d   : > { %1064 = vst [vmem:[%s1776_s26 + $0x208] sm:$0xff] %v864_v44  ;;  %v439_v24 = vld [vmem:[%s1756_s23 + $0x700] sm:$0xff]  ;;  %v975_v25 = vadd.f32 %v1759_v4, %v683_v14  ;;  %v715_v26 = vmul.f32 %v1748_v2, %v423_v18  ;;  %v440_v27 = vld [vmem:[%s1756_s23 + $0x708] sm:$0xff]  ;;  %v976_v28 = vadd.f32 %v1762_v5, %v684_v17  ;;  %v716_v29 = vmul.f32 %v1751_v3, %v424_v21  ;;  %v233_v44 = vld [vmem:[%s1756_s23 + $0x90] sm:$0xff] }
  0x1e   : > { %1065 = vst [vmem:[%s1776_s26 + $0x210] sm:$0xff] %v879_v47  ;;  %v455_v30 = vld [vmem:[%s1756_s23 + $0x780] sm:$0xff]  ;;  %v991_v31 = vadd.f32 %v1759_v4, %v699_v20  ;;  %v731_v32 = vmul.f32 %v1748_v2, %v439_v24  ;;  %v456_v33 = vld [vmem:[%s1756_s23 + $0x788] sm:$0xff]  ;;  %v1877_v34 = vperm.slane %v1740_v0, 2  ;;  %v992_v35 = vadd.f32 %v1762_v5, %v700_v23  ;;  %v297_v8 = vld [vmem:[%s1756_s23 + $0x290] sm:$0xff] }
  0x1f   : > { %1066 = vst [vmem:[%s1776_s26 + $0x218] sm:$0xff] %v880_v50  ;;  %v732_v36 = vmul.f32 %v1751_v3, %v440_v27  ;;  %v1884_v38 = vperm.slane %v1740_v0, 3  ;;  %v1007_v39 = vadd.f32 %v1759_v4, %v715_v26  ;;  %v747_v40 = vmul.f32 %v1748_v2, %v455_v30  ;;  %v234_v2 = vld [vmem:[%s1756_s23 + $0x98] sm:$0xff]  ;;  %v249_v50 = vld [vmem:[%s1756_s23 + $0x110] sm:$0xff] }
  0x20   : > { %1067 = vst [vmem:[%s1776_s26 + $0x300] sm:$0xff] %v895_v53  ;;  %v1008_v42 = vadd.f32 %v1762_v5, %v716_v29  ;;  %v748_v43 = vmul.f32 %v1751_v3, %v456_v33  ;;  %v1023_v45 = vadd.f32 %v1759_v4, %v731_v32  ;;  %v509_v46 = vmul.f32 %v1877_v34, %v217_v37  ;;  %v250_v53 = vld [vmem:[%s1756_s23 + $0x118] sm:$0xff]  ;;  %v313_v14 = vld [vmem:[%s1756_s23 + $0x310] sm:$0xff] }
  0x21   : > { %1068 = vst [vmem:[%s1776_s26 + $0x308] sm:$0xff] %v896_v56  ;;  %v1898_v47 = vperm.slane %v1745_v1, 2  ;;  %v1024_v48 = vadd.f32 %v1762_v5, %v732_v36  ;;  %v510_v3 = vmul.f32 %v1884_v38, %v218_v41  ;;  %v1905_v49 = vperm.slane %v1745_v1, 3  ;;  %v265_v56 = vld [vmem:[%s1756_s23 + $0x190] sm:$0xff]  ;;  %v298_v11 = vld [vmem:[%s1756_s23 + $0x298] sm:$0xff] }
  0x22   : > { %1069 = vst [vmem:[%s1776_s26 + $0x310] sm:$0xff] %v911_v59  ;;  %v1039_v51 = vadd.f32 %v1759_v4, %v747_v40  ;;  %v525_v52 = vmul.f32 %v1877_v34, %v233_v44  ;;  %v1040_v54 = vadd.f32 %v1762_v5, %v748_v43  ;;  %v526_v55 = vmul.f32 %v1884_v38, %v234_v2  ;;  %v266_v59 = vld [vmem:[%s1756_s23 + $0x198] sm:$0xff]  ;;  %v329_v20 = vld [vmem:[%s1756_s23 + $0x390] sm:$0xff] }
  0x23   : > { %1070 = vst [vmem:[%s1776_s26 + $0x318] sm:$0xff] %v912_v62  ;;  %v801_v57 = vadd.f32 %v1898_v47, %v509_v46  ;;  %v541_v58 = vmul.f32 %v1877_v34, %v249_v50  ;;  %v802_v4 = vadd.f32 %v1905_v49, %v510_v3  ;;  %v542_v60 = vmul.f32 %v1884_v38, %v250_v53  ;;  %v314_v17 = vld [vmem:[%s1756_s23 + $0x318] sm:$0xff]  ;;  %v345_v26 = vld [vmem:[%s1756_s23 + $0x410] sm:$0xff] }
  0x24   : > { %1071 = vst [vmem:[%s1776_s26 + $0x400] sm:$0xff] %v927_v7  ;;  %v817_v5 = vadd.f32 %v1898_v47, %v525_v52  ;;  %v557_v62 = vmul.f32 %v1877_v34, %v265_v56  ;;  %v818_v6 = vadd.f32 %v1905_v49, %v526_v55  ;;  %v558_v7 = vmul.f32 %v1884_v38, %v266_v59  ;;  %v330_v23 = vld [vmem:[%s1756_s23 + $0x398] sm:$0xff]  ;;  %v361_v32 = vld [vmem:[%s1756_s23 + $0x490] sm:$0xff] }
  0x25   : > { %1072 = vst [vmem:[%s1776_s26 + $0x408] sm:$0xff] %v928_v10  ;;  %v833_v9 = vadd.f32 %v1898_v47, %v541_v58  ;;  %v573_v10 = vmul.f32 %v1877_v34, %v281_v61  ;;  %v834_v12 = vadd.f32 %v1905_v49, %v542_v60  ;;  %v346_v29 = vld [vmem:[%s1756_s23 + $0x418] sm:$0xff]  ;;  %v377_v40 = vld [vmem:[%s1756_s23 + $0x510] sm:$0xff] }
  0x26   : > { %1073 = vst [vmem:[%s1776_s26 + $0x410] sm:$0xff] %v943_v13  ;;  %v574_v13 = vmul.f32 %v1884_v38, %v282_v63  ;;  %v849_v15 = vadd.f32 %v1898_v47, %v557_v62  ;;  %v850_v18 = vadd.f32 %v1905_v49, %v558_v7  ;;  %v362_v36 = vld [vmem:[%s1756_s23 + $0x498] sm:$0xff]  ;;  %v393_v46 = vld [vmem:[%s1756_s23 + $0x590] sm:$0xff] }
  0x27   : > { %1074 = vst [vmem:[%s1776_s26 + $0x418] sm:$0xff] %v944_v16  ;;  %v589_v16 = vmul.f32 %v1877_v34, %v297_v8  ;;  %v865_v21 = vadd.f32 %v1898_v47, %v573_v10  ;;  %v378_v43 = vld [vmem:[%s1756_s23 + $0x518] sm:$0xff]  ;;  %v409_v52 = vld [vmem:[%s1756_s23 + $0x610] sm:$0xff] }
  0x28   : > { %1075 = vst [vmem:[%s1776_s26 + $0x500] sm:$0xff] %v959_v19  ;;  %v590_v19 = vmul.f32 %v1884_v38, %v298_v11  ;;  %v866_v24 = vadd.f32 %v1905_v49, %v574_v13  ;;  %v394_v3 = vld [vmem:[%s1756_s23 + $0x598] sm:$0xff]  ;;  %v425_v58 = vld [vmem:[%s1756_s23 + $0x690] sm:$0xff] }
  0x29   : > { %1076 = vst [vmem:[%s1776_s26 + $0x508] sm:$0xff] %v960_v22  ;;  %v605_v22 = vmul.f32 %v1877_v34, %v313_v14  ;;  %v881_v27 = vadd.f32 %v1898_v47, %v589_v16  ;;  %v410_v55 = vld [vmem:[%s1756_s23 + $0x618] sm:$0xff]  ;;  %v441_v62 = vld [vmem:[%s1756_s23 + $0x710] sm:$0xff]  ;;  %v2017_v14 = vperm.slane %v1740_v0, 4 }
  0x2a   : > { %1077 = vst [vmem:[%s1776_s26 + $0x510] sm:$0xff] %v975_v25  ;;  %v606_v25 = vmul.f32 %v1884_v38, %v314_v17  ;;  %v882_v30 = vadd.f32 %v1905_v49, %v590_v19  ;;  %v426_v60 = vld [vmem:[%s1756_s23 + $0x698] sm:$0xff]  ;;  %v457_v10 = vld [vmem:[%s1756_s23 + $0x790] sm:$0xff]  ;;  %v219_v17 = vld [vmem:[%s1756_s23 + $0x20] sm:$0xff] }
  0x2b   : > { %1078 = vst [vmem:[%s1776_s26 + $0x518] sm:$0xff] %v976_v28  ;;  %v621_v28 = vmul.f32 %v1877_v34, %v329_v20  ;;  %v897_v33 = vadd.f32 %v1898_v47, %v605_v22  ;;  %v442_v7 = vld [vmem:[%s1756_s23 + $0x718] sm:$0xff]  ;;  %v749_v20 = vmul.f32 %v1877_v34, %v457_v10 }
  0x2c   : > { %1079 = vst [vmem:[%s1776_s26 + $0x600] sm:$0xff] %v991_v31  ;;  %v622_v31 = vmul.f32 %v1884_v38, %v330_v23  ;;  %v898_v37 = vadd.f32 %v1905_v49, %v606_v25  ;;  %v458_v13 = vld [vmem:[%s1756_s23 + $0x798] sm:$0xff]  ;;  %v734_v16 = vmul.f32 %v1884_v38, %v442_v7 }
  0x2d   : > { %1080 = vst [vmem:[%s1776_s26 + $0x608] sm:$0xff] %v992_v35  ;;  %v637_v35 = vmul.f32 %v1877_v34, %v345_v26  ;;  %v913_v41 = vadd.f32 %v1898_v47, %v621_v28  ;;  %v750_v23 = vmul.f32 %v1884_v38, %v458_v13  ;;  %v511_v26 = vmul.f32 %v2017_v14, %v219_v17 }
  0x2e   : > { %1081 = vst [vmem:[%s1776_s26 + $0x610] sm:$0xff] %v1007_v39  ;;  %v638_v39 = vmul.f32 %v1884_v38, %v346_v29  ;;  %v914_v44 = vadd.f32 %v1905_v49, %v622_v31  ;;  %v1026_v28 = vadd.f32 %v1905_v49, %v734_v16  ;;  %v2045_v29 = vperm.slane %v1745_v1, 5  ;;  %v364_v16 = vld [vmem:[%s1756_s23 + $0x4a8] sm:$0xff] }
  0x2f   : > { %1082 = vst [vmem:[%s1776_s26 + $0x618] sm:$0xff] %v1008_v42  ;;  %v653_v42 = vmul.f32 %v1877_v34, %v361_v32  ;;  %v929_v2 = vadd.f32 %v1898_v47, %v637_v35  ;;  %v1041_v31 = vadd.f32 %v1898_v47, %v749_v20  ;;  %v1042_v35 = vadd.f32 %v1905_v49, %v750_v23  ;;  %v379_v20 = vld [vmem:[%s1756_s23 + $0x520] sm:$0xff]  ;;  %v380_v23 = vld [vmem:[%s1756_s23 + $0x528] sm:$0xff] }
  0x30   : > { %1083 = vst [vmem:[%s1776_s26 + $0x700] sm:$0xff] %v1023_v45  ;;  %v654_v45 = vmul.f32 %v1884_v38, %v362_v36  ;;  %v930_v50 = vadd.f32 %v1905_v49, %v638_v39 }
  0x31   : > { %1084 = vst [vmem:[%s1776_s26 + $0x708] sm:$0xff] %v1024_v48  ;;  %v669_v48 = vmul.f32 %v1877_v34, %v377_v40  ;;  %v945_v53 = vadd.f32 %v1898_v47, %v653_v42 }
  0x32   : > { %1085 = vst [vmem:[%s1776_s26 + $0x710] sm:$0xff] %v1039_v51  ;;  %v670_v51 = vmul.f32 %v1884_v38, %v378_v43  ;;  %v946_v56 = vadd.f32 %v1905_v49, %v654_v45  ;;  %v283_v43 = vld [vmem:[%s1756_s23 + $0x220] sm:$0xff]  ;;  %v284_v45 = vld [vmem:[%s1756_s23 + $0x228] sm:$0xff] }
  0x33   : > { %1086 = vst [vmem:[%s1776_s26 + $0x718] sm:$0xff] %v1040_v54  ;;  %v685_v54 = vmul.f32 %v1877_v34, %v393_v46  ;;  %v961_v59 = vadd.f32 %v1898_v47, %v669_v48  ;;  %v299_v48 = vld [vmem:[%s1756_s23 + $0x2a0] sm:$0xff] }
  0x34   : > { %1423 = vst [vmem:[%s1776_s26 + $0x20] sm:$0xff] %v801_v57  ;;  %v686_v57 = vmul.f32 %v1884_v38, %v394_v3  ;;  %v962_v61 = vadd.f32 %v1905_v49, %v670_v51  ;;  %v300_v51 = vld [vmem:[%s1756_s23 + $0x2a8] sm:$0xff] }
  0x35   : > { %1424 = vst [vmem:[%s1776_s26 + $0x28] sm:$0xff] %v802_v4  ;;  %v701_v4 = vmul.f32 %v1877_v34, %v409_v52  ;;  %v977_v63 = vadd.f32 %v1898_v47, %v685_v54  ;;  %v315_v54 = vld [vmem:[%s1756_s23 + $0x320] sm:$0xff] }
  0x36   : > { %1425 = vst [vmem:[%s1776_s26 + $0x30] sm:$0xff] %v817_v5  ;;  %v702_v5 = vmul.f32 %v1884_v38, %v410_v55  ;;  %v978_v8 = vadd.f32 %v1905_v49, %v686_v57  ;;  %v316_v57 = vld [vmem:[%s1756_s23 + $0x328] sm:$0xff] }
  0x37   : > { %1426 = vst [vmem:[%s1776_s26 + $0x38] sm:$0xff] %v818_v6  ;;  %v717_v6 = vmul.f32 %v1877_v34, %v425_v58  ;;  %v993_v11 = vadd.f32 %v1898_v47, %v701_v4  ;;  %v331_v4 = vld [vmem:[%s1756_s23 + $0x3a0] sm:$0xff] }
  0x38   : > { %1427 = vst [vmem:[%s1776_s26 + $0x120] sm:$0xff] %v833_v9  ;;  %v718_v9 = vmul.f32 %v1884_v38, %v426_v60 }
  0x39   : > { %1428 = vst [vmem:[%s1776_s26 + $0x128] sm:$0xff] %v834_v12  ;;  %v733_v12 = vmul.f32 %v1877_v34, %v441_v62  ;;  %v1009_v19 = vadd.f32 %v1898_v47, %v717_v6  ;;  %v236_v34 = vld [vmem:[%s1756_s23 + $0xa8] sm:$0xff]  ;;  %v347_v6 = vld [vmem:[%s1756_s23 + $0x420] sm:$0xff] }
  0x3a   : > { %1429 = vst [vmem:[%s1776_s26 + $0x130] sm:$0xff] %v849_v15  ;;  %v994_v15 = vadd.f32 %v1905_v49, %v702_v5  ;;  %v1010_v22 = vadd.f32 %v1905_v49, %v718_v9  ;;  %v332_v5 = vld [vmem:[%s1756_s23 + $0x3a8] sm:$0xff] }
  0x3b   : > { %1430 = vst [vmem:[%s1776_s26 + $0x138] sm:$0xff] %v850_v18  ;;  %v2024_v18 = vperm.slane %v1740_v0, 5  ;;  %v1025_v25 = vadd.f32 %v1898_v47, %v733_v12  ;;  %v348_v9 = vld [vmem:[%s1756_s23 + $0x428] sm:$0xff]  ;;  %v363_v12 = vld [vmem:[%s1756_s23 + $0x4a0] sm:$0xff] }
  0x3c   : > { %1431 = vst [vmem:[%s1776_s26 + $0x220] sm:$0xff] %v865_v21  ;;  %v220_v21 = vld [vmem:[%s1756_s23 + $0x28] sm:$0xff] }
  0x3d   : > { %1432 = vst [vmem:[%s1776_s26 + $0x228] sm:$0xff] %v866_v24  ;;  %v235_v24 = vld [vmem:[%s1756_s23 + $0xa0] sm:$0xff]  ;;  %v512_v38 = vmul.f32 %v2024_v18, %v220_v21  ;;  %v528_v36 = vmul.f32 %v2024_v18, %v236_v34 }
  0x3e   : > { %1433 = vst [vmem:[%s1776_s26 + $0x230] sm:$0xff] %v881_v27  ;;  %v2038_v27 = vperm.slane %v1745_v1, 4  ;;  %v527_v32 = vmul.f32 %v2017_v14, %v235_v24 }
  0x3f   : > { %1434 = vst [vmem:[%s1776_s26 + $0x238] sm:$0xff] %v882_v30  ;;  %v251_v30 = vld [vmem:[%s1756_s23 + $0x120] sm:$0xff]  ;;  %v804_v47 = vadd.f32 %v2045_v29, %v512_v38  ;;  %v820_v46 = vadd.f32 %v2045_v29, %v528_v36  ;;  %v396_v38 = vld [vmem:[%s1756_s23 + $0x5a8] sm:$0xff] }
  0x40   : > { %1435 = vst [vmem:[%s1776_s26 + $0x320] sm:$0xff] %v897_v33  ;;  %v252_v33 = vld [vmem:[%s1756_s23 + $0x128] sm:$0xff]  ;;  %v803_v39 = vadd.f32 %v2038_v27, %v511_v26  ;;  %v543_v40 = vmul.f32 %v2017_v14, %v251_v30  ;;  %v819_v49 = vadd.f32 %v2038_v27, %v527_v32  ;;  %v395_v26 = vld [vmem:[%s1756_s23 + $0x5a0] sm:$0xff] }
  0x41   : > { %1436 = vst [vmem:[%s1776_s26 + $0x328] sm:$0xff] %v898_v37  ;;  %v267_v37 = vld [vmem:[%s1756_s23 + $0x1a0] sm:$0xff]  ;;  %v544_v42 = vmul.f32 %v2024_v18, %v252_v33  ;;  %v412_v36 = vld [vmem:[%s1756_s23 + $0x628] sm:$0xff] }
  0x42   : > { %1437 = vst [vmem:[%s1776_s26 + $0x330] sm:$0xff] %v913_v41  ;;  %v268_v41 = vld [vmem:[%s1756_s23 + $0x1a8] sm:$0xff]  ;;  %v835_v3 = vadd.f32 %v2038_v27, %v543_v40  ;;  %v411_v32 = vld [vmem:[%s1756_s23 + $0x620] sm:$0xff] }
  0x43   : > { %1438 = vst [vmem:[%s1776_s26 + $0x338] sm:$0xff] %v914_v44  ;;  %v559_v44 = vmul.f32 %v2017_v14, %v267_v37  ;;  %v836_v52 = vadd.f32 %v2045_v29, %v544_v42  ;;  %v427_v40 = vld [vmem:[%s1756_s23 + $0x6a0] sm:$0xff]  ;;  %v428_v42 = vld [vmem:[%s1756_s23 + $0x6a8] sm:$0xff] }
  0x44   : > { %1439 = vst [vmem:[%s1776_s26 + $0x420] sm:$0xff] %v929_v2  ;;  %v560_v2 = vmul.f32 %v2024_v18, %v268_v41 }
  0x45   : > { %1440 = vst [vmem:[%s1776_s26 + $0x428] sm:$0xff] %v930_v50  ;;  %v575_v50 = vmul.f32 %v2017_v14, %v283_v43  ;;  %v851_v55 = vadd.f32 %v2038_v27, %v559_v44  ;;  %v443_v44 = vld [vmem:[%s1756_s23 + $0x720] sm:$0xff] }
  0x46   : > { %1441 = vst [vmem:[%s1776_s26 + $0x430] sm:$0xff] %v945_v53  ;;  %v576_v53 = vmul.f32 %v2024_v18, %v284_v45  ;;  %v852_v58 = vadd.f32 %v2045_v29, %v560_v2  ;;  %v444_v2 = vld [vmem:[%s1756_s23 + $0x728] sm:$0xff] }
  0x47   : > { %1442 = vst [vmem:[%s1776_s26 + $0x438] sm:$0xff] %v946_v56  ;;  %v591_v56 = vmul.f32 %v2017_v14, %v299_v48  ;;  %v867_v60 = vadd.f32 %v2038_v27, %v575_v50  ;;  %v459_v50 = vld [vmem:[%s1756_s23 + $0x7a0] sm:$0xff] }
  0x48   : > { %1443 = vst [vmem:[%s1776_s26 + $0x520] sm:$0xff] %v961_v59  ;;  %v592_v59 = vmul.f32 %v2024_v18, %v300_v51  ;;  %v868_v62 = vadd.f32 %v2045_v29, %v576_v53  ;;  %v460_v53 = vld [vmem:[%s1756_s23 + $0x7a8] sm:$0xff] }
  0x49   : > { %1444 = vst [vmem:[%s1776_s26 + $0x528] sm:$0xff] %v962_v61  ;;  %v607_v61 = vmul.f32 %v2017_v14, %v315_v54  ;;  %v883_v7 = vadd.f32 %v2038_v27, %v591_v56  ;;  %v2157_v54 = vperm.slane %v1740_v0, 6  ;;  %v736_v56 = vmul.f32 %v2024_v18, %v444_v2  ;;  %v350_v2 = vld [vmem:[%s1756_s23 + $0x438] sm:$0xff] }
  0x4a   : > { %1445 = vst [vmem:[%s1776_s26 + $0x530] sm:$0xff] %v977_v63  ;;  %v608_v63 = vmul.f32 %v2024_v18, %v316_v57  ;;  %v884_v10 = vadd.f32 %v2045_v29, %v592_v59  ;;  %v221_v57 = vld [vmem:[%s1756_s23 + $0x30] sm:$0xff] }
  0x4b   : > { %1446 = vst [vmem:[%s1776_s26 + $0x538] sm:$0xff] %v978_v8  ;;  %v623_v8 = vmul.f32 %v2017_v14, %v331_v4  ;;  %v899_v13 = vadd.f32 %v2038_v27, %v607_v61  ;;  %v751_v4 = vmul.f32 %v2017_v14, %v459_v50  ;;  %v365_v50 = vld [vmem:[%s1756_s23 + $0x4b0] sm:$0xff] }
  0x4c   : > { %1447 = vst [vmem:[%s1776_s26 + $0x620] sm:$0xff] %v993_v11  ;;  %v624_v11 = vmul.f32 %v2024_v18, %v332_v5  ;;  %v900_v17 = vadd.f32 %v2045_v29, %v608_v63  ;;  %v752_v5 = vmul.f32 %v2024_v18, %v460_v53  ;;  %v513_v63 = vmul.f32 %v2157_v54, %v221_v57  ;;  %v366_v53 = vld [vmem:[%s1756_s23 + $0x4b8] sm:$0xff]  ;;  %v381_v57 = vld [vmem:[%s1756_s23 + $0x530] sm:$0xff] }
  0x4d   : > { %1448 = vst [vmem:[%s1776_s26 + $0x628] sm:$0xff] %v994_v15  ;;  %v639_v15 = vmul.f32 %v2017_v14, %v347_v6  ;;  %v915_v21 = vadd.f32 %v2038_v27, %v623_v8  ;;  %v2178_v6 = vperm.slane %v1745_v1, 6  ;;  %v2185_v8 = vperm.slane %v1745_v1, 7 }
  0x4e   : > { %1449 = vst [vmem:[%s1776_s26 + $0x630] sm:$0xff] %v1009_v19  ;;  %v640_v19 = vmul.f32 %v2024_v18, %v348_v9  ;;  %v916_v24 = vadd.f32 %v2045_v29, %v624_v11  ;;  %v253_v9 = vld [vmem:[%s1756_s23 + $0x130] sm:$0xff] }
  0x4f   : > { %1450 = vst [vmem:[%s1776_s26 + $0x638] sm:$0xff] %v1010_v22  ;;  %v655_v22 = vmul.f32 %v2017_v14, %v363_v12  ;;  %v931_v34 = vadd.f32 %v2038_v27, %v639_v15  ;;  %v254_v12 = vld [vmem:[%s1756_s23 + $0x138] sm:$0xff]  ;;  %v805_v1 = vadd.f32 %v2178_v6, %v513_v63  ;;  %v673_v63 = vmul.f32 %v2157_v54, %v381_v57 }
  0x50   : > { %1451 = vst [vmem:[%s1776_s26 + $0x720] sm:$0xff] %v1025_v25  ;;  %v656_v25 = vmul.f32 %v2024_v18, %v364_v16  ;;  %v932_v30 = vadd.f32 %v2045_v29, %v640_v19  ;;  %v269_v16 = vld [vmem:[%s1756_s23 + $0x1b0] sm:$0xff]  ;;  %v270_v19 = vld [vmem:[%s1756_s23 + $0x1b8] sm:$0xff] }
  0x51   : > { %1452 = vst [vmem:[%s1776_s26 + $0x728] sm:$0xff] %v1026_v28  ;;  %v671_v28 = vmul.f32 %v2017_v14, %v379_v20  ;;  %v947_v33 = vadd.f32 %v2038_v27, %v655_v22  ;;  %v561_v22 = vmul.f32 %v2157_v54, %v269_v16  ;;  %v429_v16 = vld [vmem:[%s1756_s23 + $0x6b0] sm:$0xff] }
  0x52   : > { %1453 = vst [vmem:[%s1776_s26 + $0x730] sm:$0xff] %v1041_v31  ;;  %v672_v31 = vmul.f32 %v2024_v18, %v380_v23  ;;  %v948_v37 = vadd.f32 %v2045_v29, %v656_v25  ;;  %v286_v23 = vld [vmem:[%s1756_s23 + $0x238] sm:$0xff] }
  0x53   : > { %1454 = vst [vmem:[%s1776_s26 + $0x738] sm:$0xff] %v1042_v35  ;;  %v687_v35 = vmul.f32 %v2017_v14, %v395_v26  ;;  %v963_v41 = vadd.f32 %v2038_v27, %v671_v28  ;;  %v301_v26 = vld [vmem:[%s1756_s23 + $0x2b0] sm:$0xff] }
  0x54   : > { %1455 = vst [vmem:[%s1776_s26 + $0x40] sm:$0xff] %v803_v39  ;;  %v688_v39 = vmul.f32 %v2024_v18, %v396_v38  ;;  %v964_v43 = vadd.f32 %v2045_v29, %v672_v31  ;;  %v302_v38 = vld [vmem:[%s1756_s23 + $0x2b8] sm:$0xff] }
  0x55   : > { %1456 = vst [vmem:[%s1776_s26 + $0x48] sm:$0xff] %v804_v47  ;;  %v703_v47 = vmul.f32 %v2017_v14, %v411_v32  ;;  %v979_v45 = vadd.f32 %v2038_v27, %v687_v35  ;;  %v317_v32 = vld [vmem:[%s1756_s23 + $0x330] sm:$0xff]  ;;  %v593_v35 = vmul.f32 %v2157_v54, %v301_v26 }
  0x56   : > { %1457 = vst [vmem:[%s1776_s26 + $0x50] sm:$0xff] %v819_v49  ;;  %v704_v49 = vmul.f32 %v2024_v18, %v412_v36  ;;  %v980_v48 = vadd.f32 %v2045_v29, %v688_v39  ;;  %v318_v36 = vld [vmem:[%s1756_s23 + $0x338] sm:$0xff] }
  0x57   : > { %1458 = vst [vmem:[%s1776_s26 + $0x58] sm:$0xff] %v820_v46  ;;  %v719_v46 = vmul.f32 %v2017_v14, %v427_v40  ;;  %v995_v51 = vadd.f32 %v2038_v27, %v703_v47  ;;  %v333_v40 = vld [vmem:[%s1756_s23 + $0x3b0] sm:$0xff]  ;;  %v609_v47 = vmul.f32 %v2157_v54, %v317_v32 }
  0x58   : > { %1459 = vst [vmem:[%s1776_s26 + $0x140] sm:$0xff] %v835_v3  ;;  %v720_v3 = vmul.f32 %v2024_v18, %v428_v42  ;;  %v334_v42 = vld [vmem:[%s1756_s23 + $0x3b8] sm:$0xff] }
  0x59   : > { %1460 = vst [vmem:[%s1776_s26 + $0x148] sm:$0xff] %v836_v52  ;;  %v735_v52 = vmul.f32 %v2017_v14, %v443_v44  ;;  %v1011_v59 = vadd.f32 %v2038_v27, %v719_v46  ;;  %v238_v14 = vld [vmem:[%s1756_s23 + $0xb8] sm:$0xff]  ;;  %v349_v44 = vld [vmem:[%s1756_s23 + $0x430] sm:$0xff]  ;;  %v625_v46 = vmul.f32 %v2157_v54, %v333_v40 }
  0x5a   : > { %1461 = vst [vmem:[%s1776_s26 + $0x150] sm:$0xff] %v851_v55  ;;  %v996_v55 = vadd.f32 %v2045_v29, %v704_v49  ;;  %v1012_v61 = vadd.f32 %v2045_v29, %v720_v3 }
  0x5b   : > { %1462 = vst [vmem:[%s1776_s26 + $0x158] sm:$0xff] %v852_v58  ;;  %v2164_v58 = vperm.slane %v1740_v0, 7  ;;  %v1027_v0 = vadd.f32 %v2038_v27, %v735_v52  ;;  %v641_v52 = vmul.f32 %v2157_v54, %v349_v44 }
  0x5c   : > { %1463 = vst [vmem:[%s1776_s26 + $0x240] sm:$0xff] %v867_v60  ;;  %v222_v60 = vld [vmem:[%s1756_s23 + $0x38] sm:$0xff] }
  0x5d   : > { %1464 = vst [vmem:[%s1776_s26 + $0x248] sm:$0xff] %v868_v62  ;;  %v237_v62 = vld [vmem:[%s1756_s23 + $0xb0] sm:$0xff]  ;;  %v514_v18 = vmul.f32 %v2164_v58, %v222_v60  ;;  %v530_v15 = vmul.f32 %v2164_v58, %v238_v14  ;;  %v546_v20 = vmul.f32 %v2164_v58, %v254_v12  ;;  %v562_v25 = vmul.f32 %v2164_v58, %v270_v19  ;;  %v382_v60 = vld [vmem:[%s1756_s23 + $0x538] sm:$0xff] }
  0x5e   : > { %1465 = vst [vmem:[%s1776_s26 + $0x250] sm:$0xff] %v883_v7  ;;  %v1028_v7 = vadd.f32 %v2045_v29, %v736_v56  ;;  %v529_v11 = vmul.f32 %v2157_v54, %v237_v62  ;;  %v578_v31 = vmul.f32 %v2164_v58, %v286_v23  ;;  %v594_v39 = vmul.f32 %v2164_v58, %v302_v38  ;;  %v397_v62 = vld [vmem:[%s1756_s23 + $0x5b0] sm:$0xff]  ;;  %v398_v14 = vld [vmem:[%s1756_s23 + $0x5b8] sm:$0xff] }
  0x5f   : > { %1466 = vst [vmem:[%s1776_s26 + $0x258] sm:$0xff] %v884_v10  ;;  %v1043_v10 = vadd.f32 %v2038_v27, %v751_v4  ;;  %v806_v27 = vadd.f32 %v2185_v8, %v514_v18  ;;  %v610_v49 = vmul.f32 %v2164_v58, %v318_v36  ;;  %v626_v3 = vmul.f32 %v2164_v58, %v334_v42  ;;  %v414_v12 = vld [vmem:[%s1756_s23 + $0x638] sm:$0xff]  ;;  %v2311_v36 = vld [vmem:[%s2898_s2 + $0x8] sm:$0xff] }
  0x60   : > { %1467 = vst [vmem:[%s1776_s26 + $0x340] sm:$0xff] %v899_v13  ;;  %v1044_v13 = vadd.f32 %v2045_v29, %v752_v5  ;;  %v821_v29 = vadd.f32 %v2178_v6, %v529_v11  ;;  %v642_v56 = vmul.f32 %v2164_v58, %v350_v2  ;;  %v657_v4 = vmul.f32 %v2157_v54, %v365_v50  ;;  %v430_v19 = vld [vmem:[%s1756_s23 + $0x6b8] sm:$0xff] }
  0x61   : > { %1468 = vst [vmem:[%s1776_s26 + $0x348] sm:$0xff] %v900_v17  ;;  %v545_v17 = vmul.f32 %v2157_v54, %v253_v9  ;;  %v658_v5 = vmul.f32 %v2164_v58, %v366_v53  ;;  %v674_v18 = vmul.f32 %v2164_v58, %v382_v60  ;;  %v413_v9 = vld [vmem:[%s1756_s23 + $0x630] sm:$0xff]  ;;  %v689_v11 = vmul.f32 %v2157_v54, %v397_v62  ;;  %v287_v60 = vld [vmem:[%s1756_s23 + $0x240] sm:$0xff] }
  0x62   : > { %1469 = vst [vmem:[%s1776_s26 + $0x350] sm:$0xff] %v915_v21  ;;  %v285_v21 = vld [vmem:[%s1756_s23 + $0x230] sm:$0xff]  ;;  %v721_v23 = vmul.f32 %v2157_v54, %v429_v16  ;;  %v722_v26 = vmul.f32 %v2164_v58, %v430_v19  ;;  %v2335_v2 = vperm.slane %v2311_v36, 1 }
  0x63   : > { %1470 = vst [vmem:[%s1776_s26 + $0x358] sm:$0xff] %v916_v24  ;;  %v822_v24 = vadd.f32 %v2185_v8, %v530_v15  ;;  %v577_v28 = vmul.f32 %v2157_v54, %v285_v21  ;;  %v690_v15 = vmul.f32 %v2164_v58, %v398_v14  ;;  %v445_v21 = vld [vmem:[%s1756_s23 + $0x730] sm:$0xff] }
  0x64   : > { %1471 = vst [vmem:[%s1776_s26 + $0x440] sm:$0xff] %v931_v34  ;;  %v837_v34 = vadd.f32 %v2178_v6, %v545_v17  ;;  %v705_v17 = vmul.f32 %v2157_v54, %v413_v9  ;;  %v737_v38 = vmul.f32 %v2157_v54, %v445_v21 }
  0x65   : > { %1472 = vst [vmem:[%s1776_s26 + $0x448] sm:$0xff] %v932_v30  ;;  %v838_v30 = vadd.f32 %v2185_v8, %v546_v20  ;;  %v706_v20 = vmul.f32 %v2164_v58, %v414_v12 }
  0x66   : > { %1473 = vst [vmem:[%s1776_s26 + $0x450] sm:$0xff] %v947_v33  ;;  %v853_v33 = vadd.f32 %v2178_v6, %v561_v22  ;;  %v981_v22 = vadd.f32 %v2178_v6, %v689_v11  ;;  %v319_v11 = vld [vmem:[%s1756_s23 + $0x340] sm:$0xff] }
  0x67   : > { %1474 = vst [vmem:[%s1776_s26 + $0x458] sm:$0xff] %v948_v37  ;;  %v854_v37 = vadd.f32 %v2185_v8, %v562_v25  ;;  %v982_v25 = vadd.f32 %v2185_v8, %v690_v15  ;;  %v998_v32 = vadd.f32 %v2185_v8, %v706_v20  ;;  %v320_v15 = vld [vmem:[%s1756_s23 + $0x348] sm:$0xff] }
  0x68   : > { %1475 = vst [vmem:[%s1776_s26 + $0x540] sm:$0xff] %v963_v41  ;;  %v869_v41 = vadd.f32 %v2178_v6, %v577_v28  ;;  %v997_v28 = vadd.f32 %v2178_v6, %v705_v17  ;;  %v335_v17 = vld [vmem:[%s1756_s23 + $0x3c0] sm:$0xff]  ;;  %v336_v20 = vld [vmem:[%s1756_s23 + $0x3c8] sm:$0xff] }
  0x69   : > { %1476 = vst [vmem:[%s1776_s26 + $0x548] sm:$0xff] %v964_v43  ;;  %v870_v43 = vadd.f32 %v2185_v8, %v578_v31 }
  0x6a   : > { %1477 = vst [vmem:[%s1776_s26 + $0x550] sm:$0xff] %v979_v45  ;;  %v885_v45 = vadd.f32 %v2178_v6, %v593_v35  ;;  %v223_v35 = vld [vmem:[%s1756_s23 + $0x40] sm:$0xff] }
  0x6b   : > { %1478 = vst [vmem:[%s1776_s26 + $0x558] sm:$0xff] %v980_v48  ;;  %v886_v48 = vadd.f32 %v2185_v8, %v594_v39  ;;  %v1013_v39 = vadd.f32 %v2178_v6, %v721_v23  ;;  %v351_v23 = vld [vmem:[%s1756_s23 + $0x440] sm:$0xff] }
  0x6c   : > { %1479 = vst [vmem:[%s1776_s26 + $0x640] sm:$0xff] %v995_v51  ;;  %v901_v51 = vadd.f32 %v2178_v6, %v609_v47  ;;  %v1014_v47 = vadd.f32 %v2185_v8, %v722_v26  ;;  %v352_v26 = vld [vmem:[%s1756_s23 + $0x448] sm:$0xff] }
  0x6d   : > { %1480 = vst [vmem:[%s1776_s26 + $0x648] sm:$0xff] %v996_v55  ;;  %v902_v55 = vadd.f32 %v2185_v8, %v610_v49  ;;  %v1029_v49 = vadd.f32 %v2178_v6, %v737_v38  ;;  %v367_v38 = vld [vmem:[%s1756_s23 + $0x4c0] sm:$0xff] }
  0x6e   : > { %1481 = vst [vmem:[%s1776_s26 + $0x650] sm:$0xff] %v1011_v59  ;;  %v917_v59 = vadd.f32 %v2178_v6, %v625_v46 }
  0x6f   : > { %1482 = vst [vmem:[%s1776_s26 + $0x658] sm:$0xff] %v1012_v61  ;;  %v918_v61 = vadd.f32 %v2185_v8, %v626_v3 }
  0x70   : > { %1483 = vst [vmem:[%s1776_s26 + $0x740] sm:$0xff] %v1027_v0  ;;  %v933_v0 = vadd.f32 %v2178_v6, %v641_v52 }
  0x71   : > { %1484 = vst [vmem:[%s1776_s26 + $0x748] sm:$0xff] %v1028_v7  ;;  %v934_v7 = vadd.f32 %v2185_v8, %v642_v56 }
  0x72   : > { %1485 = vst [vmem:[%s1776_s26 + $0x750] sm:$0xff] %v1043_v10  ;;  %v949_v10 = vadd.f32 %v2178_v6, %v657_v4 }
  0x73   : > { %1486 = vst [vmem:[%s1776_s26 + $0x758] sm:$0xff] %v1044_v13  ;;  %v950_v13 = vadd.f32 %v2185_v8, %v658_v5  ;;  %v288_v5 = vld [vmem:[%s1756_s23 + $0x248] sm:$0xff] }
  0x74   : > { %1487 = vst [vmem:[%s1776_s26 + $0x60] sm:$0xff] %v805_v1  ;;  %v965_v1 = vadd.f32 %v2178_v6, %v673_v63  ;;  %v303_v63 = vld [vmem:[%s1756_s23 + $0x2c0] sm:$0xff] }
  0x75   : > { %1488 = vst [vmem:[%s1776_s26 + $0x68] sm:$0xff] %v806_v27  ;;  %v966_v27 = vadd.f32 %v2185_v8, %v674_v18  ;;  %v304_v18 = vld [vmem:[%s1756_s23 + $0x2c8] sm:$0xff] }
  0x76   : > { %1489 = vst [vmem:[%s1776_s26 + $0x70] sm:$0xff] %v821_v29  ;;  %v2287_v29 = vld [vmem:[%s2897_s1 + $0x8] sm:$0xff] }
  0x77   : > { %1490 = vst [vmem:[%s1776_s26 + $0x78] sm:$0xff] %v822_v24  ;;  %v446_v24 = vld [vmem:[%s1756_s23 + $0x738] sm:$0xff]  ;;  %v2302_v31 = vperm.slane %v2287_v29, 0 }
  0x78   : > { %1491 = vst [vmem:[%s1776_s26 + $0x160] sm:$0xff] %v837_v34  ;;  %v461_v34 = vld [vmem:[%s1756_s23 + $0x7b0] sm:$0xff] }
  0x79   : > { %1492 = vst [vmem:[%s1776_s26 + $0x168] sm:$0xff] %v838_v30  ;;  %v462_v30 = vld [vmem:[%s1756_s23 + $0x7b8] sm:$0xff]  ;;  %v753_v40 = vmul.f32 %v2157_v54, %v461_v34  ;;  %v515_v44 = vmul.f32 %v2302_v31, %v223_v35  ;;  %v240_v54 = vld [vmem:[%s1756_s23 + $0xc8] sm:$0xff] }
  0x7a   : > { %1493 = vst [vmem:[%s1776_s26 + $0x170] sm:$0xff] %v853_v33  ;;  %v738_v33 = vmul.f32 %v2164_v58, %v446_v24  ;;  %v754_v42 = vmul.f32 %v2164_v58, %v462_v30 }
  0x7b   : > { %1494 = vst [vmem:[%s1776_s26 + $0x178] sm:$0xff] %v854_v37  ;;  %v2314_v37 = vperm.slane %v2287_v29, 1  ;;  %v1045_v3 = vadd.f32 %v2178_v6, %v753_v40  ;;  %v383_v40 = vld [vmem:[%s1756_s23 + $0x540] sm:$0xff] }
  0x7c   : > { %1495 = vst [vmem:[%s1776_s26 + $0x260] sm:$0xff] %v869_v41  ;;  %v224_v41 = vld [vmem:[%s1756_s23 + $0x48] sm:$0xff]  ;;  %v1030_v46 = vadd.f32 %v2185_v8, %v738_v33  ;;  %v1046_v52 = vadd.f32 %v2185_v8, %v754_v42 }
  0x7d   : > { %1496 = vst [vmem:[%s1776_s26 + $0x268] sm:$0xff] %v870_v43  ;;  %v239_v43 = vld [vmem:[%s1756_s23 + $0xc0] sm:$0xff]  ;;  %v516_v58 = vmul.f32 %v2314_v37, %v224_v41  ;;  %v532_v53 = vmul.f32 %v2314_v37, %v240_v54  ;;  %v368_v33 = vld [vmem:[%s1756_s23 + $0x4c8] sm:$0xff] }
  0x7e   : > { %1497 = vst [vmem:[%s1776_s26 + $0x270] sm:$0xff] %v885_v45  ;;  %v2328_v45 = vperm.slane %v2311_v36, 0  ;;  %v531_v50 = vmul.f32 %v2302_v31, %v239_v43  ;;  %v384_v42 = vld [vmem:[%s1756_s23 + $0x548] sm:$0xff] }
  0x7f   : > { %1498 = vst [vmem:[%s1776_s26 + $0x278] sm:$0xff] %v886_v48  ;;  %v255_v48 = vld [vmem:[%s1756_s23 + $0x140] sm:$0xff]  ;;  %v808_v6 = vadd.f32 %v2335_v2, %v516_v58  ;;  %v824_v62 = vadd.f32 %v2335_v2, %v532_v53  ;;  %v400_v58 = vld [vmem:[%s1756_s23 + $0x5c8] sm:$0xff] }
  0x80   : > { %1499 = vst [vmem:[%s1776_s26 + $0x360] sm:$0xff] %v901_v51  ;;  %v256_v51 = vld [vmem:[%s1756_s23 + $0x148] sm:$0xff]  ;;  %v807_v56 = vadd.f32 %v2328_v45, %v515_v44  ;;  %v547_v57 = vmul.f32 %v2302_v31, %v255_v48  ;;  %v823_v8 = vadd.f32 %v2328_v45, %v531_v50  ;;  %v399_v44 = vld [vmem:[%s1756_s23 + $0x5c0] sm:$0xff] }
  0x81   : > { %1500 = vst [vmem:[%s1776_s26 + $0x368] sm:$0xff] %v902_v55  ;;  %v271_v55 = vld [vmem:[%s1756_s23 + $0x1c0] sm:$0xff]  ;;  %v548_v4 = vmul.f32 %v2314_v37, %v256_v51  ;;  %v416_v53 = vld [vmem:[%s1756_s23 + $0x648] sm:$0xff] }
  0x82   : > { %1501 = vst [vmem:[%s1776_s26 + $0x370] sm:$0xff] %v917_v59  ;;  %v272_v59 = vld [vmem:[%s1756_s23 + $0x1c8] sm:$0xff]  ;;  %v839_v14 = vadd.f32 %v2328_v45, %v547_v57  ;;  %v415_v50 = vld [vmem:[%s1756_s23 + $0x640] sm:$0xff] }
  0x83   : > { %1502 = vst [vmem:[%s1776_s26 + $0x378] sm:$0xff] %v918_v61  ;;  %v563_v61 = vmul.f32 %v2302_v31, %v271_v55  ;;  %v840_v9 = vadd.f32 %v2335_v2, %v548_v4  ;;  %v431_v57 = vld [vmem:[%s1756_s23 + $0x6c0] sm:$0xff]  ;;  %v432_v4 = vld [vmem:[%s1756_s23 + $0x6c8] sm:$0xff] }
  0x84   : > { %1503 = vst [vmem:[%s1776_s26 + $0x460] sm:$0xff] %v933_v0  ;;  %v564_v0 = vmul.f32 %v2314_v37, %v272_v59 }
  0x85   : > { %1504 = vst [vmem:[%s1776_s26 + $0x468] sm:$0xff] %v934_v7  ;;  %v579_v7 = vmul.f32 %v2302_v31, %v287_v60  ;;  %v855_v12 = vadd.f32 %v2328_v45, %v563_v61  ;;  %v447_v61 = vld [vmem:[%s1756_s23 + $0x740] sm:$0xff] }
  0x86   : > { %1505 = vst [vmem:[%s1776_s26 + $0x470] sm:$0xff] %v949_v10  ;;  %v580_v10 = vmul.f32 %v2314_v37, %v288_v5  ;;  %v856_v16 = vadd.f32 %v2335_v2, %v564_v0  ;;  %v448_v0 = vld [vmem:[%s1756_s23 + $0x748] sm:$0xff] }
  0x87   : > { %1506 = vst [vmem:[%s1776_s26 + $0x478] sm:$0xff] %v950_v13  ;;  %v595_v13 = vmul.f32 %v2302_v31, %v303_v63  ;;  %v871_v19 = vadd.f32 %v2328_v45, %v579_v7  ;;  %v463_v7 = vld [vmem:[%s1756_s23 + $0x7c0] sm:$0xff] }
  0x88   : > { %1507 = vst [vmem:[%s1776_s26 + $0x560] sm:$0xff] %v965_v1  ;;  %v596_v1 = vmul.f32 %v2314_v37, %v304_v18  ;;  %v872_v21 = vadd.f32 %v2335_v2, %v580_v10  ;;  %v464_v10 = vld [vmem:[%s1756_s23 + $0x7c8] sm:$0xff] }
  0x89   : > { %1508 = vst [vmem:[%s1776_s26 + $0x568] sm:$0xff] %v966_v27  ;;  %v611_v27 = vmul.f32 %v2302_v31, %v319_v11  ;;  %v887_v24 = vadd.f32 %v2328_v45, %v595_v13  ;;  %v2447_v11 = vperm.slane %v2287_v29, 2  ;;  %v740_v13 = vmul.f32 %v2314_v37, %v448_v0 }
  0x8a   : > { %1509 = vst [vmem:[%s1776_s26 + $0x570] sm:$0xff] %v981_v22  ;;  %v612_v22 = vmul.f32 %v2314_v37, %v320_v15  ;;  %v888_v34 = vadd.f32 %v2335_v2, %v596_v1  ;;  %v225_v15 = vld [vmem:[%s1756_s23 + $0x50] sm:$0xff] }
  0x8b   : > { %1510 = vst [vmem:[%s1776_s26 + $0x578] sm:$0xff] %v982_v25  ;;  %v627_v25 = vmul.f32 %v2302_v31, %v335_v17  ;;  %v903_v30 = vadd.f32 %v2328_v45, %v611_v27  ;;  %v755_v17 = vmul.f32 %v2302_v31, %v463_v7 }
  0x8c   : > { %1511 = vst [vmem:[%s1776_s26 + $0x660] sm:$0xff] %v997_v28  ;;  %v628_v28 = vmul.f32 %v2314_v37, %v336_v20  ;;  %v904_v35 = vadd.f32 %v2335_v2, %v612_v22  ;;  %v756_v20 = vmul.f32 %v2314_v37, %v464_v10 }
  0x8d   : > { %1512 = vst [vmem:[%s1776_s26 + $0x668] sm:$0xff] %v998_v32  ;;  %v643_v32 = vmul.f32 %v2302_v31, %v351_v23  ;;  %v919_v41 = vadd.f32 %v2328_v45, %v627_v25  ;;  %v517_v23 = vmul.f32 %v2447_v11, %v225_v15  ;;  %v1032_v25 = vadd.f32 %v2335_v2, %v740_v13  ;;  %v370_v13 = vld [vmem:[%s1756_s23 + $0x4d8] sm:$0xff] }
  0x8e   : > { %1513 = vst [vmem:[%s1776_s26 + $0x670] sm:$0xff] %v1013_v39  ;;  %v644_v39 = vmul.f32 %v2314_v37, %v352_v26  ;;  %v920_v43 = vadd.f32 %v2335_v2, %v628_v28  ;;  %v2475_v26 = vperm.slane %v2311_v36, 3  ;;  %v1047_v28 = vadd.f32 %v2328_v45, %v755_v17  ;;  %v385_v17 = vld [vmem:[%s1756_s23 + $0x550] sm:$0xff] }
  0x8f   : > { %1514 = vst [vmem:[%s1776_s26 + $0x678] sm:$0xff] %v1014_v47  ;;  %v659_v47 = vmul.f32 %v2302_v31, %v367_v38  ;;  %v935_v54 = vadd.f32 %v2328_v45, %v643_v32  ;;  %v1048_v32 = vadd.f32 %v2335_v2, %v756_v20  ;;  %v386_v20 = vld [vmem:[%s1756_s23 + $0x558] sm:$0xff] }
  0x90   : > { %1515 = vst [vmem:[%s1776_s26 + $0x760] sm:$0xff] %v1029_v49  ;;  %v660_v49 = vmul.f32 %v2314_v37, %v368_v33  ;;  %v936_v48 = vadd.f32 %v2335_v2, %v644_v39 }
  0x91   : > { %1516 = vst [vmem:[%s1776_s26 + $0x768] sm:$0xff] %v1030_v46  ;;  %v675_v46 = vmul.f32 %v2302_v31, %v383_v40  ;;  %v951_v51 = vadd.f32 %v2328_v45, %v659_v47 }
  0x92   : > { %1517 = vst [vmem:[%s1776_s26 + $0x770] sm:$0xff] %v1045_v3  ;;  %v676_v3 = vmul.f32 %v2314_v37, %v384_v42  ;;  %v952_v55 = vadd.f32 %v2335_v2, %v660_v49  ;;  %v289_v42 = vld [vmem:[%s1756_s23 + $0x250] sm:$0xff]  ;;  %v290_v49 = vld [vmem:[%s1756_s23 + $0x258] sm:$0xff] }
  0x93   : > { %1518 = vst [vmem:[%s1776_s26 + $0x778] sm:$0xff] %v1046_v52  ;;  %v691_v52 = vmul.f32 %v2302_v31, %v399_v44  ;;  %v967_v59 = vadd.f32 %v2328_v45, %v675_v46  ;;  %v305_v46 = vld [vmem:[%s1756_s23 + $0x2d0] sm:$0xff] }
  0x94   : > { %1519 = vst [vmem:[%s1776_s26 + $0x80] sm:$0xff] %v807_v56  ;;  %v692_v56 = vmul.f32 %v2314_v37, %v400_v58  ;;  %v968_v60 = vadd.f32 %v2335_v2, %v676_v3  ;;  %v306_v3 = vld [vmem:[%s1756_s23 + $0x2d8] sm:$0xff] }
  0x95   : > { %1520 = vst [vmem:[%s1776_s26 + $0x88] sm:$0xff] %v808_v6  ;;  %v707_v6 = vmul.f32 %v2302_v31, %v415_v50  ;;  %v983_v5 = vadd.f32 %v2328_v45, %v691_v52  ;;  %v321_v52 = vld [vmem:[%s1756_s23 + $0x350] sm:$0xff] }
  0x96   : > { %1521 = vst [vmem:[%s1776_s26 + $0x90] sm:$0xff] %v823_v8  ;;  %v708_v8 = vmul.f32 %v2314_v37, %v416_v53  ;;  %v984_v63 = vadd.f32 %v2335_v2, %v692_v56  ;;  %v322_v56 = vld [vmem:[%s1756_s23 + $0x358] sm:$0xff] }
  0x97   : > { %1522 = vst [vmem:[%s1776_s26 + $0x98] sm:$0xff] %v824_v62  ;;  %v723_v62 = vmul.f32 %v2302_v31, %v431_v57  ;;  %v999_v18 = vadd.f32 %v2328_v45, %v707_v6  ;;  %v337_v6 = vld [vmem:[%s1756_s23 + $0x3d0] sm:$0xff] }
  0x98   : > { %1523 = vst [vmem:[%s1776_s26 + $0x180] sm:$0xff] %v839_v14  ;;  %v724_v14 = vmul.f32 %v2314_v37, %v432_v4 }
  0x99   : > { %1524 = vst [vmem:[%s1776_s26 + $0x188] sm:$0xff] %v840_v9  ;;  %v739_v9 = vmul.f32 %v2302_v31, %v447_v61  ;;  %v1015_v1 = vadd.f32 %v2328_v45, %v723_v62  ;;  %v242_v31 = vld [vmem:[%s1756_s23 + $0xd8] sm:$0xff]  ;;  %v353_v62 = vld [vmem:[%s1756_s23 + $0x450] sm:$0xff] }
  0x9a   : > { %1525 = vst [vmem:[%s1776_s26 + $0x190] sm:$0xff] %v855_v12  ;;  %v1000_v12 = vadd.f32 %v2335_v2, %v708_v8  ;;  %v1016_v27 = vadd.f32 %v2335_v2, %v724_v14  ;;  %v338_v8 = vld [vmem:[%s1756_s23 + $0x3d8] sm:$0xff] }
  0x9b   : > { %1526 = vst [vmem:[%s1776_s26 + $0x198] sm:$0xff] %v856_v16  ;;  %v2454_v16 = vperm.slane %v2287_v29, 3  ;;  %v1031_v22 = vadd.f32 %v2328_v45, %v739_v9  ;;  %v354_v14 = vld [vmem:[%s1756_s23 + $0x458] sm:$0xff]  ;;  %v369_v9 = vld [vmem:[%s1756_s23 + $0x4d0] sm:$0xff] }
  0x9c   : > { %1527 = vst [vmem:[%s1776_s26 + $0x280] sm:$0xff] %v871_v19  ;;  %v226_v19 = vld [vmem:[%s1756_s23 + $0x58] sm:$0xff] }
  0x9d   : > { %1528 = vst [vmem:[%s1776_s26 + $0x288] sm:$0xff] %v872_v21  ;;  %v241_v21 = vld [vmem:[%s1756_s23 + $0xd0] sm:$0xff]  ;;  %v518_v37 = vmul.f32 %v2454_v16, %v226_v19  ;;  %v534_v33 = vmul.f32 %v2454_v16, %v242_v31 }
  0x9e   : > { %1529 = vst [vmem:[%s1776_s26 + $0x290] sm:$0xff] %v887_v24  ;;  %v2468_v24 = vperm.slane %v2311_v36, 2  ;;  %v533_v38 = vmul.f32 %v2447_v11, %v241_v21 }
  0x9f   : > { %1530 = vst [vmem:[%s1776_s26 + $0x298] sm:$0xff] %v888_v34  ;;  %v257_v34 = vld [vmem:[%s1756_s23 + $0x150] sm:$0xff]  ;;  %v810_v45 = vadd.f32 %v2475_v26, %v518_v37  ;;  %v826_v44 = vadd.f32 %v2475_v26, %v534_v33  ;;  %v402_v37 = vld [vmem:[%s1756_s23 + $0x5d8] sm:$0xff] }
  0xa0   : > { %1531 = vst [vmem:[%s1776_s26 + $0x380] sm:$0xff] %v903_v30  ;;  %v258_v30 = vld [vmem:[%s1756_s23 + $0x158] sm:$0xff]  ;;  %v809_v39 = vadd.f32 %v2468_v24, %v517_v23  ;;  %v549_v40 = vmul.f32 %v2447_v11, %v257_v34  ;;  %v825_v2 = vadd.f32 %v2468_v24, %v533_v38  ;;  %v401_v23 = vld [vmem:[%s1756_s23 + $0x5d0] sm:$0xff] }
  0xa1   : > { %1532 = vst [vmem:[%s1776_s26 + $0x388] sm:$0xff] %v904_v35  ;;  %v273_v35 = vld [vmem:[%s1756_s23 + $0x1d0] sm:$0xff]  ;;  %v550_v47 = vmul.f32 %v2454_v16, %v258_v30  ;;  %v418_v33 = vld [vmem:[%s1756_s23 + $0x658] sm:$0xff] }
  0xa2   : > { %1533 = vst [vmem:[%s1776_s26 + $0x390] sm:$0xff] %v919_v41  ;;  %v274_v41 = vld [vmem:[%s1756_s23 + $0x1d8] sm:$0xff]  ;;  %v841_v58 = vadd.f32 %v2468_v24, %v549_v40  ;;  %v417_v38 = vld [vmem:[%s1756_s23 + $0x650] sm:$0xff] }
  0xa3   : > { %1534 = vst [vmem:[%s1776_s26 + $0x398] sm:$0xff] %v920_v43  ;;  %v565_v43 = vmul.f32 %v2447_v11, %v273_v35  ;;  %v842_v50 = vadd.f32 %v2475_v26, %v550_v47  ;;  %v433_v40 = vld [vmem:[%s1756_s23 + $0x6d0] sm:$0xff]  ;;  %v434_v47 = vld [vmem:[%s1756_s23 + $0x6d8] sm:$0xff] }
  0xa4   : > { %1535 = vst [vmem:[%s1776_s26 + $0x480] sm:$0xff] %v935_v54  ;;  %v566_v54 = vmul.f32 %v2454_v16, %v274_v41 }
  0xa5   : > { %1536 = vst [vmem:[%s1776_s26 + $0x488] sm:$0xff] %v936_v48  ;;  %v581_v48 = vmul.f32 %v2447_v11, %v289_v42  ;;  %v857_v53 = vadd.f32 %v2468_v24, %v565_v43  ;;  %v449_v43 = vld [vmem:[%s1756_s23 + $0x750] sm:$0xff] }
  0xa6   : > { %1537 = vst [vmem:[%s1776_s26 + $0x490] sm:$0xff] %v951_v51  ;;  %v582_v51 = vmul.f32 %v2454_v16, %v290_v49  ;;  %v858_v57 = vadd.f32 %v2475_v26, %v566_v54  ;;  %v450_v54 = vld [vmem:[%s1756_s23 + $0x758] sm:$0xff] }
  0xa7   : > { %1538 = vst [vmem:[%s1776_s26 + $0x498] sm:$0xff] %v952_v55  ;;  %v597_v55 = vmul.f32 %v2447_v11, %v305_v46  ;;  %v873_v4 = vadd.f32 %v2468_v24, %v581_v48  ;;  %v465_v48 = vld [vmem:[%s1756_s23 + $0x7d0] sm:$0xff] }
  0xa8   : > { %1539 = vst [vmem:[%s1776_s26 + $0x580] sm:$0xff] %v967_v59  ;;  %v598_v59 = vmul.f32 %v2454_v16, %v306_v3  ;;  %v874_v61 = vadd.f32 %v2475_v26, %v582_v51  ;;  %v466_v51 = vld [vmem:[%s1756_s23 + $0x7d8] sm:$0xff] }
  0xa9   : > { %1540 = vst [vmem:[%s1776_s26 + $0x588] sm:$0xff] %v968_v60  ;;  %v613_v60 = vmul.f32 %v2447_v11, %v321_v52  ;;  %v889_v0 = vadd.f32 %v2468_v24, %v597_v55  ;;  %v2587_v52 = vperm.slane %v2287_v29, 4  ;;  %v742_v55 = vmul.f32 %v2454_v16, %v450_v54 }
  0xaa   : > { %1541 = vst [vmem:[%s1776_s26 + $0x590] sm:$0xff] %v983_v5  ;;  %v614_v5 = vmul.f32 %v2454_v16, %v322_v56  ;;  %v890_v7 = vadd.f32 %v2475_v26, %v598_v59  ;;  %v227_v56 = vld [vmem:[%s1756_s23 + $0x60] sm:$0xff] }
  0xab   : > { %1542 = vst [vmem:[%s1776_s26 + $0x598] sm:$0xff] %v984_v63  ;;  %v629_v63 = vmul.f32 %v2447_v11, %v337_v6  ;;  %v905_v10 = vadd.f32 %v2468_v24, %v613_v60  ;;  %v757_v6 = vmul.f32 %v2447_v11, %v465_v48 }
  0xac   : > { %1543 = vst [vmem:[%s1776_s26 + $0x680] sm:$0xff] %v999_v18  ;;  %v630_v18 = vmul.f32 %v2454_v16, %v338_v8  ;;  %v906_v15 = vadd.f32 %v2475_v26, %v614_v5  ;;  %v758_v8 = vmul.f32 %v2454_v16, %v466_v51 }
  0xad   : > { %1544 = vst [vmem:[%s1776_s26 + $0x688] sm:$0xff] %v1000_v12  ;;  %v645_v12 = vmul.f32 %v2447_v11, %v353_v62  ;;  %v921_v19 = vadd.f32 %v2468_v24, %v629_v63  ;;  %v519_v62 = vmul.f32 %v2587_v52, %v227_v56  ;;  %v1034_v63 = vadd.f32 %v2475_v26, %v742_v55  ;;  %v372_v55 = vld [vmem:[%s1756_s23 + $0x4e8] sm:$0xff] }
  0xae   : > { %1545 = vst [vmem:[%s1776_s26 + $0x690] sm:$0xff] %v1015_v1  ;;  %v646_v1 = vmul.f32 %v2454_v16, %v354_v14  ;;  %v922_v21 = vadd.f32 %v2475_v26, %v630_v18  ;;  %v2615_v14 = vperm.slane %v2311_v36, 5  ;;  %v1049_v18 = vadd.f32 %v2468_v24, %v757_v6  ;;  %v387_v6 = vld [vmem:[%s1756_s23 + $0x560] sm:$0xff] }
  0xaf   : > { %1546 = vst [vmem:[%s1776_s26 + $0x698] sm:$0xff] %v1016_v27  ;;  %v661_v27 = vmul.f32 %v2447_v11, %v369_v9  ;;  %v937_v31 = vadd.f32 %v2468_v24, %v645_v12  ;;  %v1050_v12 = vadd.f32 %v2475_v26, %v758_v8  ;;  %v388_v8 = vld [vmem:[%s1756_s23 + $0x568] sm:$0xff] }
  0xb0   : > { %1547 = vst [vmem:[%s1776_s26 + $0x780] sm:$0xff] %v1031_v22  ;;  %v662_v22 = vmul.f32 %v2454_v16, %v370_v13  ;;  %v938_v34 = vadd.f32 %v2475_v26, %v646_v1 }
  0xb1   : > { %1548 = vst [vmem:[%s1776_s26 + $0x788] sm:$0xff] %v1032_v25  ;;  %v677_v25 = vmul.f32 %v2447_v11, %v385_v17  ;;  %v953_v30 = vadd.f32 %v2468_v24, %v661_v27 }
  0xb2   : > { %1549 = vst [vmem:[%s1776_s26 + $0x790] sm:$0xff] %v1047_v28  ;;  %v678_v28 = vmul.f32 %v2454_v16, %v386_v20  ;;  %v954_v35 = vadd.f32 %v2475_v26, %v662_v22  ;;  %v291_v20 = vld [vmem:[%s1756_s23 + $0x260] sm:$0xff]  ;;  %v292_v22 = vld [vmem:[%s1756_s23 + $0x268] sm:$0xff] }
  0xb3   : > { %1550 = vst [vmem:[%s1776_s26 + $0x798] sm:$0xff] %v1048_v32  ;;  %v693_v32 = vmul.f32 %v2447_v11, %v401_v23  ;;  %v969_v41 = vadd.f32 %v2468_v24, %v677_v25  ;;  %v307_v25 = vld [vmem:[%s1756_s23 + $0x2e0] sm:$0xff] }
  0xb4   : > { %1551 = vst [vmem:[%s1776_s26 + $0xa0] sm:$0xff] %v809_v39  ;;  %v694_v39 = vmul.f32 %v2454_v16, %v402_v37  ;;  %v970_v42 = vadd.f32 %v2475_v26, %v678_v28  ;;  %v308_v28 = vld [vmem:[%s1756_s23 + $0x2e8] sm:$0xff] }
  0xb5   : > { %1552 = vst [vmem:[%s1776_s26 + $0xa8] sm:$0xff] %v810_v45  ;;  %v709_v45 = vmul.f32 %v2447_v11, %v417_v38  ;;  %v985_v49 = vadd.f32 %v2468_v24, %v693_v32  ;;  %v323_v32 = vld [vmem:[%s1756_s23 + $0x360] sm:$0xff] }
  0xb6   : > { %1553 = vst [vmem:[%s1776_s26 + $0xb0] sm:$0xff] %v825_v2  ;;  %v710_v2 = vmul.f32 %v2454_v16, %v418_v33  ;;  %v986_v46 = vadd.f32 %v2475_v26, %v694_v39  ;;  %v324_v39 = vld [vmem:[%s1756_s23 + $0x368] sm:$0xff] }
  0xb7   : > { %1554 = vst [vmem:[%s1776_s26 + $0xb8] sm:$0xff] %v826_v44  ;;  %v725_v44 = vmul.f32 %v2447_v11, %v433_v40  ;;  %v1001_v3 = vadd.f32 %v2468_v24, %v709_v45  ;;  %v339_v45 = vld [vmem:[%s1756_s23 + $0x3e0] sm:$0xff] }
  0xb8   : > { %1555 = vst [vmem:[%s1776_s26 + $0x1a0] sm:$0xff] %v841_v58  ;;  %v726_v58 = vmul.f32 %v2454_v16, %v434_v47 }
  0xb9   : > { %1556 = vst [vmem:[%s1776_s26 + $0x1a8] sm:$0xff] %v842_v50  ;;  %v741_v50 = vmul.f32 %v2447_v11, %v449_v43  ;;  %v1017_v59 = vadd.f32 %v2468_v24, %v725_v44  ;;  %v244_v11 = vld [vmem:[%s1756_s23 + $0xe8] sm:$0xff]  ;;  %v355_v44 = vld [vmem:[%s1756_s23 + $0x460] sm:$0xff] }
  0xba   : > { %1557 = vst [vmem:[%s1776_s26 + $0x1b0] sm:$0xff] %v857_v53  ;;  %v1002_v53 = vadd.f32 %v2475_v26, %v710_v2  ;;  %v1018_v60 = vadd.f32 %v2475_v26, %v726_v58  ;;  %v340_v2 = vld [vmem:[%s1756_s23 + $0x3e8] sm:$0xff] }
  0xbb   : > { %1558 = vst [vmem:[%s1776_s26 + $0x1b8] sm:$0xff] %v858_v57  ;;  %v2594_v57 = vperm.slane %v2287_v29, 5  ;;  %v1033_v5 = vadd.f32 %v2468_v24, %v741_v50  ;;  %v356_v58 = vld [vmem:[%s1756_s23 + $0x468] sm:$0xff]  ;;  %v371_v50 = vld [vmem:[%s1756_s23 + $0x4e0] sm:$0xff] }
  0xbc   : > { %1559 = vst [vmem:[%s1776_s26 + $0x2a0] sm:$0xff] %v873_v4  ;;  %v228_v4 = vld [vmem:[%s1756_s23 + $0x68] sm:$0xff] }
  0xbd   : > { %1560 = vst [vmem:[%s1776_s26 + $0x2a8] sm:$0xff] %v874_v61  ;;  %v243_v61 = vld [vmem:[%s1756_s23 + $0xe0] sm:$0xff]  ;;  %v520_v16 = vmul.f32 %v2594_v57, %v228_v4  ;;  %v536_v13 = vmul.f32 %v2594_v57, %v244_v11 }
  0xbe   : > { %1561 = vst [vmem:[%s1776_s26 + $0x2b0] sm:$0xff] %v889_v0  ;;  %v2608_v0 = vperm.slane %v2311_v36, 4  ;;  %v535_v9 = vmul.f32 %v2587_v52, %v243_v61 }
  0xbf   : > { %1562 = vst [vmem:[%s1776_s26 + $0x2b8] sm:$0xff] %v890_v7  ;;  %v259_v7 = vld [vmem:[%s1756_s23 + $0x160] sm:$0xff]  ;;  %v812_v24 = vadd.f32 %v2615_v14, %v520_v16  ;;  %v828_v23 = vadd.f32 %v2615_v14, %v536_v13  ;;  %v404_v16 = vld [vmem:[%s1756_s23 + $0x5e8] sm:$0xff] }
  0xc0   : > { %1563 = vst [vmem:[%s1776_s26 + $0x3a0] sm:$0xff] %v905_v10  ;;  %v260_v10 = vld [vmem:[%s1756_s23 + $0x168] sm:$0xff]  ;;  %v811_v1 = vadd.f32 %v2608_v0, %v519_v62  ;;  %v551_v17 = vmul.f32 %v2587_v52, %v259_v7  ;;  %v827_v26 = vadd.f32 %v2608_v0, %v535_v9  ;;  %v403_v62 = vld [vmem:[%s1756_s23 + $0x5e0] sm:$0xff] }
  0xc1   : > { %1564 = vst [vmem:[%s1776_s26 + $0x3a8] sm:$0xff] %v906_v15  ;;  %v275_v15 = vld [vmem:[%s1756_s23 + $0x1e0] sm:$0xff]  ;;  %v552_v27 = vmul.f32 %v2594_v57, %v260_v10  ;;  %v420_v13 = vld [vmem:[%s1756_s23 + $0x668] sm:$0xff] }
  0xc2   : > { %1565 = vst [vmem:[%s1776_s26 + $0x3b0] sm:$0xff] %v921_v19  ;;  %v276_v19 = vld [vmem:[%s1756_s23 + $0x1e8] sm:$0xff]  ;;  %v843_v37 = vadd.f32 %v2608_v0, %v551_v17  ;;  %v419_v9 = vld [vmem:[%s1756_s23 + $0x660] sm:$0xff] }
  0xc3   : > { %1566 = vst [vmem:[%s1776_s26 + $0x3b8] sm:$0xff] %v922_v21  ;;  %v567_v21 = vmul.f32 %v2587_v52, %v275_v15  ;;  %v844_v38 = vadd.f32 %v2615_v14, %v552_v27  ;;  %v435_v17 = vld [vmem:[%s1756_s23 + $0x6e0] sm:$0xff]  ;;  %v436_v27 = vld [vmem:[%s1756_s23 + $0x6e8] sm:$0xff] }
  0xc4   : > { %1567 = vst [vmem:[%s1776_s26 + $0x4a0] sm:$0xff] %v937_v31  ;;  %v568_v31 = vmul.f32 %v2594_v57, %v276_v19 }
  0xc5   : > { %1568 = vst [vmem:[%s1776_s26 + $0x4a8] sm:$0xff] %v938_v34  ;;  %v583_v34 = vmul.f32 %v2587_v52, %v291_v20  ;;  %v859_v33 = vadd.f32 %v2608_v0, %v567_v21  ;;  %v451_v21 = vld [vmem:[%s1756_s23 + $0x760] sm:$0xff] }
  0xc6   : > { %1569 = vst [vmem:[%s1776_s26 + $0x4b0] sm:$0xff] %v953_v30  ;;  %v584_v30 = vmul.f32 %v2594_v57, %v292_v22  ;;  %v860_v40 = vadd.f32 %v2615_v14, %v568_v31  ;;  %v452_v31 = vld [vmem:[%s1756_s23 + $0x768] sm:$0xff] }
  0xc7   : > { %1570 = vst [vmem:[%s1776_s26 + $0x4b8] sm:$0xff] %v954_v35  ;;  %v599_v35 = vmul.f32 %v2587_v52, %v307_v25  ;;  %v875_v47 = vadd.f32 %v2608_v0, %v583_v34  ;;  %v467_v34 = vld [vmem:[%s1756_s23 + $0x7e0] sm:$0xff] }
  0xc8   : > { %1571 = vst [vmem:[%s1776_s26 + $0x5a0] sm:$0xff] %v969_v41  ;;  %v600_v41 = vmul.f32 %v2594_v57, %v308_v28  ;;  %v876_v43 = vadd.f32 %v2615_v14, %v584_v30  ;;  %v468_v30 = vld [vmem:[%s1756_s23 + $0x7e8] sm:$0xff] }
  0xc9   : > { %1572 = vst [vmem:[%s1776_s26 + $0x5a8] sm:$0xff] %v970_v42  ;;  %v615_v42 = vmul.f32 %v2587_v52, %v323_v32  ;;  %v891_v54 = vadd.f32 %v2608_v0, %v599_v35  ;;  %v2727_v32 = vperm.slane %v2287_v29, 6  ;;  %v744_v35 = vmul.f32 %v2594_v57, %v452_v31  ;;  %v358_v31 = vld [vmem:[%s1756_s23 + $0x478] sm:$0xff] }
  0xca   : > { %1573 = vst [vmem:[%s1776_s26 + $0x5b0] sm:$0xff] %v985_v49  ;;  %v616_v49 = vmul.f32 %v2594_v57, %v324_v39  ;;  %v892_v48 = vadd.f32 %v2615_v14, %v600_v41  ;;  %v229_v39 = vld [vmem:[%s1756_s23 + $0x70] sm:$0xff] }
  0xcb   : > { %1574 = vst [vmem:[%s1776_s26 + $0x5b8] sm:$0xff] %v986_v46  ;;  %v631_v46 = vmul.f32 %v2587_v52, %v339_v45  ;;  %v907_v51 = vadd.f32 %v2608_v0, %v615_v42  ;;  %v759_v45 = vmul.f32 %v2587_v52, %v467_v34  ;;  %v373_v34 = vld [vmem:[%s1756_s23 + $0x4f0] sm:$0xff] }
  0xcc   : > { %1575 = vst [vmem:[%s1776_s26 + $0x6a0] sm:$0xff] %v1001_v3  ;;  %v632_v3 = vmul.f32 %v2594_v57, %v340_v2  ;;  %v908_v56 = vadd.f32 %v2615_v14, %v616_v49  ;;  %v760_v2 = vmul.f32 %v2594_v57, %v468_v30  ;;  %v521_v49 = vmul.f32 %v2727_v32, %v229_v39  ;;  %v374_v30 = vld [vmem:[%s1756_s23 + $0x4f8] sm:$0xff]  ;;  %v389_v39 = vld [vmem:[%s1756_s23 + $0x570] sm:$0xff] }
  0xcd   : > { %1576 = vst [vmem:[%s1776_s26 + $0x6a8] sm:$0xff] %v1002_v53  ;;  %v647_v53 = vmul.f32 %v2587_v52, %v355_v44  ;;  %v923_v4 = vadd.f32 %v2608_v0, %v631_v46  ;;  %v2748_v44 = vperm.slane %v2311_v36, 6  ;;  %v2755_v46 = vperm.slane %v2311_v36, 7 }
  0xce   : > { %1577 = vst [vmem:[%s1776_s26 + $0x6b0] sm:$0xff] %v1017_v59  ;;  %v648_v59 = vmul.f32 %v2594_v57, %v356_v58  ;;  %v924_v61 = vadd.f32 %v2615_v14, %v632_v3  ;;  %v261_v58 = vld [vmem:[%s1756_s23 + $0x170] sm:$0xff] }
  0xcf   : > { %1578 = vst [vmem:[%s1776_s26 + $0x6b8] sm:$0xff] %v1018_v60  ;;  %v663_v60 = vmul.f32 %v2587_v52, %v371_v50  ;;  %v939_v11 = vadd.f32 %v2608_v0, %v647_v53  ;;  %v262_v50 = vld [vmem:[%s1756_s23 + $0x178] sm:$0xff]  ;;  %v813_v36 = vadd.f32 %v2748_v44, %v521_v49  ;;  %v681_v49 = vmul.f32 %v2727_v32, %v389_v39 }
  0xd0   : > { %1579 = vst [vmem:[%s1776_s26 + $0x7a0] sm:$0xff] %v1033_v5  ;;  %v664_v5 = vmul.f32 %v2594_v57, %v372_v55  ;;  %v940_v7 = vadd.f32 %v2615_v14, %v648_v59  ;;  %v277_v55 = vld [vmem:[%s1756_s23 + $0x1f0] sm:$0xff]  ;;  %v278_v59 = vld [vmem:[%s1756_s23 + $0x1f8] sm:$0xff] }
  0xd1   : > { %1580 = vst [vmem:[%s1776_s26 + $0x7a8] sm:$0xff] %v1034_v63  ;;  %v679_v63 = vmul.f32 %v2587_v52, %v387_v6  ;;  %v955_v10 = vadd.f32 %v2608_v0, %v663_v60  ;;  %v569_v60 = vmul.f32 %v2727_v32, %v277_v55  ;;  %v437_v55 = vld [vmem:[%s1756_s23 + $0x6f0] sm:$0xff] }
  0xd2   : > { %1581 = vst [vmem:[%s1776_s26 + $0x7b0] sm:$0xff] %v1049_v18  ;;  %v680_v18 = vmul.f32 %v2594_v57, %v388_v8  ;;  %v956_v15 = vadd.f32 %v2615_v14, %v664_v5  ;;  %v294_v8 = vld [vmem:[%s1756_s23 + $0x278] sm:$0xff] }
  0xd3   : > { %1582 = vst [vmem:[%s1776_s26 + $0x7b8] sm:$0xff] %v1050_v12  ;;  %v695_v12 = vmul.f32 %v2587_v52, %v403_v62  ;;  %v971_v19 = vadd.f32 %v2608_v0, %v679_v63  ;;  %v309_v62 = vld [vmem:[%s1756_s23 + $0x2f0] sm:$0xff] }
  0xd4   : > { %1583 = vst [vmem:[%s1776_s26 + $0xc0] sm:$0xff] %v811_v1  ;;  %v696_v1 = vmul.f32 %v2594_v57, %v404_v16  ;;  %v972_v20 = vadd.f32 %v2615_v14, %v680_v18  ;;  %v310_v16 = vld [vmem:[%s1756_s23 + $0x2f8] sm:$0xff] }
  0xd5   : > { %1584 = vst [vmem:[%s1776_s26 + $0xc8] sm:$0xff] %v812_v24  ;;  %v711_v24 = vmul.f32 %v2587_v52, %v419_v9  ;;  %v987_v22 = vadd.f32 %v2608_v0, %v695_v12  ;;  %v325_v9 = vld [vmem:[%s1756_s23 + $0x370] sm:$0xff]  ;;  %v601_v12 = vmul.f32 %v2727_v32, %v309_v62 }
  0xd6   : > { %1585 = vst [vmem:[%s1776_s26 + $0xd0] sm:$0xff] %v827_v26  ;;  %v712_v26 = vmul.f32 %v2594_v57, %v420_v13  ;;  %v988_v25 = vadd.f32 %v2615_v14, %v696_v1  ;;  %v326_v13 = vld [vmem:[%s1756_s23 + $0x378] sm:$0xff]  ;;  %v469_v62 = vld [vmem:[%s1756_s23 + $0x7f0] sm:$0xff] }
  0xd7   : > { %1586 = vst [vmem:[%s1776_s26 + $0xd8] sm:$0xff] %v828_v23  ;;  %v727_v23 = vmul.f32 %v2587_v52, %v435_v17  ;;  %v1003_v28 = vadd.f32 %v2608_v0, %v711_v24  ;;  %v341_v17 = vld [vmem:[%s1756_s23 + $0x3f0] sm:$0xff]  ;;  %v617_v24 = vmul.f32 %v2727_v32, %v325_v9 }
  0xd8   : > { %1587 = vst [vmem:[%s1776_s26 + $0x1c0] sm:$0xff] %v843_v37  ;;  %v728_v37 = vmul.f32 %v2594_v57, %v436_v27  ;;  %v342_v27 = vld [vmem:[%s1756_s23 + $0x3f8] sm:$0xff] }
  0xd9   : > { %1588 = vst [vmem:[%s1776_s26 + $0x1c8] sm:$0xff] %v844_v38  ;;  %v743_v38 = vmul.f32 %v2587_v52, %v451_v21  ;;  %v1019_v41 = vadd.f32 %v2608_v0, %v727_v23  ;;  %v246_v52 = vld [vmem:[%s1756_s23 + $0xf8] sm:$0xff]  ;;  %v357_v21 = vld [vmem:[%s1756_s23 + $0x470] sm:$0xff]  ;;  %v633_v23 = vmul.f32 %v2727_v32, %v341_v17 }
  0xda   : > { %1589 = vst [vmem:[%s1776_s26 + $0x1d0] sm:$0xff] %v859_v33  ;;  %v1004_v33 = vadd.f32 %v2615_v14, %v712_v26  ;;  %v1020_v42 = vadd.f32 %v2615_v14, %v728_v37 }
  0xdb   : > { %1590 = vst [vmem:[%s1776_s26 + $0x1d8] sm:$0xff] %v860_v40  ;;  %v2734_v40 = vperm.slane %v2287_v29, 7  ;;  %v1035_v29 = vadd.f32 %v2608_v0, %v743_v38  ;;  %v649_v38 = vmul.f32 %v2727_v32, %v357_v21 }
  0xdc   : > { %1591 = vst [vmem:[%s1776_s26 + $0x2c0] sm:$0xff] %v875_v47  ;;  %v230_v47 = vld [vmem:[%s1756_s23 + $0x78] sm:$0xff] }
  0xdd   : > { %1592 = vst [vmem:[%s1776_s26 + $0x2c8] sm:$0xff] %v876_v43  ;;  %v245_v43 = vld [vmem:[%s1756_s23 + $0xf0] sm:$0xff]  ;;  %v522_v57 = vmul.f32 %v2734_v40, %v230_v47  ;;  %v538_v53 = vmul.f32 %v2734_v40, %v246_v52  ;;  %v554_v6 = vmul.f32 %v2734_v40, %v262_v50  ;;  %v570_v5 = vmul.f32 %v2734_v40, %v278_v59  ;;  %v390_v47 = vld [vmem:[%s1756_s23 + $0x578] sm:$0xff] }
  0xde   : > { %1593 = vst [vmem:[%s1776_s26 + $0x2d0] sm:$0xff] %v891_v54  ;;  %v1036_v54 = vadd.f32 %v2615_v14, %v744_v35  ;;  %v537_v3 = vmul.f32 %v2727_v32, %v245_v43  ;;  %v586_v18 = vmul.f32 %v2734_v40, %v294_v8  ;;  %v602_v1 = vmul.f32 %v2734_v40, %v310_v16  ;;  %v405_v43 = vld [vmem:[%s1756_s23 + $0x5f0] sm:$0xff]  ;;  %v406_v52 = vld [vmem:[%s1756_s23 + $0x5f8] sm:$0xff] }
  0xdf   : > { %1594 = vst [vmem:[%s1776_s26 + $0x2d8] sm:$0xff] %v892_v48  ;;  %v1051_v48 = vadd.f32 %v2608_v0, %v759_v45  ;;  %v814_v0 = vadd.f32 %v2755_v46, %v522_v57  ;;  %v618_v26 = vmul.f32 %v2734_v40, %v326_v13  ;;  %v634_v37 = vmul.f32 %v2734_v40, %v342_v27  ;;  %v422_v50 = vld [vmem:[%s1756_s23 + $0x678] sm:$0xff] }
  0xe0   : > { %1595 = vst [vmem:[%s1776_s26 + $0x3c0] sm:$0xff] %v907_v51  ;;  %v1052_v51 = vadd.f32 %v2615_v14, %v760_v2  ;;  %v829_v14 = vadd.f32 %v2748_v44, %v537_v3  ;;  %v650_v35 = vmul.f32 %v2734_v40, %v358_v31  ;;  %v665_v45 = vmul.f32 %v2727_v32, %v373_v34  ;;  %v438_v59 = vld [vmem:[%s1756_s23 + $0x6f8] sm:$0xff] }
  0xe1   : > { %1596 = vst [vmem:[%s1776_s26 + $0x3c8] sm:$0xff] %v908_v56  ;;  %v553_v56 = vmul.f32 %v2727_v32, %v261_v58  ;;  %v666_v2 = vmul.f32 %v2734_v40, %v374_v30  ;;  %v682_v57 = vmul.f32 %v2734_v40, %v390_v47  ;;  %v421_v58 = vld [vmem:[%s1756_s23 + $0x670] sm:$0xff]  ;;  %v697_v3 = vmul.f32 %v2727_v32, %v405_v43  ;;  %v454_v8 = vld [vmem:[%s1756_s23 + $0x778] sm:$0xff] }
  0xe2   : > { %1597 = vst [vmem:[%s1776_s26 + $0x3d0] sm:$0xff] %v923_v4  ;;  %v293_v4 = vld [vmem:[%s1756_s23 + $0x270] sm:$0xff]  ;;  %v470_v16 = vld [vmem:[%s1756_s23 + $0x7f8] sm:$0xff] }
  0xe3   : > { %1598 = vst [vmem:[%s1776_s26 + $0x3d8] sm:$0xff] %v924_v61  ;;  %v830_v61 = vadd.f32 %v2755_v46, %v538_v53  ;;  %v585_v63 = vmul.f32 %v2727_v32, %v293_v4  ;;  %v698_v53 = vmul.f32 %v2734_v40, %v406_v52  ;;  %v453_v4 = vld [vmem:[%s1756_s23 + $0x770] sm:$0xff]  ;;  %v762_v13 = vmul.f32 %v2734_v40, %v470_v16 }
  0xe4   : > { %1599 = vst [vmem:[%s1776_s26 + $0x4c0] sm:$0xff] %v939_v11  ;;  %v845_v11 = vadd.f32 %v2748_v44, %v553_v56  ;;  %v713_v56 = vmul.f32 %v2727_v32, %v421_v58 }
  0xe5   : > { %1600 = vst [vmem:[%s1776_s26 + $0x4c8] sm:$0xff] %v940_v7  ;;  %v846_v7 = vadd.f32 %v2755_v46, %v554_v6  ;;  %v714_v6 = vmul.f32 %v2734_v40, %v422_v50 }
  0xe6   : > { %1601 = vst [vmem:[%s1776_s26 + $0x4d0] sm:$0xff] %v955_v10  ;;  %v861_v10 = vadd.f32 %v2748_v44, %v569_v60  ;;  %v729_v60 = vmul.f32 %v2727_v32, %v437_v55 }
  0xe7   : > { %1602 = vst [vmem:[%s1776_s26 + $0x4d8] sm:$0xff] %v956_v15  ;;  %v862_v15 = vadd.f32 %v2755_v46, %v570_v5  ;;  %v730_v5 = vmul.f32 %v2734_v40, %v438_v59 }
  0xe8   : > { %1603 = vst [vmem:[%s1776_s26 + $0x5c0] sm:$0xff] %v971_v19  ;;  %v877_v19 = vadd.f32 %v2748_v44, %v585_v63  ;;  %v745_v63 = vmul.f32 %v2727_v32, %v453_v4  ;;  %v1021_v9 = vadd.f32 %v2748_v44, %v729_v60 }
  0xe9   : > { %1604 = vst [vmem:[%s1776_s26 + $0x5c8] sm:$0xff] %v972_v20  ;;  %v878_v20 = vadd.f32 %v2755_v46, %v586_v18  ;;  %v746_v18 = vmul.f32 %v2734_v40, %v454_v8 }
  0xea   : > { %1605 = vst [vmem:[%s1776_s26 + $0x5d0] sm:$0xff] %v987_v22  ;;  %v893_v22 = vadd.f32 %v2748_v44, %v601_v12  ;;  %v1022_v12 = vadd.f32 %v2755_v46, %v730_v5 }
  0xeb   : > { %1606 = vst [vmem:[%s1776_s26 + $0x5d8] sm:$0xff] %v988_v25  ;;  %v894_v25 = vadd.f32 %v2755_v46, %v602_v1  ;;  %v1038_v1 = vadd.f32 %v2755_v46, %v746_v18 }
  0xec   : > { %1607 = vst [vmem:[%s1776_s26 + $0x6c0] sm:$0xff] %v1003_v28  ;;  %v909_v28 = vadd.f32 %v2748_v44, %v617_v24 }
  0xed   : > { %1608 = vst [vmem:[%s1776_s26 + $0x6c8] sm:$0xff] %v1004_v33  ;;  %v910_v33 = vadd.f32 %v2755_v46, %v618_v26 }
  0xee   : > { %1609 = vst [vmem:[%s1776_s26 + $0x6d0] sm:$0xff] %v1019_v41  ;;  %v925_v41 = vadd.f32 %v2748_v44, %v633_v23 }
  0xef   : > { %1610 = vst [vmem:[%s1776_s26 + $0x6d8] sm:$0xff] %v1020_v42  ;;  %v926_v42 = vadd.f32 %v2755_v46, %v634_v37 }
  0xf0   : > { %1611 = vst [vmem:[%s1776_s26 + $0x7c0] sm:$0xff] %v1035_v29  ;;  %v941_v29 = vadd.f32 %v2748_v44, %v649_v38 }
  0xf1   : > { %1612 = vst [vmem:[%s1776_s26 + $0x7c8] sm:$0xff] %v1036_v54  ;;  %v942_v54 = vadd.f32 %v2755_v46, %v650_v35 }
  0xf2   : > { %1613 = vst [vmem:[%s1776_s26 + $0x7d0] sm:$0xff] %v1051_v48  ;;  %v957_v48 = vadd.f32 %v2748_v44, %v665_v45 }
  0xf3   : > { %1614 = vst [vmem:[%s1776_s26 + $0x7d8] sm:$0xff] %v1052_v51  ;;  %v958_v51 = vadd.f32 %v2755_v46, %v666_v2 }
  0xf4   : > { %1615 = vst [vmem:[%s1776_s26 + $0xe0] sm:$0xff] %v813_v36  ;;  %v973_v36 = vadd.f32 %v2748_v44, %v681_v49 }
  0xf5   : > { %1616 = vst [vmem:[%s1776_s26 + $0xe8] sm:$0xff] %v814_v0  ;;  %v974_v0 = vadd.f32 %v2755_v46, %v682_v57 }
  0xf6   : > { %1617 = vst [vmem:[%s1776_s26 + $0xf0] sm:$0xff] %v829_v14  ;;  %v989_v14 = vadd.f32 %v2748_v44, %v697_v3 }
  0xf7   : > { %1618 = vst [vmem:[%s1776_s26 + $0xf8] sm:$0xff] %v830_v61  ;;  %v990_v61 = vadd.f32 %v2755_v46, %v698_v53 }
  0xf8   : > { %1619 = vst [vmem:[%s1776_s26 + $0x1e0] sm:$0xff] %v845_v11  ;;  %v1005_v11 = vadd.f32 %v2748_v44, %v713_v56 }
  0xf9   : > { %1620 = vst [vmem:[%s1776_s26 + $0x1e8] sm:$0xff] %v846_v7  ;;  %v1006_v7 = vadd.f32 %v2755_v46, %v714_v6 }
  0xfa   : > { %1621 = vst [vmem:[%s1776_s26 + $0x1f0] sm:$0xff] %v861_v10  ;;  %v761_v10 = vmul.f32 %v2727_v32, %v469_v62 }
  0xfb   : > { %1622 = vst [vmem:[%s1776_s26 + $0x1f8] sm:$0xff] %v862_v15  ;;  %v1037_v15 = vadd.f32 %v2748_v44, %v745_v63 }
  0xfc   : > { %1623 = vst [vmem:[%s1776_s26 + $0x2e0] sm:$0xff] %v877_v19  ;;  %v1053_v17 = vadd.f32 %v2748_v44, %v761_v10  ;;  %v1054_v19 = vadd.f32 %v2755_v46, %v762_v13 }
  0xfd   : > { %1624 = vst [vmem:[%s1776_s26 + $0x2e8] sm:$0xff] %v878_v20 }
  0xfe   : > { %1625 = vst [vmem:[%s1776_s26 + $0x2f0] sm:$0xff] %v893_v22 }
  0xff   : > { %1626 = vst [vmem:[%s1776_s26 + $0x2f8] sm:$0xff] %v894_v25 }
 0x100   : > { %1627 = vst [vmem:[%s1776_s26 + $0x3e0] sm:$0xff] %v909_v28 }
 0x101   : > { %1628 = vst [vmem:[%s1776_s26 + $0x3e8] sm:$0xff] %v910_v33 }
 0x102   : > { %1629 = vst [vmem:[%s1776_s26 + $0x3f0] sm:$0xff] %v925_v41 }
 0x103   : > { %1630 = vst [vmem:[%s1776_s26 + $0x3f8] sm:$0xff] %v926_v42 }
 0x104   : > { %1631 = vst [vmem:[%s1776_s26 + $0x4e0] sm:$0xff] %v941_v29 }
 0x105   : > { %1632 = vst [vmem:[%s1776_s26 + $0x4e8] sm:$0xff] %v942_v54 }
 0x106   : > { %1633 = vst [vmem:[%s1776_s26 + $0x4f0] sm:$0xff] %v957_v48 }
 0x107   : > { %1634 = vst [vmem:[%s1776_s26 + $0x4f8] sm:$0xff] %v958_v51 }
 0x108   : > { %1635 = vst [vmem:[%s1776_s26 + $0x5e0] sm:$0xff] %v973_v36 }
 0x109   : > { %1636 = vst [vmem:[%s1776_s26 + $0x5e8] sm:$0xff] %v974_v0 }
 0x10a   : > { %1637 = vst [vmem:[%s1776_s26 + $0x5f0] sm:$0xff] %v989_v14 }
 0x10b   : > { %1638 = vst [vmem:[%s1776_s26 + $0x5f8] sm:$0xff] %v990_v61 }
 0x10c   : > { %1639 = vst [vmem:[%s1776_s26 + $0x6e0] sm:$0xff] %v1005_v11 }
 0x10d   : > { %1640 = vst [vmem:[%s1776_s26 + $0x6e8] sm:$0xff] %v1006_v7 }
 0x10e   : > { %1641 = vst [vmem:[%s1776_s26 + $0x6f0] sm:$0xff] %v1021_v9 }
 0x10f   : > { %1642 = vst [vmem:[%s1776_s26 + $0x6f8] sm:$0xff] %v1022_v12 }
 0x110   : > { %1643 = vst [vmem:[%s1776_s26 + $0x7e0] sm:$0xff] %v1037_v15 }
 0x111   : > { %1644 = vst [vmem:[%s1776_s26 + $0x7e8] sm:$0xff] %v1038_v1 }
 0x112   : > { %1645 = vst [vmem:[%s1776_s26 + $0x7f0] sm:$0xff] %v1053_v17 }
 0x113   : > { %1646 = vst [vmem:[%s1776_s26 + $0x7f8] sm:$0xff] %v1054_v19 }
 0x114 PF: > { %s13_s14 = sadd.s32 1, %s1697_s14   ;;  %s2900_s12 = smov %s1693_s13 }
 0x115   : > { %p10_p5 = scmp.ge.s32.totalorder %s13_s14, 4   ;;  %s2901_s13 = smov %s2903_s15 }
 0x117   :  { %12 = sbr.rel (!%p10_p5) target bundleno = 2 (0x2), region = 69 }

</bundles_post_ra>
